<compile_context>
chip_gen: v7x
topology: tpu7x:2x2x1
jax: 0.10.0
libtpu: 0.0.40
codegen_flags: <defaults>
</compile_context>

<pallas_src>
import functools

import jax
import jax.numpy as jnp
from jax import lax
from jax.experimental import pallas as pl
from jax.experimental.pallas import tpu as pltpu

DILATIONS = (1, 2, 4, 8, 16)
NLAYERS = len(DILATIONS)
LANE = 128


def _alive_taps(d, H, W):
    """Taps of a dilated 3x3 kernel that read any real (non-halo) data."""
    return [(ky, kx) for ky in range(3) for kx in range(3)
            if abs(ky - 1) * d < H and abs(kx - 1) * d < W]


def _halo(H, W):
    """Smallest halo covering every off-centre alive tap of every layer."""
    p = 0
    for d in DILATIONS:
        if any(t != (1, 1) for t in _alive_taps(d, H, W)):
            p = max(p, d)
    return p


def _dblock_kernel(x_ref, w_ref, b_ref, out_ref, pad_ref, *, H, W, C, P):
    # x_ref:   (1, H, W, C)    f32  current batch element (C lane-padded)
    # w_ref:   (45, C, C)      bf16 resident weights; row li*9 + ky*3 + kx
    # b_ref:   (NLAYERS, C)    f32  biases (zero, per module init)
    # out_ref: (1, H, W, C)    f32  residual accumulator / output
    # pad_ref: (H+2P, W+2P, C) bf16 zero-padded chained activation (scratch)

    if P > 0:
        # Scratch persists across grid steps; the halo is never written again and
        # the interior is fully overwritten every layer -> zero it exactly once.
        @pl.when(pl.program_id(0) == 0)
        def _():
            pad_ref[...] = jnp.zeros_like(pad_ref)

    x = x_ref[0].astype(jnp.float32)                           # (H, W, C)
    out_ref[0] = x.astype(out_ref.dtype)                       # residual starts at x
    pad_ref[pl.ds(P, H), pl.ds(P, W), :] = x.astype(pad_ref.dtype)

    for li, d in enumerate(DILATIONS):
        # Taps reading only the zero halo are pruned at trace (Python) time.
        alive = _alive_taps(d, H, W)

        y = None
        for (ky, kx) in alive:
            h0 = P + (ky - 1) * d
            w0 = P + (kx - 1) * d
            win = pad_ref[pl.ds(h0, H), pl.ds(w0, W), :]       # (H, W, C) bf16
            part = jnp.dot(win.reshape(H * W, C),
                           w_ref[li * 9 + ky * 3 + kx],
                           preferred_element_type=jnp.float32)  # (H*W, C) f32
            y = part if y is None else y + part

        # Bias + ReLU in f32.
        y = jnp.maximum(y + b_ref[pl.ds(li, 1), :], 0.0)
        y3 = y.reshape(H, W, C)

        out_ref[0] = out_ref[0] + y3.astype(out_ref.dtype)
        if li + 1 < NLAYERS:
            # Next layer reads this activation through the pad-buffer windows.
            pad_ref[pl.ds(P, H), pl.ds(P, W), :] = y3.astype(pad_ref.dtype)


def dblock_more_dilate(x, weights, biases):
    """x: (B, H, W, C) NHWC.  weights: 5 x (3,3,C,C) HWIO.  biases: 5 x (C,)."""
    B, H, W, C = x.shape
    Cp = max(LANE, ((C + LANE - 1) // LANE) * LANE)   # lane-dense channel width
    P = _halo(H, W)
    Hp, Wp = H + 2 * P, W + 2 * P

    # Lane-pad channels with zeros: padded input channels are zero, padded weight
    # rows/columns are zero, so padded output channels are exactly zero.
    xp = x.astype(jnp.float32)
    if Cp != C:
        xp = jnp.pad(xp, ((0, 0), (0, 0), (0, 0), (0, Cp - C)))

    # (45, Cp, Cp) bf16: row li*9 + ky*3 + kx holds weights[li][ky, kx, :, :].
    wp = jnp.zeros((NLAYERS * 9, Cp, Cp), jnp.float32)
    for li, wk in enumerate(weights):
        wp = wp.at[li * 9:(li + 1) * 9, :C, :C].set(
            wk.astype(jnp.float32).reshape(9, C, C))
    wp = wp.astype(jnp.bfloat16)

    bp = jnp.zeros((NLAYERS, Cp), jnp.float32)
    for li, bk in enumerate(biases):
        bp = bp.at[li, :C].set(bk.astype(jnp.float32))

    kernel = functools.partial(_dblock_kernel, H=H, W=W, C=Cp, P=P)

    taps = sum(len(_alive_taps(d, H, W)) for d in DILATIONS)
    flops = 2 * B * H * W * Cp * Cp * taps
    bytes_accessed = int(2 * B * H * W * Cp * 4       # input + output (f32)
                         + wp.size * 2 + bp.size * 4)  # resident weights + bias

    # Real VMEM footprint (pad scratch + double-buffered in/out blocks + weights),
    # requested with headroom and capped well below v7x's 64 MiB physical VMEM.
    vmem_needed = (Hp * Wp * Cp * 2
                   + 2 * (H * W * Cp * 4) * 2
                   + 2 * wp.size * 2 + bp.size * 4)
    vmem_limit = int(min(48 * 1024 * 1024,
                         max(2 * vmem_needed, 16 * 1024 * 1024)))

    out = pl.pallas_call(
        kernel,
        out_shape=jax.ShapeDtypeStruct((B, H, W, Cp), jnp.float32),
        grid_spec=pltpu.PrefetchScalarGridSpec(
            num_scalar_prefetch=0,
            grid=(B,),
            in_specs=[
                pl.BlockSpec((1, H, W, Cp), lambda bi: (bi, 0, 0, 0)),
                # Constant index map -> weights fetched once, resident in VMEM.
                pl.BlockSpec((NLAYERS * 9, Cp, Cp), lambda bi: (0, 0, 0)),
                pl.BlockSpec((NLAYERS, Cp), lambda bi: (0, 0)),
            ],
            out_specs=pl.BlockSpec((1, H, W, Cp), lambda bi: (bi, 0, 0, 0)),
            scratch_shapes=[
                pltpu.VMEM((Hp, Wp, Cp), jnp.bfloat16),   # padded activation
            ],
        ),
        # "arbitrary" (not "parallel"): the one-time pad zero-fill is guarded by
        # program_id==0, which would miss the second core's scratch if the batch
        # axis were split across v7x's two TensorCores.
        compiler_params=pltpu.CompilerParams(
            dimension_semantics=("arbitrary",),
            vmem_limit_bytes=vmem_limit),
        cost_estimate=pl.CostEstimate(
            flops=flops, transcendentals=0, bytes_accessed=bytes_accessed),
    )(xp, wp, bp)

    return out[..., :C].astype(x.dtype)


def _ref_forward(x, weights, biases):
    """Pure-JAX reference (lax dilated conv) matching the kernel's precision:
    bf16 matmul operands, f32 accumulation / bias / ReLU / residual sum."""
    cur = x.astype(jnp.float32)
    acc = cur
    for wk, bk, d in zip(weights, biases, DILATIONS):
        y = lax.conv_general_dilated(
            cur.astype(jnp.bfloat16), wk.astype(jnp.bfloat16),
            window_strides=(1, 1),
            padding=((d, d), (d, d)),
            rhs_dilation=(d, d),
            dimension_numbers=("NHWC", "HWIO", "NHWC"),
            preferred_element_type=jnp.float32)
        y = jnp.maximum(y + bk.astype(jnp.float32), 0.0)
        cur = y
        acc = acc + y
    return acc.astype(x.dtype)


if __name__ == "__main__":
    B, C, H, W = 2, 4, 16, 16   # small shapes consistent with Conv2d(channel, channel, 3)

    key = jax.random.PRNGKey(0)
    kx, *kw = jax.random.split(key, 1 + NLAYERS)

    x = jax.random.normal(kx, (B, H, W, C), dtype=jnp.float32)
    # Deterministic synthetic conv weights (HWIO), roughly kaiming-scaled.
    fan_in = C * 3 * 3
    scale = (2.0 / fan_in) ** 0.5
    weights = [scale * jax.random.normal(k, (3, 3, C, C), dtype=jnp.float32)
               for k in kw]
    # Module init zeroes all conv biases.
    biases = [jnp.zeros((C,), dtype=jnp.float32) for _ in DILATIONS]

    out = dblock_more_dilate(x, weights, biases)
    out = jax.block_until_ready(out)

    ref = _ref_forward(x, weights, biases)
    assert out.shape == (B, H, W, C)
    err = float(jnp.max(jnp.abs(out - ref)))
    assert jnp.allclose(out, ref, rtol=2e-3, atol=2e-3), err

    print("KERNEL_OK")
</pallas_src>

<mosaic_0001>
module attributes {stable_mosaic.version = 11 : i64} {
  func.func @_dblock_kernel(%arg0: i32, %arg1: memref<1x16x16x128xf32, #tpu.memory_space<vmem>>, %arg2: memref<45x128x128xbf16, #tpu.memory_space<vmem>>, %arg3: memref<5x128xf32, #tpu.memory_space<vmem>>, %arg4: memref<1x16x16x128xf32, #tpu.memory_space<vmem>>, %arg5: memref<32x32x128xbf16, #tpu.memory_space<vmem>>) attributes {dimension_semantics = [#tpu.dimension_semantics<arbitrary>], iteration_bounds = array<i64: 2>, scalar_prefetch = 0 : i64, scratch_operands = 1 : i64, tpu.core_type = #tpu.core_type<tc>, window_params = [{transform_indices = @transform_0, window_bounds = array<i64: 1, 16, 16, 128>}, {pipeline_mode = #tpu.pipeline_mode<synchronous>, transform_indices = @transform_1, window_bounds = array<i64: 45, 128, 128>}, {pipeline_mode = #tpu.pipeline_mode<synchronous>, transform_indices = @transform_2, window_bounds = array<i64: 5, 128>}, {transform_indices = @transform_3, window_bounds = array<i64: 1, 16, 16, 128>}]} {
    %c0_i32 = arith.constant 0 : i32
    %0 = arith.cmpi eq, %arg0, %c0_i32 : i32
    %1 = arith.extui %0 : i1 to i32
    %c0_i32_0 = arith.constant 0 : i32
    %2 = arith.cmpi ne, %1, %c0_i32_0 : i32
    scf.if %2 {
      %cst_300 = arith.constant 0.000000e+00 : bf16
      %295 = vector.broadcast %cst_300 : bf16 to vector<32x32x128xbf16>
      %c0_301 = arith.constant 0 : index
      %c0_302 = arith.constant 0 : index
      %c0_303 = arith.constant 0 : index
      %296 = vector.load %arg5[%c0_301, %c0_302, %c0_303] : memref<32x32x128xbf16, #tpu.memory_space<vmem>>, vector<32x32x128xbf16>
      tpu.vector_store %arg5[%c0_301, %c0_302, %c0_303], %295 {strides = array<i32>} : memref<32x32x128xbf16, #tpu.memory_space<vmem>>, vector<32x32x128xbf16>,
    } else {
    }
    %c0 = arith.constant 0 : index
    %c0_1 = arith.constant 0 : index
    %c0_2 = arith.constant 0 : index
    %c0_3 = arith.constant 0 : index
    %3 = vector.load %arg1[%c0, %c0_1, %c0_2, %c0_3] : memref<1x16x16x128xf32, #tpu.memory_space<vmem>>, vector<1x16x16x128xf32>
    %4 = vector.shape_cast %3 : vector<1x16x16x128xf32> to vector<16x16x128xf32>
    %c0_4 = arith.constant 0 : index
    %c0_5 = arith.constant 0 : index
    %c0_6 = arith.constant 0 : index
    %c0_7 = arith.constant 0 : index
    %5 = vector.load %arg4[%c0_4, %c0_5, %c0_6, %c0_7] : memref<1x16x16x128xf32, #tpu.memory_space<vmem>>, vector<1x16x16x128xf32>
    %6 = vector.shape_cast %5 : vector<1x16x16x128xf32> to vector<16x16x128xf32>
    %7 = vector.shape_cast %4 : vector<16x16x128xf32> to vector<1x16x16x128xf32>
    tpu.vector_store %arg4[%c0_4, %c0_5, %c0_6, %c0_7], %7 {strides = array<i32>} : memref<1x16x16x128xf32, #tpu.memory_space<vmem>>, vector<1x16x16x128xf32>,
    %8 = arith.truncf %4 : vector<16x16x128xf32> to vector<16x16x128xbf16>
    %c8 = arith.constant 8 : index
    %c8_8 = arith.constant 8 : index
    %c0_9 = arith.constant 0 : index
    %9 = vector.load %arg5[%c8, %c8_8, %c0_9] : memref<32x32x128xbf16, #tpu.memory_space<vmem>>, vector<16x16x128xbf16>
    tpu.vector_store %arg5[%c8, %c8_8, %c0_9], %8 {strides = array<i32>} : memref<32x32x128xbf16, #tpu.memory_space<vmem>>, vector<16x16x128xbf16>,
    %c7 = arith.constant 7 : index
    %c7_10 = arith.constant 7 : index
    %c0_11 = arith.constant 0 : index
    %10 = vector.load %arg5[%c7, %c7_10, %c0_11] : memref<32x32x128xbf16, #tpu.memory_space<vmem>>, vector<16x16x128xbf16>
    %11 = vector.shape_cast %10 : vector<16x16x128xbf16> to vector<256x128xbf16>
    %c0_12 = arith.constant 0 : index
    %c0_13 = arith.constant 0 : index
    %c0_14 = arith.constant 0 : index
    %12 = vector.load %arg2[%c0_12, %c0_13, %c0_14] : memref<45x128x128xbf16, #tpu.memory_space<vmem>>, vector<1x128x128xbf16>
    %13 = vector.shape_cast %12 : vector<1x128x128xbf16> to vector<128x128xbf16>
    %cst = arith.constant dense<0.000000e+00> : vector<256x128xf32>
    %14 = tpu.matmul %11, %13, %cst {dimension_numbers = #tpu.dot_dimension_numbers<[1], [0], [0], [1], [0, 0, 1, 1], [], []>} : vector<256x128xbf16>, vector<128x128xbf16>, vector<256x128xf32> -> vector<256x128xf32>
    %c7_15 = arith.constant 7 : index
    %c8_16 = arith.constant 8 : index
    %c0_17 = arith.constant 0 : index
    %15 = vector.load %arg5[%c7_15, %c8_16, %c0_17] : memref<32x32x128xbf16, #tpu.memory_space<vmem>>, vector<16x16x128xbf16>
    %16 = vector.shape_cast %15 : vector<16x16x128xbf16> to vector<256x128xbf16>
    %c1 = arith.constant 1 : index
    %c0_18 = arith.constant 0 : index
    %c0_19 = arith.constant 0 : index
    %17 = vector.load %arg2[%c1, %c0_18, %c0_19] : memref<45x128x128xbf16, #tpu.memory_space<vmem>>, vector<1x128x128xbf16>
    %18 = vector.shape_cast %17 : vector<1x128x128xbf16> to vector<128x128xbf16>
    %cst_20 = arith.constant dense<0.000000e+00> : vector<256x128xf32>
    %19 = tpu.matmul %16, %18, %cst_20 {dimension_numbers = #tpu.dot_dimension_numbers<[1], [0], [0], [1], [0, 0, 1, 1], [], []>} : vector<256x128xbf16>, vector<128x128xbf16>, vector<256x128xf32> -> vector<256x128xf32>
    %20 = arith.addf %14, %19 : vector<256x128xf32>
    %c7_21 = arith.constant 7 : index
    %c9 = arith.constant 9 : index
    %c0_22 = arith.constant 0 : index
    %21 = vector.load %arg5[%c7_21, %c9, %c0_22] : memref<32x32x128xbf16, #tpu.memory_space<vmem>>, vector<16x16x128xbf16>
    %22 = vector.shape_cast %21 : vector<16x16x128xbf16> to vector<256x128xbf16>
    %c2 = arith.constant 2 : index
    %c0_23 = arith.constant 0 : index
    %c0_24 = arith.constant 0 : index
    %23 = vector.load %arg2[%c2, %c0_23, %c0_24] : memref<45x128x128xbf16, #tpu.memory_space<vmem>>, vector<1x128x128xbf16>
    %24 = vector.shape_cast %23 : vector<1x128x128xbf16> to vector<128x128xbf16>
    %cst_25 = arith.constant dense<0.000000e+00> : vector<256x128xf32>
    %25 = tpu.matmul %22, %24, %cst_25 {dimension_numbers = #tpu.dot_dimension_numbers<[1], [0], [0], [1], [0, 0, 1, 1], [], []>} : vector<256x128xbf16>, vector<128x128xbf16>, vector<256x128xf32> -> vector<256x128xf32>
    %26 = arith.addf %20, %25 : vector<256x128xf32>
    %c8_26 = arith.constant 8 : index
    %c7_27 = arith.constant 7 : index
    %c0_28 = arith.constant 0 : index
    %27 = vector.load %arg5[%c8_26, %c7_27, %c0_28] : memref<32x32x128xbf16, #tpu.memory_space<vmem>>, vector<16x16x128xbf16>
    %28 = vector.shape_cast %27 : vector<16x16x128xbf16> to vector<256x128xbf16>
    %c3 = arith.constant 3 : index
    %c0_29 = arith.constant 0 : index
    %c0_30 = arith.constant 0 : index
    %29 = vector.load %arg2[%c3, %c0_29, %c0_30] : memref<45x128x128xbf16, #tpu.memory_space<vmem>>, vector<1x128x128xbf16>
    %30 = vector.shape_cast %29 : vector<1x128x128xbf16> to vector<128x128xbf16>
    %cst_31 = arith.constant dense<0.000000e+00> : vector<256x128xf32>
    %31 = tpu.matmul %28, %30, %cst_31 {dimension_numbers = #tpu.dot_dimension_numbers<[1], [0], [0], [1], [0, 0, 1, 1], [], []>} : vector<256x128xbf16>, vector<128x128xbf16>, vector<256x128xf32> -> vector<256x128xf32>
    %32 = arith.addf %26, %31 : vector<256x128xf32>
    %c8_32 = arith.constant 8 : index
    %c8_33 = arith.constant 8 : index
    %c0_34 = arith.constant 0 : index
    %33 = vector.load %arg5[%c8_32, %c8_33, %c0_34] : memref<32x32x128xbf16, #tpu.memory_space<vmem>>, vector<16x16x128xbf16>
    %34 = vector.shape_cast %33 : vector<16x16x128xbf16> to vector<256x128xbf16>
    %c4 = arith.constant 4 : index
    %c0_35 = arith.constant 0 : index
    %c0_36 = arith.constant 0 : index
    %35 = vector.load %arg2[%c4, %c0_35, %c0_36] : memref<45x128x128xbf16, #tpu.memory_space<vmem>>, vector<1x128x128xbf16>
    %36 = vector.shape_cast %35 : vector<1x128x128xbf16> to vector<128x128xbf16>
    %cst_37 = arith.constant dense<0.000000e+00> : vector<256x128xf32>
    %37 = tpu.matmul %34, %36, %cst_37 {dimension_numbers = #tpu.dot_dimension_numbers<[1], [0], [0], [1], [0, 0, 1, 1], [], []>} : vector<256x128xbf16>, vector<128x128xbf16>, vector<256x128xf32> -> vector<256x128xf32>
    %38 = arith.addf %32, %37 : vector<256x128xf32>
    %c8_38 = arith.constant 8 : index
    %c9_39 = arith.constant 9 : index
    %c0_40 = arith.constant 0 : index
    %39 = vector.load %arg5[%c8_38, %c9_39, %c0_40] : memref<32x32x128xbf16, #tpu.memory_space<vmem>>, vector<16x16x128xbf16>
    %40 = vector.shape_cast %39 : vector<16x16x128xbf16> to vector<256x128xbf16>
    %c5 = arith.constant 5 : index
    %c0_41 = arith.constant 0 : index
    %c0_42 = arith.constant 0 : index
    %41 = vector.load %arg2[%c5, %c0_41, %c0_42] : memref<45x128x128xbf16, #tpu.memory_space<vmem>>, vector<1x128x128xbf16>
    %42 = vector.shape_cast %41 : vector<1x128x128xbf16> to vector<128x128xbf16>
    %cst_43 = arith.constant dense<0.000000e+00> : vector<256x128xf32>
    %43 = tpu.matmul %40, %42, %cst_43 {dimension_numbers = #tpu.dot_dimension_numbers<[1], [0], [0], [1], [0, 0, 1, 1], [], []>} : vector<256x128xbf16>, vector<128x128xbf16>, vector<256x128xf32> -> vector<256x128xf32>
    %44 = arith.addf %38, %43 : vector<256x128xf32>
    %c9_44 = arith.constant 9 : index
    %c7_45 = arith.constant 7 : index
    %c0_46 = arith.constant 0 : index
    %45 = vector.load %arg5[%c9_44, %c7_45, %c0_46] : memref<32x32x128xbf16, #tpu.memory_space<vmem>>, vector<16x16x128xbf16>
    %46 = vector.shape_cast %45 : vector<16x16x128xbf16> to vector<256x128xbf16>
    %c6 = arith.constant 6 : index
    %c0_47 = arith.constant 0 : index
    %c0_48 = arith.constant 0 : index
    %47 = vector.load %arg2[%c6, %c0_47, %c0_48] : memref<45x128x128xbf16, #tpu.memory_space<vmem>>, vector<1x128x128xbf16>
    %48 = vector.shape_cast %47 : vector<1x128x128xbf16> to vector<128x128xbf16>
    %cst_49 = arith.constant dense<0.000000e+00> : vector<256x128xf32>
    %49 = tpu.matmul %46, %48, %cst_49 {dimension_numbers = #tpu.dot_dimension_numbers<[1], [0], [0], [1], [0, 0, 1, 1], [], []>} : vector<256x128xbf16>, vector<128x128xbf16>, vector<256x128xf32> -> vector<256x128xf32>
    %50 = arith.addf %44, %49 : vector<256x128xf32>
    %c9_50 = arith.constant 9 : index
    %c8_51 = arith.constant 8 : index
    %c0_52 = arith.constant 0 : index
    %51 = vector.load %arg5[%c9_50, %c8_51, %c0_52] : memref<32x32x128xbf16, #tpu.memory_space<vmem>>, vector<16x16x128xbf16>
    %52 = vector.shape_cast %51 : vector<16x16x128xbf16> to vector<256x128xbf16>
    %c7_53 = arith.constant 7 : index
    %c0_54 = arith.constant 0 : index
    %c0_55 = arith.constant 0 : index
    %53 = vector.load %arg2[%c7_53, %c0_54, %c0_55] : memref<45x128x128xbf16, #tpu.memory_space<vmem>>, vector<1x128x128xbf16>
    %54 = vector.shape_cast %53 : vector<1x128x128xbf16> to vector<128x128xbf16>
    %cst_56 = arith.constant dense<0.000000e+00> : vector<256x128xf32>
    %55 = tpu.matmul %52, %54, %cst_56 {dimension_numbers = #tpu.dot_dimension_numbers<[1], [0], [0], [1], [0, 0, 1, 1], [], []>} : vector<256x128xbf16>, vector<128x128xbf16>, vector<256x128xf32> -> vector<256x128xf32>
    %56 = arith.addf %50, %55 : vector<256x128xf32>
    %c9_57 = arith.constant 9 : index
    %c9_58 = arith.constant 9 : index
    %c0_59 = arith.constant 0 : index
    %57 = vector.load %arg5[%c9_57, %c9_58, %c0_59] : memref<32x32x128xbf16, #tpu.memory_space<vmem>>, vector<16x16x128xbf16>
    %58 = vector.shape_cast %57 : vector<16x16x128xbf16> to vector<256x128xbf16>
    %c8_60 = arith.constant 8 : index
    %c0_61 = arith.constant 0 : index
    %c0_62 = arith.constant 0 : index
    %59 = vector.load %arg2[%c8_60, %c0_61, %c0_62] : memref<45x128x128xbf16, #tpu.memory_space<vmem>>, vector<1x128x128xbf16>
    %60 = vector.shape_cast %59 : vector<1x128x128xbf16> to vector<128x128xbf16>
    %cst_63 = arith.constant dense<0.000000e+00> : vector<256x128xf32>
    %61 = tpu.matmul %58, %60, %cst_63 {dimension_numbers = #tpu.dot_dimension_numbers<[1], [0], [0], [1], [0, 0, 1, 1], [], []>} : vector<256x128xbf16>, vector<128x128xbf16>, vector<256x128xf32> -> vector<256x128xf32>
    %62 = arith.addf %56, %61 : vector<256x128xf32>
    %c0_64 = arith.constant 0 : index
    %c0_65 = arith.constant 0 : index
    %63 = vector.load %arg3[%c0_64, %c0_65] : memref<5x128xf32, #tpu.memory_space<vmem>>, vector<1x128xf32>
    %64 = vector.broadcast %63 : vector<1x128xf32> to vector<256x128xf32>
    %65 = arith.addf %62, %64 : vector<256x128xf32>
    %cst_66 = arith.constant 0.000000e+00 : f32
    %66 = vector.broadcast %cst_66 : f32 to vector<256x128xf32>
    %67 = arith.maximumf %65, %66 : vector<256x128xf32>
    %68 = vector.shape_cast %67 : vector<256x128xf32> to vector<16x16x128xf32>
    %c0_67 = arith.constant 0 : index
    %c0_68 = arith.constant 0 : index
    %c0_69 = arith.constant 0 : index
    %c0_70 = arith.constant 0 : index
    %69 = vector.load %arg4[%c0_67, %c0_68, %c0_69, %c0_70] : memref<1x16x16x128xf32, #tpu.memory_space<vmem>>, vector<1x16x16x128xf32>
    %70 = vector.shape_cast %69 : vector<1x16x16x128xf32> to vector<16x16x128xf32>
    %71 = arith.addf %70, %68 : vector<16x16x128xf32>
    %c0_71 = arith.constant 0 : index
    %c0_72 = arith.constant 0 : index
    %c0_73 = arith.constant 0 : index
    %c0_74 = arith.constant 0 : index
    %72 = vector.load %arg4[%c0_71, %c0_72, %c0_73, %c0_74] : memref<1x16x16x128xf32, #tpu.memory_space<vmem>>, vector<1x16x16x128xf32>
    %73 = vector.shape_cast %72 : vector<1x16x16x128xf32> to vector<16x16x128xf32>
    %74 = vector.shape_cast %71 : vector<16x16x128xf32> to vector<1x16x16x128xf32>
    tpu.vector_store %arg4[%c0_71, %c0_72, %c0_73, %c0_74], %74 {strides = array<i32>} : memref<1x16x16x128xf32, #tpu.memory_space<vmem>>, vector<1x16x16x128xf32>,
    %75 = arith.truncf %68 : vector<16x16x128xf32> to vector<16x16x128xbf16>
    %c8_75 = arith.constant 8 : index
    %c8_76 = arith.constant 8 : index
    %c0_77 = arith.constant 0 : index
    %76 = vector.load %arg5[%c8_75, %c8_76, %c0_77] : memref<32x32x128xbf16, #tpu.memory_space<vmem>>, vector<16x16x128xbf16>
    tpu.vector_store %arg5[%c8_75, %c8_76, %c0_77], %75 {strides = array<i32>} : memref<32x32x128xbf16, #tpu.memory_space<vmem>>, vector<16x16x128xbf16>,
    %c6_78 = arith.constant 6 : index
    %c6_79 = arith.constant 6 : index
    %c0_80 = arith.constant 0 : index
    %77 = vector.load %arg5[%c6_78, %c6_79, %c0_80] : memref<32x32x128xbf16, #tpu.memory_space<vmem>>, vector<16x16x128xbf16>
    %78 = vector.shape_cast %77 : vector<16x16x128xbf16> to vector<256x128xbf16>
    %c9_81 = arith.constant 9 : index
    %c0_82 = arith.constant 0 : index
    %c0_83 = arith.constant 0 : index
    %79 = vector.load %arg2[%c9_81, %c0_82, %c0_83] : memref<45x128x128xbf16, #tpu.memory_space<vmem>>, vector<1x128x128xbf16>
    %80 = vector.shape_cast %79 : vector<1x128x128xbf16> to vector<128x128xbf16>
    %cst_84 = arith.constant dense<0.000000e+00> : vector<256x128xf32>
    %81 = tpu.matmul %78, %80, %cst_84 {dimension_numbers = #tpu.dot_dimension_numbers<[1], [0], [0], [1], [0, 0, 1, 1], [], []>} : vector<256x128xbf16>, vector<128x128xbf16>, vector<256x128xf32> -> vector<256x128xf32>
    %c6_85 = arith.constant 6 : index
    %c8_86 = arith.constant 8 : index
    %c0_87 = arith.constant 0 : index
    %82 = vector.load %arg5[%c6_85, %c8_86, %c0_87] : memref<32x32x128xbf16, #tpu.memory_space<vmem>>, vector<16x16x128xbf16>
    %83 = vector.shape_cast %82 : vector<16x16x128xbf16> to vector<256x128xbf16>
    %c10 = arith.constant 10 : index
    %c0_88 = arith.constant 0 : index
    %c0_89 = arith.constant 0 : index
    %84 = vector.load %arg2[%c10, %c0_88, %c0_89] : memref<45x128x128xbf16, #tpu.memory_space<vmem>>, vector<1x128x128xbf16>
    %85 = vector.shape_cast %84 : vector<1x128x128xbf16> to vector<128x128xbf16>
    %cst_90 = arith.constant dense<0.000000e+00> : vector<256x128xf32>
    %86 = tpu.matmul %83, %85, %cst_90 {dimension_numbers = #tpu.dot_dimension_numbers<[1], [0], [0], [1], [0, 0, 1, 1], [], []>} : vector<256x128xbf16>, vector<128x128xbf16>, vector<256x128xf32> -> vector<256x128xf32>
    %87 = arith.addf %81, %86 : vector<256x128xf32>
    %c6_91 = arith.constant 6 : index
    %c10_92 = arith.constant 10 : index
    %c0_93 = arith.constant 0 : index
    %88 = vector.load %arg5[%c6_91, %c10_92, %c0_93] : memref<32x32x128xbf16, #tpu.memory_space<vmem>>, vector<16x16x128xbf16>
    %89 = vector.shape_cast %88 : vector<16x16x128xbf16> to vector<256x128xbf16>
    %c11 = arith.constant 11 : index
    %c0_94 = arith.constant 0 : index
    %c0_95 = arith.constant 0 : index
    %90 = vector.load %arg2[%c11, %c0_94, %c0_95] : memref<45x128x128xbf16, #tpu.memory_space<vmem>>, vector<1x128x128xbf16>
    %91 = vector.shape_cast %90 : vector<1x128x128xbf16> to vector<128x128xbf16>
    %cst_96 = arith.constant dense<0.000000e+00> : vector<256x128xf32>
    %92 = tpu.matmul %89, %91, %cst_96 {dimension_numbers = #tpu.dot_dimension_numbers<[1], [0], [0], [1], [0, 0, 1, 1], [], []>} : vector<256x128xbf16>, vector<128x128xbf16>, vector<256x128xf32> -> vector<256x128xf32>
    %93 = arith.addf %87, %92 : vector<256x128xf32>
    %c8_97 = arith.constant 8 : index
    %c6_98 = arith.constant 6 : index
    %c0_99 = arith.constant 0 : index
    %94 = vector.load %arg5[%c8_97, %c6_98, %c0_99] : memref<32x32x128xbf16, #tpu.memory_space<vmem>>, vector<16x16x128xbf16>
    %95 = vector.shape_cast %94 : vector<16x16x128xbf16> to vector<256x128xbf16>
    %c12 = arith.constant 12 : index
    %c0_100 = arith.constant 0 : index
    %c0_101 = arith.constant 0 : index
    %96 = vector.load %arg2[%c12, %c0_100, %c0_101] : memref<45x128x128xbf16, #tpu.memory_space<vmem>>, vector<1x128x128xbf16>
    %97 = vector.shape_cast %96 : vector<1x128x128xbf16> to vector<128x128xbf16>
    %cst_102 = arith.constant dense<0.000000e+00> : vector<256x128xf32>
    %98 = tpu.matmul %95, %97, %cst_102 {dimension_numbers = #tpu.dot_dimension_numbers<[1], [0], [0], [1], [0, 0, 1, 1], [], []>} : vector<256x128xbf16>, vector<128x128xbf16>, vector<256x128xf32> -> vector<256x128xf32>
    %99 = arith.addf %93, %98 : vector<256x128xf32>
    %c8_103 = arith.constant 8 : index
    %c8_104 = arith.constant 8 : index
    %c0_105 = arith.constant 0 : index
    %100 = vector.load %arg5[%c8_103, %c8_104, %c0_105] : memref<32x32x128xbf16, #tpu.memory_space<vmem>>, vector<16x16x128xbf16>
    %101 = vector.shape_cast %100 : vector<16x16x128xbf16> to vector<256x128xbf16>
    %c13 = arith.constant 13 : index
    %c0_106 = arith.constant 0 : index
    %c0_107 = arith.constant 0 : index
    %102 = vector.load %arg2[%c13, %c0_106, %c0_107] : memref<45x128x128xbf16, #tpu.memory_space<vmem>>, vector<1x128x128xbf16>
    %103 = vector.shape_cast %102 : vector<1x128x128xbf16> to vector<128x128xbf16>
    %cst_108 = arith.constant dense<0.000000e+00> : vector<256x128xf32>
    %104 = tpu.matmul %101, %103, %cst_108 {dimension_numbers = #tpu.dot_dimension_numbers<[1], [0], [0], [1], [0, 0, 1, 1], [], []>} : vector<256x128xbf16>, vector<128x128xbf16>, vector<256x128xf32> -> vector<256x128xf32>
    %105 = arith.addf %99, %104 : vector<256x128xf32>
    %c8_109 = arith.constant 8 : index
    %c10_110 = arith.constant 10 : index
    %c0_111 = arith.constant 0 : index
    %106 = vector.load %arg5[%c8_109, %c10_110, %c0_111] : memref<32x32x128xbf16, #tpu.memory_space<vmem>>, vector<16x16x128xbf16>
    %107 = vector.shape_cast %106 : vector<16x16x128xbf16> to vector<256x128xbf16>
    %c14 = arith.constant 14 : index
    %c0_112 = arith.constant 0 : index
    %c0_113 = arith.constant 0 : index
    %108 = vector.load %arg2[%c14, %c0_112, %c0_113] : memref<45x128x128xbf16, #tpu.memory_space<vmem>>, vector<1x128x128xbf16>
    %109 = vector.shape_cast %108 : vector<1x128x128xbf16> to vector<128x128xbf16>
    %cst_114 = arith.constant dense<0.000000e+00> : vector<256x128xf32>
    %110 = tpu.matmul %107, %109, %cst_114 {dimension_numbers = #tpu.dot_dimension_numbers<[1], [0], [0], [1], [0, 0, 1, 1], [], []>} : vector<256x128xbf16>, vector<128x128xbf16>, vector<256x128xf32> -> vector<256x128xf32>
    %111 = arith.addf %105, %110 : vector<256x128xf32>
    %c10_115 = arith.constant 10 : index
    %c6_116 = arith.constant 6 : index
    %c0_117 = arith.constant 0 : index
    %112 = vector.load %arg5[%c10_115, %c6_116, %c0_117] : memref<32x32x128xbf16, #tpu.memory_space<vmem>>, vector<16x16x128xbf16>
    %113 = vector.shape_cast %112 : vector<16x16x128xbf16> to vector<256x128xbf16>
    %c15 = arith.constant 15 : index
    %c0_118 = arith.constant 0 : index
    %c0_119 = arith.constant 0 : index
    %114 = vector.load %arg2[%c15, %c0_118, %c0_119] : memref<45x128x128xbf16, #tpu.memory_space<vmem>>, vector<1x128x128xbf16>
    %115 = vector.shape_cast %114 : vector<1x128x128xbf16> to vector<128x128xbf16>
    %cst_120 = arith.constant dense<0.000000e+00> : vector<256x128xf32>
    %116 = tpu.matmul %113, %115, %cst_120 {dimension_numbers = #tpu.dot_dimension_numbers<[1], [0], [0], [1], [0, 0, 1, 1], [], []>} : vector<256x128xbf16>, vector<128x128xbf16>, vector<256x128xf32> -> vector<256x128xf32>
    %117 = arith.addf %111, %116 : vector<256x128xf32>
    %c10_121 = arith.constant 10 : index
    %c8_122 = arith.constant 8 : index
    %c0_123 = arith.constant 0 : index
    %118 = vector.load %arg5[%c10_121, %c8_122, %c0_123] : memref<32x32x128xbf16, #tpu.memory_space<vmem>>, vector<16x16x128xbf16>
    %119 = vector.shape_cast %118 : vector<16x16x128xbf16> to vector<256x128xbf16>
    %c16 = arith.constant 16 : index
    %c0_124 = arith.constant 0 : index
    %c0_125 = arith.constant 0 : index
    %120 = vector.load %arg2[%c16, %c0_124, %c0_125] : memref<45x128x128xbf16, #tpu.memory_space<vmem>>, vector<1x128x128xbf16>
    %121 = vector.shape_cast %120 : vector<1x128x128xbf16> to vector<128x128xbf16>
    %cst_126 = arith.constant dense<0.000000e+00> : vector<256x128xf32>
    %122 = tpu.matmul %119, %121, %cst_126 {dimension_numbers = #tpu.dot_dimension_numbers<[1], [0], [0], [1], [0, 0, 1, 1], [], []>} : vector<256x128xbf16>, vector<128x128xbf16>, vector<256x128xf32> -> vector<256x128xf32>
    %123 = arith.addf %117, %122 : vector<256x128xf32>
    %c10_127 = arith.constant 10 : index
    %c10_128 = arith.constant 10 : index
    %c0_129 = arith.constant 0 : index
    %124 = vector.load %arg5[%c10_127, %c10_128, %c0_129] : memref<32x32x128xbf16, #tpu.memory_space<vmem>>, vector<16x16x128xbf16>
    %125 = vector.shape_cast %124 : vector<16x16x128xbf16> to vector<256x128xbf16>
    %c17 = arith.constant 17 : index
    %c0_130 = arith.constant 0 : index
    %c0_131 = arith.constant 0 : index
    %126 = vector.load %arg2[%c17, %c0_130, %c0_131] : memref<45x128x128xbf16, #tpu.memory_space<vmem>>, vector<1x128x128xbf16>
    %127 = vector.shape_cast %126 : vector<1x128x128xbf16> to vector<128x128xbf16>
    %cst_132 = arith.constant dense<0.000000e+00> : vector<256x128xf32>
    %128 = tpu.matmul %125, %127, %cst_132 {dimension_numbers = #tpu.dot_dimension_numbers<[1], [0], [0], [1], [0, 0, 1, 1], [], []>} : vector<256x128xbf16>, vector<128x128xbf16>, vector<256x128xf32> -> vector<256x128xf32>
    %129 = arith.addf %123, %128 : vector<256x128xf32>
    %c1_133 = arith.constant 1 : index
    %c0_134 = arith.constant 0 : index
    %130 = vector.load %arg3[%c1_133, %c0_134] : memref<5x128xf32, #tpu.memory_space<vmem>>, vector<1x128xf32>
    %131 = vector.broadcast %130 : vector<1x128xf32> to vector<256x128xf32>
    %132 = arith.addf %129, %131 : vector<256x128xf32>
    %cst_135 = arith.constant 0.000000e+00 : f32
    %133 = vector.broadcast %cst_135 : f32 to vector<256x128xf32>
    %134 = arith.maximumf %132, %133 : vector<256x128xf32>
    %135 = vector.shape_cast %134 : vector<256x128xf32> to vector<16x16x128xf32>
    %c0_136 = arith.constant 0 : index
    %c0_137 = arith.constant 0 : index
    %c0_138 = arith.constant 0 : index
    %c0_139 = arith.constant 0 : index
    %136 = vector.load %arg4[%c0_136, %c0_137, %c0_138, %c0_139] : memref<1x16x16x128xf32, #tpu.memory_space<vmem>>, vector<1x16x16x128xf32>
    %137 = vector.shape_cast %136 : vector<1x16x16x128xf32> to vector<16x16x128xf32>
    %138 = arith.addf %137, %135 : vector<16x16x128xf32>
    %c0_140 = arith.constant 0 : index
    %c0_141 = arith.constant 0 : index
    %c0_142 = arith.constant 0 : index
    %c0_143 = arith.constant 0 : index
    %139 = vector.load %arg4[%c0_140, %c0_141, %c0_142, %c0_143] : memref<1x16x16x128xf32, #tpu.memory_space<vmem>>, vector<1x16x16x128xf32>
    %140 = vector.shape_cast %139 : vector<1x16x16x128xf32> to vector<16x16x128xf32>
    %141 = vector.shape_cast %138 : vector<16x16x128xf32> to vector<1x16x16x128xf32>
    tpu.vector_store %arg4[%c0_140, %c0_141, %c0_142, %c0_143], %141 {strides = array<i32>} : memref<1x16x16x128xf32, #tpu.memory_space<vmem>>, vector<1x16x16x128xf32>,
    %142 = arith.truncf %135 : vector<16x16x128xf32> to vector<16x16x128xbf16>
    %c8_144 = arith.constant 8 : index
    %c8_145 = arith.constant 8 : index
    %c0_146 = arith.constant 0 : index
    %143 = vector.load %arg5[%c8_144, %c8_145, %c0_146] : memref<32x32x128xbf16, #tpu.memory_space<vmem>>, vector<16x16x128xbf16>
    tpu.vector_store %arg5[%c8_144, %c8_145, %c0_146], %142 {strides = array<i32>} : memref<32x32x128xbf16, #tpu.memory_space<vmem>>, vector<16x16x128xbf16>,
    %c4_147 = arith.constant 4 : index
    %c4_148 = arith.constant 4 : index
    %c0_149 = arith.constant 0 : index
    %144 = vector.load %arg5[%c4_147, %c4_148, %c0_149] : memref<32x32x128xbf16, #tpu.memory_space<vmem>>, vector<16x16x128xbf16>
    %145 = vector.shape_cast %144 : vector<16x16x128xbf16> to vector<256x128xbf16>
    %c18 = arith.constant 18 : index
    %c0_150 = arith.constant 0 : index
    %c0_151 = arith.constant 0 : index
    %146 = vector.load %arg2[%c18, %c0_150, %c0_151] : memref<45x128x128xbf16, #tpu.memory_space<vmem>>, vector<1x128x128xbf16>
    %147 = vector.shape_cast %146 : vector<1x128x128xbf16> to vector<128x128xbf16>
    %cst_152 = arith.constant dense<0.000000e+00> : vector<256x128xf32>
    %148 = tpu.matmul %145, %147, %cst_152 {dimension_numbers = #tpu.dot_dimension_numbers<[1], [0], [0], [1], [0, 0, 1, 1], [], []>} : vector<256x128xbf16>, vector<128x128xbf16>, vector<256x128xf32> -> vector<256x128xf32>
    %c4_153 = arith.constant 4 : index
    %c8_154 = arith.constant 8 : index
    %c0_155 = arith.constant 0 : index
    %149 = vector.load %arg5[%c4_153, %c8_154, %c0_155] : memref<32x32x128xbf16, #tpu.memory_space<vmem>>, vector<16x16x128xbf16>
    %150 = vector.shape_cast %149 : vector<16x16x128xbf16> to vector<256x128xbf16>
    %c19 = arith.constant 19 : index
    %c0_156 = arith.constant 0 : index
    %c0_157 = arith.constant 0 : index
    %151 = vector.load %arg2[%c19, %c0_156, %c0_157] : memref<45x128x128xbf16, #tpu.memory_space<vmem>>, vector<1x128x128xbf16>
    %152 = vector.shape_cast %151 : vector<1x128x128xbf16> to vector<128x128xbf16>
    %cst_158 = arith.constant dense<0.000000e+00> : vector<256x128xf32>
    %153 = tpu.matmul %150, %152, %cst_158 {dimension_numbers = #tpu.dot_dimension_numbers<[1], [0], [0], [1], [0, 0, 1, 1], [], []>} : vector<256x128xbf16>, vector<128x128xbf16>, vector<256x128xf32> -> vector<256x128xf32>
    %154 = arith.addf %148, %153 : vector<256x128xf32>
    %c4_159 = arith.constant 4 : index
    %c12_160 = arith.constant 12 : index
    %c0_161 = arith.constant 0 : index
    %155 = vector.load %arg5[%c4_159, %c12_160, %c0_161] : memref<32x32x128xbf16, #tpu.memory_space<vmem>>, vector<16x16x128xbf16>
    %156 = vector.shape_cast %155 : vector<16x16x128xbf16> to vector<256x128xbf16>
    %c20 = arith.constant 20 : index
    %c0_162 = arith.constant 0 : index
    %c0_163 = arith.constant 0 : index
    %157 = vector.load %arg2[%c20, %c0_162, %c0_163] : memref<45x128x128xbf16, #tpu.memory_space<vmem>>, vector<1x128x128xbf16>
    %158 = vector.shape_cast %157 : vector<1x128x128xbf16> to vector<128x128xbf16>
    %cst_164 = arith.constant dense<0.000000e+00> : vector<256x128xf32>
    %159 = tpu.matmul %156, %158, %cst_164 {dimension_numbers = #tpu.dot_dimension_numbers<[1], [0], [0], [1], [0, 0, 1, 1], [], []>} : vector<256x128xbf16>, vector<128x128xbf16>, vector<256x128xf32> -> vector<256x128xf32>
    %160 = arith.addf %154, %159 : vector<256x128xf32>
    %c8_165 = arith.constant 8 : index
    %c4_166 = arith.constant 4 : index
    %c0_167 = arith.constant 0 : index
    %161 = vector.load %arg5[%c8_165, %c4_166, %c0_167] : memref<32x32x128xbf16, #tpu.memory_space<vmem>>, vector<16x16x128xbf16>
    %162 = vector.shape_cast %161 : vector<16x16x128xbf16> to vector<256x128xbf16>
    %c21 = arith.constant 21 : index
    %c0_168 = arith.constant 0 : index
    %c0_169 = arith.constant 0 : index
    %163 = vector.load %arg2[%c21, %c0_168, %c0_169] : memref<45x128x128xbf16, #tpu.memory_space<vmem>>, vector<1x128x128xbf16>
    %164 = vector.shape_cast %163 : vector<1x128x128xbf16> to vector<128x128xbf16>
    %cst_170 = arith.constant dense<0.000000e+00> : vector<256x128xf32>
    %165 = tpu.matmul %162, %164, %cst_170 {dimension_numbers = #tpu.dot_dimension_numbers<[1], [0], [0], [1], [0, 0, 1, 1], [], []>} : vector<256x128xbf16>, vector<128x128xbf16>, vector<256x128xf32> -> vector<256x128xf32>
    %166 = arith.addf %160, %165 : vector<256x128xf32>
    %c8_171 = arith.constant 8 : index
    %c8_172 = arith.constant 8 : index
    %c0_173 = arith.constant 0 : index
    %167 = vector.load %arg5[%c8_171, %c8_172, %c0_173] : memref<32x32x128xbf16, #tpu.memory_space<vmem>>, vector<16x16x128xbf16>
    %168 = vector.shape_cast %167 : vector<16x16x128xbf16> to vector<256x128xbf16>
    %c22 = arith.constant 22 : index
    %c0_174 = arith.constant 0 : index
    %c0_175 = arith.constant 0 : index
    %169 = vector.load %arg2[%c22, %c0_174, %c0_175] : memref<45x128x128xbf16, #tpu.memory_space<vmem>>, vector<1x128x128xbf16>
    %170 = vector.shape_cast %169 : vector<1x128x128xbf16> to vector<128x128xbf16>
    %cst_176 = arith.constant dense<0.000000e+00> : vector<256x128xf32>
    %171 = tpu.matmul %168, %170, %cst_176 {dimension_numbers = #tpu.dot_dimension_numbers<[1], [0], [0], [1], [0, 0, 1, 1], [], []>} : vector<256x128xbf16>, vector<128x128xbf16>, vector<256x128xf32> -> vector<256x128xf32>
    %172 = arith.addf %166, %171 : vector<256x128xf32>
    %c8_177 = arith.constant 8 : index
    %c12_178 = arith.constant 12 : index
    %c0_179 = arith.constant 0 : index
    %173 = vector.load %arg5[%c8_177, %c12_178, %c0_179] : memref<32x32x128xbf16, #tpu.memory_space<vmem>>, vector<16x16x128xbf16>
    %174 = vector.shape_cast %173 : vector<16x16x128xbf16> to vector<256x128xbf16>
    %c23 = arith.constant 23 : index
    %c0_180 = arith.constant 0 : index
    %c0_181 = arith.constant 0 : index
    %175 = vector.load %arg2[%c23, %c0_180, %c0_181] : memref<45x128x128xbf16, #tpu.memory_space<vmem>>, vector<1x128x128xbf16>
    %176 = vector.shape_cast %175 : vector<1x128x128xbf16> to vector<128x128xbf16>
    %cst_182 = arith.constant dense<0.000000e+00> : vector<256x128xf32>
    %177 = tpu.matmul %174, %176, %cst_182 {dimension_numbers = #tpu.dot_dimension_numbers<[1], [0], [0], [1], [0, 0, 1, 1], [], []>} : vector<256x128xbf16>, vector<128x128xbf16>, vector<256x128xf32> -> vector<256x128xf32>
    %178 = arith.addf %172, %177 : vector<256x128xf32>
    %c12_183 = arith.constant 12 : index
    %c4_184 = arith.constant 4 : index
    %c0_185 = arith.constant 0 : index
    %179 = vector.load %arg5[%c12_183, %c4_184, %c0_185] : memref<32x32x128xbf16, #tpu.memory_space<vmem>>, vector<16x16x128xbf16>
    %180 = vector.shape_cast %179 : vector<16x16x128xbf16> to vector<256x128xbf16>
    %c24 = arith.constant 24 : index
    %c0_186 = arith.constant 0 : index
    %c0_187 = arith.constant 0 : index
    %181 = vector.load %arg2[%c24, %c0_186, %c0_187] : memref<45x128x128xbf16, #tpu.memory_space<vmem>>, vector<1x128x128xbf16>
    %182 = vector.shape_cast %181 : vector<1x128x128xbf16> to vector<128x128xbf16>
    %cst_188 = arith.constant dense<0.000000e+00> : vector<256x128xf32>
    %183 = tpu.matmul %180, %182, %cst_188 {dimension_numbers = #tpu.dot_dimension_numbers<[1], [0], [0], [1], [0, 0, 1, 1], [], []>} : vector<256x128xbf16>, vector<128x128xbf16>, vector<256x128xf32> -> vector<256x128xf32>
    %184 = arith.addf %178, %183 : vector<256x128xf32>
    %c12_189 = arith.constant 12 : index
    %c8_190 = arith.constant 8 : index
    %c0_191 = arith.constant 0 : index
    %185 = vector.load %arg5[%c12_189, %c8_190, %c0_191] : memref<32x32x128xbf16, #tpu.memory_space<vmem>>, vector<16x16x128xbf16>
    %186 = vector.shape_cast %185 : vector<16x16x128xbf16> to vector<256x128xbf16>
    %c25 = arith.constant 25 : index
    %c0_192 = arith.constant 0 : index
    %c0_193 = arith.constant 0 : index
    %187 = vector.load %arg2[%c25, %c0_192, %c0_193] : memref<45x128x128xbf16, #tpu.memory_space<vmem>>, vector<1x128x128xbf16>
    %188 = vector.shape_cast %187 : vector<1x128x128xbf16> to vector<128x128xbf16>
    %cst_194 = arith.constant dense<0.000000e+00> : vector<256x128xf32>
    %189 = tpu.matmul %186, %188, %cst_194 {dimension_numbers = #tpu.dot_dimension_numbers<[1], [0], [0], [1], [0, 0, 1, 1], [], []>} : vector<256x128xbf16>, vector<128x128xbf16>, vector<256x128xf32> -> vector<256x128xf32>
    %190 = arith.addf %184, %189 : vector<256x128xf32>
    %c12_195 = arith.constant 12 : index
    %c12_196 = arith.constant 12 : index
    %c0_197 = arith.constant 0 : index
    %191 = vector.load %arg5[%c12_195, %c12_196, %c0_197] : memref<32x32x128xbf16, #tpu.memory_space<vmem>>, vector<16x16x128xbf16>
    %192 = vector.shape_cast %191 : vector<16x16x128xbf16> to vector<256x128xbf16>
    %c26 = arith.constant 26 : index
    %c0_198 = arith.constant 0 : index
    %c0_199 = arith.constant 0 : index
    %193 = vector.load %arg2[%c26, %c0_198, %c0_199] : memref<45x128x128xbf16, #tpu.memory_space<vmem>>, vector<1x128x128xbf16>
    %194 = vector.shape_cast %193 : vector<1x128x128xbf16> to vector<128x128xbf16>
    %cst_200 = arith.constant dense<0.000000e+00> : vector<256x128xf32>
    %195 = tpu.matmul %192, %194, %cst_200 {dimension_numbers = #tpu.dot_dimension_numbers<[1], [0], [0], [1], [0, 0, 1, 1], [], []>} : vector<256x128xbf16>, vector<128x128xbf16>, vector<256x128xf32> -> vector<256x128xf32>
    %196 = arith.addf %190, %195 : vector<256x128xf32>
    %c2_201 = arith.constant 2 : index
    %c0_202 = arith.constant 0 : index
    %197 = vector.load %arg3[%c2_201, %c0_202] : memref<5x128xf32, #tpu.memory_space<vmem>>, vector<1x128xf32>
    %198 = vector.broadcast %197 : vector<1x128xf32> to vector<256x128xf32>
    %199 = arith.addf %196, %198 : vector<256x128xf32>
    %cst_203 = arith.constant 0.000000e+00 : f32
    %200 = vector.broadcast %cst_203 : f32 to vector<256x128xf32>
    %201 = arith.maximumf %199, %200 : vector<256x128xf32>
    %202 = vector.shape_cast %201 : vector<256x128xf32> to vector<16x16x128xf32>
    %c0_204 = arith.constant 0 : index
    %c0_205 = arith.constant 0 : index
    %c0_206 = arith.constant 0 : index
    %c0_207 = arith.constant 0 : index
    %203 = vector.load %arg4[%c0_204, %c0_205, %c0_206, %c0_207] : memref<1x16x16x128xf32, #tpu.memory_space<vmem>>, vector<1x16x16x128xf32>
    %204 = vector.shape_cast %203 : vector<1x16x16x128xf32> to vector<16x16x128xf32>
    %205 = arith.addf %204, %202 : vector<16x16x128xf32>
    %c0_208 = arith.constant 0 : index
    %c0_209 = arith.constant 0 : index
    %c0_210 = arith.constant 0 : index
    %c0_211 = arith.constant 0 : index
    %206 = vector.load %arg4[%c0_208, %c0_209, %c0_210, %c0_211] : memref<1x16x16x128xf32, #tpu.memory_space<vmem>>, vector<1x16x16x128xf32>
    %207 = vector.shape_cast %206 : vector<1x16x16x128xf32> to vector<16x16x128xf32>
    %208 = vector.shape_cast %205 : vector<16x16x128xf32> to vector<1x16x16x128xf32>
    tpu.vector_store %arg4[%c0_208, %c0_209, %c0_210, %c0_211], %208 {strides = array<i32>} : memref<1x16x16x128xf32, #tpu.memory_space<vmem>>, vector<1x16x16x128xf32>,
    %209 = arith.truncf %202 : vector<16x16x128xf32> to vector<16x16x128xbf16>
    %c8_212 = arith.constant 8 : index
    %c8_213 = arith.constant 8 : index
    %c0_214 = arith.constant 0 : index
    %210 = vector.load %arg5[%c8_212, %c8_213, %c0_214] : memref<32x32x128xbf16, #tpu.memory_space<vmem>>, vector<16x16x128xbf16>
    tpu.vector_store %arg5[%c8_212, %c8_213, %c0_214], %209 {strides = array<i32>} : memref<32x32x128xbf16, #tpu.memory_space<vmem>>, vector<16x16x128xbf16>,
    %c0_215 = arith.constant 0 : index
    %c0_216 = arith.constant 0 : index
    %c0_217 = arith.constant 0 : index
    %211 = vector.load %arg5[%c0_215, %c0_216, %c0_217] : memref<32x32x128xbf16, #tpu.memory_space<vmem>>, vector<16x16x128xbf16>
    %212 = vector.shape_cast %211 : vector<16x16x128xbf16> to vector<256x128xbf16>
    %c27 = arith.constant 27 : index
    %c0_218 = arith.constant 0 : index
    %c0_219 = arith.constant 0 : index
    %213 = vector.load %arg2[%c27, %c0_218, %c0_219] : memref<45x128x128xbf16, #tpu.memory_space<vmem>>, vector<1x128x128xbf16>
    %214 = vector.shape_cast %213 : vector<1x128x128xbf16> to vector<128x128xbf16>
    %cst_220 = arith.constant dense<0.000000e+00> : vector<256x128xf32>
    %215 = tpu.matmul %212, %214, %cst_220 {dimension_numbers = #tpu.dot_dimension_numbers<[1], [0], [0], [1], [0, 0, 1, 1], [], []>} : vector<256x128xbf16>, vector<128x128xbf16>, vector<256x128xf32> -> vector<256x128xf32>
    %c0_221 = arith.constant 0 : index
    %c8_222 = arith.constant 8 : index
    %c0_223 = arith.constant 0 : index
    %216 = vector.load %arg5[%c0_221, %c8_222, %c0_223] : memref<32x32x128xbf16, #tpu.memory_space<vmem>>, vector<16x16x128xbf16>
    %217 = vector.shape_cast %216 : vector<16x16x128xbf16> to vector<256x128xbf16>
    %c28 = arith.constant 28 : index
    %c0_224 = arith.constant 0 : index
    %c0_225 = arith.constant 0 : index
    %218 = vector.load %arg2[%c28, %c0_224, %c0_225] : memref<45x128x128xbf16, #tpu.memory_space<vmem>>, vector<1x128x128xbf16>
    %219 = vector.shape_cast %218 : vector<1x128x128xbf16> to vector<128x128xbf16>
    %cst_226 = arith.constant dense<0.000000e+00> : vector<256x128xf32>
    %220 = tpu.matmul %217, %219, %cst_226 {dimension_numbers = #tpu.dot_dimension_numbers<[1], [0], [0], [1], [0, 0, 1, 1], [], []>} : vector<256x128xbf16>, vector<128x128xbf16>, vector<256x128xf32> -> vector<256x128xf32>
    %221 = arith.addf %215, %220 : vector<256x128xf32>
    %c0_227 = arith.constant 0 : index
    %c16_228 = arith.constant 16 : index
    %c0_229 = arith.constant 0 : index
    %222 = vector.load %arg5[%c0_227, %c16_228, %c0_229] : memref<32x32x128xbf16, #tpu.memory_space<vmem>>, vector<16x16x128xbf16>
    %223 = vector.shape_cast %222 : vector<16x16x128xbf16> to vector<256x128xbf16>
    %c29 = arith.constant 29 : index
    %c0_230 = arith.constant 0 : index
    %c0_231 = arith.constant 0 : index
    %224 = vector.load %arg2[%c29, %c0_230, %c0_231] : memref<45x128x128xbf16, #tpu.memory_space<vmem>>, vector<1x128x128xbf16>
    %225 = vector.shape_cast %224 : vector<1x128x128xbf16> to vector<128x128xbf16>
    %cst_232 = arith.constant dense<0.000000e+00> : vector<256x128xf32>
    %226 = tpu.matmul %223, %225, %cst_232 {dimension_numbers = #tpu.dot_dimension_numbers<[1], [0], [0], [1], [0, 0, 1, 1], [], []>} : vector<256x128xbf16>, vector<128x128xbf16>, vector<256x128xf32> -> vector<256x128xf32>
    %227 = arith.addf %221, %226 : vector<256x128xf32>
    %c8_233 = arith.constant 8 : index
    %c0_234 = arith.constant 0 : index
    %c0_235 = arith.constant 0 : index
    %228 = vector.load %arg5[%c8_233, %c0_234, %c0_235] : memref<32x32x128xbf16, #tpu.memory_space<vmem>>, vector<16x16x128xbf16>
    %229 = vector.shape_cast %228 : vector<16x16x128xbf16> to vector<256x128xbf16>
    %c30 = arith.constant 30 : index
    %c0_236 = arith.constant 0 : index
    %c0_237 = arith.constant 0 : index
    %230 = vector.load %arg2[%c30, %c0_236, %c0_237] : memref<45x128x128xbf16, #tpu.memory_space<vmem>>, vector<1x128x128xbf16>
    %231 = vector.shape_cast %230 : vector<1x128x128xbf16> to vector<128x128xbf16>
    %cst_238 = arith.constant dense<0.000000e+00> : vector<256x128xf32>
    %232 = tpu.matmul %229, %231, %cst_238 {dimension_numbers = #tpu.dot_dimension_numbers<[1], [0], [0], [1], [0, 0, 1, 1], [], []>} : vector<256x128xbf16>, vector<128x128xbf16>, vector<256x128xf32> -> vector<256x128xf32>
    %233 = arith.addf %227, %232 : vector<256x128xf32>
    %c8_239 = arith.constant 8 : index
    %c8_240 = arith.constant 8 : index
    %c0_241 = arith.constant 0 : index
    %234 = vector.load %arg5[%c8_239, %c8_240, %c0_241] : memref<32x32x128xbf16, #tpu.memory_space<vmem>>, vector<16x16x128xbf16>
    %235 = vector.shape_cast %234 : vector<16x16x128xbf16> to vector<256x128xbf16>
    %c31 = arith.constant 31 : index
    %c0_242 = arith.constant 0 : index
    %c0_243 = arith.constant 0 : index
    %236 = vector.load %arg2[%c31, %c0_242, %c0_243] : memref<45x128x128xbf16, #tpu.memory_space<vmem>>, vector<1x128x128xbf16>
    %237 = vector.shape_cast %236 : vector<1x128x128xbf16> to vector<128x128xbf16>
    %cst_244 = arith.constant dense<0.000000e+00> : vector<256x128xf32>
    %238 = tpu.matmul %235, %237, %cst_244 {dimension_numbers = #tpu.dot_dimension_numbers<[1], [0], [0], [1], [0, 0, 1, 1], [], []>} : vector<256x128xbf16>, vector<128x128xbf16>, vector<256x128xf32> -> vector<256x128xf32>
    %239 = arith.addf %233, %238 : vector<256x128xf32>
    %c8_245 = arith.constant 8 : index
    %c16_246 = arith.constant 16 : index
    %c0_247 = arith.constant 0 : index
    %240 = vector.load %arg5[%c8_245, %c16_246, %c0_247] : memref<32x32x128xbf16, #tpu.memory_space<vmem>>, vector<16x16x128xbf16>
    %241 = vector.shape_cast %240 : vector<16x16x128xbf16> to vector<256x128xbf16>
    %c32 = arith.constant 32 : index
    %c0_248 = arith.constant 0 : index
    %c0_249 = arith.constant 0 : index
    %242 = vector.load %arg2[%c32, %c0_248, %c0_249] : memref<45x128x128xbf16, #tpu.memory_space<vmem>>, vector<1x128x128xbf16>
    %243 = vector.shape_cast %242 : vector<1x128x128xbf16> to vector<128x128xbf16>
    %cst_250 = arith.constant dense<0.000000e+00> : vector<256x128xf32>
    %244 = tpu.matmul %241, %243, %cst_250 {dimension_numbers = #tpu.dot_dimension_numbers<[1], [0], [0], [1], [0, 0, 1, 1], [], []>} : vector<256x128xbf16>, vector<128x128xbf16>, vector<256x128xf32> -> vector<256x128xf32>
    %245 = arith.addf %239, %244 : vector<256x128xf32>
    %c16_251 = arith.constant 16 : index
    %c0_252 = arith.constant 0 : index
    %c0_253 = arith.constant 0 : index
    %246 = vector.load %arg5[%c16_251, %c0_252, %c0_253] : memref<32x32x128xbf16, #tpu.memory_space<vmem>>, vector<16x16x128xbf16>
    %247 = vector.shape_cast %246 : vector<16x16x128xbf16> to vector<256x128xbf16>
    %c33 = arith.constant 33 : index
    %c0_254 = arith.constant 0 : index
    %c0_255 = arith.constant 0 : index
    %248 = vector.load %arg2[%c33, %c0_254, %c0_255] : memref<45x128x128xbf16, #tpu.memory_space<vmem>>, vector<1x128x128xbf16>
    %249 = vector.shape_cast %248 : vector<1x128x128xbf16> to vector<128x128xbf16>
    %cst_256 = arith.constant dense<0.000000e+00> : vector<256x128xf32>
    %250 = tpu.matmul %247, %249, %cst_256 {dimension_numbers = #tpu.dot_dimension_numbers<[1], [0], [0], [1], [0, 0, 1, 1], [], []>} : vector<256x128xbf16>, vector<128x128xbf16>, vector<256x128xf32> -> vector<256x128xf32>
    %251 = arith.addf %245, %250 : vector<256x128xf32>
    %c16_257 = arith.constant 16 : index
    %c8_258 = arith.constant 8 : index
    %c0_259 = arith.constant 0 : index
    %252 = vector.load %arg5[%c16_257, %c8_258, %c0_259] : memref<32x32x128xbf16, #tpu.memory_space<vmem>>, vector<16x16x128xbf16>
    %253 = vector.shape_cast %252 : vector<16x16x128xbf16> to vector<256x128xbf16>
    %c34 = arith.constant 34 : index
    %c0_260 = arith.constant 0 : index
    %c0_261 = arith.constant 0 : index
    %254 = vector.load %arg2[%c34, %c0_260, %c0_261] : memref<45x128x128xbf16, #tpu.memory_space<vmem>>, vector<1x128x128xbf16>
    %255 = vector.shape_cast %254 : vector<1x128x128xbf16> to vector<128x128xbf16>
    %cst_262 = arith.constant dense<0.000000e+00> : vector<256x128xf32>
    %256 = tpu.matmul %253, %255, %cst_262 {dimension_numbers = #tpu.dot_dimension_numbers<[1], [0], [0], [1], [0, 0, 1, 1], [], []>} : vector<256x128xbf16>, vector<128x128xbf16>, vector<256x128xf32> -> vector<256x128xf32>
    %257 = arith.addf %251, %256 : vector<256x128xf32>
    %c16_263 = arith.constant 16 : index
    %c16_264 = arith.constant 16 : index
    %c0_265 = arith.constant 0 : index
    %258 = vector.load %arg5[%c16_263, %c16_264, %c0_265] : memref<32x32x128xbf16, #tpu.memory_space<vmem>>, vector<16x16x128xbf16>
    %259 = vector.shape_cast %258 : vector<16x16x128xbf16> to vector<256x128xbf16>
    %c35 = arith.constant 35 : index
    %c0_266 = arith.constant 0 : index
    %c0_267 = arith.constant 0 : index
    %260 = vector.load %arg2[%c35, %c0_266, %c0_267] : memref<45x128x128xbf16, #tpu.memory_space<vmem>>, vector<1x128x128xbf16>
    %261 = vector.shape_cast %260 : vector<1x128x128xbf16> to vector<128x128xbf16>
    %cst_268 = arith.constant dense<0.000000e+00> : vector<256x128xf32>
    %262 = tpu.matmul %259, %261, %cst_268 {dimension_numbers = #tpu.dot_dimension_numbers<[1], [0], [0], [1], [0, 0, 1, 1], [], []>} : vector<256x128xbf16>, vector<128x128xbf16>, vector<256x128xf32> -> vector<256x128xf32>
    %263 = arith.addf %257, %262 : vector<256x128xf32>
    %c3_269 = arith.constant 3 : index
    %c0_270 = arith.constant 0 : index
    %264 = vector.load %arg3[%c3_269, %c0_270] : memref<5x128xf32, #tpu.memory_space<vmem>>, vector<1x128xf32>
    %265 = vector.broadcast %264 : vector<1x128xf32> to vector<256x128xf32>
    %266 = arith.addf %263, %265 : vector<256x128xf32>
    %cst_271 = arith.constant 0.000000e+00 : f32
    %267 = vector.broadcast %cst_271 : f32 to vector<256x128xf32>
    %268 = arith.maximumf %266, %267 : vector<256x128xf32>
    %269 = vector.shape_cast %268 : vector<256x128xf32> to vector<16x16x128xf32>
    %c0_272 = arith.constant 0 : index
    %c0_273 = arith.constant 0 : index
    %c0_274 = arith.constant 0 : index
    %c0_275 = arith.constant 0 : index
    %270 = vector.load %arg4[%c0_272, %c0_273, %c0_274, %c0_275] : memref<1x16x16x128xf32, #tpu.memory_space<vmem>>, vector<1x16x16x128xf32>
    %271 = vector.shape_cast %270 : vector<1x16x16x128xf32> to vector<16x16x128xf32>
    %272 = arith.addf %271, %269 : vector<16x16x128xf32>
    %c0_276 = arith.constant 0 : index
    %c0_277 = arith.constant 0 : index
    %c0_278 = arith.constant 0 : index
    %c0_279 = arith.constant 0 : index
    %273 = vector.load %arg4[%c0_276, %c0_277, %c0_278, %c0_279] : memref<1x16x16x128xf32, #tpu.memory_space<vmem>>, vector<1x16x16x128xf32>
    %274 = vector.shape_cast %273 : vector<1x16x16x128xf32> to vector<16x16x128xf32>
    %275 = vector.shape_cast %272 : vector<16x16x128xf32> to vector<1x16x16x128xf32>
    tpu.vector_store %arg4[%c0_276, %c0_277, %c0_278, %c0_279], %275 {strides = array<i32>} : memref<1x16x16x128xf32, #tpu.memory_space<vmem>>, vector<1x16x16x128xf32>,
    %276 = arith.truncf %269 : vector<16x16x128xf32> to vector<16x16x128xbf16>
    %c8_280 = arith.constant 8 : index
    %c8_281 = arith.constant 8 : index
    %c0_282 = arith.constant 0 : index
    %277 = vector.load %arg5[%c8_280, %c8_281, %c0_282] : memref<32x32x128xbf16, #tpu.memory_space<vmem>>, vector<16x16x128xbf16>
    tpu.vector_store %arg5[%c8_280, %c8_281, %c0_282], %276 {strides = array<i32>} : memref<32x32x128xbf16, #tpu.memory_space<vmem>>, vector<16x16x128xbf16>,
    %c8_283 = arith.constant 8 : index
    %c8_284 = arith.constant 8 : index
    %c0_285 = arith.constant 0 : index
    %278 = vector.load %arg5[%c8_283, %c8_284, %c0_285] : memref<32x32x128xbf16, #tpu.memory_space<vmem>>, vector<16x16x128xbf16>
    %279 = vector.shape_cast %278 : vector<16x16x128xbf16> to vector<256x128xbf16>
    %c40 = arith.constant 40 : index
    %c0_286 = arith.constant 0 : index
    %c0_287 = arith.constant 0 : index
    %280 = vector.load %arg2[%c40, %c0_286, %c0_287] : memref<45x128x128xbf16, #tpu.memory_space<vmem>>, vector<1x128x128xbf16>
    %281 = vector.shape_cast %280 : vector<1x128x128xbf16> to vector<128x128xbf16>
    %cst_288 = arith.constant dense<0.000000e+00> : vector<256x128xf32>
    %282 = tpu.matmul %279, %281, %cst_288 {dimension_numbers = #tpu.dot_dimension_numbers<[1], [0], [0], [1], [0, 0, 1, 1], [], []>} : vector<256x128xbf16>, vector<128x128xbf16>, vector<256x128xf32> -> vector<256x128xf32>
    %c4_289 = arith.constant 4 : index
    %c0_290 = arith.constant 0 : index
    %283 = vector.load %arg3[%c4_289, %c0_290] : memref<5x128xf32, #tpu.memory_space<vmem>>, vector<1x128xf32>
    %284 = vector.broadcast %283 : vector<1x128xf32> to vector<256x128xf32>
    %285 = arith.addf %282, %284 : vector<256x128xf32>
    %cst_291 = arith.constant 0.000000e+00 : f32
    %286 = vector.broadcast %cst_291 : f32 to vector<256x128xf32>
    %287 = arith.maximumf %285, %286 : vector<256x128xf32>
    %288 = vector.shape_cast %287 : vector<256x128xf32> to vector<16x16x128xf32>
    %c0_292 = arith.constant 0 : index
    %c0_293 = arith.constant 0 : index
    %c0_294 = arith.constant 0 : index
    %c0_295 = arith.constant 0 : index
    %289 = vector.load %arg4[%c0_292, %c0_293, %c0_294, %c0_295] : memref<1x16x16x128xf32, #tpu.memory_space<vmem>>, vector<1x16x16x128xf32>
    %290 = vector.shape_cast %289 : vector<1x16x16x128xf32> to vector<16x16x128xf32>
    %291 = arith.addf %290, %288 : vector<16x16x128xf32>
    %c0_296 = arith.constant 0 : index
    %c0_297 = arith.constant 0 : index
    %c0_298 = arith.constant 0 : index
    %c0_299 = arith.constant 0 : index
    %292 = vector.load %arg4[%c0_296, %c0_297, %c0_298, %c0_299] : memref<1x16x16x128xf32, #tpu.memory_space<vmem>>, vector<1x16x16x128xf32>
    %293 = vector.shape_cast %292 : vector<1x16x16x128xf32> to vector<16x16x128xf32>
    %294 = vector.shape_cast %291 : vector<16x16x128xf32> to vector<1x16x16x128xf32>
    tpu.vector_store %arg4[%c0_296, %c0_297, %c0_298, %c0_299], %294 {strides = array<i32>} : memref<1x16x16x128xf32, #tpu.memory_space<vmem>>, vector<1x16x16x128xf32>,
    return
  }
  func.func @transform_0(%arg0: i32) -> (i32, i32, i32, i32) {
    %c0_i32 = arith.constant 0 : i32
    %c0_i32_0 = arith.constant 0 : i32
    %c0_i32_1 = arith.constant 0 : i32
    %c0_i32_2 = arith.constant 0 : i32
    return %arg0, %c0_i32, %c0_i32_0, %c0_i32_1 : i32, i32, i32, i32
  }
  func.func @transform_1(%arg0: i32) -> (i32, i32, i32) {
    %c0_i32 = arith.constant 0 : i32
    %c0_i32_0 = arith.constant 0 : i32
    %c0_i32_1 = arith.constant 0 : i32
    %c0_i32_2 = arith.constant 0 : i32
    return %c0_i32, %c0_i32_0, %c0_i32_1 : i32, i32, i32
  }
  func.func @transform_2(%arg0: i32) -> (i32, i32) {
    %c0_i32 = arith.constant 0 : i32
    %c0_i32_0 = arith.constant 0 : i32
    %c0_i32_1 = arith.constant 0 : i32
    return %c0_i32, %c0_i32_0 : i32, i32
  }
  func.func @transform_3(%arg0: i32) -> (i32, i32, i32, i32) {
    %c0_i32 = arith.constant 0 : i32
    %c0_i32_0 = arith.constant 0 : i32
    %c0_i32_1 = arith.constant 0 : i32
    %c0_i32_2 = arith.constant 0 : i32
    return %arg0, %c0_i32, %c0_i32_0, %c0_i32_1 : i32, i32, i32, i32
  }
}

</mosaic_0001>

<bundles_post_ra>
// kernel: tpu_custom_call.1
= control target key start
LH: loop header
LB: loop body
LE: loop exit
PB: predicated region body
PF: predicated region fallthrough
CT: control target
= control target key end

     0   :  { %8 = vsyncpa [#allocation4], 0  ;;  %s23166_s0 = inlined_call_operand.hbm [shape: f32[2,16,16,128], index: 0, kind: input, shape index: {}]   ;;  %s23167_s1 = inlined_call_operand.hbm [shape: bf16[45,128,128], index: 1, kind: input, shape index: {}]   ;;  %s23168_s2 = inlined_call_operand.hbm [shape: f32[5,128], index: 2, kind: input, shape index: {}]   ;;  %s23169_s3 = inlined_call_operand.hbm [shape: f32[2,16,16,128], index: 3, kind: output, shape index: {}]  }
   0x1   :  { %10 = vsyncpa [#allocation4 + $0x1], 0 }
   0x2   :  { %11 = vsyncpa [#allocation7], 0 }
   0x3   :  { %12 = vsyncpa [#allocation5], 0 }
   0x4   :  { %14 = vsyncpa [#allocation5 + $0x1], 0  ;;  %s20721_s12 = smov 0   ;;  %s20723_s13 = smov 0  }
   0x5   :  { %s20725_s14 = smov 0   ;;  %s20727_s15 = smov 0  }
   0x6 LB: > { %s20742_s16 = sadd.s32 4294967295, %s20688_s15   ;;  %s16120_s17 = sadd.s32 4294967294, %s20688_s15   ;;  %s20688_s15 = sphi %s20727_s15, %s23226_s15   ;;  %s20684_s14 = sphi %s20725_s14, %s23225_s14   ;;  %s20680_s13 = sphi %s20723_s13, %s23224_s13   ;;  %s20676_s12 = sphi %s20721_s12, %s23223_s12  }
   0x7   : > { %p40_p0 = scmp.ne.s32.totalorder %s20680_s13, %s20676_s12  ;;  %p23170_p1 = scmp.eq.s32.totalorder %s20742_s16, 0 }
   0x8   : > { %p112_p3 = scmp.eq.s32.totalorder %s16120_s17, 1  ;;  %p16121_p5 = scmp.ge.s32.totalorder %s20688_s15, 1 }
   0x9   : > { %p20751_p4 = por %p23170_p1, %p40_p0  ;;  %p119_p7 = scmp.lt.s32.totalorder %s20688_s15, 3 }
   0xa   : > { %p20756_p6 = por %p112_p3, %p40_p0  ;;  %s20690_s21 = smov [#allocation6]  }
   0xb   : > { %s23191_s18 = scalar_select %p20751_p4, 1, 0 }
   0xc   : > { %s23192_s19 = scalar_select %p20756_p6, 1, 0 }
   0xd   : > { %p20762_p9 = pnand %p16121_p5, %p119_p7  ;;  %s131_s22 = sshll.u32 %s20690_s21, 4  ;;  %s20766_s22 = int_to_ptr.vmem [resolvable:$true] %s131_s22 }
   0xe   : > { %s20691_s24 = smov [#allocation8]   ;;  %s20532_s28 = scalar_lea.hbm %s23167_s1, 46080 }
   0xf   : > { %p20158_p10 = pneg %p20762_p9  ;;  %s145_s25 = sshll.u32 %s20691_s24, 4  ;;  %s20777_s25 = int_to_ptr.vmem [resolvable:$true] %s145_s25 }
  0x10   : > { %p20533_p13 = scmp.ne.s32.totalorder %s23167_s1, %s20532_s28  ;;  %p20539_p7 = scmp.lt.u32.totalorder %s20532_s28, %s23167_s1 }
  0x11   : > { %p20773_p12 = pnand %p20158_p10, %p23170_p1 }
  0x13   : > { %p20534_p0 = pneg %p20773_p12 }
  0x15   : > { %p20535_p3 = pnand %p20534_p0, %p20533_p13 }
  0x17   : > { %p20536_p5 = pneg %p20535_p3 }
  0x19   : > { %p20541_p10 = pnand %p20539_p7, %p20536_p5 }
  0x1b   : > { %20544 = shalt.err (!%p20541_p10)
}
  0x1c   : > { %s20545_s6 = scalar_lea.vmem %s20766_s22, 46080  ;;  %p20553_p2 = scmp.lt.s32.totalorder %s20766_s22, %s20766_s22 }
  0x1d   : > { %p20546_p11 = scmp.ne.s32.totalorder %s20766_s22, %s20545_s6  ;;  %p20554_p13 = scmp.lt.s32.totalorder %s20545_s6, %s20545_s6 }
  0x1f   : > { %p20548_p8 = pnand %p20546_p11, %p20534_p0  ;;  %p20555_p3 = por %p20554_p13, %p20553_p2 }
  0x21   : > { %p20549_p1 = pneg %p20548_p8 }
  0x23   : > { %p20556_p6 = pnand %p20555_p3, %p20549_p1 }
  0x25   : > { %20559 = shalt.err (!%p20556_p6)
}
  0x26   : > { %s20692_s7 = smov 64   ;;  %s20693_s8 = smov 4  }
  0x27   : > { %20161 = dma.hbm_to_vmem [thread:$0]  (!%p20773_p12), %s23167_s1, 46080, %s20766_s22, [#allocation7], %s20692_s7, %s20692_s7, %s20693_s8  }
  0x28   : > { %s20560_s21 = scalar_lea.hbm %s23168_s2, 128 }
  0x29   : > { %p20561_p2 = scmp.ne.s32.totalorder %s23168_s2, %s20560_s21  ;;  %p20567_p8 = scmp.lt.u32.totalorder %s20560_s21, %s23168_s2 }
  0x2b   : > { %p20563_p1 = pnand %p20561_p2, %p20534_p0 }
  0x2d   : > { %p20564_p6 = pneg %p20563_p1 }
  0x2f   : > { %p20569_p11 = pnand %p20567_p8, %p20564_p6 }
  0x31   : > { %20572 = shalt.err (!%p20569_p11)
}
  0x32   : > { %s20573_s22 = scalar_lea.vmem %s20777_s25, 128  ;;  %p20581_p13 = scmp.lt.s32.totalorder %s20777_s25, %s20777_s25 }
  0x33   : > { %p20574_p5 = scmp.ne.s32.totalorder %s20777_s25, %s20573_s22  ;;  %p20582_p3 = scmp.lt.s32.totalorder %s20573_s22, %s20573_s22 }
  0x35   : > { %p20576_p7 = pnand %p20574_p5, %p20534_p0  ;;  %p20583_p2 = por %p20582_p3, %p20581_p13 }
  0x37   : > { %p20577_p10 = pneg %p20576_p7 }
  0x39   : > { %p20584_p1 = pnand %p20583_p2, %p20577_p10 }
  0x3b   : > { %20587 = shalt.err (!%p20584_p1)
}
  0x3c   : > { %20164 = dma.hbm_to_vmem [thread:$0]  (!%p20773_p12), %s23168_s2, 128, %s20777_s25, [#allocation7]  }
  0x3d   : > { %s20832_s4 = sadd.s32 1, %s20688_s15   ;;  %s27_s23 = sadd.s32 1, %s20684_s14 }
  0x3e   : > { %s24_s5 = ssub.s32 %s20688_s15, %s20832_s4  ;;  %p34_p0 = scmp.ne.s32.totalorder %s20684_s14, %s20680_s13 }
  0x3f   : > { %p25_p6 = scmp.eq.s32.totalorder %s24_s5, 0  ;;  %p35_p8 = scmp.eq.s32.totalorder %s20688_s15, 0 }
  0x40   : > { %p23195_p11 = scmp.eq.s32.totalorder %s20742_s16, 1  ;;  %p20175_p7 = scmp.lt.s32.totalorder %s20688_s15, 2 }
  0x41   : > { %s20848_s7 = scalar_select %p25_p6, %s20684_s14, %s27_s23  }
  0x42   : > { %p20842_p5 = por %p23195_p11, %p34_p0  ;;  %p36_p10 = por %p35_p8, %p34_p0 }
  0x43   : > { %s156_s8 = sand.u32 1, %s20684_s14   ;;  %s16440_s25 = sshll.u32 %s20688_s15, 12 }
  0x44   : > { %s23196_s6 = scalar_select %p20842_p5, 1, 0 }
  0x45   : > { %s16125_s9 = sshll.u32 %s156_s8, 8  ;;  %s20855_s17 = scalar_lea.hbm %s23166_s0, %s16440_s25 }
  0x46   : > { %s160_s21 = scalar_lea.vmem [#allocation3], %s16125_s9  ;;  %p20859_p12 = pnand %p20175_p7, %p36_p10 }
  0x47   : > { %s167_s24 = sshll.u32 %s160_s21, 4  ;;  %s20863_s27 = scalar_lea.sflag [#allocation4], %s156_s8  ;;  %s20857_s24 = int_to_ptr.vmem [resolvable:$true] %s167_s24 }
  0x48   : > { %s20588_s28 = scalar_lea.hbm %s20855_s17, 4096  ;;  %p20590_p3 = pneg %p20859_p12 }
  0x49   : > { %p20589_p13 = scmp.ne.s32.totalorder %s20855_s17, %s20588_s28  ;;  %s20593_s30 = scalar_lea.hbm %s23166_s0, 8192 }
  0x4a   : > { %p20594_p0 = scmp.lt.u32.totalorder %s20855_s17, %s23166_s0  ;;  %p20595_p6 = scmp.lt.u32.totalorder %s20593_s30, %s20588_s28 }
  0x4b   : > { %p20591_p2 = pnand %p20590_p3, %p20589_p13  ;;  %p20597_p11 = scmp.lt.u32.totalorder %s20588_s28, %s20855_s17 }
  0x4c   : > { %p20596_p8 = por %p20595_p6, %p20594_p0 }
  0x4d   : > { %p20592_p1 = pneg %p20591_p2 }
  0x4e   : > { %p20598_p7 = por %p20597_p11, %p20596_p8 }
  0x50   : > { %p20599_p10 = pnand %p20598_p7, %p20592_p1 }
  0x52   : > { %20602 = shalt.err (!%p20599_p10)
}
  0x53   : > { %s20603_s8 = scalar_lea.vmem %s20857_s24, 4096  ;;  %s20694_s9 = smov [#allocation3]  }
  0x54   : > { %p20604_p13 = scmp.ne.s32.totalorder %s20857_s24, %s20603_s8  ;;  %s20608_s25 = sshll.u32 %s20694_s9, 4  ;;  %s20609_s25 = int_to_ptr.vmem [resolvable:$false] %s20608_s25 }
  0x55   : > { %s20610_s10 = scalar_lea.vmem %s20609_s25, 8192  ;;  %p20611_p4 = scmp.lt.s32.totalorder %s20857_s24, %s20609_s25 }
  0x56   : > { %p20606_p2 = pnand %p20604_p13, %p20590_p3  ;;  %p20612_p0 = scmp.lt.s32.totalorder %s20610_s10, %s20603_s8 }
  0x58   : > { %p20607_p5 = pneg %p20606_p2  ;;  %p20613_p6 = por %p20612_p0, %p20611_p4 }
  0x5a   : > { %p20614_p8 = pnand %p20613_p6, %p20607_p5 }
  0x5c   : > { %20617 = shalt.err (!%p20614_p8)
}
  0x5d   : > { %s20695_s11 = smov 128   ;;  %s20696_s21 = smov 8  }
  0x5e   : > { %20168 = dma.hbm_to_vmem [thread:$0]  (!%p20859_p12), %s20855_s17, 4096, %s20857_s24, %s20863_s27, %s20695_s11, %s20695_s11, %s20696_s21  }
  0x5f   : > { %179 = sbr.rel (%p20762_p9) target bundleno = 3374 (0xd2e), region = 32  ;;  %s20894_s28 = sand.u32 (!%p20762_p9), 1, %s20680_s13  }
  0x60   : > { %s16129_s22 = sshll.u32 (!%p20762_p9), %s20894_s28, 8  ;;  %s182_s29 = scalar_lea.sflag (!%p20762_p9), [#allocation4], %s20894_s28 }
  0x61   : > { %s20898_s30 = scalar_lea.vmem (!%p20762_p9), [#allocation3], %s16129_s22  ;;  %p23198_p4 = scmp.ne.s32.totalorder (!%p20762_p9), %s23191_s18, 0 }
  0x66   : > { %20663 = dma.done.wait (%p23198_p4), %s182_s29, 4096  }
  0x67   : > { %20665 = vsyncadd (%p23198_p4), %s182_s29, 4294963200  ;;  %p23199_p5 = scmp.eq.s32.totalorder %s20742_s16, 0 }
  0x69   : > { %20667 = dma.done.wait (%p23199_p5), [#allocation7], 46208   ;;  %p23200_p9 = pmov %p23199_p5 }
  0x6a   : > { %s20908_s20 = scalar_lea.vmem [#allocation9], %s16129_s22  ;;  %p23201_p12 = scmp.ne.s32.totalorder %s20742_s16, 0 }
  0x6b   : > { %20669 = vsyncadd (%p23200_p9), [#allocation7], 4294921088  ;;  %v20697_v0 = vmov (!%p23201_p12), 0  }
  0x6c   : > { %220 = sbr.rel (%p23201_p12) target bundleno = 140 (0x8c), region = 48  ;;  %221 = vst [vmem:[#allocation2] sm:$0xff] (!%p23201_p12), %v20697_v0  ;;  %222 = vst [vmem:[#allocation2 + $0x8] sm:$0xff] (!%p23201_p12), %v20697_v0 }
  0x6d   : > { %223 = vst [vmem:[#allocation2 + $0x10] sm:$0xff] (!%p23201_p12), %v20697_v0  ;;  %224 = vst [vmem:[#allocation2 + $0x18] sm:$0xff] (!%p23201_p12), %v20697_v0 }
  0x6e   : > { %225 = vst [vmem:[#allocation2 + $0x20] sm:$0xff] (!%p23201_p12), %v20697_v0  ;;  %226 = vst [vmem:[#allocation2 + $0x28] sm:$0xff] (!%p23201_p12), %v20697_v0 }
  0x6f   : > { %227 = vst [vmem:[#allocation2 + $0x30] sm:$0xff] (!%p23201_p12), %v20697_v0  ;;  %228 = vst [vmem:[#allocation2 + $0x38] sm:$0xff] (!%p23201_p12), %v20697_v0 }
  0x70   : > { %229 = vst [vmem:[#allocation2 + $0x40] sm:$0xff] (!%p23201_p12), %v20697_v0  ;;  %230 = vst [vmem:[#allocation2 + $0x48] sm:$0xff] (!%p23201_p12), %v20697_v0 }
  0x71   : > { %231 = vst [vmem:[#allocation2 + $0x50] sm:$0xff] (!%p23201_p12), %v20697_v0  ;;  %232 = vst [vmem:[#allocation2 + $0x58] sm:$0xff] (!%p23201_p12), %v20697_v0 }
  0x72   : > { %233 = vst [vmem:[#allocation2 + $0x60] sm:$0xff] (!%p23201_p12), %v20697_v0  ;;  %234 = vst [vmem:[#allocation2 + $0x68] sm:$0xff] (!%p23201_p12), %v20697_v0 }
  0x73   : > { %235 = vst [vmem:[#allocation2 + $0x70] sm:$0xff] %v20697_v0  ;;  %236 = vst [vmem:[#allocation2 + $0x78] sm:$0xff] %v20697_v0 }
  0x74   : > { %237 = vst [vmem:[#allocation2 + $0x80] sm:$0xff] %v20697_v0  ;;  %238 = vst [vmem:[#allocation2 + $0x88] sm:$0xff] %v20697_v0 }
  0x75   : > { %239 = vst [vmem:[#allocation2 + $0x90] sm:$0xff] %v20697_v0  ;;  %240 = vst [vmem:[#allocation2 + $0x98] sm:$0xff] %v20697_v0 }
  0x76   : > { %241 = vst [vmem:[#allocation2 + $0xa0] sm:$0xff] %v20697_v0  ;;  %242 = vst [vmem:[#allocation2 + $0xa8] sm:$0xff] %v20697_v0 }
  0x77   : > { %243 = vst [vmem:[#allocation2 + $0xb0] sm:$0xff] %v20697_v0  ;;  %244 = vst [vmem:[#allocation2 + $0xb8] sm:$0xff] %v20697_v0 }
  0x78   : > { %245 = vst [vmem:[#allocation2 + $0xc0] sm:$0xff] %v20697_v0  ;;  %246 = vst [vmem:[#allocation2 + $0xc8] sm:$0xff] %v20697_v0 }
  0x79   : > { %247 = vst [vmem:[#allocation2 + $0xd0] sm:$0xff] %v20697_v0  ;;  %248 = vst [vmem:[#allocation2 + $0xd8] sm:$0xff] %v20697_v0 }
  0x7a   : > { %249 = vst [vmem:[#allocation2 + $0xe0] sm:$0xff] %v20697_v0  ;;  %250 = vst [vmem:[#allocation2 + $0xe8] sm:$0xff] %v20697_v0 }
  0x7b   : > { %251 = vst [vmem:[#allocation2 + $0xf0] sm:$0xff] %v20697_v0  ;;  %252 = vst [vmem:[#allocation2 + $0xf8] sm:$0xff] %v20697_v0 }
  0x7c   : > { %253 = vst [vmem:[#allocation2 + $0x100] sm:$0xff] %v20697_v0  ;;  %254 = vst [vmem:[#allocation2 + $0x108] sm:$0xff] %v20697_v0 }
  0x7d   : > { %255 = vst [vmem:[#allocation2 + $0x110] sm:$0xff] %v20697_v0  ;;  %256 = vst [vmem:[#allocation2 + $0x118] sm:$0xff] %v20697_v0 }
  0x7e   : > { %257 = vst [vmem:[#allocation2 + $0x120] sm:$0xff] %v20697_v0  ;;  %258 = vst [vmem:[#allocation2 + $0x128] sm:$0xff] %v20697_v0 }
  0x7f   : > { %259 = vst [vmem:[#allocation2 + $0x130] sm:$0xff] %v20697_v0  ;;  %260 = vst [vmem:[#allocation2 + $0x138] sm:$0xff] %v20697_v0 }
  0x80   : > { %261 = vst [vmem:[#allocation2 + $0x140] sm:$0xff] %v20697_v0  ;;  %262 = vst [vmem:[#allocation2 + $0x148] sm:$0xff] %v20697_v0 }
  0x81   : > { %263 = vst [vmem:[#allocation2 + $0x150] sm:$0xff] %v20697_v0  ;;  %264 = vst [vmem:[#allocation2 + $0x158] sm:$0xff] %v20697_v0 }
  0x82   : > { %265 = vst [vmem:[#allocation2 + $0x160] sm:$0xff] %v20697_v0  ;;  %266 = vst [vmem:[#allocation2 + $0x168] sm:$0xff] %v20697_v0 }
  0x83   : > { %267 = vst [vmem:[#allocation2 + $0x170] sm:$0xff] %v20697_v0  ;;  %268 = vst [vmem:[#allocation2 + $0x178] sm:$0xff] %v20697_v0 }
  0x84   : > { %269 = vst [vmem:[#allocation2 + $0x180] sm:$0xff] %v20697_v0  ;;  %270 = vst [vmem:[#allocation2 + $0x188] sm:$0xff] %v20697_v0 }
  0x85   : > { %271 = vst [vmem:[#allocation2 + $0x190] sm:$0xff] %v20697_v0  ;;  %272 = vst [vmem:[#allocation2 + $0x198] sm:$0xff] %v20697_v0 }
  0x86   : > { %273 = vst [vmem:[#allocation2 + $0x1a0] sm:$0xff] %v20697_v0  ;;  %274 = vst [vmem:[#allocation2 + $0x1a8] sm:$0xff] %v20697_v0 }
  0x87   : > { %275 = vst [vmem:[#allocation2 + $0x1b0] sm:$0xff] %v20697_v0  ;;  %276 = vst [vmem:[#allocation2 + $0x1b8] sm:$0xff] %v20697_v0 }
  0x88   : > { %277 = vst [vmem:[#allocation2 + $0x1c0] sm:$0xff] %v20697_v0  ;;  %278 = vst [vmem:[#allocation2 + $0x1c8] sm:$0xff] %v20697_v0 }
  0x89   : > { %279 = vst [vmem:[#allocation2 + $0x1d0] sm:$0xff] %v20697_v0  ;;  %280 = vst [vmem:[#allocation2 + $0x1d8] sm:$0xff] %v20697_v0 }
  0x8a   : > { %281 = vst [vmem:[#allocation2 + $0x1e0] sm:$0xff] %v20697_v0  ;;  %282 = vst [vmem:[#allocation2 + $0x1e8] sm:$0xff] %v20697_v0 }
  0x8b   : > { %283 = vst [vmem:[#allocation2 + $0x1f0] sm:$0xff] %v20697_v0  ;;  %284 = vst [vmem:[#allocation2 + $0x1f8] sm:$0xff] %v20697_v0 }
  0x8c PF: > { %v20220_v1 = vld [vmem:[#allocation6 + $0x40] sm:$0xff]   ;;  %v20221_v2 = vld [vmem:[#allocation6 + $0x48] sm:$0xff]   ;;  %v20222_v3 = vld [vmem:[#allocation6 + $0x50] sm:$0xff]   ;;  %vm832_vm0 = vcmask 1043456   ;;  %vm479_vm1 = vsmask.f32 4352 }
  0x8d   : > { %17330 = vmatprep.subr.bf16.mxu0 %v20220_v1  ;;  %19106 = vmatprep.subr.bf16.mxu1 %v20220_v1  ;;  %v20223_v4 = vld [vmem:[#allocation6 + $0x58] sm:$0xff]   ;;  %v285_v7 = vld [vmem:[%s20898_s30] sm:$0xff]  ;;  %v286_v10 = vld [vmem:[%s20898_s30 + $0x8] sm:$0xff]  ;;  %vm1348_vm2 = vsmask.f32 3328  ;;  %vm5242_vm3 = vcmask 1044480  }
  0x8e   : > { %17331 = vmatpush3.bf16.msra.mxu0 %v20220_v1  ;;  %19114 = vmatpush3.bf16.msra.mxu1 %v20220_v1  ;;  %317 = vst [vmem:[%s20908_s20] sm:$0xff] %v285_v7  ;;  %v349_v11 = vpack.c.bf16 %v286_v10, %v285_v7  ;;  %318 = vst [vmem:[%s20908_s20 + $0x8] sm:$0xff] %v286_v10  ;;  %v20224_v12 = vld [vmem:[#allocation6 + $0x60] sm:$0xff]   ;;  %v287_v14 = vld [vmem:[%s20898_s30 + $0x10] sm:$0xff]  ;;  %vm5951_vm4 = vcmask 1042432   ;;  %vm8917_vm5 = vcmask 1045504   ;;  %vm9626_vm6 = vcmask 1041408  }
  0x8f   : > { %17332 = vmatprep.subr.bf16.mxu0 %v20221_v2  ;;  %19107 = vmatprep.subr.bf16.mxu1 %v20221_v2  ;;  %v288_v15 = vld [vmem:[%s20898_s30 + $0x18] sm:$0xff]  ;;  %319 = vst [vmem:[%s20908_s20 + $0x10] sm:$0xff] %v287_v14  ;;  %v289_v18 = vld [vmem:[%s20898_s30 + $0x20] sm:$0xff]  ;;  %v290_v19 = vld [vmem:[%s20898_s30 + $0x28] sm:$0xff]  ;;  %s16441_s18 = sshll.u32 %s20742_s16, 12  ;;  %s16028_s17 = sshll.u32 %s20908_s20, 4  ;;  %s23119_s17 = int_to_ptr.vmem [resolvable:$true] %s16028_s17 }
  0x90   : > { %v381_v16 = vrot.slane %v349_v11, 4  ;;  %v350_v17 = vpack.c.bf16 %v288_v15, %v287_v14  ;;  %320 = vst [vmem:[%s20908_s20 + $0x18] sm:$0xff] %v288_v15  ;;  %v351_v20 = vpack.c.bf16 %v290_v19, %v289_v18  ;;  %321 = vst [vmem:[%s20908_s20 + $0x20] sm:$0xff] %v289_v18  ;;  %v291_v22 = vld [vmem:[%s20898_s30 + $0x30] sm:$0xff]  ;;  %v292_v24 = vld [vmem:[%s20898_s30 + $0x38] sm:$0xff]  ;;  %s23117_s16 = scalar_lea.hbm %s23169_s3, %s16441_s18  ;;  %s16015_s27 = scalar_lea.sflag [#allocation5], %s20894_s28 }
  0x91   : > { %322 = vst [vmem:[%s20908_s20 + $0x28] sm:$0xff] %v290_v19  ;;  %323 = vst [vmem:[%s20908_s20 + $0x30] sm:$0xff] %v291_v22  ;;  %v293_v25 = vld [vmem:[%s20898_s30 + $0x40] sm:$0xff]  ;;  %v294_v26 = vld [vmem:[%s20898_s30 + $0x48] sm:$0xff]  ;;  %v352_v28 = vpack.c.bf16 %v292_v24, %v291_v22  ;;  %s20618_s23 = scalar_lea.vmem %s23119_s17, 4096  ;;  %p23220_p1 = scmp.ne.s32.totalorder %s23196_s6, 0 }
  0x92   : > { %17333 = vmatpush3.bf16.msra.mxu0 %v20221_v2  ;;  %19115 = vmatpush3.bf16.msra.mxu1 %v20221_v2  ;;  %414 = vst [vmem:[#allocation2 + $0x88] ss:$-4 sps:$4 sm:$0xff] %v381_v16   ;;  %v382_v21 = vrot.slane %v350_v17, 4  ;;  %v383_v23 = vrot.slane %v351_v20, 4  ;;  %v20225_v27 = vld [vmem:[#allocation6 + $0x68] sm:$0xff]   ;;  %324 = vst [vmem:[%s20908_s20 + $0x38] sm:$0xff] %v292_v24  ;;  %v353_v29 = vpack.c.bf16 %v294_v26, %v293_v25  ;;  %p20619_p3 = scmp.ne.s32.totalorder %s23119_s17, %s20618_s23 }
  0x93   : > { %17334 = vmatprep.subr.bf16.mxu0 %v20222_v3  ;;  %v20976_v5 = vld [vmem:[#allocation2 + $0x78] sm:$0xf]  ;;  %v20978_v6 = vld [vmem:[#allocation2 + $0x70] sm:$0xf0]  ;;  %19108 = vmatprep.subr.bf16.mxu1 %v20222_v3  ;;  %325 = vst [vmem:[%s20908_s20 + $0x40] sm:$0xff] %v293_v25  ;;  %326 = vst [vmem:[%s20908_s20 + $0x48] sm:$0xff] %v294_v26 }
  0x94   : > { %v833_v8 = vrot.slane %v20978_v6, 4  ;;  %v834_v9 = vrot.slane %v20976_v5, 4  ;;  %416 = vst [vmem:[#allocation2 + $0x98] ss:$-4 sps:$4 sm:$0xff] %v382_v21   ;;  %418 = vst [vmem:[#allocation2 + $0xa8] ss:$-4 sps:$4 sm:$0xff] %v383_v23   ;;  %p20620_p11 = pnand %p20619_p3, %p23220_p1 }
  0x95   : > { %v384_v30 = vrot.slane %v352_v28, 4  ;;  %v385_v31 = vrot.slane %v353_v29, 4  ;;  %v295_v32 = vld [vmem:[%s20898_s30 + $0x50] sm:$0xff]  ;;  %v296_v33 = vld [vmem:[%s20898_s30 + $0x58] sm:$0xff]  ;;  %v297_v34 = vld [vmem:[%s20898_s30 + $0x60] sm:$0xff]  ;;  %v489_v60 = vshrl.u32 %v20976_v5, 16 }
  0x96   : > { %17335 = vmatpush3.bf16.msra.mxu0 %v20222_v3  ;;  %v835_v13 = vsel %vm832_vm0, %v833_v8, %v834_v9  ;;  %19116 = vmatpush3.bf16.msra.mxu1 %v20222_v3  ;;  %v354_v35 = vpack.c.bf16 %v296_v33, %v295_v32  ;;  %327 = vst [vmem:[%s20908_s20 + $0x50] sm:$0xff] %v295_v32  ;;  %328 = vst [vmem:[%s20908_s20 + $0x58] sm:$0xff] %v296_v33  ;;  %v298_v36 = vld [vmem:[%s20898_s30 + $0x68] sm:$0xff]  ;;  %v20226_v37 = vld [vmem:[#allocation6 + $0x70] sm:$0xff]   ;;  %v492_v0 = vshll.u32 %v20976_v5, 16  ;;  %p20621_p7 = pneg %p20620_p11  ;;  %s20698_s5 = smov [#allocation9]  }
  0x97   : > { %17336 = vmatprep.subr.bf16.mxu0 %v20223_v4  ;;  %17346 = vmatprep.mubr.bf16.mxu0 %v835_v13  ;;  %329 = vst [vmem:[%s20908_s20 + $0x60] sm:$0xff] %v297_v34  ;;  %420 = vst [vmem:[#allocation2 + $0xb8] ss:$-4 sps:$4 sm:$0xff] %v384_v30   ;;  %v355_v38 = vpack.c.bf16 %v298_v36, %v297_v34  ;;  %v20227_v41 = vld [vmem:[#allocation6 + $0x78] sm:$0xff]   ;;  %v20228_v48 = vld [vmem:[#allocation6] sm:$0xff]   ;;  %v21047_v10 = vrot.slane %v489_v60, 3 }
  0x98   : > { %19109 = vmatprep.subr.bf16.mxu1 %v20223_v4  ;;  %422 = vst [vmem:[#allocation2 + $0xc8] ss:$-4 sps:$4 sm:$0xff] %v385_v31   ;;  %330 = vst [vmem:[%s20908_s20 + $0x68] sm:$0xff] %v298_v36  ;;  %v386_v39 = vrot.slane %v354_v35, 4  ;;  %v20229_v52 = vld [vmem:[#allocation6 + $0x8] sm:$0xff]   ;;  %v20230_v61 = vld [vmem:[#allocation6 + $0x10] sm:$0xff]  }
  0x99   : > { %v387_v40 = vrot.slane %v355_v38, 4  ;;  %v21011_v42 = vld [vmem:[#allocation2 + $0x88] sm:$0xf]  ;;  %v21013_v43 = vld [vmem:[#allocation2 + $0x80] sm:$0xf0]  ;;  %v20231_v1 = vld [vmem:[#allocation6 + $0x18] sm:$0xff]  }
  0x9a   : > { %17337 = vmatpush3.bf16.msra.mxu0 %v20223_v4  ;;  %19117 = vmatpush3.bf16.msra.mxu1 %v20223_v4  ;;  %424 = vst [vmem:[#allocation2 + $0xd8] ss:$-4 sps:$4 sm:$0xff] %v386_v39   ;;  %v836_v46 = vrot.slane %v21013_v43, 4  ;;  %v837_v47 = vrot.slane %v21011_v42, 4  ;;  %v447_v4 = vld [vmem:[#allocation2 + $0x70] sm:$0xf8] }
  0x9b   : > { %17338 = vmatprep.subr.bf16.mxu0 %v20224_v12  ;;  %19110 = vmatprep.subr.bf16.mxu1 %v20224_v12  ;;  %426 = vst [vmem:[#allocation2 + $0xe8] ss:$-4 sps:$4 sm:$0xff] %v387_v40   ;;  %v21015_v44 = vld [vmem:[#allocation2 + $0x98] sm:$0xf]  ;;  %v21017_v45 = vld [vmem:[#allocation2 + $0x90] sm:$0xf0] }
  0x9c   : > { %v839_v49 = vrot.slane %v21017_v45, 4  ;;  %v840_v50 = vrot.slane %v21015_v44, 4  ;;  %v838_v51 = vsel %vm832_vm0, %v836_v46, %v837_v47  ;;  %v21025_v54 = vld [vmem:[#allocation2 + $0xa8] sm:$0xf]  ;;  %v21027_v55 = vld [vmem:[#allocation2 + $0xa0] sm:$0xf0] }
  0x9d   : > { %v842_v58 = vrot.slane %v21027_v55, 4  ;;  %v843_v59 = vrot.slane %v21025_v54, 4  ;;  %v21049_v5 = vrot.slane %v492_v0, 4  ;;  %v21052_v11 = vld [vmem:[%s20898_s30 + $0x70] sm:$0xff]  ;;  %v21058_v13 = vld [vmem:[%s20898_s30 + $0x80] sm:$0xff]  ;;  %v481_v15 = vshrl.u32 %v447_v4, 16 }
  0x9e   : > { %17339 = vmatpush3.bf16.msra.mxu0 %v20224_v12  ;;  %19118 = vmatpush3.bf16.msra.mxu1 %v20224_v12  ;;  %v841_v53 = vsel %vm832_vm0, %v839_v49, %v840_v50  ;;  %v21029_v56 = vld [vmem:[#allocation2 + $0xb8] sm:$0xf]  ;;  %v21031_v57 = vld [vmem:[#allocation2 + $0xb0] sm:$0xf0]  ;;  %v484_v16 = vshll.u32 %v447_v4, 16  ;;  %v506_v17 = vshrl.u32 %v21011_v42, 16 }
  0x9f   : > { %17340 = vmatprep.subr.bf16.mxu0 %v20225_v27  ;;  %19111 = vmatprep.subr.bf16.mxu1 %v20225_v27  ;;  %v845_v62 = vrot.slane %v21031_v57, 4  ;;  %v846_v63 = vrot.slane %v21029_v56, 4  ;;  %v21039_v2 = vld [vmem:[#allocation2 + $0xc8] sm:$0xf]  ;;  %v21041_v3 = vld [vmem:[#allocation2 + $0xc0] sm:$0xf0]  ;;  %v844_v7 = vsel %vm832_vm0, %v842_v58, %v843_v59  ;;  %v495_v34 = vor.u32 %v21049_v5, %v21047_v10 }
  0xa0   : > { %v21055_v12 = vld [vmem:[%s20898_s30 + $0x78] sm:$0xff]  ;;  %331 = vst [vmem:[%s20908_s20 + $0x70] sm:$0xff] %v21052_v11  ;;  %v21068_v18 = vld [vmem:[%s20898_s30 + $0x88] sm:$0xff]  ;;  %333 = vst [vmem:[%s20908_s20 + $0x80] sm:$0xff] %v21058_v13  ;;  %v848_v21 = vrot.slane %v21041_v3, 4  ;;  %v849_v22 = vrot.slane %v21039_v2, 4 }
  0xa1   : > { %v21044_v8 = vld [vmem:[#allocation2 + $0xd0] sm:$0xf0]  ;;  %v847_v9 = vsel %vm832_vm0, %v845_v62, %v846_v63  ;;  %v21060_v14 = vld [vmem:[#allocation2 + $0xd8] sm:$0xf]  ;;  %332 = vst [vmem:[%s20908_s20 + $0x78] sm:$0xff] %v21055_v12  ;;  %v20232_v19 = vld [vmem:[#allocation6 + $0x20] sm:$0xff]   ;;  %v357_v59 = vpack.c.bf16 %v21068_v18, %v21058_v13 }
  0xa2   : > { %17341 = vmatpush3.bf16.msra.mxu0 %v20225_v27  ;;  %19119 = vmatpush3.bf16.msra.mxu1 %v20225_v27  ;;  %v21072_v20 = vld [vmem:[#allocation2 + $0x80] sm:$0xf8]  ;;  %334 = vst [vmem:[%s20908_s20 + $0x88] sm:$0xff] %v21068_v18  ;;  %v851_v23 = vrot.slane %v21044_v8, 4  ;;  %v303_v24 = vld [vmem:[%s20898_s30 + $0x90] sm:$0xff]  ;;  %v304_v25 = vld [vmem:[%s20898_s30 + $0x98] sm:$0xff]  ;;  %v850_v39 = vsel %vm832_vm0, %v848_v21, %v849_v22 }
  0xa3   : > { %17342 = vmatprep.subr.bf16.mxu0 %v20226_v37  ;;  %19112 = vmatprep.subr.bf16.mxu1 %v20226_v37  ;;  %v305_v26 = vld [vmem:[%s20898_s30 + $0xa0] sm:$0xff]  ;;  %v852_v27 = vrot.slane %v21060_v14, 4  ;;  %v21083_v28 = vld [vmem:[#allocation2 + $0xe8] sm:$0xf]  ;;  %335 = vst [vmem:[%s20908_s20 + $0x90] sm:$0xff] %v303_v24  ;;  %336 = vst [vmem:[%s20908_s20 + $0x98] sm:$0xff] %v304_v25  ;;  %v358_v60 = vpack.c.bf16 %v304_v25, %v303_v24 }
  0xa4   : > { %v21085_v29 = vld [vmem:[#allocation2 + $0xe0] sm:$0xf0]  ;;  %v306_v30 = vld [vmem:[%s20898_s30 + $0xa8] sm:$0xff]  ;;  %337 = vst [vmem:[%s20908_s20 + $0xa0] sm:$0xff] %v305_v26  ;;  %v21091_v31 = vrot.slane %v481_v15, 3  ;;  %v307_v32 = vld [vmem:[%s20898_s30 + $0xb0] sm:$0xff] }
  0xa5   : > { %338 = vst [vmem:[%s20908_s20 + $0xa8] sm:$0xff] %v306_v30  ;;  %v21095_v33 = vrot.slane %v484_v16, 4  ;;  %v498_v35 = vshrl.u32 %v21072_v20, 16  ;;  %v21100_v36 = vld [vmem:[#allocation2 + $0x90] sm:$0xf8]  ;;  %339 = vst [vmem:[%s20908_s20 + $0xb0] sm:$0xff] %v307_v32  ;;  %v853_v49 = vsel %vm832_vm0, %v851_v23, %v852_v27 }
  0xa6   : > { %17343 = vmatpush3.bf16.msra.mxu0 %v20226_v37  ;;  %19120 = vmatpush3.bf16.msra.mxu1 %v20226_v37  ;;  %v308_v37 = vld [vmem:[%s20898_s30 + $0xb8] sm:$0xff]  ;;  %v309_v38 = vld [vmem:[%s20898_s30 + $0xc0] sm:$0xff]  ;;  %v501_v40 = vshll.u32 %v21072_v20, 16  ;;  %v509_v46 = vshll.u32 %v21011_v42, 16  ;;  %v310_v47 = vld [vmem:[%s20898_s30 + $0xc8] sm:$0xff]  ;;  %v854_v50 = vrot.slane %v21085_v29, 4 }
  0xa7   : > { %17344 = vmatprep.subr.bf16.mxu0 %v20227_v41  ;;  %19113 = vmatprep.subr.bf16.mxu1 %v20227_v41  ;;  %340 = vst [vmem:[%s20908_s20 + $0xb8] sm:$0xff] %v308_v37  ;;  %341 = vst [vmem:[%s20908_s20 + $0xc0] sm:$0xff] %v309_v38  ;;  %v311_v42 = vld [vmem:[%s20898_s30 + $0xd0] sm:$0xff]  ;;  %v518_v58 = vshll.u32 %v21100_v36, 16  ;;  %v313_v62 = vld [vmem:[%s20898_s30 + $0xe0] sm:$0xff]  ;;  %v487_v0 = vor.u32 %v21095_v33, %v21091_v31  ;;  %v360_v13 = vpack.c.bf16 %v308_v37, %v307_v32  ;;  %s20622_s8 = sshll.u32 %s20698_s5, 4  ;;  %s20623_s8 = int_to_ptr.vmem [resolvable:$false] %s20622_s8 }
  0xa8   : > { %342 = vst [vmem:[%s20908_s20 + $0xc8] sm:$0xff] %v310_v47  ;;  %343 = vst [vmem:[%s20908_s20 + $0xd0] sm:$0xff] %v311_v42  ;;  %v314_v63 = vld [vmem:[%s20898_s30 + $0xe8] sm:$0xff]  ;;  %v20234_v15 = vld [vmem:[#allocation6 + $0x30] sm:$0xff]   ;;  %v500_v21 = vrot.slane %v498_v35, 3  ;;  %v503_v22 = vrot.slane %v501_v40, 4  ;;  %p20625_p10 = scmp.lt.s32.totalorder %s23119_s17, %s20623_s8 }
  0xa9   : > { %345 = vst [vmem:[%s20908_s20 + $0xe0] sm:$0xff] %v313_v62  ;;  %346 = vst [vmem:[%s20908_s20 + $0xe8] sm:$0xff] %v314_v63  ;;  %v363_v20 = vpack.c.bf16 %v314_v63, %v313_v62  ;;  %v511_v23 = vrot.slane %v509_v46, 4  ;;  %v392_v24 = vrot.slane %v360_v13, 4  ;;  %v453_v25 = vld [vmem:[#allocation2 + $0xa0] sm:$0xf8] }
  0xaa   : > { %17345 = vmatpush3.bf16.msra.mxu0 %v20227_v41  ;;  %19121 = vmatpush3.bf16.msra.mxu1 %v20227_v41  ;;  %v21107_v41 = vrot.slane %v506_v17, 3  ;;  %v361_v17 = vpack.c.bf16 %v310_v47, %v309_v38  ;;  %v520_v31 = vrot.slane %v518_v58, 4  ;;  %v20235_v35 = vld [vmem:[#allocation6 + $0x38] sm:$0xff]   ;;  %v504_v37 = vor.u32 %v503_v22, %v500_v21  ;;  %v455_v38 = vld [vmem:[#allocation2 + $0xb0] sm:$0xf8]  ;;  %v20236_v5 = vld [vmem:[#allocation6 + $0x80] sm:$0xff]  }
  0xab   : > { %17378 = vmatprep.subr.bf16.mxu0 %v20228_v48  ;;  %v395_v27 = vrot.slane %v363_v20, 4  ;;  %436 = vst [vmem:[#allocation2 + $0x138] ss:$-4 sps:$4 sm:$0xff] %v392_v24   ;;  %v535_v40 = vshll.u32 %v453_v25, 16  ;;  %v540_v46 = vshrl.u32 %v21025_v54, 16  ;;  %v543_v47 = vshll.u32 %v21025_v54, 16 }
  0xac   : > { %v20238_v22 = vld [vmem:[#allocation6 + $0x90] sm:$0xff]   ;;  %s20624_s9 = scalar_lea.vmem %s20623_s8, 8192 }
  0xad   : > { %17347 = vmatmul.mubr.bf16.vlgmr.msra.gmra.mrb[0].mxu0 %v838_v51  ;;  %v855_v51 = vrot.slane %v21083_v28, 4  ;;  %442 = vst [vmem:[#allocation2 + $0x168] ss:$-4 sps:$4 sm:$0xff] %v395_v27   ;;  %v542_v58 = vrot.slane %v540_v46, 3  ;;  %v611_v46 = vshll.u32 %v21083_v28, 16  ;;  %p20626_p13 = scmp.lt.s32.totalorder %s20624_s9, %s20618_s23 }
  0xae   : > { %17379 = vmatpush3.bf16.msra.mxu0 %v20228_v48  ;;  %17350 = vmatprep.mubr.bf16.mxu0 %v841_v53  ;;  %v20233_v48 = vld [vmem:[#allocation6 + $0x28] sm:$0xff]   ;;  %v515_v53 = vshrl.u32 %v21100_v36, 16  ;;  %v496_v36 = vsel %vm479_vm1, %v487_v0, %v495_v34  ;;  %v549_v34 = vshrl.u32 %v455_v38, 16 }
  0xaf   : > { %17380 = vmatprep.subr.bf16.mxu0 %v20229_v52  ;;  %p20627_p2 = por %p20626_p13, %p20625_p10 }
  0xb0   : > { %v551_v62 = vrot.slane %v549_v34, 3 }
  0xb1   : > { %p20628_p0 = pnand %p20627_p2, %p20621_p7 }
  0xb2   : > { %17381 = vmatpush3.bf16.msra.mxu0 %v20229_v52  ;;  %v356_v52 = vpack.c.bf16 %v21055_v12, %v21052_v11  ;;  %v389_v11 = vrot.slane %v357_v59, 4  ;;  %v390_v12 = vrot.slane %v358_v60, 4  ;;  %v545_v59 = vrot.slane %v543_v47, 4  ;;  %v457_v60 = vld [vmem:[#allocation2 + $0xc0] sm:$0xf8] }
  0xb3   : > { %17382 = vmatprep.subr.bf16.mxu0 %v20230_v61 }
  0xb4   : > { %v388_v4 = vrot.slane %v356_v52, 4  ;;  %430 = vst [vmem:[#allocation2 + $0x108] ss:$-4 sps:$4 sm:$0xff] %v389_v11   ;;  %432 = vst [vmem:[#allocation2 + $0x118] ss:$-4 sps:$4 sm:$0xff] %v390_v12   ;;  %v560_v52 = vshll.u32 %v21029_v56, 16  ;;  %v546_v13 = vor.u32 %v545_v59, %v542_v58 }
  0xb5   : > { %17351 = vmatmul.mubr.bf16.gmra.mrb[4].mxu0 %v844_v7  ;;  %v359_v7 = vpack.c.bf16 %v306_v30, %v305_v26  ;;  %v517_v30 = vrot.slane %v515_v53, 3  ;;  %v537_v53 = vrot.slane %v535_v40, 4  ;;  %v577_v11 = vshll.u32 %v21039_v2, 16 }
  0xb6   : > { %17383 = vmatpush3.bf16.msra.mxu0 %v20230_v61  ;;  %17354 = vmatprep.mubr.bf16.mxu0 %v847_v9  ;;  %v312_v61 = vld [vmem:[%s20898_s30 + $0xd8] sm:$0xff]  ;;  %v526_v9 = vshll.u32 %v21015_v44, 16  ;;  %428 = vst [vmem:[#allocation2 + $0xf8] ss:$-4 sps:$4 sm:$0xff] %v388_v4   ;;  %v459_v4 = vld [vmem:[#allocation2 + $0xd0] sm:$0xf8] }
  0xb7   : > { %17384 = vmatprep.subr.bf16.mxu0 %v20231_v1  ;;  %344 = vst [vmem:[%s20908_s20 + $0xd8] sm:$0xff] %v312_v61  ;;  %v391_v16 = vrot.slane %v359_v7, 4  ;;  %v362_v18 = vpack.c.bf16 %v312_v61, %v311_v42  ;;  %v20237_v61 = vld [vmem:[#allocation6 + $0x88] sm:$0xff]   ;;  %v566_v7 = vshrl.u32 %v457_v60, 16  ;;  %v608_v40 = vshrl.u32 %v21083_v28, 16 }
  0xb8   : > { %v528_v33 = vrot.slane %v526_v9, 4  ;;  %v569_v9 = vshll.u32 %v457_v60, 16  ;;  %v613_v59 = vrot.slane %v611_v46, 4 }
  0xb9   : > { %434 = vst [vmem:[#allocation2 + $0x128] ss:$-4 sps:$4 sm:$0xff] %v391_v16   ;;  %v394_v26 = vrot.slane %v362_v18, 4  ;;  %v586_v16 = vshll.u32 %v459_v4, 16  ;;  %v594_v18 = vshll.u32 %v21060_v14, 16  ;;  %v610_v58 = vrot.slane %v608_v40, 3 }
  0xba   : > { %17385 = vmatpush3.bf16.msra.mxu0 %v20231_v1  ;;  %v523_v1 = vshrl.u32 %v21015_v44, 16  ;;  %v393_v44 = vrot.slane %v361_v17, 4  ;;  %v591_v17 = vshrl.u32 %v21060_v14, 16  ;;  %v571_v24 = vrot.slane %v569_v9, 4 }
  0xbb   : > { %17386 = vmatprep.subr.bf16.mxu0 %v20232_v19  ;;  %440 = vst [vmem:[#allocation2 + $0x158] ss:$-4 sps:$4 sm:$0xff] %v394_v26   ;;  %v20239_v26 = vld [vmem:[#allocation6 + $0x98] sm:$0xff]   ;;  %v466_v60 = vld [vmem:[#allocation2 + $0x108] sm:$0xf] }
  0xbc   : > { %v525_v32 = vrot.slane %v523_v1, 3  ;;  %438 = vst [vmem:[#allocation2 + $0x148] ss:$-4 sps:$4 sm:$0xff] %v393_v44   ;;  %v562_v1 = vrot.slane %v560_v52, 4  ;;  %v461_v44 = vld [vmem:[#allocation2 + $0xe0] sm:$0xf8] }
  0xbd   : > { %17355 = vmatmul.mubr.bf16.gmra.mrb[8].mxu0 %v850_v39  ;;  %v532_v39 = vshrl.u32 %v453_v25, 16  ;;  %v579_v25 = vrot.slane %v577_v11, 4  ;;  %v465_v52 = vld [vmem:[#allocation2 + $0x100] sm:$0xf8]  ;;  %v467_v9 = vld [vmem:[#allocation2 + $0x110] sm:$0xf8] }
  0xbe   : > { %17387 = vmatpush3.bf16.msra.mxu0 %v20232_v19  ;;  %17358 = vmatprep.mubr.bf16.mxu0 %v853_v49  ;;  %v856_v19 = vsel %vm832_vm0, %v854_v50, %v855_v51  ;;  %v521_v49 = vor.u32 %v520_v31, %v517_v30  ;;  %v529_v10 = vor.u32 %v528_v33, %v525_v32  ;;  %v552_v50 = vshll.u32 %v455_v38, 16  ;;  %v463_v33 = vld [vmem:[#allocation2 + $0xf0] sm:$0xf8] }
  0xbf   : > { %17388 = vmatprep.subr.bf16.mxu0 %v20233_v48  ;;  %v557_v51 = vshrl.u32 %v21029_v56, 16  ;;  %v534_v42 = vrot.slane %v532_v39, 3  ;;  %v574_v56 = vshrl.u32 %v21039_v2, 16  ;;  %v588_v30 = vrot.slane %v586_v16, 4 }
  0xc0   : > { %v554_v63 = vrot.slane %v552_v50, 4  ;;  %v593_v31 = vrot.slane %v591_v17, 3  ;;  %v596_v32 = vrot.slane %v594_v18, 4  ;;  %v600_v38 = vshrl.u32 %v461_v44, 16  ;;  %v20240_v50 = vld [vmem:[#allocation6 + $0xa0] sm:$0xff]  }
  0xc1   : > { %v559_v0 = vrot.slane %v557_v51, 3  ;;  %v538_v12 = vor.u32 %v537_v53, %v534_v42  ;;  %v603_v39 = vshll.u32 %v461_v44, 16  ;;  %v617_v47 = vshrl.u32 %v463_v33, 16  ;;  %v20243_v44 = vld [vmem:[#allocation6 + $0xb8] sm:$0xff]  }
  0xc2   : > { %17389 = vmatpush3.bf16.msra.mxu0 %v20233_v48  ;;  %v512_v48 = vor.u32 %v511_v23, %v21107_v41  ;;  %v530_v41 = vsel %vm479_vm1, %v521_v49, %v529_v10  ;;  %v555_v20 = vor.u32 %v554_v63, %v551_v62  ;;  %v568_v23 = vrot.slane %v566_v7, 3 }
  0xc3   : > { %17390 = vmatprep.subr.bf16.mxu0 %v20234_v15  ;;  %v563_v21 = vor.u32 %v562_v1, %v559_v0  ;;  %v547_v2 = vsel %vm479_vm1, %v538_v12, %v546_v13  ;;  %v597_v34 = vor.u32 %v596_v32, %v593_v31  ;;  %v602_v42 = vrot.slane %v600_v38, 3  ;;  %v20241_v1 = vld [vmem:[#allocation6 + $0xa8] sm:$0xff]   ;;  %v472_v31 = vld [vmem:[#allocation2 + $0x138] sm:$0xf] }
  0xc4   : > { %v513_v54 = vsel %vm479_vm1, %v504_v37, %v512_v48  ;;  %v620_v48 = vshll.u32 %v463_v33, 16  ;;  %v605_v53 = vrot.slane %v603_v39, 4  ;;  %v619_v28 = vrot.slane %v617_v47, 3 }
  0xc5   : > { %17359 = vmatmul.mubr.bf16.gmra.mrb[12].mxu0 %v856_v19  ;;  %v576_v19 = vrot.slane %v574_v56, 3  ;;  %v564_v14 = vsel %vm479_vm1, %v555_v20, %v563_v21  ;;  %v634_v63 = vshrl.u32 %v465_v52, 16  ;;  %v637_v0 = vshll.u32 %v465_v52, 16  ;;  %v468_v56 = vld [vmem:[#allocation2 + $0x118] sm:$0xf]  ;;  %v20242_v21 = vld [vmem:[#allocation6 + $0xb0] sm:$0xff]  }
  0xc6   : > { %17391 = vmatpush3.bf16.msra.mxu0 %v20234_v15  ;;  %17394 = vmatprep.mubr.bf16.mxu0 %v496_v36  ;;  %v583_v15 = vshrl.u32 %v459_v4, 16  ;;  %v572_v36 = vor.u32 %v571_v24, %v568_v23  ;;  %v642_v4 = vshrl.u32 %v466_v60, 16  ;;  %v645_v7 = vshll.u32 %v466_v60, 16 }
  0xc7   : > { %17392 = vmatprep.subr.bf16.mxu0 %v20235_v35  ;;  %v580_v37 = vor.u32 %v579_v25, %v576_v19  ;;  %v606_v11 = vor.u32 %v605_v53, %v602_v42  ;;  %v614_v12 = vor.u32 %v613_v59, %v610_v58  ;;  %v651_v16 = vshrl.u32 %v467_v9, 16  ;;  %v469_v25 = vld [vmem:[#allocation2 + $0x120] sm:$0xf8] }
  0xc8   : > { %v585_v27 = vrot.slane %v583_v15, 3  ;;  %v654_v17 = vshll.u32 %v467_v9, 16  ;;  %v659_v18 = vshrl.u32 %v468_v56, 16  ;;  %v662_v20 = vshll.u32 %v468_v56, 16 }
  0xc9   : > { %v581_v51 = vsel %vm479_vm1, %v572_v36, %v580_v37  ;;  %v639_v23 = vrot.slane %v637_v0, 4  ;;  %v644_v24 = vrot.slane %v642_v4, 3  ;;  %v647_v19 = vrot.slane %v645_v7, 4  ;;  %v476_v0 = vld [vmem:[#allocation2 + $0x158] sm:$0xf] }
  0xca   : > { %17393 = vmatpush3.bf16.msra.mxu0 %v20235_v35  ;;  %v464_v35 = vld [vmem:[#allocation2 + $0xf8] sm:$0xf]  ;;  %v653_v32 = vrot.slane %v651_v16, 3  ;;  %v656_v33 = vrot.slane %v654_v17, 4  ;;  %v668_v38 = vshrl.u32 %v469_v25, 16  ;;  %v671_v39 = vshll.u32 %v469_v25, 16 }
  0xcb   : > { %17426 = vmatprep.subr.bf16.mxu0 %v20236_v5  ;;  %v625_v49 = vshrl.u32 %v464_v35, 16  ;;  %v628_v10 = vshll.u32 %v464_v35, 16  ;;  %v664_v35 = vrot.slane %v662_v20, 4  ;;  %v648_v37 = vor.u32 %v647_v19, %v644_v24 }
  0xcc   : > { %v670_v52 = vrot.slane %v668_v38, 3  ;;  %v673_v42 = vrot.slane %v671_v39, 4  ;;  %v727_v17 = vshrl.u32 %v476_v0, 16 }
  0xcd   : > { %17395 = vmatmul.mubr.bf16.vlgmr.msra.gmra.mrb[0].mxu0 %v513_v54  ;;  %v622_v54 = vrot.slane %v620_v48, 4 }
  0xce   : > { %17427 = vmatpush3.bf16.msra.mxu0 %v20236_v5  ;;  %17398 = vmatprep.mubr.bf16.mxu0 %v530_v41  ;;  %v589_v5 = vor.u32 %v588_v30, %v585_v27  ;;  %v627_v41 = vrot.slane %v625_v49, 3  ;;  %v471_v30 = vld [vmem:[#allocation2 + $0x130] sm:$0xf8]  ;;  %v693_v49 = vshrl.u32 %v472_v31, 16 }
  0xcf   : > { %17428 = vmatprep.subr.bf16.mxu0 %v20237_v61  ;;  %v623_v13 = vor.u32 %v622_v54, %v619_v28  ;;  %v685_v47 = vshrl.u32 %v471_v30, 16  ;;  %v688_v48 = vshll.u32 %v471_v30, 16 }
  0xd0   : > { %v598_v62 = vsel %vm479_vm1, %v589_v5, %v597_v34  ;;  %v657_v5 = vor.u32 %v656_v33, %v653_v32  ;;  %v695_v28 = vrot.slane %v693_v49, 3  ;;  %v1332_v32 = vld [vmem:[#allocation2 + $0x78] sm:$0x1f] }
  0xd1   : > { %v687_v59 = vrot.slane %v685_v47, 3  ;;  %v690_v60 = vrot.slane %v688_v48, 4  ;;  %v1358_v48 = vshrl.u32 %v1332_v32, 16  ;;  %v1361_v49 = vshll.u32 %v1332_v32, 16 }
  0xd2   : > { %17429 = vmatpush3.bf16.msra.mxu0 %v20237_v61  ;;  %v630_v61 = vrot.slane %v628_v10, 4  ;;  %v696_v10 = vshll.u32 %v472_v31, 16  ;;  %v478_v31 = vld [vmem:[#allocation2 + $0x168] sm:$0xf] }
  0xd3   : > { %17430 = vmatprep.subr.bf16.mxu0 %v20238_v22  ;;  %v691_v56 = vor.u32 %v690_v60, %v687_v59  ;;  %v744_v39 = vshrl.u32 %v478_v31, 16  ;;  %v1360_v60 = vrot.slane %v1358_v48, 4  ;;  %v20245_v48 = vld [vmem:[#allocation6 + $0xc8] sm:$0xff]  }
  0xd4   : > { %v631_v15 = vor.u32 %v630_v61, %v627_v41  ;;  %v698_v54 = vrot.slane %v696_v10, 4  ;;  %v473_v41 = vld [vmem:[#allocation2 + $0x140] sm:$0xf8]  ;;  %v21174_v10 = vld [vmem:[%s20898_s30 + $0xf8] sm:$0xff] }
  0xd5   : > { %17399 = vmatmul.mubr.bf16.gmra.mrb[4].mxu0 %v547_v2  ;;  %v470_v2 = vld [vmem:[#allocation2 + $0x128] sm:$0xf]  ;;  %v702_v7 = vshrl.u32 %v473_v41, 16  ;;  %v705_v9 = vshll.u32 %v473_v41, 16  ;;  %348 = vst [vmem:[%s20908_s20 + $0xf8] sm:$0xff] %v21174_v10  ;;  %v1367_v41 = vshrl.u32 %v21013_v43, 16 }
  0xd6   : > { %17402 = vmatprep.mubr.bf16.mxu0 %v564_v14  ;;  %17431 = vmatpush3.bf16.msra.mxu0 %v20238_v22  ;;  %v636_v22 = vrot.slane %v634_v63, 3  ;;  %v632_v27 = vsel %vm479_vm1, %v623_v13, %v631_v15  ;;  %v661_v14 = vrot.slane %v659_v18, 3  ;;  %v676_v40 = vshrl.u32 %v470_v2, 16  ;;  %v475_v63 = vld [vmem:[#allocation2 + $0x150] sm:$0xf8] }
  0xd7   : > { %17432 = vmatprep.subr.bf16.mxu0 %v20239_v26  ;;  %v679_v46 = vshll.u32 %v470_v2, 16  ;;  %v719_v15 = vshrl.u32 %v475_v63, 16  ;;  %v722_v16 = vshll.u32 %v475_v63, 16  ;;  %v730_v18 = vshll.u32 %v476_v0, 16  ;;  %v477_v2 = vld [vmem:[#allocation2 + $0x160] sm:$0xf8] }
  0xd8   : > { %v640_v36 = vor.u32 %v639_v23, %v636_v22  ;;  %v665_v34 = vor.u32 %v664_v35, %v661_v14  ;;  %v678_v53 = vrot.slane %v676_v40, 3  ;;  %v704_v20 = vrot.slane %v702_v7, 3  ;;  %v21165_v22 = vld [vmem:[%s20898_s30 + $0xf0] sm:$0xff] }
  0xd9   : > { %v681_v58 = vrot.slane %v679_v46, 4  ;;  %347 = vst [vmem:[%s20908_s20 + $0xf0] sm:$0xff] %v21165_v22  ;;  %v732_v30 = vrot.slane %v730_v18, 4  ;;  %v736_v14 = vshrl.u32 %v477_v2, 16  ;;  %v1350_v35 = vshrl.u32 %v20978_v6, 16 }
  0xda   : > { %17433 = vmatpush3.bf16.msra.mxu0 %v20239_v26  ;;  %v615_v26 = vsel %vm479_vm1, %v606_v11, %v614_v12  ;;  %v666_v61 = vsel %vm479_vm1, %v657_v5, %v665_v34  ;;  %v699_v11 = vor.u32 %v698_v54, %v695_v28  ;;  %v739_v38 = vshll.u32 %v477_v2, 16  ;;  %v1334_v54 = vld [vmem:[#allocation2 + $0x98] sm:$0x1f] }
  0xdb   : > { %17434 = vmatprep.subr.bf16.mxu0 %v20240_v50  ;;  %v682_v4 = vor.u32 %v681_v58, %v678_v53  ;;  %v747_v40 = vshll.u32 %v478_v31, 16  ;;  %v738_v5 = vrot.slane %v736_v14, 3  ;;  %v1352_v34 = vrot.slane %v1350_v35, 4  ;;  %v1336_v2 = vld [vmem:[#allocation2 + $0xb8] sm:$0x1f] }
  0xdc   : > { %v700_v24 = vsel %vm479_vm1, %v691_v56, %v699_v11  ;;  %v1363_v28 = vrot.slane %v1361_v49, 5  ;;  %v1384_v0 = vshrl.u32 %v21017_v45, 16  ;;  %v1395_v56 = vshll.u32 %v1334_v54, 16 }
  0xdd   : > { %17403 = vmatmul.mubr.bf16.gmra.mrb[8].mxu0 %v581_v51  ;;  %v649_v51 = vsel %vm479_vm1, %v640_v36, %v648_v37  ;;  %v1353_v36 = vshll.u32 %v20978_v6, 16  ;;  %v746_v6 = vrot.slane %v744_v39, 3  ;;  %v749_v53 = vrot.slane %v747_v40, 4 }
  0xde   : > { %17406 = vmatprep.mubr.bf16.mxu0 %v598_v62  ;;  %17435 = vmatpush3.bf16.msra.mxu0 %v20240_v50  ;;  %v21159_v50 = vld [vmem:[#allocation6 + $0xc0] sm:$0xff]   ;;  %v474_v62 = vld [vmem:[#allocation2 + $0x148] sm:$0xf]  ;;  %v1421_v14 = vshll.u32 %v21031_v57, 16  ;;  %v1426_v35 = vshrl.u32 %v1336_v2, 16 }
  0xdf   : > { %17436 = vmatprep.subr.bf16.mxu0 %v20241_v1  ;;  %v710_v12 = vshrl.u32 %v474_v62, 16  ;;  %v713_v13 = vshll.u32 %v474_v62, 16  ;;  %v1355_v59 = vrot.slane %v1353_v36, 5  ;;  %v750_v7 = vor.u32 %v749_v53, %v746_v6 }
  0xe0   : > { %v1429_v36 = vshll.u32 %v1336_v2, 16  ;;  %v793_v2 = vld [vmem:[#allocation2 + $0x100] sm:$0xf0] }
  0xe1   : > { %v712_v19 = vrot.slane %v710_v12, 3  ;;  %v715_v25 = vrot.slane %v713_v13, 4  ;;  %v1356_v11 = vor.u32 %v1355_v59, %v1352_v34  ;;  %v1364_v12 = vor.u32 %v1363_v28, %v1360_v60  ;;  %v20246_v28 = vld [vmem:[#allocation6 + $0xd0] sm:$0xff]  }
  0xe2   : > { %17437 = vmatpush3.bf16.msra.mxu0 %v20241_v1  ;;  %v674_v1 = vor.u32 %v673_v42, %v670_v52  ;;  %v741_v42 = vrot.slane %v739_v38, 4  ;;  %v1369_v13 = vrot.slane %v1367_v41, 4  ;;  %v1428_v34 = vrot.slane %v1426_v35, 4 }
  0xe3   : > { %17438 = vmatprep.subr.bf16.mxu0 %v20242_v21  ;;  %v716_v37 = vor.u32 %v715_v25, %v712_v19  ;;  %v1401_v25 = vshrl.u32 %v21027_v55, 16  ;;  %v1452_v60 = vshrl.u32 %v21044_v8, 16 }
  0xe4   : > { %v683_v23 = vsel %vm479_vm1, %v674_v1, %v682_v4  ;;  %v1387_v1 = vshll.u32 %v21017_v45, 16  ;;  %v742_v4 = vor.u32 %v741_v42, %v738_v5  ;;  %v1365_v45 = vsel %vm1348_vm2, %v1356_v11, %v1364_v12  ;;  %v1338_v42 = vld [vmem:[#allocation2 + $0xd8] sm:$0x1f] }
  0xe5   : > { %17407 = vmatmul.mubr.bf16.gmra.mrb[12].mxu0 %v615_v26  ;;  %v724_v26 = vrot.slane %v722_v16, 4  ;;  %v1403_v38 = vrot.slane %v1401_v25, 4  ;;  %v1423_v5 = vrot.slane %v1421_v14, 5  ;;  %v1460_v41 = vshrl.u32 %v1338_v42, 16  ;;  %v20247_v12 = vld [vmem:[#allocation6 + $0xd8] sm:$0xff]   ;;  %v20248_v14 = vld [vmem:[#allocation6 + $0xe0] sm:$0xff]  }
  0xe6   : > { %17410 = vmatprep.mubr.bf16.mxu0 %v632_v27  ;;  %17439 = vmatpush3.bf16.msra.mxu0 %v20242_v21  ;;  %v707_v21 = vrot.slane %v705_v9, 4  ;;  %v729_v27 = vrot.slane %v727_v17, 3  ;;  %v1392_v9 = vshrl.u32 %v1334_v54, 16  ;;  %v1389_v18 = vrot.slane %v1387_v1, 5  ;;  %v1339_v1 = vld [vmem:[#allocation2 + $0xe8] sm:$0x1f] }
  0xe7   : > { %17440 = vmatprep.subr.bf16.mxu0 %v20243_v44  ;;  %v1455_v54 = vshll.u32 %v21044_v8, 16  ;;  %v1454_v11 = vrot.slane %v1452_v60, 4  ;;  %v1343_v60 = vld [vmem:[#allocation2 + $0x128] sm:$0x1f] }
  0xe8   : > { %v708_v33 = vor.u32 %v707_v21, %v704_v20  ;;  %v733_v47 = vor.u32 %v732_v30, %v729_v27  ;;  %v1335_v20 = vld [vmem:[#allocation2 + $0xa8] sm:$0x1f]  ;;  %v751_v21 = vsel %vm479_vm1, %v742_v4, %v750_v7  ;;  %v792_v4 = vld [vmem:[#allocation2 + $0xf0] sm:$0xf0] }
  0xe9   : > { %v1409_v27 = vshrl.u32 %v1335_v20, 16  ;;  %v1412_v30 = vshll.u32 %v1335_v20, 16 }
  0xea   : > { %17441 = vmatpush3.bf16.msra.mxu0 %v20243_v44  ;;  %v721_v44 = vrot.slane %v719_v15, 3  ;;  %v717_v52 = vsel %vm479_vm1, %v708_v33, %v716_v37  ;;  %v1418_v33 = vshrl.u32 %v21031_v57, 16  ;;  %v1337_v37 = vld [vmem:[#allocation2 + $0xc8] sm:$0x1f]  ;;  %v1438_v57 = vshll.u32 %v21041_v3, 16 }
  0xeb   : > { %17474 = vmatprep.subr.bf16.mxu0 %v21159_v50  ;;  %v1411_v40 = vrot.slane %v1409_v27, 4  ;;  %v1443_v6 = vshrl.u32 %v1337_v37, 16  ;;  %v1446_v53 = vshll.u32 %v1337_v37, 16  ;;  %v794_v27 = vld [vmem:[#allocation2 + $0x110] sm:$0xf0] }
  0xec   : > { %v725_v46 = vor.u32 %v724_v26, %v721_v44  ;;  %v1404_v26 = vshll.u32 %v21027_v55, 16  ;;  %v1420_v49 = vrot.slane %v1418_v33, 4 }
  0xed   : > { %17411 = vmatmul.mubr.bf16.gmra.mrb[16].mxu0 %v649_v51  ;;  %v1333_v51 = vld [vmem:[#allocation2 + $0x88] sm:$0x1f]  ;;  %v1445_v7 = vrot.slane %v1443_v6, 4 }
  0xee   : > { %17414 = vmatprep.mubr.bf16.mxu0 %v666_v61  ;;  %v734_v58 = vsel %vm479_vm1, %v725_v46, %v733_v47  ;;  %v1370_v61 = vshll.u32 %v21013_v43, 16  ;;  %v1375_v62 = vshrl.u32 %v1333_v51, 16  ;;  %v1378_v63 = vshll.u32 %v1333_v51, 16 }
  0xef   : > { %v1386_v43 = vrot.slane %v1384_v0, 4  ;;  %v1406_v39 = vrot.slane %v1404_v26, 5  ;;  %v1414_v46 = vrot.slane %v1412_v30, 5  ;;  %v1431_v51 = vrot.slane %v1429_v36, 5  ;;  %v1341_v26 = vld [vmem:[#allocation2 + $0x108] sm:$0x1f] }
  0xf0   : > { %v1372_v15 = vrot.slane %v1370_v61, 5  ;;  %v1377_v16 = vrot.slane %v1375_v62, 4  ;;  %v1380_v17 = vrot.slane %v1378_v63, 5  ;;  %v1463_v61 = vshll.u32 %v1338_v42, 16  ;;  %v1342_v30 = vld [vmem:[#allocation2 + $0x118] sm:$0x1f] }
  0xf1   : > { %v1390_v31 = vor.u32 %v1389_v18, %v1386_v43  ;;  %v1415_v59 = vor.u32 %v1414_v46, %v1411_v40  ;;  %v1424_v62 = vor.u32 %v1423_v5, %v1420_v49  ;;  %v1432_v63 = vor.u32 %v1431_v51, %v1428_v34  ;;  %v795_v42 = vld [vmem:[#allocation2 + $0x120] sm:$0xf0] }
  0xf2   : > { %v1373_v19 = vor.u32 %v1372_v15, %v1369_v13  ;;  %v1381_v44 = vor.u32 %v1380_v17, %v1377_v16  ;;  %v1440_v0 = vrot.slane %v1438_v57, 5  ;;  %v1457_v13 = vrot.slane %v1455_v54, 5 }
  0xf3   : > { %v1462_v15 = vrot.slane %v1460_v41, 4  ;;  %v1465_v8 = vrot.slane %v1463_v61, 5  ;;  %v1469_v16 = vshrl.u32 %v21085_v29, 16  ;;  %v1433_v17 = vsel %vm1348_vm2, %v1424_v62, %v1432_v63  ;;  %v1344_v63 = vld [vmem:[#allocation2 + $0x138] sm:$0x1f] }
  0xf4   : > { %v1382_v47 = vsel %vm1348_vm2, %v1373_v19, %v1381_v44  ;;  %v1472_v43 = vshll.u32 %v21085_v29, 16  ;;  %v1477_v18 = vshrl.u32 %v1339_v1, 16  ;;  %v1458_v44 = vor.u32 %v1457_v13, %v1454_v11 }
  0xf5   : > { %17415 = vmatmul.mubr.bf16.gmra.mrb[20].mxu0 %v683_v23  ;;  %v1394_v23 = vrot.slane %v1392_v9, 4  ;;  %v1448_v9 = vrot.slane %v1446_v53, 5  ;;  %v1503_v46 = vshrl.u32 %v793_v2, 16  ;;  %v1514_v49 = vshll.u32 %v1341_v26, 16 }
  0xf6   : > { %17418 = vmatprep.mubr.bf16.mxu0 %v700_v24  ;;  %v1397_v24 = vrot.slane %v1395_v56, 5  ;;  %v1474_v33 = vrot.slane %v1472_v43, 5  ;;  %v1479_v29 = vrot.slane %v1477_v18, 4  ;;  %v1520_v5 = vshrl.u32 %v794_v27, 16 }
  0xf7   : > { %v1523_v51 = vshll.u32 %v794_v27, 16  ;;  %v1531_v57 = vshll.u32 %v1342_v30, 16  ;;  %v1516_v62 = vrot.slane %v1514_v49, 5  ;;  %v1545_v11 = vshrl.u32 %v1343_v60, 16  ;;  %v798_v27 = vld [vmem:[#allocation2 + $0x150] sm:$0xf0] }
  0xf8   : > { %v1398_v32 = vor.u32 %v1397_v24, %v1394_v23  ;;  %v1480_v23 = vshll.u32 %v1339_v1, 16  ;;  %v1486_v24 = vshrl.u32 %v792_v4, 16  ;;  %v1562_v18 = vshrl.u32 %v1344_v63, 16  ;;  %v799_v49 = vld [vmem:[#allocation2 + $0x160] sm:$0xf0] }
  0xf9   : > { %v1525_v1 = vrot.slane %v1523_v51, 5 }
  0xfa   : > { %v1399_v55 = vsel %vm1348_vm2, %v1390_v31, %v1398_v32  ;;  %v1466_v31 = vor.u32 %v1465_v8, %v1462_v15  ;;  %v1471_v32 = vrot.slane %v1469_v16, 4  ;;  %v1482_v36 = vrot.slane %v1480_v23, 5  ;;  %v20251_v16 = vld [vmem:[#allocation6 + $0xf8] sm:$0xff]  }
  0xfb   : > { %v1488_v37 = vrot.slane %v1486_v24, 4 }
  0xfc   : > { %v1467_v34 = vsel %vm1348_vm2, %v1458_v44, %v1466_v31  ;;  %v1475_v6 = vor.u32 %v1474_v33, %v1471_v32  ;;  %v1483_v53 = vor.u32 %v1482_v36, %v1479_v29  ;;  %v797_v44 = vld [vmem:[#allocation2 + $0x140] sm:$0xf0]  ;;  %v1564_v32 = vrot.slane %v1562_v18, 4  ;;  %v1346_v36 = vld [vmem:[#allocation2 + $0x158] sm:$0x1f] }
  0xfd   : > { %17419 = vmatmul.mubr.bf16.gmra.mrb[24].mxu0 %v717_v52  ;;  %v1435_v52 = vshrl.u32 %v21041_v3, 16  ;;  %v1596_v51 = vshrl.u32 %v1346_v36, 16 }
  0xfe   : > { %17422 = vmatprep.mubr.bf16.mxu0 %v734_v58  ;;  %v1407_v58 = vor.u32 %v1406_v39, %v1403_v38 }
  0xff   : > { %v1437_v3 = vrot.slane %v1435_v52, 4  ;;  %v1528_v52 = vshrl.u32 %v1342_v30, 16 }
 0x100   : > { %v1416_v56 = vsel %vm1348_vm2, %v1407_v58, %v1415_v59  ;;  %v1505_v59 = vrot.slane %v1503_v46, 4 }
 0x101   : > { %v1441_v20 = vor.u32 %v1440_v0, %v1437_v3  ;;  %v20250_v3 = vld [vmem:[#allocation6 + $0xf0] sm:$0xff]   ;;  %v1522_v0 = vrot.slane %v1520_v5, 4 }
 0x105   : > { %17423 = vmatmul.mubr.bf16.gmra.mrb[28].mxu0 %v751_v21  ;;  %v1449_v21 = vor.u32 %v1448_v9, %v1445_v7  ;;  %v1537_v7 = vshrl.u32 %v795_v42, 16  ;;  %v1533_v9 = vrot.slane %v1531_v57, 5 }
 0x106   : > { %17442 = vmatprep.mubr.bf16.mxu0 %v1365_v45  ;;  %v1489_v45 = vshll.u32 %v792_v4, 16  ;;  %v1530_v4 = vrot.slane %v1528_v52, 4  ;;  %v1347_v52 = vld [vmem:[#allocation2 + $0x168] sm:$0x1f] }
 0x107   : > { %v1450_v35 = vsel %vm1348_vm2, %v1441_v20, %v1449_v21  ;;  %v1565_v20 = vshll.u32 %v1344_v63, 16  ;;  %v1526_v21 = vor.u32 %v1525_v1, %v1522_v0  ;;  %v1539_v24 = vrot.slane %v1537_v7, 4 }
 0x108   : > { %v1491_v38 = vrot.slane %v1489_v45, 5  ;;  %v1534_v23 = vor.u32 %v1533_v9, %v1530_v4  ;;  %v1605_v0 = vshrl.u32 %v799_v49, 16  ;;  %v1608_v4 = vshll.u32 %v799_v49, 16 }
 0x109   : > { %v1567_v33 = vrot.slane %v1565_v20, 5  ;;  %v1613_v7 = vshrl.u32 %v1347_v52, 16  ;;  %v1616_v9 = vshll.u32 %v1347_v52, 16 }
 0x10a   : > { %v1492_v58 = vor.u32 %v1491_v38, %v1488_v37  ;;  %v1571_v38 = vshrl.u32 %v797_v44, 16 }
 0x10d   : > { %17443 = vmatmul.mubr.bf16.vlgmr.msra.gmra.mrb[0].mxu0 %v1382_v47  ;;  %v20249_v47 = vld [vmem:[#allocation6 + $0xe8] sm:$0xff]  }
 0x10e   : > { %17475 = vmatpush3.bf16.msra.mxu0 %v21159_v50  ;;  %17446 = vmatprep.mubr.bf16.mxu0 %v1399_v55  ;;  %v1340_v50 = vld [vmem:[#allocation2 + $0xf8] sm:$0x1f]  ;;  %v1506_v55 = vshll.u32 %v793_v2, 16  ;;  %v21205_v2 = vld [vmem:[#allocation6 + $0x100] sm:$0xff]  }
 0x10f   : > { %17476 = vmatprep.subr.bf16.mxu0 %v20245_v48  ;;  %v1494_v19 = vshrl.u32 %v1340_v50, 16  ;;  %v1497_v25 = vshll.u32 %v1340_v50, 16  ;;  %v1484_v50 = vsel %vm1348_vm2, %v1475_v6, %v1483_v53  ;;  %v1895_v6 = vld [vmem:[#allocation2 + $0x80] sm:$0xf8]  ;;  %v1573_v53 = vrot.slane %v1571_v38, 4 }
 0x110   : > { %v1508_v41 = vrot.slane %v1506_v55, 5  ;;  %v1588_v55 = vshrl.u32 %v798_v27, 16 }
 0x111   : > { %v1496_v39 = vrot.slane %v1494_v19, 4  ;;  %v1499_v40 = vrot.slane %v1497_v25, 5  ;;  %v1547_v19 = vrot.slane %v1545_v11, 4  ;;  %v1931_v11 = vshll.u32 %v1895_v6, 16 }
 0x112   : > { %17477 = vmatpush3.bf16.msra.mxu0 %v20245_v48  ;;  %v1511_v48 = vshrl.u32 %v1341_v26, 16  ;;  %v1345_v26 = vld [vmem:[#allocation2 + $0x148] sm:$0x1f] }
 0x113   : > { %17478 = vmatprep.subr.bf16.mxu0 %v20246_v28  ;;  %v1500_v54 = vor.u32 %v1499_v40, %v1496_v39  ;;  %v1574_v39 = vshll.u32 %v797_v44, 16  ;;  %v364_v40 = vpack.c.bf16 %v21174_v10, %v21165_v22  ;;  %v1579_v46 = vshrl.u32 %v1345_v26, 16  ;;  %v1897_v22 = vld [vmem:[#allocation2 + $0x90] sm:$0xf8] }
 0x114   : > { %v1513_v61 = vrot.slane %v1511_v48, 4  ;;  %v1591_v48 = vshll.u32 %v798_v27, 16  ;;  %v1618_v44 = vrot.slane %v1616_v9, 5  ;;  %v1933_v27 = vrot.slane %v1931_v11, 4  ;;  %v21240_v11 = vld [vmem:[#allocation2 + $0xe8] sm:$0xf] }
 0x115   : > { %17447 = vmatmul.mubr.bf16.gmra.mrb[4].mxu0 %v1416_v56  ;;  %v1540_v56 = vshll.u32 %v795_v42, 16  ;;  %v1501_v13 = vsel %vm1348_vm2, %v1492_v58, %v1500_v54  ;;  %v396_v57 = vrot.slane %v364_v40, 4  ;;  %v1599_v42 = vshll.u32 %v1346_v36, 16  ;;  %v21226_v40 = vld [vmem:[#allocation2 + $0xb8] sm:$0xf] }
 0x116   : > { %17450 = vmatprep.mubr.bf16.mxu0 %v1433_v17  ;;  %17479 = vmatpush3.bf16.msra.mxu0 %v20246_v28  ;;  %v796_v28 = vld [vmem:[#allocation2 + $0x130] sm:$0xf0]  ;;  %v1509_v17 = vor.u32 %v1508_v41, %v1505_v59  ;;  %v1517_v43 = vor.u32 %v1516_v62, %v1513_v61  ;;  %v1576_v58 = vrot.slane %v1574_v39, 5  ;;  %v21212_v59 = vld [vmem:[#allocation2 + $0x88] sm:$0xf]  ;;  %v1581_v10 = vrot.slane %v1579_v46, 4 }
 0x117   : > { %17480 = vmatprep.subr.bf16.mxu0 %v20247_v12  ;;  %v1554_v15 = vshrl.u32 %v796_v28, 16  ;;  %v1557_v8 = vshll.u32 %v796_v28, 16  ;;  %v1542_v45 = vrot.slane %v1540_v56, 5  ;;  %444 = vst [vmem:[#allocation2 + $0x178] ss:$-4 sps:$4 sm:$0xff] %v396_v57   ;;  %v1590_v28 = vrot.slane %v1588_v55, 4 }
 0x118   : > { %v1518_v29 = vsel %vm1348_vm2, %v1509_v17, %v1517_v43  ;;  %v1593_v54 = vrot.slane %v1591_v48, 5  ;;  %v21214_v41 = vld [vmem:[#allocation2 + $0x98] sm:$0xf]  ;;  %v1899_v61 = vld [vmem:[#allocation2 + $0xa0] sm:$0xf8]  ;;  %v1601_v1 = vrot.slane %v1599_v42, 5 }
 0x119   : > { %v1556_v30 = vrot.slane %v1554_v15, 4  ;;  %v1559_v31 = vrot.slane %v1557_v8, 5  ;;  %v1928_v56 = vshrl.u32 %v1895_v6, 16  ;;  %v1945_v8 = vshrl.u32 %v1897_v22, 16  ;;  %v21220_v17 = vld [vmem:[#allocation2 + $0xa8] sm:$0xf] }
 0x11a   : > { %17481 = vmatpush3.bf16.msra.mxu0 %v20247_v12  ;;  %v1548_v12 = vshll.u32 %v1343_v60, 16  ;;  %v1594_v43 = vor.u32 %v1593_v54, %v1590_v28  ;;  %v1953_v18 = vshrl.u32 %v21214_v41, 16  ;;  %v1956_v20 = vshll.u32 %v21214_v41, 16  ;;  %v1901_v39 = vld [vmem:[#allocation2 + $0xb0] sm:$0xf8] }
 0x11b   : > { %17482 = vmatprep.subr.bf16.mxu0 %v20248_v14  ;;  %v1560_v5 = vor.u32 %v1559_v31, %v1556_v30  ;;  %v1970_v36 = vshrl.u32 %v21220_v17, 16  ;;  %v1973_v38 = vshll.u32 %v21220_v17, 16  ;;  %v1903_v46 = vld [vmem:[#allocation2 + $0xc0] sm:$0xf8]  ;;  %v21229_v55 = vld [vmem:[#allocation2 + $0xc8] sm:$0xf] }
 0x11c   : > { %v1550_v25 = vrot.slane %v1548_v12, 5  ;;  %v1936_v12 = vshrl.u32 %v21212_v59, 16  ;;  %v1979_v52 = vshrl.u32 %v1901_v39, 16  ;;  %v1982_v57 = vshll.u32 %v1901_v39, 16  ;;  %v1905_v54 = vld [vmem:[#allocation2 + $0xd0] sm:$0xf8] }
 0x11d   : > { %17451 = vmatmul.mubr.bf16.gmra.mrb[8].mxu0 %v1450_v35  ;;  %v1543_v35 = vor.u32 %v1542_v45, %v1539_v24  ;;  %v1607_v24 = vrot.slane %v1605_v0, 4  ;;  %v1610_v45 = vrot.slane %v1608_v4, 5  ;;  %v1987_v42 = vshrl.u32 %v21226_v40, 16  ;;  %v21238_v0 = vld [vmem:[#allocation2 + $0xd8] sm:$0xf] }
 0x11e   : > { %17454 = vmatprep.mubr.bf16.mxu0 %v1467_v34  ;;  %17483 = vmatpush3.bf16.msra.mxu0 %v20248_v14  ;;  %v1535_v14 = vsel %vm1348_vm2, %v1526_v21, %v1534_v23  ;;  %v1551_v37 = vor.u32 %v1550_v25, %v1547_v19  ;;  %v1568_v34 = vor.u32 %v1567_v33, %v1564_v32  ;;  %v1962_v21 = vshrl.u32 %v1899_v61, 16 }
 0x11f   : > { %17484 = vmatprep.subr.bf16.mxu0 %v20249_v47  ;;  %v1965_v19 = vshll.u32 %v1899_v61, 16  ;;  %v1615_v25 = vrot.slane %v1613_v7, 4  ;;  %v1938_v30 = vrot.slane %v1936_v12, 3  ;;  %v1947_v32 = vrot.slane %v1945_v8, 3 }
 0x120   : > { %v1552_v62 = vsel %vm1348_vm2, %v1543_v35, %v1551_v37  ;;  %v1569_v63 = vsel %vm1348_vm2, %v1560_v5, %v1568_v34  ;;  %v1964_v35 = vrot.slane %v1962_v21, 3  ;;  %v1611_v49 = vor.u32 %v1610_v45, %v1607_v24  ;;  %v20253_v45 = vld [vmem:[#allocation6 + $0x108] sm:$0xff]  }
 0x121   : > { %v1967_v37 = vrot.slane %v1965_v19, 4  ;;  %v1619_v5 = vor.u32 %v1618_v44, %v1615_v25  ;;  %v1972_v34 = vrot.slane %v1970_v36, 3  ;;  %v1990_v6 = vshll.u32 %v21226_v40, 16  ;;  %v20254_v36 = vld [vmem:[#allocation6 + $0x110] sm:$0xff]  }
 0x122   : > { %17485 = vmatpush3.bf16.msra.mxu0 %v20249_v47  ;;  %v1582_v47 = vshll.u32 %v1345_v26, 16  ;;  %v1930_v26 = vrot.slane %v1928_v56, 3  ;;  %v2007_v28 = vshll.u32 %v21229_v55, 16  ;;  %v1981_v7 = vrot.slane %v1979_v52, 3  ;;  %v1907_v56 = vld [vmem:[#allocation2 + $0xe0] sm:$0xf8] }
 0x123   : > { %17486 = vmatprep.subr.bf16.mxu0 %v20250_v3  ;;  %v1620_v61 = vsel %vm1348_vm2, %v1611_v49, %v1619_v5  ;;  %v1984_v9 = vrot.slane %v1982_v57, 4  ;;  %v1989_v12 = vrot.slane %v1987_v42, 3  ;;  %v2024_v21 = vshll.u32 %v21238_v0, 16 }
 0x124   : > { %v1584_v60 = vrot.slane %v1582_v47, 5  ;;  %v2033_v24 = vshll.u32 %v1907_v56, 16  ;;  %v2038_v25 = vshrl.u32 %v21240_v11, 16  ;;  %v2041_v44 = vshll.u32 %v21240_v11, 16 }
 0x125   : > { %17455 = vmatmul.mubr.bf16.gmra.mrb[12].mxu0 %v1484_v50  ;;  %v1939_v50 = vshll.u32 %v21212_v59, 16 }
 0x126   : > { %17458 = vmatprep.mubr.bf16.mxu0 %v1501_v13  ;;  %17487 = vmatpush3.bf16.msra.mxu0 %v20250_v3  ;;  %v1598_v3 = vrot.slane %v1596_v51, 4  ;;  %v1577_v13 = vor.u32 %v1576_v58, %v1573_v53  ;;  %v1585_v15 = vor.u32 %v1584_v60, %v1581_v10  ;;  %v1975_v51 = vrot.slane %v1973_v38, 4  ;;  %v21250_v38 = vld [vmem:[#allocation2 + $0x108] sm:$0xf] }
 0x127   : > { %17488 = vmatprep.subr.bf16.mxu0 %v20251_v16  ;;  %v1941_v31 = vrot.slane %v1939_v50, 4  ;;  %v1996_v53 = vshrl.u32 %v1903_v46, 16  ;;  %v1999_v58 = vshll.u32 %v1903_v46, 16  ;;  %v2004_v60 = vshrl.u32 %v21229_v55, 16 }
 0x128   : > { %v1602_v23 = vor.u32 %v1601_v1, %v1598_v3  ;;  %v1586_v47 = vsel %vm1348_vm2, %v1577_v13, %v1585_v15  ;;  %v1968_v1 = vor.u32 %v1967_v37, %v1964_v35  ;;  %v1976_v4 = vor.u32 %v1975_v51, %v1972_v34  ;;  %v1911_v37 = vld [vmem:[#allocation2 + $0x100] sm:$0xf8] }
 0x129   : > { %v1942_v10 = vor.u32 %v1941_v31, %v1938_v30  ;;  %v1992_v50 = vrot.slane %v1990_v6, 4  ;;  %v1998_v13 = vrot.slane %v1996_v53, 3  ;;  %v2013_v15 = vshrl.u32 %v1905_v54, 16  ;;  %v20255_v53 = vld [vmem:[#allocation6 + $0x118] sm:$0xff]  }
 0x12a   : > { %17489 = vmatpush3.bf16.msra.mxu0 %v20251_v16  ;;  %v1948_v16 = vshll.u32 %v1897_v22, 16  ;;  %v1603_v48 = vsel %vm1348_vm2, %v1594_v43, %v1602_v23  ;;  %v1934_v22 = vor.u32 %v1933_v27, %v1930_v26  ;;  %v2001_v8 = vrot.slane %v1999_v58, 4  ;;  %v1909_v26 = vld [vmem:[#allocation2 + $0xf0] sm:$0xf8] }
 0x12b   : > { %17522 = vmatprep.subr.bf16.mxu0 %v21205_v2  ;;  %v2009_v43 = vrot.slane %v2007_v28, 4  ;;  %v2030_v23 = vshrl.u32 %v1907_v56, 16  ;;  %v1977_v27 = vsel %vm479_vm1, %v1968_v1, %v1976_v4  ;;  %v1985_v30 = vor.u32 %v1984_v9, %v1981_v7  ;;  %v1913_v58 = vld [vmem:[#allocation2 + $0x110] sm:$0xf8]  ;;  %v20256_v4 = vld [vmem:[#allocation6 + $0x120] sm:$0xff]  }
 0x12c   : > { %v1950_v33 = vrot.slane %v1948_v16, 4  ;;  %v2006_v16 = vrot.slane %v2004_v60, 3  ;;  %v1993_v31 = vor.u32 %v1992_v50, %v1989_v12  ;;  %v2026_v46 = vrot.slane %v2024_v21, 4  ;;  %v1915_v7 = vld [vmem:[#allocation2 + $0x120] sm:$0xf8] }
 0x12d   : > { %17459 = vmatmul.mubr.bf16.gmra.mrb[16].mxu0 %v1518_v29  ;;  %v1955_v29 = vrot.slane %v1953_v18, 3  ;;  %v2016_v18 = vshll.u32 %v1905_v54, 16  ;;  %v2040_v49 = vrot.slane %v2038_v25, 3  ;;  %v2043_v5 = vrot.slane %v2041_v44, 4  ;;  %v21261_v9 = vld [vmem:[#allocation2 + $0x128] sm:$0xf] }
 0x12e   : > { %17462 = vmatprep.mubr.bf16.mxu0 %v1535_v14  ;;  %v1958_v14 = vrot.slane %v1956_v20, 4  ;;  %v2021_v20 = vshrl.u32 %v21238_v0, 16  ;;  %v2047_v34 = vshrl.u32 %v1909_v26, 16  ;;  %v2050_v51 = vshll.u32 %v1909_v26, 16  ;;  %v1917_v44 = vld [vmem:[#allocation2 + $0x130] sm:$0xf8] }
 0x12f   : > { %v2018_v35 = vrot.slane %v2016_v18, 4  ;;  %v2064_v42 = vshrl.u32 %v1911_v37, 16  ;;  %v2067_v6 = vshll.u32 %v1911_v37, 16  ;;  %v2098_v21 = vshrl.u32 %v1915_v7, 16  ;;  %v20258_v37 = vld [vmem:[#allocation6 + $0x130] sm:$0xff]  }
 0x130   : > { %v1959_v3 = vor.u32 %v1958_v14, %v1955_v29  ;;  %v2010_v29 = vor.u32 %v2009_v43, %v2006_v16  ;;  %v2015_v14 = vrot.slane %v2013_v15, 3  ;;  %v2023_v39 = vrot.slane %v2021_v20, 3 }
 0x131   : > { %v2052_v1 = vrot.slane %v2050_v51, 4  ;;  %v2066_v50 = vrot.slane %v2064_v42, 3  ;;  %v2069_v15 = vrot.slane %v2067_v6, 4  ;;  %v2084_v43 = vshll.u32 %v1913_v58, 16 }
 0x132   : > { %v2019_v28 = vor.u32 %v2018_v35, %v2015_v14  ;;  %v2027_v54 = vor.u32 %v2026_v46, %v2023_v39  ;;  %v2109_v25 = vshll.u32 %v21261_v9, 16  ;;  %v1919_v35 = vld [vmem:[#allocation2 + $0x140] sm:$0xf8]  ;;  %v2115_v51 = vshrl.u32 %v1917_v44, 16 }
 0x133   : > { %v2086_v39 = vrot.slane %v2084_v43, 4  ;;  %v2132_v6 = vshrl.u32 %v1919_v35, 16 }
 0x135   : > { %17463 = vmatmul.mubr.bf16.gmra.mrb[20].mxu0 %v1552_v62  ;;  %v1943_v62 = vsel %vm479_vm1, %v1934_v22, %v1942_v10  ;;  %v2072_v22 = vshrl.u32 %v21250_v38, 16  ;;  %v2075_v10 = vshll.u32 %v21250_v38, 16 }
 0x136   : > { %17466 = vmatprep.mubr.bf16.mxu0 %v1569_v63  ;;  %v1951_v63 = vor.u32 %v1950_v33, %v1947_v32  ;;  %v21248_v32 = vld [vmem:[#allocation2 + $0xf8] sm:$0xf]  ;;  %v2002_v33 = vor.u32 %v2001_v8, %v1998_v13  ;;  %v2081_v13 = vshrl.u32 %v1913_v58, 16 }
 0x137   : > { %v2055_v52 = vshrl.u32 %v21248_v32, 16  ;;  %v2058_v57 = vshll.u32 %v21248_v32, 16  ;;  %v2074_v8 = vrot.slane %v2072_v22, 3  ;;  %v2077_v16 = vrot.slane %v2075_v10, 4  ;;  %v1921_v10 = vld [vmem:[#allocation2 + $0x150] sm:$0xf8] }
 0x138   : > { %v1960_v19 = vsel %vm479_vm1, %v1951_v63, %v1959_v3  ;;  %v2011_v60 = vsel %vm479_vm1, %v2002_v33, %v2010_v29  ;;  %v2044_v63 = vor.u32 %v2043_v5, %v2040_v49  ;;  %v2049_v3 = vrot.slane %v2047_v34, 3 }
 0x139   : > { %v2057_v56 = vrot.slane %v2055_v52, 3  ;;  %v2060_v12 = vrot.slane %v2058_v57, 4  ;;  %v2070_v33 = vor.u32 %v2069_v15, %v2066_v50  ;;  %v2078_v29 = vor.u32 %v2077_v16, %v2074_v8 }
 0x13a   : > { %v2083_v14 = vrot.slane %v2081_v13, 3  ;;  %v2111_v34 = vrot.slane %v2109_v25, 4  ;;  %v2118_v52 = vshll.u32 %v1917_v44, 16  ;;  %v21281_v13 = vld [vmem:[#allocation6 + $0x140] sm:$0xff]   ;;  %v2134_v15 = vrot.slane %v2132_v6, 3 }
 0x13b   : > { %v2149_v43 = vshrl.u32 %v1921_v10, 16 }
 0x13d   : > { %17467 = vmatmul.mubr.bf16.gmra.mrb[24].mxu0 %v1586_v47  ;;  %v2032_v47 = vrot.slane %v2030_v23, 3  ;;  %v2101_v23 = vshll.u32 %v1915_v7, 16 }
 0x13e   : > { %17470 = vmatprep.mubr.bf16.mxu0 %v1603_v48  ;;  %v2035_v48 = vrot.slane %v2033_v24, 4  ;;  %v20257_v24 = vld [vmem:[#allocation6 + $0x128] sm:$0xff]  }
 0x13f   : > { %v2103_v49 = vrot.slane %v2101_v23, 4 }
 0x145   : > { %17471 = vmatmul.mubr.bf16.gmra.mrb[28].mxu0 %v1620_v61  ;;  %v21259_v61 = vld [vmem:[#allocation2 + $0x118] sm:$0xf] }
 0x146   : > { %17490 = vmatprep.mubr.bf16.mxu0 %v1943_v62  ;;  %v2036_v62 = vor.u32 %v2035_v48, %v2032_v47  ;;  %v2089_v18 = vshrl.u32 %v21259_v61, 16  ;;  %v2092_v20 = vshll.u32 %v21259_v61, 16  ;;  %v2100_v48 = vrot.slane %v2098_v21, 3 }
 0x147   : > { %v2152_v21 = vshll.u32 %v1921_v10, 16 }
 0x148   : > { %v2045_v26 = vsel %vm479_vm1, %v2036_v62, %v2044_v63  ;;  %v2091_v46 = vrot.slane %v2089_v18, 3  ;;  %v2094_v47 = vrot.slane %v2092_v20, 4  ;;  %v2104_v63 = vor.u32 %v2103_v49, %v2100_v48  ;;  %v21283_v18 = vld [vmem:[#allocation2 + $0x168] sm:$0xf] }
 0x14a   : > { %v2095_v62 = vor.u32 %v2094_v47, %v2091_v46 }
 0x14d   : > { %17491 = vmatmul.mubr.bf16.vlgmr.msra.gmra.mrb[0].mxu0 %v1960_v19  ;;  %v2106_v19 = vshrl.u32 %v21261_v9, 16 }
 0x14e   : > { %17523 = vmatpush3.bf16.msra.mxu0 %v21205_v2  ;;  %17494 = vmatprep.mubr.bf16.mxu0 %v1977_v27  ;;  %v1994_v2 = vsel %vm479_vm1, %v1985_v30, %v1993_v31  ;;  %v2053_v27 = vor.u32 %v2052_v1, %v2049_v3  ;;  %v21269_v30 = vld [vmem:[#allocation2 + $0x138] sm:$0xf]  ;;  %v2061_v31 = vor.u32 %v2060_v12, %v2057_v56  ;;  %v2117_v3 = vrot.slane %v2115_v51, 3 }
 0x14f   : > { %17524 = vmatprep.subr.bf16.mxu0 %v20253_v45  ;;  %v2108_v5 = vrot.slane %v2106_v19, 3  ;;  %v2123_v57 = vshrl.u32 %v21269_v30, 16  ;;  %v2126_v42 = vshll.u32 %v21269_v30, 16  ;;  %v21279_v1 = vld [vmem:[#allocation2 + $0x158] sm:$0xf]  ;;  %v2120_v56 = vrot.slane %v2118_v52, 4 }
 0x150   : > { %v2062_v58 = vsel %vm479_vm1, %v2053_v27, %v2061_v31  ;;  %v2157_v23 = vshrl.u32 %v21279_v1, 16  ;;  %v2177_v27 = vshll.u32 %v21283_v18, 16  ;;  %v21293_v52 = vld [vmem:[#allocation2 + $0x178] sm:$0xf] }
 0x151   : > { %v2112_v7 = vor.u32 %v2111_v34, %v2108_v5  ;;  %v2125_v12 = vrot.slane %v2123_v57, 3  ;;  %v2128_v50 = vrot.slane %v2126_v42, 4  ;;  %v2121_v31 = vor.u32 %v2120_v56, %v2117_v3  ;;  %v1925_v34 = vld [vmem:[#allocation2 + $0x170] sm:$0xf8] }
 0x152   : > { %17525 = vmatpush3.bf16.msra.mxu0 %v20253_v45  ;;  %v2028_v45 = vsel %vm479_vm1, %v2019_v28, %v2027_v54  ;;  %v2087_v54 = vor.u32 %v2086_v39, %v2083_v14  ;;  %v2159_v39 = vrot.slane %v2157_v23, 3  ;;  %v2179_v5 = vrot.slane %v2177_v27, 4 }
 0x153   : > { %17526 = vmatprep.subr.bf16.mxu0 %v20254_v36  ;;  %v2113_v44 = vsel %vm479_vm1, %v2104_v63, %v2112_v7  ;;  %v2183_v42 = vshrl.u32 %v1925_v34, 16  ;;  %v2186_v6 = vshll.u32 %v1925_v34, 16  ;;  %v21300_v7 = vld [vmem:[#allocation2 + $0x80] sm:$0xf0]  ;;  %v2525_v23 = vrot.slane %v21214_v41, 4 }
 0x154   : > { %v2531_v41 = vrot.slane %v21226_v40, 4  ;;  %v21333_v40 = vld [vmem:[#allocation2 + $0x100] sm:$0xf0] }
 0x155   : > { %17495 = vmatmul.mubr.bf16.gmra.mrb[4].mxu0 %v1994_v2  ;;  %v2135_v2 = vshll.u32 %v1919_v35, 16  ;;  %v2151_v35 = vrot.slane %v2149_v43, 3 }
 0x156   : > { %17498 = vmatprep.mubr.bf16.mxu0 %v2011_v60  ;;  %17527 = vmatpush3.bf16.msra.mxu0 %v20254_v36  ;;  %v21271_v36 = vld [vmem:[#allocation2 + $0x148] sm:$0xf]  ;;  %v2079_v60 = vsel %vm479_vm1, %v2070_v33, %v2078_v29  ;;  %v2129_v33 = vor.u32 %v2128_v50, %v2125_v12  ;;  %v2521_v50 = vrot.slane %v21300_v7, 4 }
 0x157   : > { %17528 = vmatprep.subr.bf16.mxu0 %v20255_v53  ;;  %v2140_v22 = vshrl.u32 %v21271_v36, 16  ;;  %v2143_v28 = vshll.u32 %v21271_v36, 16  ;;  %v2137_v8 = vrot.slane %v2135_v2, 4  ;;  %v2191_v2 = vshrl.u32 %v21293_v52, 16 }
 0x158   : > { %v2130_v51 = vsel %vm479_vm1, %v2121_v31, %v2129_v33  ;;  %v2534_v31 = vrot.slane %v21229_v55, 4  ;;  %v20262_v33 = vld [vmem:[#allocation6 + $0x150] sm:$0xff]  }
 0x159   : > { %v2142_v16 = vrot.slane %v2140_v22, 3  ;;  %v2145_v20 = vrot.slane %v2143_v28, 4  ;;  %v2138_v29 = vor.u32 %v2137_v8, %v2134_v15  ;;  %v2194_v22 = vshll.u32 %v21293_v52, 16 }
 0x15a   : > { %17529 = vmatpush3.bf16.msra.mxu0 %v20255_v53  ;;  %v20259_v53 = vld [vmem:[#allocation6 + $0x138] sm:$0xff]   ;;  %v2185_v28 = vrot.slane %v2183_v42, 3  ;;  %v2193_v63 = vrot.slane %v2191_v2, 3  ;;  %v2522_v15 = vrot.slane %v21212_v59, 4  ;;  %v2543_v42 = vrot.slane %v21248_v32, 4 }
 0x15b   : > { %17530 = vmatprep.subr.bf16.mxu0 %v20256_v4  ;;  %v2146_v14 = vor.u32 %v2145_v20, %v2142_v16  ;;  %v2196_v3 = vrot.slane %v2194_v22, 4  ;;  %v21305_v16 = vld [vmem:[#allocation2 + $0x90] sm:$0xf0]  ;;  %v21308_v20 = vld [vmem:[#allocation2 + $0xa0] sm:$0xf0]  ;;  %v2549_v2 = vrot.slane %v21259_v61, 4 }
 0x15c   : > { %v2523_v43 = vsel %vm832_vm0, %v2521_v50, %v2522_v15  ;;  %v2552_v22 = vrot.slane %v21261_v9, 4  ;;  %v21355_v32 = vld [vmem:[#allocation2 + $0x140] sm:$0xf0]  ;;  %v20266_v15 = vld [vmem:[#allocation6 + $0x170] sm:$0xff]  }
 0x15d   : > { %17499 = vmatmul.mubr.bf16.gmra.mrb[8].mxu0 %v2028_v45  ;;  %v2096_v45 = vsel %vm479_vm1, %v2087_v54, %v2095_v62  ;;  %v2147_v57 = vsel %vm479_vm1, %v2138_v29, %v2146_v14  ;;  %v2188_v54 = vrot.slane %v2186_v6, 4  ;;  %v2197_v12 = vor.u32 %v2196_v3, %v2193_v63  ;;  %v21325_v29 = vld [vmem:[#allocation2 + $0xd0] sm:$0xf0]  ;;  %v21327_v14 = vld [vmem:[#allocation2 + $0xe0] sm:$0xf0] }
 0x15e   : > { %17502 = vmatprep.mubr.bf16.mxu0 %v2045_v26  ;;  %17531 = vmatpush3.bf16.msra.mxu0 %v20256_v4  ;;  %v1923_v4 = vld [vmem:[#allocation2 + $0x160] sm:$0xf8]  ;;  %v2174_v26 = vshrl.u32 %v21283_v18, 16  ;;  %v2536_v55 = vrot.slane %v21325_v29, 4  ;;  %v2539_v34 = vrot.slane %v21327_v14, 4  ;;  %v2545_v6 = vrot.slane %v21333_v40, 4 }
 0x15f   : > { %17532 = vmatprep.subr.bf16.mxu0 %v20257_v24  ;;  %v2166_v19 = vshrl.u32 %v1923_v4, 16  ;;  %v2169_v25 = vshll.u32 %v1923_v4, 16  ;;  %v2189_v56 = vor.u32 %v2188_v54, %v2185_v28  ;;  %v21357_v28 = vld [vmem:[#allocation2 + $0x150] sm:$0xf0]  ;;  %v21360_v54 = vld [vmem:[#allocation2 + $0x160] sm:$0xf0] }
 0x160   : > { %v2176_v49 = vrot.slane %v2174_v26, 3  ;;  %v21318_v26 = vld [vmem:[#allocation2 + $0xc0] sm:$0xf0]  ;;  %v2555_v63 = vrot.slane %v21269_v30, 4  ;;  %v2557_v3 = vrot.slane %v21355_v32, 4  ;;  %v2560_v50 = vrot.slane %v21357_v28, 4 }
 0x161   : > { %v2168_v47 = vrot.slane %v2166_v19, 3  ;;  %v2171_v48 = vrot.slane %v2169_v25, 4  ;;  %v2198_v8 = vsel %vm479_vm1, %v2189_v56, %v2197_v12  ;;  %v21315_v19 = vld [vmem:[#allocation2 + $0xb0] sm:$0xf0]  ;;  %v20261_v25 = vld [vmem:[#allocation6 + $0x148] sm:$0xff]   ;;  %v2561_v56 = vrot.slane %v21279_v1, 4 }
 0x162   : > { %17533 = vmatpush3.bf16.msra.mxu0 %v20257_v24  ;;  %v2160_v24 = vshll.u32 %v21279_v1, 16  ;;  %v2530_v27 = vrot.slane %v21315_v19, 4  ;;  %v2843_v12 = vld [vmem:[#allocation2 + $0x88] sm:$0x1f]  ;;  %v2850_v30 = vld [vmem:[#allocation2 + $0xf8] sm:$0x1f] }
 0x163   : > { %17534 = vmatprep.subr.bf16.mxu0 %v20258_v37  ;;  %v2172_v10 = vor.u32 %v2171_v48, %v2168_v47  ;;  %v20264_v47 = vld [vmem:[#allocation6 + $0x160] sm:$0xff]  }
 0x164   : > { %v2162_v46 = vrot.slane %v2160_v24, 4  ;;  %v2527_v24 = vrot.slane %v21308_v20, 4  ;;  %v21338_v48 = vld [vmem:[#allocation2 + $0x120] sm:$0xf0] }
 0x165   : > { %17503 = vmatmul.mubr.bf16.gmra.mrb[12].mxu0 %v2062_v58 }
 0x166   : > { %17506 = vmatprep.mubr.bf16.mxu0 %v2079_v60  ;;  %17535 = vmatpush3.bf16.msra.mxu0 %v20258_v37  ;;  %v2154_v37 = vrot.slane %v2152_v21, 4  ;;  %v2163_v58 = vor.u32 %v2162_v46, %v2159_v39  ;;  %v2180_v60 = vor.u32 %v2179_v5, %v2176_v49  ;;  %v2524_v21 = vrot.slane %v21305_v16, 4  ;;  %v21335_v46 = vld [vmem:[#allocation2 + $0x110] sm:$0xf0] }
 0x167   : > { %17536 = vmatprep.subr.bf16.mxu0 %v20259_v53  ;;  %v21340_v49 = vld [vmem:[#allocation2 + $0x130] sm:$0xf0]  ;;  %v2537_v5 = vrot.slane %v21238_v0, 4  ;;  %v2551_v0 = vrot.slane %v21338_v48, 4 }
 0x168   : > { %v2181_v4 = vsel %vm479_vm1, %v2172_v10, %v2180_v60  ;;  %v2526_v59 = vsel %vm832_vm0, %v2524_v21, %v2525_v23  ;;  %v2554_v10 = vrot.slane %v21340_v49, 4  ;;  %v2563_v21 = vrot.slane %v21360_v54, 4 }
 0x169   : > { %v2538_v60 = vsel %vm832_vm0, %v2536_v55, %v2537_v5 }
 0x16a   : > { %17537 = vmatpush3.bf16.msra.mxu0 %v20259_v53  ;;  %v2155_v53 = vor.u32 %v2154_v37, %v2151_v35  ;;  %v2532_v35 = vsel %vm832_vm0, %v2530_v27, %v2531_v41  ;;  %v21330_v37 = vld [vmem:[#allocation2 + $0xf0] sm:$0xf0]  ;;  %v2880_v27 = vshll.u32 %v21305_v16, 16 }
 0x16b   : > { %17570 = vmatprep.subr.bf16.mxu0 %v21281_v13 }
 0x16c   : > { %v2164_v62 = vsel %vm479_vm1, %v2155_v53, %v2163_v58  ;;  %v2546_v53 = vrot.slane %v21250_v38, 4  ;;  %v2548_v58 = vrot.slane %v21335_v46, 4 }
 0x16d   : > { %17507 = vmatmul.mubr.bf16.gmra.mrb[16].mxu0 %v2096_v45  ;;  %v2528_v45 = vrot.slane %v21220_v17, 4  ;;  %v2533_v17 = vrot.slane %v21318_v26, 4 }
 0x16e   : > { %17510 = vmatprep.mubr.bf16.mxu0 %v2113_v44 }
 0x16f   : > { %v2529_v44 = vsel %vm832_vm0, %v2527_v24, %v2528_v45  ;;  %v2535_v39 = vsel %vm832_vm0, %v2533_v17, %v2534_v31  ;;  %v2567_v24 = vrot.slane %v21293_v52, 4  ;;  %v2863_v45 = vshll.u32 %v21300_v7, 16  ;;  %v20267_v17 = vld [vmem:[#allocation6 + $0x178] sm:$0xff]  }
 0x175   : > { %17511 = vmatmul.mubr.bf16.gmra.mrb[20].mxu0 %v2130_v51  ;;  %v2540_v51 = vrot.slane %v21240_v11, 4  ;;  %v20265_v11 = vld [vmem:[#allocation6 + $0x168] sm:$0xff]  }
 0x176   : > { %17514 = vmatprep.mubr.bf16.mxu0 %v2147_v57  ;;  %v2542_v57 = vrot.slane %v21330_v37, 4 }
 0x177   : > { %v2541_v38 = vsel %vm832_vm0, %v2539_v34, %v2540_v51  ;;  %v21391_v51 = vld [vmem:[#allocation6 + $0x180] sm:$0xff]  }
 0x178   : > { %v2544_v41 = vsel %vm832_vm0, %v2542_v57, %v2543_v42  ;;  %v2894_v57 = vshrl.u32 %v21308_v20, 16  ;;  %v2897_v42 = vshll.u32 %v21308_v20, 16  ;;  %v2928_v20 = vshrl.u32 %v21318_v26, 16 }
 0x17d   : > { %17515 = vmatmul.mubr.bf16.gmra.mrb[24].mxu0 %v2164_v62  ;;  %v21362_v62 = vld [vmem:[#allocation2 + $0x170] sm:$0xf0] }
 0x17e   : > { %17518 = vmatprep.mubr.bf16.mxu0 %v2181_v4  ;;  %v2558_v4 = vrot.slane %v21271_v36, 4  ;;  %v2566_v23 = vrot.slane %v21362_v62, 4 }
 0x185   : > { %17519 = vmatmul.mubr.bf16.gmra.mrb[28].mxu0 %v2198_v8  ;;  %v2564_v8 = vrot.slane %v21283_v18, 4 }
 0x186   : > { %17538 = vmatprep.mubr.bf16.mxu0 %v2523_v43  ;;  %v2860_v43 = vshrl.u32 %v21300_v7, 16  ;;  %v2845_v7 = vld [vmem:[#allocation2 + $0xa8] sm:$0x1f] }
 0x188   : > { %v21378_v31 = vrot.slane %v2860_v43, 4 }
 0x18d   : > { %17539 = vmatmul.mubr.bf16.vlgmr.msra.gmra.mrb[0].mxu0 %v2526_v59  ;;  %v2868_v59 = vshrl.u32 %v2843_v12, 16 }
 0x18e   : > { %17571 = vmatpush3.bf16.msra.mxu0 %v21281_v13  ;;  %17542 = vmatprep.mubr.bf16.mxu0 %v2529_v44  ;;  %v20263_v13 = vld [vmem:[#allocation6 + $0x158] sm:$0xff]   ;;  %v2877_v44 = vshrl.u32 %v21305_v16, 16  ;;  %v21389_v16 = vrot.slane %v2880_v27, 5  ;;  %v21416_v27 = vrot.slane %v2897_v42, 5 }
 0x18f   : > { %17572 = vmatprep.subr.bf16.mxu0 %v20261_v25 }
 0x192   : > { %17573 = vmatpush3.bf16.msra.mxu0 %v20261_v25  ;;  %v2871_v25 = vshll.u32 %v2843_v12, 16  ;;  %v2847_v12 = vld [vmem:[#allocation2 + $0xc8] sm:$0x1f] }
 0x193   : > { %17574 = vmatprep.subr.bf16.mxu0 %v20262_v33 }
 0x194   : > { %v21385_v55 = vrot.slane %v2871_v25, 5 }
 0x195   : > { %17543 = vmatmul.mubr.bf16.gmra.mrb[4].mxu0 %v2532_v35  ;;  %v2547_v35 = vsel %vm832_vm0, %v2545_v6, %v2546_v53  ;;  %v2902_v6 = vshrl.u32 %v2845_v7, 16  ;;  %v2905_v53 = vshll.u32 %v2845_v7, 16 }
 0x196   : > { %17546 = vmatprep.mubr.bf16.mxu0 %v2535_v39  ;;  %17575 = vmatpush3.bf16.msra.mxu0 %v20262_v33  ;;  %v2844_v33 = vld [vmem:[#allocation2 + $0x98] sm:$0x1f]  ;;  %v21383_v39 = vrot.slane %v2868_v59, 4  ;;  %v2931_v59 = vshll.u32 %v21318_v26, 16 }
 0x197   : > { %17576 = vmatprep.subr.bf16.mxu0 %v20263_v13  ;;  %v2885_v5 = vshrl.u32 %v2844_v33, 16  ;;  %v2888_v34 = vshll.u32 %v2844_v33, 16  ;;  %v21418_v26 = vrot.slane %v2902_v6, 4  ;;  %v21420_v9 = vrot.slane %v2905_v53, 5 }
 0x198   : > { %v21432_v7 = vrot.slane %v2931_v59, 5  ;;  %v2851_v59 = vld [vmem:[#allocation2 + $0x108] sm:$0x1f] }
 0x199   : > { %v21410_v61 = vrot.slane %v2885_v5, 4  ;;  %v21412_v25 = vrot.slane %v2888_v34, 5  ;;  %v2945_v5 = vshrl.u32 %v21325_v29, 16  ;;  %v2948_v34 = vshll.u32 %v21325_v29, 16 }
 0x19a   : > { %17577 = vmatpush3.bf16.msra.mxu0 %v20263_v13  ;;  %v21381_v13 = vrot.slane %v2863_v45, 5  ;;  %v2559_v29 = vsel %vm832_vm0, %v2557_v3, %v2558_v4  ;;  %v2979_v3 = vshrl.u32 %v21330_v37, 16  ;;  %v2982_v4 = vshll.u32 %v21330_v37, 16 }
 0x19b   : > { %17578 = vmatprep.subr.bf16.mxu0 %v20264_v47 }
 0x19c   : > { %v21484_v1 = vrot.slane %v2979_v3, 4  ;;  %v2866_v3 = vor.u32 %v21381_v13, %v21378_v31  ;;  %v2568_v31 = vsel %vm832_vm0, %v2566_v23, %v2567_v24  ;;  %v3047_v13 = vshrl.u32 %v21340_v49, 16 }
 0x19d   : > { %17547 = vmatmul.mubr.bf16.gmra.mrb[8].mxu0 %v2538_v60  ;;  %v2911_v60 = vshrl.u32 %v21315_v19, 16 }
 0x19e   : > { %17550 = vmatprep.mubr.bf16.mxu0 %v2541_v38  ;;  %17579 = vmatpush3.bf16.msra.mxu0 %v20264_v47  ;;  %v21387_v47 = vrot.slane %v2877_v44, 4  ;;  %v2914_v38 = vshll.u32 %v21315_v19, 16  ;;  %v2553_v19 = vsel %vm832_vm0, %v2551_v0, %v2552_v22  ;;  %v21414_v44 = vrot.slane %v2894_v57, 4 }
 0x19f   : > { %17580 = vmatprep.subr.bf16.mxu0 %v20265_v11  ;;  %v21422_v0 = vrot.slane %v2911_v60, 4  ;;  %v2849_v60 = vld [vmem:[#allocation2 + $0xe8] sm:$0x1f] }
 0x1a0   : > { %v21424_v22 = vrot.slane %v2914_v38, 5  ;;  %v2962_v38 = vshrl.u32 %v21327_v14, 16 }
 0x1a2   : > { %17581 = vmatpush3.bf16.msra.mxu0 %v20265_v11  ;;  %v2846_v11 = vld [vmem:[#allocation2 + $0xb8] sm:$0x1f] }
 0x1a3   : > { %17582 = vmatprep.subr.bf16.mxu0 %v20266_v15  ;;  %v2919_v43 = vshrl.u32 %v2846_v11, 16  ;;  %v2922_v45 = vshll.u32 %v2846_v11, 16  ;;  %v2556_v11 = vsel %vm832_vm0, %v2554_v10, %v2555_v63  ;;  %v2970_v63 = vshrl.u32 %v2849_v60, 16 }
 0x1a5   : > { %17551 = vmatmul.mubr.bf16.gmra.mrb[12].mxu0 %v2544_v41  ;;  %v2848_v41 = vld [vmem:[#allocation2 + $0xd8] sm:$0x1f]  ;;  %v21428_v33 = vrot.slane %v2922_v45, 5 }
 0x1a6   : > { %17554 = vmatprep.mubr.bf16.mxu0 %v2547_v35  ;;  %17583 = vmatpush3.bf16.msra.mxu0 %v20266_v15  ;;  %v2550_v15 = vsel %vm832_vm0, %v2548_v58, %v2549_v2  ;;  %v2936_v58 = vshrl.u32 %v2847_v12, 16  ;;  %v2939_v2 = vshll.u32 %v2847_v12, 16  ;;  %v21430_v35 = vrot.slane %v2928_v20, 4 }
 0x1a7   : > { %17584 = vmatprep.subr.bf16.mxu0 %v20267_v17  ;;  %v2953_v6 = vshrl.u32 %v2848_v41, 16  ;;  %v2956_v53 = vshll.u32 %v2848_v41, 16  ;;  %v2965_v12 = vshll.u32 %v21327_v14, 16  ;;  %v2973_v20 = vshll.u32 %v2849_v60, 16 }
 0x1a8   : > { %v21436_v57 = vrot.slane %v2936_v58, 4  ;;  %v21438_v42 = vrot.slane %v2939_v2, 5  ;;  %v21460_v14 = vrot.slane %v2962_v38, 4  ;;  %v2990_v58 = vshll.u32 %v2850_v30, 16  ;;  %v2852_v2 = vld [vmem:[#allocation2 + $0x118] sm:$0x1f] }
 0x1a9   : > { %v21456_v45 = vrot.slane %v2953_v6, 4  ;;  %v21458_v10 = vrot.slane %v2956_v53, 5  ;;  %v21462_v36 = vrot.slane %v2965_v12, 5  ;;  %v2996_v41 = vshrl.u32 %v21333_v40, 16 }
 0x1aa   : > { %17585 = vmatpush3.bf16.msra.mxu0 %v20267_v17  ;;  %v21426_v17 = vrot.slane %v2919_v43, 4  ;;  %v21454_v43 = vrot.slane %v2948_v34, 5  ;;  %v3004_v34 = vshrl.u32 %v2851_v59, 16  ;;  %v3007_v6 = vshll.u32 %v2851_v59, 16  ;;  %v2853_v59 = vld [vmem:[#allocation2 + $0x128] sm:$0x1f] }
 0x1ab   : > { %17618 = vmatprep.subr.bf16.mxu0 %v21391_v51  ;;  %v2562_v53 = vsel %vm832_vm0, %v2560_v50, %v2561_v56  ;;  %v3016_v60 = vshll.u32 %v21335_v46, 16  ;;  %v3021_v37 = vshrl.u32 %v2852_v2, 16  ;;  %v3024_v38 = vshll.u32 %v2852_v2, 16  ;;  %v2854_v2 = vld [vmem:[#allocation2 + $0x138] sm:$0x1f] }
 0x1ac   : > { %v21480_v12 = vrot.slane %v2970_v63, 4  ;;  %v21492_v50 = vrot.slane %v2996_v41, 4  ;;  %v3030_v41 = vshrl.u32 %v21338_v48, 16 }
 0x1ad   : > { %17555 = vmatmul.mubr.bf16.gmra.mrb[16].mxu0 %v2550_v15  ;;  %v21452_v15 = vrot.slane %v2945_v5, 4  ;;  %v2999_v5 = vshll.u32 %v21333_v40, 16  ;;  %v2565_v40 = vsel %vm832_vm0, %v2563_v21, %v2564_v8  ;;  %v21496_v8 = vrot.slane %v3004_v34, 4 }
 0x1ae   : > { %17558 = vmatprep.mubr.bf16.mxu0 %v2553_v19  ;;  %v2987_v19 = vshrl.u32 %v2850_v30, 16  ;;  %v21486_v30 = vrot.slane %v2982_v4, 5  ;;  %v21498_v21 = vrot.slane %v3007_v6, 5  ;;  %v2874_v4 = vor.u32 %v21385_v55, %v21383_v39 }
 0x1af   : > { %v21494_v18 = vrot.slane %v2999_v5, 5  ;;  %v3033_v5 = vshll.u32 %v21338_v48, 16  ;;  %v3038_v34 = vshrl.u32 %v2853_v59, 16  ;;  %v3041_v6 = vshll.u32 %v2853_v59, 16 }
 0x1b0   : > { %v21488_v56 = vrot.slane %v2987_v19, 4  ;;  %v21508_v19 = vrot.slane %v3021_v37, 4  ;;  %v3050_v39 = vshll.u32 %v21340_v49, 16  ;;  %v3055_v55 = vshrl.u32 %v2854_v2, 16 }
 0x1b1   : > { %v2891_v48 = vor.u32 %v21412_v25, %v21410_v61  ;;  %v21526_v52 = vrot.slane %v3030_v41, 4  ;;  %v21528_v37 = vrot.slane %v3033_v5, 5  ;;  %v21530_v23 = vrot.slane %v3038_v34, 4  ;;  %v2856_v41 = vld [vmem:[#allocation2 + $0x158] sm:$0x1f] }
 0x1b2   : > { %v21532_v24 = vrot.slane %v3041_v6, 5  ;;  %v21534_v49 = vrot.slane %v3047_v13, 4  ;;  %v2908_v61 = vor.u32 %v21420_v9, %v21418_v26  ;;  %v3064_v25 = vshrl.u32 %v21355_v32, 16 }
 0x1b3   : > { %v3067_v59 = vshll.u32 %v21355_v32, 16  ;;  %v2917_v34 = vor.u32 %v21424_v22, %v21422_v0  ;;  %v20270_v32 = vld [vmem:[#allocation6 + $0x190] sm:$0xff]   ;;  %v3084_v13 = vshll.u32 %v21357_v28, 16  ;;  %v2934_v0 = vor.u32 %v21432_v7, %v21430_v35  ;;  %v20272_v35 = vld [vmem:[#allocation6 + $0x1a0] sm:$0xff]  }
 0x1b4   : > { %v21555_v9 = vrot.slane %v3064_v25, 4  ;;  %v2942_v22 = vor.u32 %v21438_v42, %v21436_v57 }
 0x1b5   : > { %17559 = vmatmul.mubr.bf16.gmra.mrb[20].mxu0 %v2556_v11  ;;  %v3013_v11 = vshrl.u32 %v21335_v46, 16  ;;  %v21490_v46 = vrot.slane %v2990_v58, 5  ;;  %v21510_v58 = vrot.slane %v3024_v38, 5  ;;  %v21536_v38 = vrot.slane %v3050_v39, 5 }
 0x1b6   : > { %17562 = vmatprep.mubr.bf16.mxu0 %v2559_v29  ;;  %v21482_v29 = vrot.slane %v2973_v20, 5  ;;  %v21502_v20 = vrot.slane %v3016_v60, 5  ;;  %v2883_v60 = vor.u32 %v21389_v16, %v21387_v47  ;;  %v2900_v16 = vor.u32 %v21416_v27, %v21414_v44 }
 0x1b7   : > { %v21500_v63 = vrot.slane %v3013_v11, 4  ;;  %v2875_v11 = vsel %vm1348_vm2, %v2866_v3, %v2874_v4  ;;  %v2855_v3 = vld [vmem:[#allocation2 + $0x148] sm:$0x1f]  ;;  %v2925_v44 = vor.u32 %v21428_v33, %v21426_v17  ;;  %v21557_v6 = vrot.slane %v3067_v59, 5 }
 0x1b8   : > { %v20269_v4 = vld [vmem:[#allocation6 + $0x188] sm:$0xff]   ;;  %v2909_v5 = vsel %vm1348_vm2, %v2900_v16, %v2908_v61  ;;  %v3072_v27 = vshrl.u32 %v2855_v3, 16  ;;  %v3075_v26 = vshll.u32 %v2855_v3, 16  ;;  %v3089_v17 = vshrl.u32 %v2856_v41, 16  ;;  %v2858_v3 = vld [vmem:[#allocation2 + $0x178] sm:$0x1f] }
 0x1b9   : > { %v3092_v33 = vshll.u32 %v2856_v41, 16  ;;  %v2926_v39 = vsel %vm1348_vm2, %v2917_v34, %v2925_v44  ;;  %v20273_v59 = vld [vmem:[#allocation6 + $0x1a8] sm:$0xff]   ;;  %v3118_v34 = vshll.u32 %v21362_v62, 16 }
 0x1ba   : > { %v21571_v7 = vrot.slane %v3072_v27, 4  ;;  %v21573_v57 = vrot.slane %v3075_v26, 5 }
 0x1bb   : > { %v21581_v16 = vrot.slane %v3092_v33, 5 }
 0x1bd   : > { %17563 = vmatmul.mubr.bf16.gmra.mrb[24].mxu0 %v2562_v53  ;;  %v3058_v53 = vshll.u32 %v2854_v2, 16  ;;  %v2892_v2 = vsel %vm1348_vm2, %v2883_v60, %v2891_v48  ;;  %v21577_v60 = vrot.slane %v3084_v13, 5  ;;  %v21579_v48 = vrot.slane %v3089_v17, 4  ;;  %v21609_v13 = vld [vmem:[#allocation2 + $0x98] sm:$0xf] }
 0x1be   : > { %17566 = vmatprep.mubr.bf16.mxu0 %v2565_v40  ;;  %v21538_v40 = vrot.slane %v3055_v55, 4  ;;  %v2857_v55 = vld [vmem:[#allocation2 + $0x168] sm:$0x1f]  ;;  %v3019_v17 = vor.u32 %v21502_v20, %v21500_v63  ;;  %v3447_v63 = vshrl.u32 %v21609_v13, 16  ;;  %v3450_v20 = vshll.u32 %v21609_v13, 16 }
 0x1bf   : > { %v21540_v47 = vrot.slane %v3058_v53, 5  ;;  %v2943_v53 = vsel %vm1348_vm2, %v2934_v0, %v2942_v22  ;;  %v3106_v61 = vshrl.u32 %v2857_v55, 16  ;;  %v3109_v25 = vshll.u32 %v2857_v55, 16  ;;  %v3408_v0 = vld [vmem:[#allocation2 + $0xa0] sm:$0xf8] }
 0x1c0   : > { %v3456_v55 = vshrl.u32 %v3408_v0, 16 }
 0x1c1   : > { %v21601_v44 = vrot.slane %v3106_v61, 4  ;;  %v21603_v27 = vrot.slane %v3109_v25, 5 }
 0x1c2   : > { %v21649_v61 = vrot.slane %v3456_v55, 3 }
 0x1c5   : > { %17567 = vmatmul.mubr.bf16.gmra.mrb[28].mxu0 %v2568_v31  ;;  %v3081_v31 = vshrl.u32 %v21357_v28, 16  ;;  %v2951_v28 = vor.u32 %v21454_v43, %v21452_v15  ;;  %v3098_v15 = vshrl.u32 %v21360_v54, 16  ;;  %v3101_v43 = vshll.u32 %v21360_v54, 16 }
 0x1c6   : > { %17586 = vmatprep.mubr.bf16.mxu0 %v2875_v11  ;;  %v2959_v11 = vor.u32 %v21458_v10, %v21456_v45  ;;  %v2968_v45 = vor.u32 %v21462_v36, %v21460_v14  ;;  %v2976_v10 = vor.u32 %v21482_v29, %v21480_v12  ;;  %v2985_v54 = vor.u32 %v21486_v30, %v21484_v1  ;;  %v20274_v36 = vld [vmem:[#allocation6 + $0x1b0] sm:$0xff]  }
 0x1c7   : > { %v21575_v42 = vrot.slane %v3081_v31, 4  ;;  %v2993_v14 = vor.u32 %v21490_v46, %v21488_v56  ;;  %v21595_v12 = vrot.slane %v3098_v15, 4  ;;  %v21597_v29 = vrot.slane %v3101_v43, 5  ;;  %v20275_v31 = vld [vmem:[#allocation6 + $0x1b8] sm:$0xff]  }
 0x1c8   : > { %v2977_v41 = vsel %vm1348_vm2, %v2968_v45, %v2976_v10  ;;  %v3123_v1 = vshrl.u32 %v2858_v3, 16  ;;  %v3126_v30 = vshll.u32 %v2858_v3, 16  ;;  %v3002_v56 = vor.u32 %v21494_v18, %v21492_v50  ;;  %v21640_v15 = vld [vmem:[#allocation2 + $0xb8] sm:$0xf] }
 0x1c9   : > { %v3010_v46 = vor.u32 %v21498_v21, %v21496_v8  ;;  %v3027_v50 = vor.u32 %v21510_v58, %v21508_v19  ;;  %v21619_v8 = vrot.slane %v3118_v34, 5  ;;  %v3036_v19 = vor.u32 %v21528_v37, %v21526_v52 }
 0x1ca   : > { %v21621_v21 = vrot.slane %v3123_v1, 4  ;;  %v21623_v33 = vrot.slane %v3126_v30, 5  ;;  %v3044_v58 = vor.u32 %v21532_v24, %v21530_v23  ;;  %v3053_v52 = vor.u32 %v21536_v38, %v21534_v49 }
 0x1cb   : > { %v3011_v22 = vsel %vm1348_vm2, %v3002_v56, %v3010_v46  ;;  %v3061_v37 = vor.u32 %v21540_v47, %v21538_v40  ;;  %v3449_v23 = vrot.slane %v3447_v63, 3  ;;  %v3452_v24 = vrot.slane %v3450_v20, 4  ;;  %v3412_v47 = vld [vmem:[#allocation2 + $0xc0] sm:$0xf8]  ;;  %v21675_v46 = vld [vmem:[#allocation2 + $0xd8] sm:$0xf] }
 0x1cc   : > { %v3045_v43 = vsel %vm1348_vm2, %v3036_v19, %v3044_v58  ;;  %v3459_v45 = vshll.u32 %v3408_v0, 16  ;;  %v3078_v49 = vor.u32 %v21573_v57, %v21571_v7  ;;  %v3481_v38 = vshrl.u32 %v21640_v15, 16 }
 0x1cd   : > { %17587 = vmatmul.mubr.bf16.vlgmr.msra.gmra.mrb[0].mxu0 %v2892_v2  ;;  %v3406_v2 = vld [vmem:[#allocation2 + $0x90] sm:$0xf8]  ;;  %v3484_v40 = vshll.u32 %v21640_v15, 16  ;;  %v3490_v30 = vshrl.u32 %v3412_v47, 16  ;;  %v3104_v56 = vor.u32 %v21597_v29, %v21595_v12  ;;  %v3129_v12 = vor.u32 %v21623_v33, %v21621_v21 }
 0x1ce   : > { %17619 = vmatpush3.bf16.msra.mxu0 %v21391_v51  ;;  %17590 = vmatprep.mubr.bf16.mxu0 %v2909_v5  ;;  %v20271_v51 = vld [vmem:[#allocation6 + $0x198] sm:$0xff]   ;;  %v3115_v5 = vshrl.u32 %v21362_v62, 16  ;;  %v3439_v26 = vshrl.u32 %v3406_v2, 16  ;;  %v2994_v62 = vsel %vm1348_vm2, %v2985_v54, %v2993_v14  ;;  %v3087_v14 = vor.u32 %v21577_v60, %v21575_v42 }
 0x1cf   : > { %17620 = vmatprep.subr.bf16.mxu0 %v20269_v4  ;;  %v3483_v34 = vrot.slane %v3481_v38, 3  ;;  %v3486_v1 = vrot.slane %v3484_v40, 4  ;;  %v3112_v42 = vor.u32 %v21603_v27, %v21601_v44  ;;  %v3493_v60 = vshll.u32 %v3412_v47, 16 }
 0x1d0   : > { %v21617_v18 = vrot.slane %v3115_v5, 4  ;;  %v21685_v29 = vrot.slane %v3490_v30, 3  ;;  %v3518_v63 = vshll.u32 %v21675_v46, 16  ;;  %v20278_v30 = vld [vmem:[#allocation6 + $0x1d0] sm:$0xff]  }
 0x1d1   : > { %v21687_v44 = vrot.slane %v3493_v60, 4 }
 0x1d2   : > { %17621 = vmatpush3.bf16.msra.mxu0 %v20269_v4  ;;  %v2960_v4 = vsel %vm1348_vm2, %v2951_v28, %v2959_v11  ;;  %v21637_v28 = vld [vmem:[#allocation2 + $0xa8] sm:$0xf]  ;;  %v3410_v11 = vld [vmem:[#allocation2 + $0xb0] sm:$0xf8]  ;;  %v3121_v0 = vor.u32 %v21619_v8, %v21617_v18  ;;  %v3453_v8 = vor.u32 %v3452_v24, %v3449_v23 }
 0x1d3   : > { %17622 = vmatprep.subr.bf16.mxu0 %v20270_v32  ;;  %v3464_v10 = vshrl.u32 %v21637_v28, 16  ;;  %v3467_v25 = vshll.u32 %v21637_v28, 16  ;;  %v3476_v3 = vshll.u32 %v3410_v11, 16 }
 0x1d4   : > { %v3130_v19 = vsel %vm1348_vm2, %v3121_v0, %v3129_v12 }
 0x1d5   : > { %17591 = vmatmul.mubr.bf16.gmra.mrb[4].mxu0 %v2926_v39  ;;  %v3466_v7 = vrot.slane %v3464_v10, 3  ;;  %v3469_v57 = vrot.slane %v3467_v25, 4  ;;  %v3478_v5 = vrot.slane %v3476_v3, 4  ;;  %v21699_v10 = vld [vmem:[#allocation2 + $0xf8] sm:$0xf] }
 0x1d6   : > { %17594 = vmatprep.mubr.bf16.mxu0 %v2943_v53  ;;  %17623 = vmatpush3.bf16.msra.mxu0 %v20270_v32  ;;  %v3442_v32 = vshll.u32 %v3406_v2, 16  ;;  %v21635_v53 = vld [vmem:[#allocation6 + $0x1c0] sm:$0xff]   ;;  %v3062_v2 = vsel %vm1348_vm2, %v3053_v52, %v3061_v37  ;;  %v3549_v40 = vshrl.u32 %v21699_v10, 16  ;;  %v3552_v47 = vshll.u32 %v21699_v10, 16 }
 0x1d7   : > { %17624 = vmatprep.subr.bf16.mxu0 %v20271_v51 }
 0x1d8   : > { %v21627_v39 = vrot.slane %v3442_v32, 4 }
 0x1da   : > { %17625 = vmatpush3.bf16.msra.mxu0 %v20271_v51  ;;  %v21625_v51 = vrot.slane %v3439_v26, 3  ;;  %v3416_v26 = vld [vmem:[#allocation2 + $0xe0] sm:$0xf8] }
 0x1db   : > { %17626 = vmatprep.subr.bf16.mxu0 %v20272_v35  ;;  %v3524_v20 = vshrl.u32 %v3416_v26, 16  ;;  %v3527_v21 = vshll.u32 %v3416_v26, 16  ;;  %v3554_v26 = vrot.slane %v3552_v47, 4 }
 0x1dc   : > { %v3445_v18 = vor.u32 %v21627_v39, %v21625_v51  ;;  %v3520_v39 = vrot.slane %v3518_v63, 4  ;;  %v21729_v63 = vld [vmem:[#allocation2 + $0x128] sm:$0xf] }
 0x1dd   : > { %17595 = vmatmul.mubr.bf16.gmra.mrb[8].mxu0 %v2960_v4  ;;  %v3070_v4 = vor.u32 %v21557_v6, %v21555_v9  ;;  %v3095_v9 = vor.u32 %v21581_v16, %v21579_v48  ;;  %v21666_v6 = vrot.slane %v3459_v45, 4  ;;  %v3414_v16 = vld [vmem:[#allocation2 + $0xd0] sm:$0xf8]  ;;  %v21701_v23 = vrot.slane %v3524_v20, 3 }
 0x1de   : > { %17598 = vmatprep.mubr.bf16.mxu0 %v2977_v41  ;;  %17627 = vmatpush3.bf16.msra.mxu0 %v20272_v35  ;;  %v3028_v35 = vsel %vm1348_vm2, %v3019_v17, %v3027_v50  ;;  %v21659_v41 = vld [vmem:[#allocation2 + $0xc8] sm:$0xf]  ;;  %v3510_v17 = vshll.u32 %v3414_v16, 16  ;;  %v3515_v50 = vshrl.u32 %v21675_v46, 16  ;;  %v3454_v58 = vsel %vm479_vm1, %v3445_v18, %v3453_v8  ;;  %v3418_v45 = vld [vmem:[#allocation2 + $0xf0] sm:$0xf8] }
 0x1df   : > { %17628 = vmatprep.subr.bf16.mxu0 %v20273_v59  ;;  %v3079_v54 = vsel %vm1348_vm2, %v3070_v4, %v3078_v49  ;;  %v3498_v48 = vshrl.u32 %v21659_v41, 16  ;;  %v3096_v32 = vsel %vm1348_vm2, %v3087_v14, %v3095_v9  ;;  %v3501_v27 = vshll.u32 %v21659_v41, 16 }
 0x1e0   : > { %v3512_v37 = vrot.slane %v3510_v17, 4  ;;  %v3517_v51 = vrot.slane %v3515_v50, 3  ;;  %v21705_v3 = vrot.slane %v3527_v21, 4  ;;  %v3541_v49 = vshrl.u32 %v3418_v45, 16  ;;  %v3424_v17 = vld [vmem:[#allocation2 + $0x120] sm:$0xf8] }
 0x1e1   : > { %v3500_v55 = vrot.slane %v3498_v48, 3  ;;  %v3544_v38 = vshll.u32 %v3418_v45, 16  ;;  %v3595_v45 = vshll.u32 %v3424_v17, 16 }
 0x1e2   : > { %17629 = vmatpush3.bf16.msra.mxu0 %v20273_v59  ;;  %v3473_v59 = vshrl.u32 %v3410_v11, 16  ;;  %v3503_v11 = vrot.slane %v3501_v27, 4  ;;  %v3543_v60 = vrot.slane %v3541_v49, 3  ;;  %v3530_v18 = vor.u32 %v21705_v3, %v21701_v23 }
 0x1e3   : > { %17630 = vmatprep.subr.bf16.mxu0 %v20274_v36  ;;  %v3546_v48 = vrot.slane %v3544_v38, 4  ;;  %v3603_v23 = vshll.u32 %v21729_v63, 16  ;;  %v21742_v38 = vld [vmem:[#allocation2 + $0x148] sm:$0xf] }
 0x1e5   : > { %17599 = vmatmul.mubr.bf16.gmra.mrb[12].mxu0 %v2994_v62  ;;  %v3113_v62 = vsel %vm1348_vm2, %v3104_v56, %v3112_v42  ;;  %v3422_v56 = vld [vmem:[#allocation2 + $0x110] sm:$0xf8]  ;;  %v21717_v42 = vld [vmem:[#allocation2 + $0x118] sm:$0xf]  ;;  %v3547_v21 = vor.u32 %v3546_v48, %v3543_v60 }
 0x1e6   : > { %17602 = vmatprep.mubr.bf16.mxu0 %v3011_v22  ;;  %17631 = vmatpush3.bf16.msra.mxu0 %v20274_v36  ;;  %v21668_v36 = vrot.slane %v3473_v59, 3  ;;  %v3507_v22 = vshrl.u32 %v3414_v16, 16  ;;  %v3487_v59 = vor.u32 %v3486_v1, %v3483_v34  ;;  %v3521_v34 = vor.u32 %v3520_v39, %v3517_v51 }
 0x1e7   : > { %17632 = vmatprep.subr.bf16.mxu0 %v20275_v31  ;;  %v3551_v16 = vrot.slane %v3549_v40, 3  ;;  %v3583_v27 = vshrl.u32 %v21717_v42, 16  ;;  %v3600_v39 = vshrl.u32 %v21729_v63, 16  ;;  %v20281_v40 = vld [vmem:[#allocation6 + $0x1e8] sm:$0xff]  }
 0x1e8   : > { %v3509_v52 = vrot.slane %v3507_v22, 3  ;;  %v3479_v25 = vor.u32 %v3478_v5, %v21668_v36  ;;  %v3504_v36 = vor.u32 %v3503_v11, %v3500_v55  ;;  %v20279_v22 = vld [vmem:[#allocation6 + $0x1d8] sm:$0xff]  }
 0x1e9   : > { %v3555_v51 = vor.u32 %v3554_v26, %v3551_v16  ;;  %v3634_v26 = vshrl.u32 %v21742_v38, 16 }
 0x1ea   : > { %17633 = vmatpush3.bf16.msra.mxu0 %v20275_v31  ;;  %v21678_v31 = vld [vmem:[#allocation2 + $0xe8] sm:$0xf]  ;;  %v3513_v5 = vor.u32 %v3512_v37, %v3509_v52  ;;  %v3592_v37 = vshrl.u32 %v3424_v17, 16 }
 0x1eb   : > { %17666 = vmatprep.subr.bf16.mxu0 %v21635_v53  ;;  %v3532_v33 = vshrl.u32 %v21678_v31, 16  ;;  %v3535_v24 = vshll.u32 %v21678_v31, 16  ;;  %v3556_v47 = vsel %vm479_vm1, %v3547_v21, %v3555_v51 }
 0x1ec   : > { %v3522_v20 = vsel %vm479_vm1, %v3513_v5, %v3521_v34  ;;  %v3605_v5 = vrot.slane %v3603_v23, 4  ;;  %v3430_v34 = vld [vmem:[#allocation2 + $0x150] sm:$0xf8]  ;;  %v21759_v23 = vld [vmem:[#allocation6 + $0x200] sm:$0xff]  }
 0x1ed   : > { %17603 = vmatmul.mubr.bf16.gmra.mrb[16].mxu0 %v3028_v35  ;;  %v3462_v35 = vor.u32 %v21666_v6, %v21649_v61  ;;  %v21707_v4 = vrot.slane %v3532_v33, 3  ;;  %v3420_v61 = vld [vmem:[#allocation2 + $0x100] sm:$0xf8]  ;;  %v3488_v6 = vsel %vm479_vm1, %v3479_v25, %v3487_v59  ;;  %v3537_v1 = vrot.slane %v3535_v24, 4  ;;  %v3426_v33 = vld [vmem:[#allocation2 + $0x130] sm:$0xf8] }
 0x1ee   : > { %17606 = vmatprep.mubr.bf16.mxu0 %v3045_v43  ;;  %v3470_v43 = vor.u32 %v3469_v57, %v3466_v7  ;;  %v3558_v14 = vshrl.u32 %v3420_v61, 16  ;;  %v3561_v9 = vshll.u32 %v3420_v61, 16  ;;  %v3496_v7 = vor.u32 %v21687_v44, %v21685_v29  ;;  %v21715_v57 = vld [vmem:[#allocation2 + $0x108] sm:$0xf]  ;;  %v20280_v24 = vld [vmem:[#allocation6 + $0x1e0] sm:$0xff]  }
 0x1ef   : > { %v3566_v0 = vshrl.u32 %v21715_v57, 16  ;;  %v3569_v12 = vshll.u32 %v21715_v57, 16  ;;  %v3575_v29 = vshrl.u32 %v3422_v56, 16  ;;  %v3578_v44 = vshll.u32 %v3422_v56, 16 }
 0x1f0   : > { %v3505_v50 = vsel %vm479_vm1, %v3496_v7, %v3504_v36  ;;  %v3538_v8 = vor.u32 %v3537_v1, %v21707_v4  ;;  %v3609_v25 = vshrl.u32 %v3426_v33, 16  ;;  %v3612_v59 = vshll.u32 %v3426_v33, 16  ;;  %v3428_v4 = vld [vmem:[#allocation2 + $0x140] sm:$0xf8] }
 0x1f1   : > { %v3577_v55 = vrot.slane %v3575_v29, 3  ;;  %v3580_v11 = vrot.slane %v3578_v44, 4  ;;  %v3597_v7 = vrot.slane %v3595_v45, 4  ;;  %v3602_v36 = vrot.slane %v3600_v39, 3  ;;  %v20518_v33 = vld [vmem:[#allocation2 + $0x100] sm:$0xf0] }
 0x1f2   : > { %v3539_v61 = vsel %vm479_vm1, %v3530_v18, %v3538_v8  ;;  %v3611_v1 = vrot.slane %v3609_v25, 3  ;;  %v3629_v16 = vshll.u32 %v3428_v4, 16  ;;  %v3643_v29 = vshrl.u32 %v3430_v34, 16  ;;  %v20517_v8 = vld [vmem:[#allocation2 + $0xf8] sm:$0xf] }
 0x1f3   : > { %v858_v21 = vrot.slane %v20517_v8, 4  ;;  %v21757_v45 = vld [vmem:[#allocation2 + $0x168] sm:$0xf] }
 0x1f4   : > { %v3631_v39 = vrot.slane %v3629_v16, 4 }
 0x1f5   : > { %17607 = vmatmul.mubr.bf16.gmra.mrb[20].mxu0 %v3062_v2  ;;  %v20277_v2 = vld [vmem:[#allocation6 + $0x1c8] sm:$0xff]  }
 0x1f6   : > { %17610 = vmatprep.mubr.bf16.mxu0 %v3079_v54  ;;  %v3471_v54 = vsel %vm479_vm1, %v3462_v35, %v3470_v43  ;;  %v21735_v35 = vld [vmem:[#allocation2 + $0x138] sm:$0xf]  ;;  %v3585_v43 = vrot.slane %v3583_v27, 3  ;;  %v3646_v27 = vshll.u32 %v3430_v34, 16 }
 0x1f7   : > { %v3617_v3 = vshrl.u32 %v21735_v35, 16  ;;  %v3620_v49 = vshll.u32 %v21735_v35, 16  ;;  %v21769_v34 = vld [vmem:[#allocation2 + $0x178] sm:$0xf] }
 0x1f9   : > { %v3619_v56 = vrot.slane %v3617_v3, 3  ;;  %v3622_v60 = vrot.slane %v3620_v49, 4 }
 0x1fb   : > { %v3623_v51 = vor.u32 %v3622_v60, %v3619_v56  ;;  %v20520_v56 = vld [vmem:[#allocation2 + $0x110] sm:$0xf0] }
 0x1fc   : > { %v863_v60 = vrot.slane %v20520_v56, 4 }
 0x1fd   : > { %17611 = vmatmul.mubr.bf16.gmra.mrb[24].mxu0 %v3096_v32  ;;  %v21720_v32 = vrot.slane %v3558_v14, 3  ;;  %v3581_v14 = vor.u32 %v3580_v11, %v3577_v55 }
 0x1fe   : > { %17614 = vmatprep.mubr.bf16.mxu0 %v3113_v62  ;;  %v21722_v62 = vrot.slane %v3561_v9, 4  ;;  %v3626_v9 = vshrl.u32 %v3428_v4, 16  ;;  %v3645_v4 = vrot.slane %v3643_v29, 3 }
 0x205   : > { %17615 = vmatmul.mubr.bf16.gmra.mrb[28].mxu0 %v3130_v19  ;;  %v3568_v19 = vrot.slane %v3566_v0, 3  ;;  %v21749_v0 = vrot.slane %v3626_v9, 3  ;;  %v3671_v9 = vshll.u32 %v21757_v45, 16 }
 0x206   : > { %17634 = vmatprep.mubr.bf16.mxu0 %v3454_v58  ;;  %v3571_v58 = vrot.slane %v3569_v12, 4  ;;  %v21751_v12 = vld [vmem:[#allocation2 + $0x158] sm:$0xf] }
 0x207   : > { %v3651_v17 = vshrl.u32 %v21751_v12, 16 }
 0x209   : > { %v3653_v49 = vrot.slane %v3651_v17, 3 }
 0x20d   : > { %17635 = vmatmul.mubr.bf16.vlgmr.msra.gmra.mrb[0].mxu0 %v3471_v54  ;;  %v3572_v54 = vor.u32 %v3571_v58, %v3568_v19  ;;  %v860_v19 = vrot.slane %v20518_v33, 4  ;;  %v20519_v58 = vld [vmem:[#allocation2 + $0x108] sm:$0xf] }
 0x20e   : > { %17667 = vmatpush3.bf16.msra.mxu0 %v21635_v53  ;;  %17638 = vmatprep.mubr.bf16.mxu0 %v3488_v6  ;;  %v3586_v53 = vshll.u32 %v21717_v42, 16  ;;  %v3594_v6 = vrot.slane %v3592_v37, 3  ;;  %v861_v55 = vrot.slane %v20519_v58, 4  ;;  %v3432_v37 = vld [vmem:[#allocation2 + $0x160] sm:$0xf8] }
 0x20f   : > { %17668 = vmatprep.subr.bf16.mxu0 %v20277_v2  ;;  %v21775_v33 = vld [vmem:[#allocation2 + $0x188] sm:$0xf] }
 0x210   : > { %v3588_v52 = vrot.slane %v3586_v53, 4  ;;  %v20283_v53 = vld [vmem:[#allocation6 + $0x1f8] sm:$0xff]   ;;  %v3598_v11 = vor.u32 %v3597_v7, %v3594_v6  ;;  %v862_v25 = vsel %vm832_vm0, %v860_v19, %v861_v55  ;;  %v3434_v7 = vld [vmem:[#allocation2 + $0x170] sm:$0xf8] }
 0x212   : > { %17669 = vmatpush3.bf16.msra.mxu0 %v20277_v2  ;;  %v3564_v2 = vor.u32 %v21722_v62, %v21720_v32  ;;  %v3589_v48 = vor.u32 %v3588_v52, %v3585_v43  ;;  %v3637_v32 = vshll.u32 %v21742_v38, 16  ;;  %v20282_v62 = vld [vmem:[#allocation6 + $0x1f0] sm:$0xff]   ;;  %v3606_v43 = vor.u32 %v3605_v5, %v3602_v36 }
 0x213   : > { %17670 = vmatprep.subr.bf16.mxu0 %v20278_v30  ;;  %v3632_v36 = vor.u32 %v3631_v39, %v21749_v0  ;;  %v3685_v0 = vshrl.u32 %v21769_v34, 16 }
 0x214   : > { %v3573_v44 = vsel %vm479_vm1, %v3564_v2, %v3572_v54  ;;  %v3639_v3 = vrot.slane %v3637_v32, 4  ;;  %v3663_v2 = vshll.u32 %v3432_v37, 16  ;;  %v3607_v54 = vsel %vm479_vm1, %v3598_v11, %v3606_v43 }
 0x215   : > { %17639 = vmatmul.mubr.bf16.gmra.mrb[4].mxu0 %v3505_v50  ;;  %v3654_v50 = vshll.u32 %v21751_v12, 16  ;;  %v3680_v32 = vshll.u32 %v3434_v7, 16  ;;  %v3687_v43 = vrot.slane %v3685_v0, 3 }
 0x216   : > { %17642 = vmatprep.mubr.bf16.mxu0 %v3522_v20  ;;  %17671 = vmatpush3.bf16.msra.mxu0 %v20278_v30  ;;  %v3614_v30 = vrot.slane %v3612_v59, 4  ;;  %v20516_v20 = vld [vmem:[#allocation2 + $0xf0] sm:$0xf0]  ;;  %v3636_v59 = vrot.slane %v3634_v26, 3  ;;  %v3677_v26 = vshrl.u32 %v3434_v7, 16 }
 0x217   : > { %17672 = vmatprep.subr.bf16.mxu0 %v20279_v22  ;;  %v857_v18 = vrot.slane %v20516_v20, 4  ;;  %v3682_v55 = vrot.slane %v3680_v32, 4  ;;  %v20529_v32 = vld [vmem:[#allocation2 + $0x158] sm:$0xf] }
 0x218   : > { %v3615_v52 = vor.u32 %v3614_v30, %v3611_v1  ;;  %v3640_v5 = vor.u32 %v3639_v3, %v3636_v59  ;;  %v3679_v58 = vrot.slane %v3677_v26, 3  ;;  %v20525_v3 = vld [vmem:[#allocation2 + $0x138] sm:$0xf] }
 0x21a   : > { %17673 = vmatpush3.bf16.msra.mxu0 %v20279_v22  ;;  %v3590_v22 = vsel %vm479_vm1, %v3581_v14, %v3589_v48  ;;  %v3668_v14 = vshrl.u32 %v21757_v45, 16  ;;  %v3624_v6 = vsel %vm479_vm1, %v3615_v52, %v3623_v51  ;;  %v20521_v48 = vld [vmem:[#allocation2 + $0x118] sm:$0xf]  ;;  %v3641_v19 = vsel %vm479_vm1, %v3632_v36, %v3640_v5 }
 0x21b   : > { %17674 = vmatprep.subr.bf16.mxu0 %v20280_v24  ;;  %v864_v16 = vrot.slane %v20521_v48, 4  ;;  %v21785_v48 = vld [vmem:[#allocation2 + $0x90] sm:$0xf0] }
 0x21c   : > { %v3670_v20 = vrot.slane %v3668_v14, 3  ;;  %v3683_v14 = vor.u32 %v3682_v55, %v3679_v58  ;;  %v21795_v58 = vld [vmem:[#allocation2 + $0xb0] sm:$0xf0]  ;;  %v20293_v55 = vld [vmem:[#allocation6 + $0x288] sm:$0xff]  }
 0x21d   : > { %17643 = vmatmul.mubr.bf16.gmra.mrb[8].mxu0 %v3539_v61  ;;  %v3648_v61 = vrot.slane %v3646_v27, 4  ;;  %v865_v17 = vsel %vm832_vm0, %v863_v60, %v864_v16  ;;  %v20528_v16 = vld [vmem:[#allocation2 + $0x150] sm:$0xf0] }
 0x21e   : > { %17646 = vmatprep.mubr.bf16.mxu0 %v3556_v47  ;;  %17675 = vmatpush3.bf16.msra.mxu0 %v20280_v24  ;;  %v859_v24 = vsel %vm832_vm0, %v857_v18, %v858_v21  ;;  %v3660_v47 = vshrl.u32 %v3432_v37, 16  ;;  %v3673_v18 = vrot.slane %v3671_v9, 4  ;;  %v3436_v21 = vld [vmem:[#allocation2 + $0x180] sm:$0xf8]  ;;  %v875_v26 = vrot.slane %v20528_v16, 4 }
 0x21f   : > { %17676 = vmatprep.subr.bf16.mxu0 %v20281_v40  ;;  %17362 = vmatprep.mubr.bf16.mxu1 %v859_v24  ;;  %v3649_v1 = vor.u32 %v3648_v61, %v3645_v4  ;;  %v3694_v39 = vshrl.u32 %v3436_v21, 16  ;;  %v3697_v24 = vshll.u32 %v3436_v21, 16  ;;  %v870_v4 = vrot.slane %v20525_v3, 4  ;;  %v21805_v3 = vld [vmem:[#allocation2 + $0xd0] sm:$0xf0] }
 0x220   : > { %17363 = vmatmul.mubr.bf16.vlgmr.msra.gmra.mrb[0].mxu1 %v862_v25  ;;  %v3662_v30 = vrot.slane %v3660_v47, 3  ;;  %v3674_v51 = vor.u32 %v3673_v18, %v3670_v20  ;;  %v20524_v25 = vld [vmem:[#allocation2 + $0x130] sm:$0xf0]  ;;  %v3702_v61 = vshrl.u32 %v21775_v33, 16  ;;  %v4057_v16 = vrot.slane %v21717_v42, 4 }
 0x221   : > { %17366 = vmatprep.mubr.bf16.mxu1 %v865_v17  ;;  %v869_v59 = vrot.slane %v20524_v25, 4  ;;  %v3696_v5 = vrot.slane %v3694_v39, 3  ;;  %v21803_v25 = vld [vmem:[#allocation2 + $0xc0] sm:$0xf0] }
 0x222   : > { %17677 = vmatpush3.bf16.msra.mxu0 %v20281_v40  ;;  %v3656_v40 = vrot.slane %v3654_v50, 4  ;;  %v3665_v50 = vrot.slane %v3663_v2, 4  ;;  %v20527_v2 = vld [vmem:[#allocation2 + $0x148] sm:$0xf] }
 0x223   : > { %17678 = vmatprep.subr.bf16.mxu0 %v20282_v62 }
 0x224   : > { %v3666_v37 = vor.u32 %v3665_v50, %v3662_v30  ;;  %v3704_v30 = vrot.slane %v3702_v61, 3  ;;  %v20531_v50 = vld [vmem:[#allocation2 + $0x168] sm:$0xf]  ;;  %v4044_v61 = vrot.slane %v21805_v3, 4 }
 0x225   : > { %17647 = vmatmul.mubr.bf16.gmra.mrb[12].mxu0 %v3573_v44  ;;  %v20523_v44 = vld [vmem:[#allocation2 + $0x128] sm:$0xf]  ;;  %v879_v20 = vrot.slane %v20531_v50, 4  ;;  %v21844_v50 = vld [vmem:[#allocation2 + $0x140] sm:$0xf0] }
 0x226   : > { %17650 = vmatprep.mubr.bf16.mxu0 %v3590_v22  ;;  %17679 = vmatpush3.bf16.msra.mxu0 %v20282_v62  ;;  %v20522_v62 = vld [vmem:[#allocation2 + $0x120] sm:$0xf0]  ;;  %v867_v27 = vrot.slane %v20523_v44, 4  ;;  %v3688_v22 = vshll.u32 %v21769_v34, 16  ;;  %v3675_v36 = vsel %vm479_vm1, %v3666_v37, %v3674_v51  ;;  %v4039_v37 = vrot.slane %v21640_v15, 4  ;;  %v20294_v51 = vld [vmem:[#allocation6 + $0x290] sm:$0xff]  }
 0x227   : > { %17680 = vmatprep.subr.bf16.mxu0 %v20283_v53  ;;  %v866_v29 = vrot.slane %v20522_v62, 4  ;;  %v876_v62 = vrot.slane %v20529_v32, 4  ;;  %v4041_v15 = vrot.slane %v21803_v25, 4 }
 0x228   : > { %v3690_v52 = vrot.slane %v3688_v22, 4  ;;  %v20530_v22 = vld [vmem:[#allocation2 + $0x160] sm:$0xf0] }
 0x229   : > { %v868_v8 = vsel %vm832_vm0, %v866_v29, %v867_v27  ;;  %v4033_v27 = vrot.slane %v21609_v13, 4  ;;  %v877_v0 = vsel %vm832_vm0, %v875_v26, %v876_v62  ;;  %v878_v17 = vrot.slane %v20530_v22, 4  ;;  %v20292_v13 = vld [vmem:[#allocation6 + $0x280] sm:$0xff]   ;;  %v20290_v26 = vld [vmem:[#allocation6 + $0x230] sm:$0xff]  }
 0x22a   : > { %17681 = vmatpush3.bf16.msra.mxu0 %v20283_v53  ;;  %v3657_v53 = vor.u32 %v3656_v40, %v3653_v49  ;;  %17367 = vmatmul.mubr.bf16.gmra.mrb[4].mxu1 %v868_v8  ;;  %v3705_v49 = vshll.u32 %v21775_v33, 16  ;;  %v20526_v40 = vld [vmem:[#allocation2 + $0x140] sm:$0xf0]  ;;  %v3691_v9 = vor.u32 %v3690_v52, %v3687_v43  ;;  %v4036_v43 = vrot.slane %v21637_v28, 4  ;;  %v20295_v28 = vld [vmem:[#allocation6 + $0x298] sm:$0xff]  }
 0x22b   : > { %17714 = vmatprep.subr.bf16.mxu0 %v21759_v23  ;;  %v872_v47 = vrot.slane %v20526_v40, 4  ;;  %v880_v18 = vsel %vm832_vm0, %v878_v17, %v879_v20  ;;  %v4038_v52 = vrot.slane %v21795_v58, 4  ;;  %17762 = vmatprep.subr.bf16.mxu1 %v20292_v13  ;;  %v20286_v40 = vld [vmem:[#allocation6 + $0x210] sm:$0xff]  }
 0x22c   : > { %v3658_v11 = vsel %vm479_vm1, %v3649_v1, %v3657_v53  ;;  %v3699_v1 = vrot.slane %v3697_v24, 4  ;;  %v3707_v56 = vrot.slane %v3705_v49, 4  ;;  %v3692_v60 = vsel %vm479_vm1, %v3683_v14, %v3691_v9  ;;  %17763 = vmatpush3.bf16.msra.mxu1 %v20292_v13  ;;  %v21816_v14 = vld [vmem:[#allocation2 + $0xf0] sm:$0xf0]  ;;  %v21853_v13 = vld [vmem:[#allocation2 + $0x160] sm:$0xf0] }
 0x22d   : > { %17651 = vmatmul.mubr.bf16.gmra.mrb[16].mxu0 %v3607_v54  ;;  %v873_v54 = vrot.slane %v20527_v2, 4  ;;  %v4032_v53 = vrot.slane %v21785_v48, 4  ;;  %17764 = vmatprep.subr.bf16.mxu1 %v20293_v55  ;;  %v4040_v24 = vsel %vm832_vm0, %v4038_v52, %v4039_v37  ;;  %v4045_v49 = vrot.slane %v21675_v46, 4  ;;  %v21846_v20 = vld [vmem:[#allocation2 + $0x150] sm:$0xf0] }
 0x22e   : > { %17654 = vmatprep.mubr.bf16.mxu0 %v3624_v6  ;;  %v871_v6 = vsel %vm832_vm0, %v869_v59, %v870_v4  ;;  %v3700_v29 = vor.u32 %v3699_v1, %v3696_v5  ;;  %v3708_v44 = vor.u32 %v3707_v56, %v3704_v30  ;;  %v20285_v59 = vld [vmem:[#allocation6 + $0x208] sm:$0xff]   ;;  %v4042_v4 = vrot.slane %v21659_v41, 4  ;;  %v21824_v1 = vld [vmem:[#allocation2 + $0x100] sm:$0xf0]  ;;  %v21826_v56 = vld [vmem:[#allocation2 + $0x110] sm:$0xf0] }
 0x22f   : > { %17370 = vmatprep.mubr.bf16.mxu1 %v871_v6  ;;  %v874_v7 = vsel %vm832_vm0, %v872_v47, %v873_v54  ;;  %v4034_v21 = vsel %vm832_vm0, %v4032_v53, %v4033_v27  ;;  %v4046_v2 = vsel %vm832_vm0, %v4044_v61, %v4045_v49  ;;  %v21814_v54 = vld [vmem:[#allocation2 + $0xe0] sm:$0xf0]  ;;  %v4048_v46 = vrot.slane %v21678_v31, 4  ;;  %v20289_v30 = vld [vmem:[#allocation6 + $0x228] sm:$0xff]   ;;  %v21836_v27 = vld [vmem:[#allocation2 + $0x130] sm:$0xf0] }
 0x230   : > { %v3709_v8 = vsel %vm479_vm1, %v3700_v29, %v3708_v44  ;;  %17765 = vmatpush3.bf16.msra.mxu1 %v20293_v55  ;;  %v4043_v47 = vsel %vm832_vm0, %v4041_v15, %v4042_v4  ;;  %v4047_v41 = vrot.slane %v21814_v54, 4  ;;  %v4050_v9 = vrot.slane %v21816_v14, 4  ;;  %v21834_v29 = vld [vmem:[#allocation2 + $0x120] sm:$0xf0]  ;;  %v20291_v44 = vld [vmem:[#allocation6 + $0x238] sm:$0xff]  }
 0x231   : > { %17766 = vmatprep.subr.bf16.mxu1 %v20294_v51  ;;  %v4051_v6 = vrot.slane %v21699_v10, 4  ;;  %v4053_v31 = vrot.slane %v21824_v1, 4  ;;  %v4056_v10 = vrot.slane %v21826_v56, 4  ;;  %v4060_v53 = vrot.slane %v21729_v63, 4  ;;  %v4355_v15 = vld [vmem:[#allocation2 + $0xa8] sm:$0x1f] }
 0x232   : > { %17371 = vmatmul.mubr.bf16.gmra.mrb[8].mxu1 %v874_v7  ;;  %v20288_v7 = vld [vmem:[#allocation6 + $0x220] sm:$0xff]   ;;  %v4062_v42 = vrot.slane %v21836_v27, 4  ;;  %v4066_v63 = vrot.slane %v21742_v38, 4  ;;  %v4071_v52 = vrot.slane %v21853_v13, 4  ;;  %v4072_v37 = vrot.slane %v21757_v45, 4 }
 0x233   : > { %17374 = vmatprep.mubr.bf16.mxu1 %v877_v0  ;;  %v4052_v5 = vsel %vm832_vm0, %v4050_v9, %v4051_v6  ;;  %v4058_v62 = vsel %vm832_vm0, %v4056_v10, %v4057_v16  ;;  %v4063_v0 = vrot.slane %v21735_v35, 4  ;;  %v4069_v35 = vrot.slane %v21751_v12, 4 }
 0x234   : > { %17767 = vmatpush3.bf16.msra.mxu1 %v20294_v51  ;;  %v4371_v38 = vshrl.u32 %v21785_v48, 16  ;;  %v4374_v51 = vshll.u32 %v21785_v48, 16  ;;  %v4078_v9 = vrot.slane %v21775_v33, 4 }
 0x235   : > { %17655 = vmatmul.mubr.bf16.gmra.mrb[20].mxu0 %v3641_v19  ;;  %v21793_v19 = vld [vmem:[#allocation2 + $0xa0] sm:$0xf0]  ;;  %17768 = vmatprep.subr.bf16.mxu1 %v20295_v28  ;;  %v4064_v17 = vsel %vm832_vm0, %v4062_v42, %v4063_v0  ;;  %v4358_v42 = vld [vmem:[#allocation2 + $0xd8] sm:$0x1f] }
 0x236   : > { %17658 = vmatprep.mubr.bf16.mxu0 %v3658_v11  ;;  %v4035_v11 = vrot.slane %v21793_v19, 4  ;;  %v4373_v4 = vrot.slane %v4371_v38, 4  ;;  %v4376_v61 = vrot.slane %v4374_v51, 5  ;;  %v4391_v48 = vshll.u32 %v21793_v19, 16 }
 0x238   : > { %v4037_v39 = vsel %vm832_vm0, %v4035_v11, %v4036_v43  ;;  %17769 = vmatpush3.bf16.msra.mxu1 %v20295_v28  ;;  %v4354_v11 = vld [vmem:[#allocation2 + $0x98] sm:$0x1f]  ;;  %v21856_v43 = vld [vmem:[#allocation2 + $0x170] sm:$0xf0]  ;;  %v4073_v28 = vsel %vm832_vm0, %v4071_v52, %v4072_v37  ;;  %v4377_v6 = vor.u32 %v4376_v61, %v4373_v4  ;;  %v4393_v10 = vrot.slane %v4391_v48, 5 }
 0x239   : > { %v4379_v12 = vshrl.u32 %v4354_v11, 16  ;;  %v4456_v61 = vshrl.u32 %v21814_v54, 16 }
 0x23a   : > { %17375 = vmatmul.mubr.bf16.gmra.mrb[12].mxu1 %v880_v18  ;;  %v4065_v18 = vrot.slane %v21844_v50, 4 }
 0x23b   : > { %v4381_v49 = vrot.slane %v4379_v12, 4 }
 0x23d   : > { %17659 = vmatmul.mubr.bf16.gmra.mrb[24].mxu0 %v3675_v36  ;;  %v4049_v36 = vsel %vm832_vm0, %v4047_v41, %v4048_v46  ;;  %v4399_v41 = vshll.u32 %v4355_v15, 16  ;;  %v4356_v46 = vld [vmem:[#allocation2 + $0xb8] sm:$0x1f] }
 0x23e   : > { %17662 = vmatprep.mubr.bf16.mxu0 %v3692_v60  ;;  %v4054_v60 = vrot.slane %v21715_v57, 4  ;;  %v4059_v57 = vrot.slane %v21834_v29, 4 }
 0x23f   : > { %v4401_v16 = vrot.slane %v4399_v41, 5 }
 0x240   : > { %v4055_v32 = vsel %vm832_vm0, %v4053_v31, %v4054_v60  ;;  %v4061_v22 = vsel %vm832_vm0, %v4059_v57, %v4060_v53  ;;  %v4416_v31 = vshll.u32 %v4356_v46, 16 }
 0x242   : > { %v4418_v53 = vrot.slane %v4416_v31, 5 }
 0x245   : > { %17663 = vmatmul.mubr.bf16.gmra.mrb[28].mxu0 %v3709_v8  ;;  %v4068_v8 = vrot.slane %v21846_v20, 4 }
 0x246   : > { %17682 = vmatprep.mubr.bf16.mxu0 %v4034_v21  ;;  %v4067_v21 = vsel %vm832_vm0, %v4065_v18, %v4066_v63 }
 0x247   : > { %v4070_v55 = vsel %vm832_vm0, %v4068_v8, %v4069_v35  ;;  %v4439_v8 = vshrl.u32 %v21805_v3, 16  ;;  %v4442_v35 = vshll.u32 %v21805_v3, 16  ;;  %v4459_v3 = vshll.u32 %v21814_v54, 16 }
 0x24d   : > { %17683 = vmatmul.mubr.bf16.vlgmr.msra.gmra.mrb[0].mxu0 %v4037_v39  ;;  %v4382_v39 = vshll.u32 %v4354_v11, 16 }
 0x24e   : > { %17715 = vmatpush3.bf16.msra.mxu0 %v21759_v23  ;;  %17686 = vmatprep.mubr.bf16.mxu0 %v4040_v24  ;;  %v20287_v23 = vld [vmem:[#allocation6 + $0x218] sm:$0xff]   ;;  %v4074_v24 = vrot.slane %v21856_v43, 4 }
 0x24f   : > { %17716 = vmatprep.subr.bf16.mxu0 %v20285_v59 }
 0x252   : > { %17717 = vmatpush3.bf16.msra.mxu0 %v20285_v59  ;;  %v4075_v59 = vrot.slane %v21769_v34, 4 }
 0x253   : > { %17718 = vmatprep.subr.bf16.mxu0 %v20286_v40 }
 0x254   : > { %v4076_v45 = vsel %vm832_vm0, %v4074_v24, %v4075_v59  ;;  %v4359_v24 = vld [vmem:[#allocation2 + $0xe8] sm:$0x1f]  ;;  %v4441_v59 = vrot.slane %v4439_v8, 4 }
 0x255   : > { %17687 = vmatmul.mubr.bf16.gmra.mrb[4].mxu0 %v4043_v47  ;;  %v21866_v47 = vld [vmem:[#allocation2 + $0x180] sm:$0xf0] }
 0x256   : > { %17690 = vmatprep.mubr.bf16.mxu0 %v4046_v2  ;;  %17719 = vmatpush3.bf16.msra.mxu0 %v20286_v40  ;;  %v4384_v40 = vrot.slane %v4382_v39, 5  ;;  %v4388_v2 = vshrl.u32 %v21793_v19, 16  ;;  %v4077_v34 = vrot.slane %v21866_v47, 4 }
 0x257   : > { %17720 = vmatprep.subr.bf16.mxu0 %v20287_v23 }
 0x258   : > { %v4390_v60 = vrot.slane %v4388_v2, 4 }
 0x25a   : > { %17721 = vmatpush3.bf16.msra.mxu0 %v20287_v23  ;;  %v4396_v23 = vshrl.u32 %v4355_v15, 16  ;;  %v4394_v0 = vor.u32 %v4393_v10, %v4390_v60  ;;  %v4361_v60 = vld [vmem:[#allocation2 + $0x108] sm:$0x1f] }
 0x25b   : > { %17722 = vmatprep.subr.bf16.mxu0 %v20288_v7 }
 0x25c   : > { %v4398_v19 = vrot.slane %v4396_v23, 4 }
 0x25d   : > { %17691 = vmatmul.mubr.bf16.gmra.mrb[8].mxu0 %v4049_v36  ;;  %v4405_v36 = vshrl.u32 %v21795_v58, 16 }
 0x25e   : > { %17694 = vmatprep.mubr.bf16.mxu0 %v4052_v5  ;;  %17723 = vmatpush3.bf16.msra.mxu0 %v20288_v7  ;;  %v4385_v7 = vor.u32 %v4384_v40, %v4381_v49  ;;  %v4408_v5 = vshll.u32 %v21795_v58, 16  ;;  %v4422_v58 = vshrl.u32 %v21803_v25, 16  ;;  %v4464_v49 = vshrl.u32 %v4359_v24, 16 }
 0x25f   : > { %17724 = vmatprep.subr.bf16.mxu0 %v20289_v30  ;;  %v4467_v40 = vshll.u32 %v4359_v24, 16 }
 0x260   : > { %v4410_v57 = vrot.slane %v4408_v5, 5  ;;  %v4424_v38 = vrot.slane %v4422_v58, 4  ;;  %v4466_v5 = vrot.slane %v4464_v49, 4 }
 0x262   : > { %17725 = vmatpush3.bf16.msra.mxu0 %v20289_v30  ;;  %v4413_v30 = vshrl.u32 %v4356_v46, 16  ;;  %v4473_v46 = vshrl.u32 %v21816_v14, 16 }
 0x263   : > { %17726 = vmatprep.subr.bf16.mxu0 %v20290_v26 }
 0x264   : > { %v4415_v33 = vrot.slane %v4413_v30, 4  ;;  %v4469_v30 = vrot.slane %v4467_v40, 5  ;;  %v4475_v10 = vrot.slane %v4473_v46, 4  ;;  %v4365_v46 = vld [vmem:[#allocation2 + $0x148] sm:$0x1f] }
 0x265   : > { %17695 = vmatmul.mubr.bf16.gmra.mrb[12].mxu0 %v4055_v32  ;;  %v4386_v32 = vsel %vm1348_vm2, %v4377_v6, %v4385_v7  ;;  %v4458_v7 = vrot.slane %v4456_v61, 4  ;;  %v4541_v61 = vshrl.u32 %v21836_v27, 16 }
 0x266   : > { %17698 = vmatprep.mubr.bf16.mxu0 %v4058_v62  ;;  %17727 = vmatpush3.bf16.msra.mxu0 %v20290_v26  ;;  %v4079_v26 = vsel %vm832_vm0, %v4077_v34, %v4078_v9  ;;  %v4357_v62 = vld [vmem:[#allocation2 + $0xc8] sm:$0x1f]  ;;  %v4419_v52 = vor.u32 %v4418_v53, %v4415_v33  ;;  %v4476_v34 = vshll.u32 %v21816_v14, 16  ;;  %v4490_v14 = vshrl.u32 %v21824_v1, 16 }
 0x267   : > { %17728 = vmatprep.subr.bf16.mxu0 %v20291_v44  ;;  %v4430_v18 = vshrl.u32 %v4357_v62, 16  ;;  %v4433_v63 = vshll.u32 %v4357_v62, 16  ;;  %v4498_v33 = vshrl.u32 %v4361_v60, 16  ;;  %v4501_v53 = vshll.u32 %v4361_v60, 16 }
 0x268   : > { %v4492_v8 = vrot.slane %v4490_v14, 4  ;;  %v4569_v60 = vshll.u32 %v4365_v46, 16 }
 0x269   : > { %v4432_v12 = vrot.slane %v4430_v18, 4  ;;  %v4435_v39 = vrot.slane %v4433_v63, 5 }
 0x26a   : > { %17729 = vmatpush3.bf16.msra.mxu0 %v20291_v44  ;;  %v4407_v44 = vrot.slane %v4405_v36, 4  ;;  %v4461_v36 = vrot.slane %v4459_v3, 5  ;;  %v4544_v3 = vshll.u32 %v21836_v27, 16  ;;  %v4558_v27 = vshrl.u32 %v21844_v50, 16 }
 0x26b   : > { %v4436_v48 = vor.u32 %v4435_v39, %v4432_v12  ;;  %v4524_v12 = vshrl.u32 %v21834_v29, 16 }
 0x26c   : > { %v4411_v11 = vor.u32 %v4410_v57, %v4407_v44  ;;  %v4462_v62 = vor.u32 %v4461_v36, %v4458_v7  ;;  %v4470_v44 = vor.u32 %v4469_v30, %v4466_v5  ;;  %v4493_v57 = vshll.u32 %v21824_v1, 16  ;;  %v4366_v36 = vld [vmem:[#allocation2 + $0x158] sm:$0x1f] }
 0x26d   : > { %17699 = vmatmul.mubr.bf16.gmra.mrb[16].mxu0 %v4061_v22  ;;  %v4402_v22 = vor.u32 %v4401_v16, %v4398_v19  ;;  %v4478_v19 = vrot.slane %v4476_v34, 5  ;;  %v4543_v34 = vrot.slane %v4541_v61, 4  ;;  %v4560_v14 = vrot.slane %v4558_v27, 4  ;;  %v4369_v61 = vld [vmem:[#allocation2 + $0x188] sm:$0x1f]  ;;  %v20298_v27 = vld [vmem:[#allocation6 + $0x2b0] sm:$0xff]  }
 0x26e   : > { %17702 = vmatprep.mubr.bf16.mxu0 %v4064_v17  ;;  %v4425_v17 = vshll.u32 %v21803_v25, 16  ;;  %v4444_v25 = vrot.slane %v4442_v35, 5  ;;  %v4420_v4 = vsel %vm1348_vm2, %v4411_v11, %v4419_v52  ;;  %v4471_v63 = vsel %vm1348_vm2, %v4462_v62, %v4470_v44  ;;  %v4363_v11 = vld [vmem:[#allocation2 + $0x128] sm:$0x1f] }
 0x26f   : > { %v4403_v37 = vsel %vm1348_vm2, %v4394_v0, %v4402_v22  ;;  %v4510_v0 = vshll.u32 %v21826_v56, 16  ;;  %v4495_v35 = vrot.slane %v4493_v57, 5  ;;  %v4532_v39 = vshrl.u32 %v4363_v11, 16 }
 0x270   : > { %v4427_v51 = vrot.slane %v4425_v17, 5  ;;  %v4445_v23 = vor.u32 %v4444_v25, %v4441_v59  ;;  %v4479_v17 = vor.u32 %v4478_v19, %v4475_v10  ;;  %v4535_v24 = vshll.u32 %v4363_v11, 16  ;;  %v4364_v59 = vld [vmem:[#allocation2 + $0x138] sm:$0x1f] }
 0x271   : > { %v4512_v1 = vrot.slane %v4510_v0, 5  ;;  %v4496_v25 = vor.u32 %v4495_v35, %v4492_v8  ;;  %v4549_v49 = vshrl.u32 %v4364_v59, 16  ;;  %v4552_v40 = vshll.u32 %v4364_v59, 16 }
 0x272   : > { %v4428_v2 = vor.u32 %v4427_v51, %v4424_v38  ;;  %v4575_v10 = vshrl.u32 %v21846_v20, 16  ;;  %v4578_v19 = vshll.u32 %v21846_v20, 16  ;;  %v4592_v20 = vshrl.u32 %v21853_v13, 16 }
 0x273   : > { %v4554_v7 = vrot.slane %v4552_v40, 5  ;;  %v4629_v40 = vshll.u32 %v21866_v47, 16 }
 0x274   : > { %v4437_v54 = vsel %vm1348_vm2, %v4428_v2, %v4436_v48  ;;  %v4534_v48 = vrot.slane %v4532_v39, 4  ;;  %v4580_v0 = vrot.slane %v4578_v19, 5 }
 0x275   : > { %17703 = vmatmul.mubr.bf16.gmra.mrb[20].mxu0 %v4067_v21  ;;  %v4447_v21 = vshrl.u32 %v4358_v42, 16 }
 0x276   : > { %17706 = vmatprep.mubr.bf16.mxu0 %v4070_v55  ;;  %v4450_v55 = vshll.u32 %v4358_v42, 16  ;;  %v4507_v42 = vshrl.u32 %v21826_v56, 16  ;;  %v4527_v56 = vshll.u32 %v21834_v29, 16 }
 0x278   : > { %v4452_v15 = vrot.slane %v4450_v55, 5  ;;  %v4503_v55 = vrot.slane %v4501_v53, 5  ;;  %v4509_v52 = vrot.slane %v4507_v42, 4  ;;  %v4529_v2 = vrot.slane %v4527_v56, 5 }
 0x279   : > { %v4571_v53 = vrot.slane %v4569_v60, 5  ;;  %v4577_v42 = vrot.slane %v4575_v10, 4  ;;  %v5325_v60 = vld [vmem:[#allocation2 + $0x68] sm:$0xf] }
 0x27a   : > { %v5389_v19 = vrot.slane %v5325_v60, 4 }
 0x27b   : > { %v4581_v11 = vor.u32 %v4580_v0, %v4577_v42 }
 0x27d   : > { %17707 = vmatmul.mubr.bf16.gmra.mrb[24].mxu0 %v4073_v28  ;;  %v4449_v28 = vrot.slane %v4447_v21, 4  ;;  %v4500_v21 = vrot.slane %v4498_v33, 4 }
 0x27e   : > { %17710 = vmatprep.mubr.bf16.mxu0 %v4076_v45  ;;  %v4360_v45 = vld [vmem:[#allocation2 + $0xf8] sm:$0x1f] }
 0x27f   : > { %v4453_v41 = vor.u32 %v4452_v15, %v4449_v28  ;;  %v4481_v9 = vshrl.u32 %v4360_v45, 16  ;;  %v4484_v6 = vshll.u32 %v4360_v45, 16  ;;  %v4504_v28 = vor.u32 %v4503_v55, %v4500_v21 }
 0x280   : > { %v4513_v15 = vor.u32 %v4512_v1, %v4509_v52  ;;  %v4526_v45 = vrot.slane %v4524_v12, 4  ;;  %v4609_v1 = vshrl.u32 %v21856_v43, 16  ;;  %v4594_v12 = vrot.slane %v4592_v20, 4  ;;  %v20302_v20 = vld [vmem:[#allocation6 + $0x250] sm:$0xff]  }
 0x281   : > { %v4454_v31 = vsel %vm1348_vm2, %v4445_v23, %v4453_v41  ;;  %v4483_v16 = vrot.slane %v4481_v9, 4  ;;  %v4537_v23 = vrot.slane %v4535_v24, 5  ;;  %v4505_v29 = vsel %vm1348_vm2, %v4496_v25, %v4504_v28 }
 0x282   : > { %v4546_v9 = vrot.slane %v4544_v3, 5  ;;  %v4530_v5 = vor.u32 %v4529_v2, %v4526_v45  ;;  %v4611_v25 = vrot.slane %v4609_v1, 4  ;;  %v4634_v45 = vshrl.u32 %v4369_v61, 16  ;;  %v20304_v1 = vld [vmem:[#allocation6 + $0x260] sm:$0xff]  }
 0x283   : > { %v4538_v30 = vor.u32 %v4537_v23, %v4534_v48  ;;  %v4637_v2 = vshll.u32 %v4369_v61, 16 }
 0x285   : > { %17711 = vmatmul.mubr.bf16.gmra.mrb[28].mxu0 %v4079_v26  ;;  %v4486_v26 = vrot.slane %v4484_v6, 5  ;;  %v4551_v6 = vrot.slane %v4549_v49, 4  ;;  %v4539_v44 = vsel %vm1348_vm2, %v4530_v5, %v4538_v30  ;;  %v20297_v30 = vld [vmem:[#allocation6 + $0x2a8] sm:$0xff]  }
 0x286   : > { %17730 = vmatprep.mubr.bf16.mxu0 %v4386_v32  ;;  %v4362_v32 = vld [vmem:[#allocation2 + $0x118] sm:$0x1f] }
 0x287   : > { %v4515_v22 = vshrl.u32 %v4362_v32, 16  ;;  %v4518_v58 = vshll.u32 %v4362_v32, 16  ;;  %v4487_v18 = vor.u32 %v4486_v26, %v4483_v16  ;;  %v4583_v16 = vshrl.u32 %v4366_v36, 16 }
 0x288   : > { %v4586_v26 = vshll.u32 %v4366_v36, 16  ;;  %v4547_v32 = vor.u32 %v4546_v9, %v4543_v34  ;;  %v4555_v62 = vor.u32 %v4554_v7, %v4551_v6  ;;  %v4636_v34 = vrot.slane %v4634_v45, 4  ;;  %v4988_v45 = vld [vmem:[%s20908_s20 + $0x18] sm:$0xff] }
 0x289   : > { %v4520_v38 = vrot.slane %v4518_v58, 5  ;;  %v4488_v51 = vsel %vm1348_vm2, %v4479_v17, %v4487_v18  ;;  %v4367_v58 = vld [vmem:[#allocation2 + $0x168] sm:$0x1f]  ;;  %v4368_v18 = vld [vmem:[#allocation2 + $0x178] sm:$0x1f]  ;;  %v4639_v9 = vrot.slane %v4637_v2, 5 }
 0x28a   : > { %v4556_v17 = vsel %vm1348_vm2, %v4547_v32, %v4555_v62  ;;  %v4600_v8 = vshrl.u32 %v4367_v58, 16  ;;  %v4603_v35 = vshll.u32 %v4367_v58, 16 }
 0x28b   : > { %v4640_v36 = vor.u32 %v4639_v9, %v4636_v34 }
 0x28c   : > { %v4602_v39 = vrot.slane %v4600_v8, 4  ;;  %v4605_v24 = vrot.slane %v4603_v35, 5 }
 0x28d   : > { %17731 = vmatmul.mubr.bf16.vlgmr.msra.gmra.mrb[0].mxu0 %v4403_v37  ;;  %v4517_v37 = vrot.slane %v4515_v22, 4  ;;  %v4588_v22 = vrot.slane %v4586_v26, 5  ;;  %v5327_v26 = vld [vmem:[#allocation2 + $0x78] sm:$0xf] }
 0x28e   : > { %17734 = vmatprep.mubr.bf16.mxu0 %v4420_v4  ;;  %v4606_v49 = vor.u32 %v4605_v24, %v4602_v39  ;;  %v21951_v39 = vld [vmem:[#allocation6 + $0x2c0] sm:$0xff]  }
 0x28f   : > { %v4521_v4 = vor.u32 %v4520_v38, %v4517_v37  ;;  %v4612_v37 = vshll.u32 %v21856_v43, 16  ;;  %v4617_v38 = vshrl.u32 %v4368_v18, 16  ;;  %v4626_v43 = vshrl.u32 %v21866_v47, 16  ;;  %v20296_v47 = vld [vmem:[#allocation6 + $0x2a0] sm:$0xff]  }
 0x290   : > { %17770 = vmatprep.subr.bf16.mxu1 %v20296_v47  ;;  %v21954_v24 = vld [vmem:[#allocation8] ss:$0 sm:$0xff] }
 0x291   : > { %v4522_v41 = vsel %vm1348_vm2, %v4513_v15, %v4521_v4  ;;  %v4614_v28 = vrot.slane %v4612_v37, 5  ;;  %v4619_v15 = vrot.slane %v4617_v38, 4  ;;  %17771 = vmatpush3.bf16.msra.mxu1 %v20296_v47 }
 0x292   : > { %17772 = vmatprep.subr.bf16.mxu1 %v20297_v30 }
 0x293   : > { %v4615_v48 = vor.u32 %v4614_v28, %v4611_v25  ;;  %v4987_v28 = vld [vmem:[%s20908_s20 + $0x10] sm:$0xff] }
 0x295   : > { %17735 = vmatmul.mubr.bf16.gmra.mrb[4].mxu0 %v4437_v54  ;;  %v4561_v54 = vshll.u32 %v21844_v50, 16  ;;  %v4585_v50 = vrot.slane %v4583_v16, 4  ;;  %17773 = vmatpush3.bf16.msra.mxu1 %v20297_v30  ;;  %v5326_v16 = vld [vmem:[#allocation2 + $0x70] sm:$0xf0] }
 0x296   : > { %17738 = vmatprep.mubr.bf16.mxu0 %v4454_v31  ;;  %v4566_v31 = vshrl.u32 %v4365_v46, 16  ;;  %v4631_v46 = vrot.slane %v4629_v40, 5  ;;  %17774 = vmatprep.subr.bf16.mxu1 %v20298_v27  ;;  %v5391_v32 = vrot.slane %v5326_v16, 4 }
 0x297   : > { %v4563_v57 = vrot.slane %v4561_v54, 5  ;;  %v4589_v52 = vor.u32 %v4588_v22, %v4585_v50  ;;  %v20299_v54 = vld [vmem:[#allocation6 + $0x2b8] sm:$0xff]   ;;  %v20301_v50 = vld [vmem:[#allocation6 + $0x248] sm:$0xff]  }
 0x298   : > { %v4568_v33 = vrot.slane %v4566_v31, 4  ;;  %v5324_v31 = vld [vmem:[#allocation2 + $0x60] sm:$0xf0] }
 0x299   : > { %v4564_v21 = vor.u32 %v4563_v57, %v4560_v14  ;;  %17775 = vmatpush3.bf16.msra.mxu1 %v20298_v27  ;;  %v5388_v10 = vrot.slane %v5324_v31, 4  ;;  %v20300_v57 = vld [vmem:[#allocation6 + $0x240] sm:$0xff]  }
 0x29a   : > { %v4572_v55 = vor.u32 %v4571_v53, %v4568_v33  ;;  %17776 = vmatprep.subr.bf16.mxu1 %v20299_v54 }
 0x29b   : > { %v5390_v62 = vsel %vm832_vm0, %v5388_v10, %v5389_v19  ;;  %v4989_v19 = vld [vmem:[%s20908_s20 + $0x20] sm:$0xff] }
 0x29c   : > { %v4573_v59 = vsel %vm1348_vm2, %v4564_v21, %v4572_v55  ;;  %17778 = vmatprep.mubr.bf16.mxu1 %v5390_v62  ;;  %v20303_v55 = vld [vmem:[#allocation6 + $0x258] sm:$0xff]   ;;  %v4992_v62 = vld [vmem:[%s20908_s20 + $0x38] sm:$0xff] }
 0x29d   : > { %17739 = vmatmul.mubr.bf16.gmra.mrb[8].mxu0 %v4471_v63  ;;  %v4595_v63 = vshll.u32 %v21853_v13, 16  ;;  %v4590_v13 = vsel %vm1348_vm2, %v4581_v11, %v4589_v52  ;;  %17777 = vmatpush3.bf16.msra.mxu1 %v20299_v54  ;;  %v4991_v54 = vld [vmem:[%s20908_s20 + $0x30] sm:$0xff] }
 0x29e   : > { %17742 = vmatprep.mubr.bf16.mxu0 %v4488_v51  ;;  %v4620_v51 = vshll.u32 %v4368_v18, 16  ;;  %17810 = vmatprep.subr.bf16.mxu1 %v20300_v57 }
 0x29f   : > { %v4597_v56 = vrot.slane %v4595_v63, 5 }
 0x2a0   : > { %v4622_v4 = vrot.slane %v4620_v51, 5  ;;  %v20305_v51 = vld [vmem:[#allocation6 + $0x268] sm:$0xff]  }
 0x2a1   : > { %v4598_v3 = vor.u32 %v4597_v56, %v4594_v12  ;;  %v20306_v12 = vld [vmem:[#allocation6 + $0x270] sm:$0xff]   ;;  %v20307_v56 = vld [vmem:[#allocation6 + $0x278] sm:$0xff]  }
 0x2a2   : > { %v4623_v23 = vor.u32 %v4622_v4, %v4619_v15 }
 0x2a4   : > { %v4624_v6 = vsel %vm1348_vm2, %v4615_v48, %v4623_v23 }
 0x2a5   : > { %17743 = vmatmul.mubr.bf16.gmra.mrb[12].mxu0 %v4505_v29  ;;  %v4607_v29 = vsel %vm1348_vm2, %v4598_v3, %v4606_v49  ;;  %v4985_v3 = vld [vmem:[%s20908_s20] sm:$0xff] }
 0x2a6   : > { %17746 = vmatprep.mubr.bf16.mxu0 %v4522_v41  ;;  %v4628_v41 = vrot.slane %v4626_v43, 4 }
 0x2a8   : > { %v4632_v7 = vor.u32 %v4631_v46, %v4628_v41 }
 0x2aa   : > { %v4641_v5 = vsel %vm1348_vm2, %v4632_v7, %v4640_v36 }
 0x2ad   : > { %17747 = vmatmul.mubr.bf16.gmra.mrb[16].mxu0 %v4539_v44  ;;  %v5392_v44 = vrot.slane %v5327_v26, 4 }
 0x2ae   : > { %17750 = vmatprep.mubr.bf16.mxu0 %v4556_v17 }
 0x2af   : > { %v5393_v14 = vsel %vm832_vm0, %v5391_v32, %v5392_v44 }
 0x2b0   : > { %17779 = vmatmul.mubr.bf16.vlgmr.msra.gmra.mrb[16].mxu1 %v5393_v14 }
 0x2b1   : > { %17811 = vmatpush3.bf16.msra.mxu1 %v20300_v57 }
 0x2b2   : > { %17812 = vmatprep.subr.bf16.mxu1 %v20301_v50 }
 0x2b5   : > { %17751 = vmatmul.mubr.bf16.gmra.mrb[20].mxu0 %v4573_v59  ;;  %17813 = vmatpush3.bf16.msra.mxu1 %v20301_v50  ;;  %v4990_v50 = vld [vmem:[%s20908_s20 + $0x28] sm:$0xff] }
 0x2b6   : > { %17754 = vmatprep.mubr.bf16.mxu0 %v4590_v13  ;;  %17814 = vmatprep.subr.bf16.mxu1 %v20302_v20 }
 0x2b9   : > { %17815 = vmatpush3.bf16.msra.mxu1 %v20302_v20 }
 0x2ba   : > { %17816 = vmatprep.subr.bf16.mxu1 %v20303_v55 }
 0x2bd   : > { %17755 = vmatmul.mubr.bf16.gmra.mrb[24].mxu0 %v4607_v29  ;;  %17817 = vmatpush3.bf16.msra.mxu1 %v20303_v55  ;;  %v4986_v29 = vld [vmem:[%s20908_s20 + $0x8] sm:$0xff] }
 0x2be   : > { %17758 = vmatprep.mubr.bf16.mxu0 %v4624_v6  ;;  %17818 = vmatprep.subr.bf16.mxu1 %v20304_v1 }
 0x2c1   : > { %17819 = vmatpush3.bf16.msra.mxu1 %v20304_v1 }
 0x2c2   : > { %17820 = vmatprep.subr.bf16.mxu1 %v20305_v51 }
 0x2c5   : > { %17759 = vmatmul.mubr.bf16.gmra.mrb[28].mxu0 %v4641_v5  ;;  %17821 = vmatpush3.bf16.msra.mxu1 %v20305_v51 }
 0x2c6   : > { %17822 = vmatprep.subr.bf16.mxu1 %v20306_v12 }
 0x2c9   : > { %17823 = vmatpush3.bf16.msra.mxu1 %v20306_v12 }
 0x2ca   : > { %17824 = vmatprep.subr.bf16.mxu1 %v20307_v56 }
 0x2cd   : > { %17825 = vmatpush3.bf16.msra.mxu1 %v20307_v56 }
 0x2ce   : > { %17858 = vmatprep.subr.bf16.mxu1 %v21951_v39 }
 0x2f3   : > { %v21919_v33 = vpop.f32.mrb[0].mxu1 }
 0x2f4   : > { %v21921_v53 = vpop.f32.mrb[1].mxu1 }
 0x2f5   : > { %v21923_v42 = vpop.f32.mrb[2].mxu1 }
 0x2f6   : > { %v21925_v0 = vpop.f32.mrb[3].mxu1 }
 0x2fd   : > { %v21927_v22 = vpop.f32.mrb[4].mxu1 }
 0x2fe   : > { %v21929_v58 = vpop.f32.mrb[5].mxu1 }
 0x2ff   : > { %v21931_v17 = vpop.f32.mrb[6].mxu1 }
 0x300   : > { %v21933_v18 = vpop.f32.mrb[7].mxu1 }
 0x305   : > { %v21935_v63 = vpop.f32.mrb[8].mxu1 }
 0x306   : > { %v21937_v8 = vpop.f32.mrb[9].mxu1 }
 0x307   : > { %v21939_v35 = vpop.f32.mrb[10].mxu1 }
 0x308   : > { %v21941_v21 = vpop.f32.mrb[11].mxu1 }
 0x30d   : > { %v21943_v11 = vpop.f32.mrb[12].mxu1 }
 0x30e   : > { %v21945_v52 = vpop.f32.mrb[13].mxu1 }
 0x30f   : > { %v21947_v37 = vpop.f32.mrb[14].mxu1 }
 0x310   : > { %v21949_v38 = vpop.f32.mrb[15].mxu1 }
 0x360   : > { %v17732_v59 = vpop.f32.mrb[0].mxu0 }
 0x361   : > { %v4923_v13 = vadd.f32 %v17732_v59, %v21954_v24  ;;  %v4757_v25 = vpop.f32.mrb[1].mxu0 }
 0x362   : > { %v4921_v15 = vadd.f32 %v21954_v24, %v4757_v25  ;;  %v17733_v4 = vpop.f32.mrb[2].mxu0 }
 0x363   : > { %v4955_v61 = vmax.f32 %v4923_v13, 0.0  ;;  %v4924_v49 = vadd.f32 %v17733_v4, %v21954_v24  ;;  %v4760_v43 = vpop.f32.mrb[3].mxu0  ;;  %v4993_v4 = vld [vmem:[%s20908_s20 + $0x40] sm:$0xff] }
 0x364   : > { %v4953_v40 = vmax.f32 %v4921_v15, 0.0  ;;  %v4922_v2 = vadd.f32 %v21954_v24, %v4760_v43 }
 0x365   : > { %v5019_v48 = vadd.f32 %v4987_v28, %v4955_v61  ;;  %v4956_v23 = vmax.f32 %v4924_v49, 0.0  ;;  %v4995_v28 = vld [vmem:[%s20908_s20 + $0x50] sm:$0xff] }
 0x366   : > { %v5017_v41 = vadd.f32 %v4985_v3, %v4953_v40  ;;  %v4954_v46 = vmax.f32 %v4922_v2, 0.0 }
 0x367   : > { %5051 = vst [vmem:[%s20908_s20 + $0x10] sm:$0xff] %v5019_v48  ;;  %v5020_v34 = vadd.f32 %v4988_v45, %v4956_v23  ;;  %v5082_v9 = vpack.c.bf16 %v4956_v23, %v4955_v61 }
 0x368   : > { %5049 = vst [vmem:[%s20908_s20] sm:$0xff] %v5017_v41  ;;  %v5018_v6 = vadd.f32 %v4986_v29, %v4954_v46  ;;  %v5081_v7 = vpack.c.bf16 %v4954_v46, %v4953_v40  ;;  %v17736_v36 = vpop.f32.mrb[4].mxu0  ;;  %v4996_v46 = vld [vmem:[%s20908_s20 + $0x58] sm:$0xff] }
 0x369   : > { %5052 = vst [vmem:[%s20908_s20 + $0x18] sm:$0xff] %v5020_v34  ;;  %v5114_v5 = vrot.slane %v5082_v9, 4  ;;  %v4927_v47 = vadd.f32 %v17736_v36, %v21954_v24  ;;  %v4773_v30 = vpop.f32.mrb[5].mxu0 }
 0x36a   : > { %5050 = vst [vmem:[%s20908_s20 + $0x8] sm:$0xff] %v5018_v6  ;;  %v5113_v27 = vrot.slane %v5081_v7, 4  ;;  %v4925_v31 = vadd.f32 %v21954_v24, %v4773_v30  ;;  %v17737_v60 = vpop.f32.mrb[6].mxu0 }
 0x36b   : > { %5147 = vst [vmem:[#allocation2 + $0x98] ss:$-4 sps:$4 sm:$0xff] %v5114_v5   ;;  %v4959_v10 = vmax.f32 %v4927_v47, 0.0  ;;  %v4928_v16 = vadd.f32 %v17737_v60, %v21954_v24  ;;  %v4776_v26 = vpop.f32.mrb[7].mxu0  ;;  %v4994_v5 = vld [vmem:[%s20908_s20 + $0x48] sm:$0xff] }
 0x36c   : > { %5145 = vst [vmem:[#allocation2 + $0x88] ss:$-4 sps:$4 sm:$0xff] %v5113_v27   ;;  %v4957_v32 = vmax.f32 %v4925_v31, 0.0  ;;  %v4926_v44 = vadd.f32 %v21954_v24, %v4776_v26 }
 0x36d   : > { %v5023_v14 = vadd.f32 %v4991_v54, %v4959_v10  ;;  %v4960_v57 = vmax.f32 %v4928_v16, 0.0 }
 0x36e   : > { %v5021_v20 = vadd.f32 %v4989_v19, %v4957_v32  ;;  %v4958_v55 = vmax.f32 %v4926_v44, 0.0 }
 0x36f   : > { %5055 = vst [vmem:[%s20908_s20 + $0x30] sm:$0xff] %v5023_v14  ;;  %v5024_v1 = vadd.f32 %v4992_v62, %v4960_v57  ;;  %v5084_v51 = vpack.c.bf16 %v4960_v57, %v4959_v10  ;;  %v4999_v14 = vld [vmem:[%s20908_s20 + $0x70] sm:$0xff] }
 0x370   : > { %5053 = vst [vmem:[%s20908_s20 + $0x20] sm:$0xff] %v5021_v20  ;;  %v5022_v12 = vadd.f32 %v4990_v50, %v4958_v55  ;;  %v5083_v56 = vpack.c.bf16 %v4958_v55, %v4957_v32  ;;  %v17740_v59 = vpop.f32.mrb[8].mxu0  ;;  %v4997_v50 = vld [vmem:[%s20908_s20 + $0x60] sm:$0xff] }
 0x371   : > { %5056 = vst [vmem:[%s20908_s20 + $0x38] sm:$0xff] %v5024_v1  ;;  %v5116_v13 = vrot.slane %v5084_v51, 4  ;;  %v4931_v25 = vadd.f32 %v17740_v59, %v21954_v24  ;;  %v4789_v15 = vpop.f32.mrb[9].mxu0 }
 0x372   : > { %5054 = vst [vmem:[%s20908_s20 + $0x28] sm:$0xff] %v5022_v12  ;;  %v5115_v61 = vrot.slane %v5083_v56, 4  ;;  %v4929_v3 = vadd.f32 %v21954_v24, %v4789_v15  ;;  %v17741_v49 = vpop.f32.mrb[10].mxu0  ;;  %v5330_v43 = vld [vmem:[#allocation2 + $0x90] sm:$0xf0] }
 0x373   : > { %v5331_v40 = vld [vmem:[#allocation2 + $0x98] sm:$0xf]  ;;  %5151 = vst [vmem:[#allocation2 + $0xb8] ss:$-4 sps:$4 sm:$0xff] %v5116_v13   ;;  %v4963_v45 = vmax.f32 %v4931_v25, 0.0  ;;  %v4932_v2 = vadd.f32 %v17741_v49, %v21954_v24  ;;  %v4792_v48 = vpop.f32.mrb[11].mxu0 }
 0x374   : > { %v5328_v23 = vld [vmem:[#allocation2 + $0x80] sm:$0xf0]  ;;  %v5329_v29 = vld [vmem:[#allocation2 + $0x88] sm:$0xf]  ;;  %5149 = vst [vmem:[#allocation2 + $0xa8] ss:$-4 sps:$4 sm:$0xff] %v5115_v61   ;;  %v4930_v34 = vadd.f32 %v21954_v24, %v4792_v48 }
 0x375   : > { %v4961_v41 = vmax.f32 %v4929_v3, 0.0  ;;  %v5394_v9 = vrot.slane %v5328_v23, 4  ;;  %v5395_v6 = vrot.slane %v5329_v29, 4  ;;  %v5027_v7 = vadd.f32 %v4995_v28, %v4963_v45 }
 0x376   : > { %v4964_v36 = vmax.f32 %v4932_v2, 0.0  ;;  %v5397_v47 = vrot.slane %v5330_v43, 4  ;;  %v5398_v30 = vrot.slane %v5331_v40, 4  ;;  %v4962_v54 = vmax.f32 %v4930_v34, 0.0 }
 0x377   : > { %v5025_v27 = vadd.f32 %v4993_v4, %v4961_v41  ;;  %v5396_v31 = vsel %vm832_vm0, %v5394_v9, %v5395_v6  ;;  %5059 = vst [vmem:[%s20908_s20 + $0x50] sm:$0xff] %v5027_v7  ;;  %v5000_v4 = vld [vmem:[%s20908_s20 + $0x78] sm:$0xff] }
 0x378   : > { %v5028_v60 = vadd.f32 %v4996_v46, %v4964_v36  ;;  %v5086_v10 = vpack.c.bf16 %v4964_v36, %v4963_v45  ;;  %17782 = vmatprep.mubr.bf16.mxu1 %v5396_v31  ;;  %v5399_v19 = vsel %vm832_vm0, %v5397_v47, %v5398_v30  ;;  %v5026_v16 = vadd.f32 %v4994_v5, %v4962_v54  ;;  %v17744_v32 = vpop.f32.mrb[12].mxu0  ;;  %v4998_v45 = vld [vmem:[%s20908_s20 + $0x68] sm:$0xff] }
 0x379   : > { %5057 = vst [vmem:[%s20908_s20 + $0x40] sm:$0xff] %v5025_v27  ;;  %v5085_v26 = vpack.c.bf16 %v4962_v54, %v4961_v41  ;;  %17783 = vmatmul.mubr.bf16.gmra.mrb[20].mxu1 %v5399_v19  ;;  %v4935_v44 = vadd.f32 %v17744_v32, %v21954_v24  ;;  %v4805_v57 = vpop.f32.mrb[13].mxu0 }
 0x37a   : > { %5060 = vst [vmem:[%s20908_s20 + $0x58] sm:$0xff] %v5028_v60  ;;  %v5118_v62 = vrot.slane %v5086_v10, 4  ;;  %5058 = vst [vmem:[%s20908_s20 + $0x48] sm:$0xff] %v5026_v16  ;;  %v4933_v55 = vadd.f32 %v21954_v24, %v4805_v57  ;;  %v17745_v1 = vpop.f32.mrb[14].mxu0  ;;  %v5334_v51 = vld [vmem:[#allocation2 + $0xb0] sm:$0xf0] }
 0x37b   : > { %v5117_v20 = vrot.slane %v5085_v26, 4  ;;  %v5335_v12 = vld [vmem:[#allocation2 + $0xb8] sm:$0xf]  ;;  %v4967_v56 = vmax.f32 %v4935_v44, 0.0  ;;  %v4936_v59 = vadd.f32 %v17745_v1, %v21954_v24  ;;  %v4808_v13 = vpop.f32.mrb[15].mxu0  ;;  %v5403_v2 = vrot.slane %v5334_v51, 4 }
 0x37c   : > { %5155 = vst [vmem:[#allocation2 + $0xd8] ss:$-4 sps:$4 sm:$0xff] %v5118_v62   ;;  %v5332_v25 = vld [vmem:[#allocation2 + $0xa0] sm:$0xf0]  ;;  %v5333_v28 = vld [vmem:[#allocation2 + $0xa8] sm:$0xf]  ;;  %v4934_v61 = vadd.f32 %v21954_v24, %v4808_v13 }
 0x37d   : > { %5153 = vst [vmem:[#allocation2 + $0xc8] ss:$-4 sps:$4 sm:$0xff] %v5117_v20   ;;  %v4965_v15 = vmax.f32 %v4933_v55, 0.0  ;;  %v5400_v3 = vrot.slane %v5332_v25, 4  ;;  %v5401_v49 = vrot.slane %v5333_v28, 4  ;;  %v5031_v43 = vadd.f32 %v4999_v14, %v4967_v56  ;;  %v5003_v44 = vld [vmem:[%s20908_s20 + $0x90] sm:$0xff] }
 0x37e   : > { %v4968_v40 = vmax.f32 %v4936_v59, 0.0  ;;  %v5404_v48 = vrot.slane %v5335_v12, 4  ;;  %v4966_v29 = vmax.f32 %v4934_v61, 0.0  ;;  %v5001_v55 = vld [vmem:[%s20908_s20 + $0x80] sm:$0xff]  ;;  %v5004_v12 = vld [vmem:[%s20908_s20 + $0x98] sm:$0xff]  ;;  %v5002_v28 = vld [vmem:[%s20908_s20 + $0x88] sm:$0xff] }
 0x37f   : > { %v5029_v23 = vadd.f32 %v4997_v50, %v4965_v15  ;;  %v5402_v41 = vsel %vm832_vm0, %v5400_v3, %v5401_v49  ;;  %5063 = vst [vmem:[%s20908_s20 + $0x70] sm:$0xff] %v5031_v43 }
 0x380   : > { %v5032_v46 = vadd.f32 %v5000_v4, %v4968_v40  ;;  %v5088_v34 = vpack.c.bf16 %v4968_v40, %v4967_v56  ;;  %17786 = vmatprep.mubr.bf16.mxu1 %v5402_v41  ;;  %v5405_v9 = vsel %vm832_vm0, %v5403_v2, %v5404_v48  ;;  %v5030_v6 = vadd.f32 %v4998_v45, %v4966_v29  ;;  %v17748_v36 = vpop.f32.mrb[16].mxu0 }
 0x381   : > { %5061 = vst [vmem:[%s20908_s20 + $0x60] sm:$0xff] %v5029_v23  ;;  %v5087_v7 = vpack.c.bf16 %v4966_v29, %v4965_v15  ;;  %17787 = vmatmul.mubr.bf16.gmra.mrb[24].mxu1 %v5405_v9  ;;  %v19122_v47 = vadd.f32 %v17748_v36, %v21919_v33  ;;  %v4821_v30 = vpop.f32.mrb[17].mxu0 }
 0x382   : > { %5064 = vst [vmem:[%s20908_s20 + $0x78] sm:$0xff] %v5032_v46  ;;  %v5120_v5 = vrot.slane %v5088_v34, 4  ;;  %5062 = vst [vmem:[%s20908_s20 + $0x68] sm:$0xff] %v5030_v6  ;;  %v19123_v54 = vadd.f32 %v4821_v30, %v21921_v53  ;;  %v17749_v31 = vpop.f32.mrb[18].mxu0 }
 0x383   : > { %v5119_v27 = vrot.slane %v5087_v7, 4  ;;  %v5338_v60 = vld [vmem:[#allocation2 + $0xd0] sm:$0xf0]  ;;  %v5339_v10 = vld [vmem:[#allocation2 + $0xd8] sm:$0xf]  ;;  %v4939_v19 = vadd.f32 %v19122_v47, %v21954_v24  ;;  %v19124_v16 = vadd.f32 %v17749_v31, %v21923_v42  ;;  %v4824_v26 = vpop.f32.mrb[19].mxu0 }
 0x384   : > { %5159 = vst [vmem:[#allocation2 + $0xf8] ss:$-4 sps:$4 sm:$0xff] %v5120_v5   ;;  %v5336_v32 = vld [vmem:[#allocation2 + $0xc0] sm:$0xf0]  ;;  %v5337_v62 = vld [vmem:[#allocation2 + $0xc8] sm:$0xf]  ;;  %v4937_v14 = vadd.f32 %v19123_v54, %v21954_v24  ;;  %v19125_v53 = vadd.f32 %v4824_v26, %v21925_v0 }
 0x385   : > { %v5409_v33 = vrot.slane %v5338_v60, 4  ;;  %5157 = vst [vmem:[#allocation2 + $0xe8] ss:$-4 sps:$4 sm:$0xff] %v5119_v27   ;;  %v5406_v57 = vrot.slane %v5336_v32, 4  ;;  %v5407_v50 = vrot.slane %v5337_v62, 4  ;;  %v4971_v20 = vmax.f32 %v4939_v19, 0.0 }
 0x386   : > { %v4940_v1 = vadd.f32 %v19124_v16, %v21954_v24  ;;  %v5410_v42 = vrot.slane %v5339_v10, 4  ;;  %v4969_v51 = vmax.f32 %v4937_v14, 0.0  ;;  %v4938_v56 = vadd.f32 %v19125_v53, %v21954_v24  ;;  %v5007_v5 = vld [vmem:[%s20908_s20 + $0xb0] sm:$0xff]  ;;  %v5005_v54 = vld [vmem:[%s20908_s20 + $0xa0] sm:$0xff]  ;;  %v5008_v19 = vld [vmem:[%s20908_s20 + $0xb8] sm:$0xff] }
 0x387   : > { %v5408_v59 = vsel %vm832_vm0, %v5406_v57, %v5407_v50  ;;  %v5035_v13 = vadd.f32 %v5003_v44, %v4971_v20 }
 0x388   : > { %v4972_v25 = vmax.f32 %v4940_v1, 0.0  ;;  %17790 = vmatprep.mubr.bf16.mxu1 %v5408_v59  ;;  %v5411_v0 = vsel %vm832_vm0, %v5409_v33, %v5410_v42  ;;  %v5033_v15 = vadd.f32 %v5001_v55, %v4969_v51  ;;  %v4970_v4 = vmax.f32 %v4938_v56, 0.0  ;;  %v17752_v61 = vpop.f32.mrb[20].mxu0  ;;  %v5006_v33 = vld [vmem:[%s20908_s20 + $0xa8] sm:$0xff] }
 0x389   : > { %17791 = vmatmul.mubr.bf16.gmra.mrb[28].mxu1 %v5411_v0  ;;  %5067 = vst [vmem:[%s20908_s20 + $0x90] sm:$0xff] %v5035_v13  ;;  %v19126_v43 = vadd.f32 %v17752_v61, %v21927_v22  ;;  %v4837_v40 = vpop.f32.mrb[21].mxu0 }
 0x38a   : > { %v5036_v3 = vadd.f32 %v5004_v12, %v4972_v25  ;;  %v5090_v49 = vpack.c.bf16 %v4972_v25, %v4971_v20  ;;  %5065 = vst [vmem:[%s20908_s20 + $0x80] sm:$0xff] %v5033_v15  ;;  %v5034_v45 = vadd.f32 %v5002_v28, %v4970_v4  ;;  %v5089_v2 = vpack.c.bf16 %v4970_v4, %v4969_v51  ;;  %v17753_v23 = vpop.f32.mrb[22].mxu0  ;;  %v5011_v25 = vld [vmem:[%s20908_s20 + $0xd0] sm:$0xff]  ;;  %v5009_v4 = vld [vmem:[%s20908_s20 + $0xc0] sm:$0xff] }
 0x38b   : > { %v19127_v48 = vadd.f32 %v4837_v40, %v21929_v58  ;;  %v5342_v29 = vld [vmem:[#allocation2 + $0xf0] sm:$0xf0]  ;;  %v5343_v41 = vld [vmem:[#allocation2 + $0xf8] sm:$0xf]  ;;  %v4943_v34 = vadd.f32 %v19126_v43, %v21954_v24  ;;  %v19128_v9 = vadd.f32 %v17753_v23, %v21931_v17  ;;  %v4840_v6 = vpop.f32.mrb[23].mxu0 }
 0x38c   : > { %5068 = vst [vmem:[%s20908_s20 + $0x98] sm:$0xff] %v5036_v3  ;;  %v5122_v46 = vrot.slane %v5090_v49, 4  ;;  %v5340_v22 = vld [vmem:[#allocation2 + $0xe0] sm:$0xf0]  ;;  %v5341_v7 = vld [vmem:[#allocation2 + $0xe8] sm:$0xf]  ;;  %v19129_v58 = vadd.f32 %v4840_v6, %v21933_v18 }
 0x38d   : > { %5066 = vst [vmem:[%s20908_s20 + $0x88] sm:$0xff] %v5034_v45  ;;  %v5121_v36 = vrot.slane %v5089_v2, 4  ;;  %v4941_v47 = vadd.f32 %v19127_v48, %v21954_v24  ;;  %v5412_v30 = vrot.slane %v5340_v22, 4  ;;  %v4975_v27 = vmax.f32 %v4943_v34, 0.0  ;;  %v5012_v48 = vld [vmem:[%s20908_s20 + $0xd8] sm:$0xff]  ;;  %v5010_v34 = vld [vmem:[%s20908_s20 + $0xc8] sm:$0xff] }
 0x38e   : > { %5163 = vst [vmem:[#allocation2 + $0x118] ss:$-4 sps:$4 sm:$0xff] %v5122_v46   ;;  %v4944_v31 = vadd.f32 %v19128_v9, %v21954_v24  ;;  %v5413_v60 = vrot.slane %v5341_v7, 4  ;;  %v5415_v17 = vrot.slane %v5342_v29, 4  ;;  %v4942_v16 = vadd.f32 %v19129_v58, %v21954_v24 }
 0x38f   : > { %5161 = vst [vmem:[#allocation2 + $0x108] ss:$-4 sps:$4 sm:$0xff] %v5121_v36   ;;  %v4973_v10 = vmax.f32 %v4941_v47, 0.0  ;;  %v5416_v26 = vrot.slane %v5343_v41, 4  ;;  %v5039_v32 = vadd.f32 %v5007_v5, %v4975_v27 }
 0x390   : > { %v4976_v62 = vmax.f32 %v4944_v31, 0.0  ;;  %v5414_v18 = vsel %vm832_vm0, %v5412_v30, %v5413_v60  ;;  %v4974_v14 = vmax.f32 %v4942_v16, 0.0  ;;  %v17756_v53 = vpop.f32.mrb[24].mxu0  ;;  %v5015_v16 = vld [vmem:[%s20908_s20 + $0xf0] sm:$0xff] }
 0x391   : > { %v5037_v44 = vadd.f32 %v5005_v54, %v4973_v10  ;;  %17794 = vmatprep.mubr.bf16.mxu1 %v5414_v18  ;;  %v5417_v57 = vsel %vm832_vm0, %v5415_v17, %v5416_v26  ;;  %5071 = vst [vmem:[%s20908_s20 + $0xb0] sm:$0xff] %v5039_v32  ;;  %v19130_v55 = vadd.f32 %v17756_v53, %v21935_v63  ;;  %v4853_v1 = vpop.f32.mrb[25].mxu0 }
 0x392   : > { %v5040_v50 = vadd.f32 %v5008_v19, %v4976_v62  ;;  %v5092_v20 = vpack.c.bf16 %v4976_v62, %v4975_v27  ;;  %17795 = vmatmul.mubr.bf16.gmra.mrb[32].mxu1 %v5417_v57  ;;  %v5038_v42 = vadd.f32 %v5006_v33, %v4974_v14  ;;  %v5091_v51 = vpack.c.bf16 %v4974_v14, %v4973_v10  ;;  %v17757_v56 = vpop.f32.mrb[26].mxu0  ;;  %v5013_v33 = vld [vmem:[%s20908_s20 + $0xe0] sm:$0xff] }
 0x393   : > { %5069 = vst [vmem:[%s20908_s20 + $0xa0] sm:$0xff] %v5037_v44  ;;  %v19131_v12 = vadd.f32 %v4853_v1, %v21937_v8  ;;  %v4947_v13 = vadd.f32 %v19130_v55, %v21954_v24  ;;  %v19132_v28 = vadd.f32 %v17757_v56, %v21939_v35  ;;  %v4856_v0 = vpop.f32.mrb[27].mxu0  ;;  %v5016_v55 = vld [vmem:[%s20908_s20 + $0xf8] sm:$0xff]  ;;  %v5014_v56 = vld [vmem:[%s20908_s20 + $0xe8] sm:$0xff] }
 0x394   : > { %5072 = vst [vmem:[%s20908_s20 + $0xb8] sm:$0xff] %v5040_v50  ;;  %v5124_v59 = vrot.slane %v5092_v20, 4  ;;  %5070 = vst [vmem:[%s20908_s20 + $0xa8] sm:$0xff] %v5038_v42  ;;  %v5123_v63 = vrot.slane %v5091_v51, 4  ;;  %v19133_v61 = vadd.f32 %v4856_v0, %v21941_v21  ;;  %v5178_v0 = vld [vmem:[#allocation2 + $0x60] sm:$0xf8] }
 0x395   : > { %v4945_v15 = vadd.f32 %v19131_v12, %v21954_v24  ;;  %v5346_v3 = vld [vmem:[#allocation2 + $0x110] sm:$0xf0]  ;;  %v5347_v8 = vld [vmem:[#allocation2 + $0x118] sm:$0xf]  ;;  %v4979_v49 = vmax.f32 %v4947_v13, 0.0  ;;  %v4948_v43 = vadd.f32 %v19132_v28, %v21954_v24 }
 0x396   : > { %5167 = vst [vmem:[#allocation2 + $0x138] ss:$-4 sps:$4 sm:$0xff] %v5124_v59   ;;  %v5344_v40 = vld [vmem:[#allocation2 + $0x100] sm:$0xf0]  ;;  %v5345_v45 = vld [vmem:[#allocation2 + $0x108] sm:$0xf]  ;;  %v4946_v23 = vadd.f32 %v19133_v61, %v21954_v24 }
 0x397   : > { %v5421_v35 = vrot.slane %v5346_v3, 4  ;;  %5165 = vst [vmem:[#allocation2 + $0x128] ss:$-4 sps:$4 sm:$0xff] %v5123_v63   ;;  %v4977_v2 = vmax.f32 %v4945_v15, 0.0  ;;  %v5418_v29 = vrot.slane %v5344_v40, 4  ;;  %v5419_v41 = vrot.slane %v5345_v45, 4 }
 0x398   : > { %v5043_v21 = vadd.f32 %v5011_v25, %v4979_v49  ;;  %v4980_v46 = vmax.f32 %v4948_v43, 0.0  ;;  %v5422_v9 = vrot.slane %v5347_v8, 4  ;;  %v4978_v22 = vmax.f32 %v4946_v23, 0.0  ;;  %v17760_v7 = vpop.f32.mrb[28].mxu0 }
 0x399   : > { %v5041_v6 = vadd.f32 %v5009_v4, %v4977_v2  ;;  %v5420_v36 = vsel %vm832_vm0, %v5418_v29, %v5419_v41  ;;  %v19134_v58 = vadd.f32 %v17760_v7, %v21943_v11  ;;  %v4869_v30 = vpop.f32.mrb[29].mxu0  ;;  %v5179_v4 = vld [vmem:[#allocation2 + $0x68] sm:$0x7] }
 0x39a   : > { %5075 = vst [vmem:[%s20908_s20 + $0xd0] sm:$0xff] %v5043_v21  ;;  %v5044_v5 = vadd.f32 %v5012_v48, %v4980_v46  ;;  %v5094_v47 = vpack.c.bf16 %v4980_v46, %v4979_v49  ;;  %17798 = vmatprep.mubr.bf16.mxu1 %v5420_v36  ;;  %v5423_v27 = vsel %vm832_vm0, %v5421_v35, %v5422_v9  ;;  %v17761_v17 = vpop.f32.mrb[30].mxu0  ;;  %v5243_v49 = vrot.slane %v5178_v0, 3  ;;  %v5180_v9 = vld [vmem:[#allocation2 + $0x70] sm:$0xf8] }
 0x39b   : > { %5073 = vst [vmem:[%s20908_s20 + $0xc0] sm:$0xff] %v5041_v6  ;;  %v5042_v54 = vadd.f32 %v5010_v34, %v4978_v22  ;;  %v5093_v31 = vpack.c.bf16 %v4978_v22, %v4977_v2  ;;  %v19135_v60 = vadd.f32 %v4869_v30, %v21945_v52  ;;  %17799 = vmatmul.mubr.bf16.gmra.mrb[36].mxu1 %v5423_v27  ;;  %v4872_v26 = vpop.f32.mrb[31].mxu0  ;;  %v5244_v35 = vrot.slane %v5179_v4, 3  ;;  %v5181_v6 = vld [vmem:[#allocation2 + $0x78] sm:$0x7] }
 0x39c   : > { %5076 = vst [vmem:[%s20908_s20 + $0xd8] sm:$0xff] %v5044_v5  ;;  %v5126_v10 = vrot.slane %v5094_v47, 4  ;;  %v4951_v19 = vadd.f32 %v19134_v58, %v21954_v24  ;;  %v19136_v11 = vadd.f32 %v17761_v17, %v21947_v37  ;;  %v19137_v18 = vadd.f32 %v4872_v26, %v21949_v38  ;;  %v5182_v5 = vld [vmem:[#allocation2 + $0x80] sm:$0xf8]  ;;  %v5183_v47 = vld [vmem:[#allocation2 + $0x88] sm:$0x7] }
 0x39d   : > { %5074 = vst [vmem:[%s20908_s20 + $0xc8] sm:$0xff] %v5042_v54  ;;  %v5125_v32 = vrot.slane %v5093_v31, 4  ;;  %v4949_v62 = vadd.f32 %v19135_v60, %v21954_v24  ;;  %v5350_v44 = vld [vmem:[#allocation2 + $0x130] sm:$0xf0]  ;;  %v5351_v52 = vld [vmem:[#allocation2 + $0x138] sm:$0xf]  ;;  %v5245_v34 = vsel %vm5242_vm3, %v5243_v49, %v5244_v35 }
 0x39e   : > { %5171 = vst [vmem:[#allocation2 + $0x158] ss:$-4 sps:$4 sm:$0xff] %v5126_v10   ;;  %v4983_v14 = vmax.f32 %v4951_v19, 0.0  ;;  %v4952_v53 = vadd.f32 %v19136_v11, %v21954_v24  ;;  %v5348_v57 = vld [vmem:[#allocation2 + $0x120] sm:$0xf0]  ;;  %v5427_v37 = vrot.slane %v5350_v44, 4  ;;  %v4950_v1 = vadd.f32 %v19137_v18, %v21954_v24 }
 0x39f   : > { %v5349_v50 = vld [vmem:[#allocation2 + $0x128] sm:$0xf]  ;;  %5169 = vst [vmem:[#allocation2 + $0x148] ss:$-4 sps:$4 sm:$0xff] %v5125_v32   ;;  %v4981_v20 = vmax.f32 %v4949_v62, 0.0  ;;  %v5424_v42 = vrot.slane %v5348_v57, 4 }
 0x3a0   : > { %v5425_v51 = vrot.slane %v5349_v50, 4  ;;  %v5047_v38 = vadd.f32 %v5015_v16, %v4983_v14  ;;  %v4984_v12 = vmax.f32 %v4952_v53, 0.0  ;;  %v5428_v59 = vrot.slane %v5351_v52, 4  ;;  %v20309_v54 = vld [vmem:[#allocation6 + $0x2c8] sm:$0xff]   ;;  %v5184_v60 = vld [vmem:[#allocation2 + $0x90] sm:$0xf8] }
 0x3a1   : > { %v5045_v13 = vadd.f32 %v5013_v33, %v4981_v20  ;;  %v4982_v25 = vmax.f32 %v4950_v1, 0.0  ;;  %v5246_v7 = vrot.slane %v5180_v9, 3  ;;  %v5247_v36 = vrot.slane %v5181_v6, 3  ;;  %v5185_v17 = vld [vmem:[#allocation2 + $0x98] sm:$0x7]  ;;  %v20310_v16 = vld [vmem:[#allocation6 + $0x2d0] sm:$0xff]  }
 0x3a2   : > { %v5426_v28 = vsel %vm832_vm0, %v5424_v42, %v5425_v51  ;;  %5079 = vst [vmem:[%s20908_s20 + $0xf0] sm:$0xff] %v5047_v38  ;;  %v5048_v63 = vadd.f32 %v5016_v55, %v4984_v12  ;;  %v5096_v15 = vpack.c.bf16 %v4984_v12, %v4983_v14  ;;  %v5429_v24 = vsel %vm832_vm0, %v5427_v37, %v5428_v59  ;;  %v5186_v10 = vld [vmem:[#allocation2 + $0xa0] sm:$0xf8]  ;;  %v5187_v19 = vld [vmem:[#allocation2 + $0xa8] sm:$0x7]  ;;  %v20311_v33 = vld [vmem:[#allocation6 + $0x2d8] sm:$0xff]  }
 0x3a3   : > { %17802 = vmatprep.mubr.bf16.mxu1 %v5426_v28  ;;  %5077 = vst [vmem:[%s20908_s20 + $0xe0] sm:$0xff] %v5045_v13  ;;  %v5046_v61 = vadd.f32 %v5014_v56, %v4982_v25  ;;  %v5095_v3 = vpack.c.bf16 %v4982_v25, %v4981_v20  ;;  %v5249_v58 = vrot.slane %v5182_v5, 3  ;;  %v5250_v30 = vrot.slane %v5183_v47, 3  ;;  %v5188_v52 = vld [vmem:[#allocation2 + $0xb0] sm:$0xf8]  ;;  %v20312_v57 = vld [vmem:[#allocation6 + $0x2e0] sm:$0xff]  }
 0x3a4   : > { %17803 = vmatmul.mubr.bf16.gmra.mrb[40].mxu1 %v5429_v24  ;;  %5080 = vst [vmem:[%s20908_s20 + $0xf8] sm:$0xff] %v5048_v63  ;;  %v5128_v8 = vrot.slane %v5096_v15, 4  ;;  %v5248_v27 = vsel %vm5242_vm3, %v5246_v7, %v5247_v36  ;;  %v5252_v11 = vrot.slane %v5184_v60, 3  ;;  %v5253_v26 = vrot.slane %v5185_v17, 3  ;;  %v5189_v14 = vld [vmem:[#allocation2 + $0xb8] sm:$0x7] }
 0x3a5   : > { %5078 = vst [vmem:[%s20908_s20 + $0xe8] sm:$0xff] %v5046_v61  ;;  %v5127_v43 = vrot.slane %v5095_v3, 4  ;;  %v5354_v40 = vld [vmem:[#allocation2 + $0x150] sm:$0xf0]  ;;  %v5355_v45 = vld [vmem:[#allocation2 + $0x158] sm:$0xf]  ;;  %v5251_v31 = vsel %vm5242_vm3, %v5249_v58, %v5250_v30 }
 0x3a6   : > { %5175 = vst [vmem:[#allocation2 + $0x178] ss:$-4 sps:$4 sm:$0xff] %v5128_v8   ;;  %v5352_v2 = vld [vmem:[#allocation2 + $0x140] sm:$0xf0]  ;;  %v5353_v48 = vld [vmem:[#allocation2 + $0x148] sm:$0xf]  ;;  %v5254_v18 = vsel %vm5242_vm3, %v5252_v11, %v5253_v26 }
 0x3a7   : > { %v5433_v23 = vrot.slane %v5354_v40, 4  ;;  %v5434_v29 = vrot.slane %v5355_v45, 4  ;;  %5173 = vst [vmem:[#allocation2 + $0x168] ss:$-4 sps:$4 sm:$0xff] %v5127_v43   ;;  %v5430_v41 = vrot.slane %v5352_v2, 4  ;;  %v5431_v21 = vrot.slane %v5353_v48, 4 }
 0x3a8   : > { %v5255_v32 = vrot.slane %v5186_v10, 3  ;;  %v5256_v62 = vrot.slane %v5187_v19, 3  ;;  %v5191_v53 = vld [vmem:[#allocation2 + $0xc8] sm:$0x7]  ;;  %v5258_v50 = vrot.slane %v5188_v52, 3  ;;  %v5259_v37 = vrot.slane %v5189_v14, 3 }
 0x3a9   : > { %v5432_v46 = vsel %vm832_vm0, %v5430_v41, %v5431_v21  ;;  %v5435_v22 = vsel %vm832_vm0, %v5433_v23, %v5434_v29  ;;  %v5262_v55 = vrot.slane %v5191_v53, 3  ;;  %v20313_v1 = vld [vmem:[#allocation6 + $0x2e8] sm:$0xff]   ;;  %v5192_v38 = vld [vmem:[#allocation2 + $0xd0] sm:$0xf8]  ;;  %v5193_v12 = vld [vmem:[#allocation2 + $0xd8] sm:$0x7] }
 0x3aa   : > { %17806 = vmatprep.mubr.bf16.mxu1 %v5432_v46  ;;  %v5257_v44 = vsel %vm5242_vm3, %v5255_v32, %v5256_v62  ;;  %v5260_v42 = vsel %vm5242_vm3, %v5258_v50, %v5259_v37  ;;  %v5194_v56 = vld [vmem:[#allocation2 + $0xe0] sm:$0xf8]  ;;  %v5195_v59 = vld [vmem:[#allocation2 + $0xe8] sm:$0x7]  ;;  %v20314_v13 = vld [vmem:[#allocation6 + $0x2f0] sm:$0xff]   ;;  %v5264_v25 = vrot.slane %v5192_v38, 3 }
 0x3ab   : > { %v5265_v28 = vrot.slane %v5193_v12, 3  ;;  %v5267_v0 = vrot.slane %v5194_v56, 3  ;;  %v5268_v63 = vrot.slane %v5195_v59, 3  ;;  %v20315_v15 = vld [vmem:[#allocation6 + $0x2f8] sm:$0xff]   ;;  %v5196_v61 = vld [vmem:[#allocation2 + $0xf0] sm:$0xf8] }
 0x3ac   : > { %17807 = vmatmul.mubr.bf16.gmra.mrb[44].mxu1 %v5435_v22  ;;  %v5197_v3 = vld [vmem:[#allocation2 + $0xf8] sm:$0x7]  ;;  %v5198_v8 = vld [vmem:[#allocation2 + $0x100] sm:$0xf8]  ;;  %v5199_v49 = vld [vmem:[#allocation2 + $0x108] sm:$0x7] }
 0x3ad   : > { %17826 = vmatprep.mubr.bf16.mxu1 %v5245_v34  ;;  %v5266_v24 = vsel %vm5242_vm3, %v5264_v25, %v5265_v28  ;;  %v5269_v4 = vsel %vm5242_vm3, %v5267_v0, %v5268_v63  ;;  %v20316_v43 = vld [vmem:[#allocation6 + $0x300] sm:$0xff]   ;;  %v5270_v40 = vrot.slane %v5196_v61, 3  ;;  %v5271_v45 = vrot.slane %v5197_v3, 3  ;;  %v5200_v29 = vld [vmem:[#allocation2 + $0x110] sm:$0xf8] }
 0x3ae   : > { %v5273_v35 = vrot.slane %v5198_v8, 3  ;;  %v5274_v2 = vrot.slane %v5199_v49, 3  ;;  %v5201_v41 = vld [vmem:[#allocation2 + $0x118] sm:$0x7]  ;;  %v5202_v21 = vld [vmem:[#allocation2 + $0x120] sm:$0xf8] }
 0x3af   : > { %v5272_v48 = vsel %vm5242_vm3, %v5270_v40, %v5271_v45  ;;  %v5203_v46 = vld [vmem:[#allocation2 + $0x128] sm:$0x7]  ;;  %v5276_v34 = vrot.slane %v5200_v29, 3  ;;  %v5277_v9 = vrot.slane %v5201_v41, 3  ;;  %v5279_v6 = vrot.slane %v5202_v21, 3 }
 0x3b0   : > { %v5275_v23 = vsel %vm5242_vm3, %v5273_v35, %v5274_v2  ;;  %v5280_v22 = vrot.slane %v5203_v46, 3  ;;  %v5204_v5 = vld [vmem:[#allocation2 + $0x130] sm:$0xf8]  ;;  %v5205_v47 = vld [vmem:[#allocation2 + $0x138] sm:$0x7] }
 0x3b1   : > { %v5278_v7 = vsel %vm5242_vm3, %v5276_v34, %v5277_v9  ;;  %v5206_v58 = vld [vmem:[#allocation2 + $0x140] sm:$0xf8]  ;;  %v5207_v30 = vld [vmem:[#allocation2 + $0x148] sm:$0x7]  ;;  %v5208_v11 = vld [vmem:[#allocation2 + $0x150] sm:$0xf8] }
 0x3b2   : > { %v5281_v36 = vsel %vm5242_vm3, %v5279_v6, %v5280_v22  ;;  %v5286_v60 = vrot.slane %v5207_v30, 3  ;;  %v5887_v10 = vld [vmem:[#allocation2 + $0x60] sm:$0xe0]  ;;  %v5888_v19 = vld [vmem:[#allocation2 + $0x68] sm:$0x1f]  ;;  %v20322_v9 = vld [vmem:[#allocation6 + $0x330] sm:$0xff]  }
 0x3b3   : > { %v5209_v26 = vld [vmem:[#allocation2 + $0x158] sm:$0x7]  ;;  %v5952_v32 = vrot.slane %v5887_v10, 5  ;;  %v5953_v62 = vrot.slane %v5888_v19, 5  ;;  %v5889_v52 = vld [vmem:[#allocation2 + $0x70] sm:$0xe0] }
 0x3b4   : > { %17827 = vmatmul.mubr.bf16.vlgmr.msra.gmra.mrb[16].mxu1 %v5248_v27  ;;  %v5282_v27 = vrot.slane %v5204_v5, 3  ;;  %v5890_v14 = vld [vmem:[#allocation2 + $0x78] sm:$0x1f]  ;;  %v5955_v53 = vrot.slane %v5889_v52, 5  ;;  %v5891_v50 = vld [vmem:[#allocation2 + $0x80] sm:$0xe0] }
 0x3b5   : > { %17830 = vmatprep.mubr.bf16.mxu1 %v5251_v31  ;;  %17859 = vmatpush3.bf16.msra.mxu1 %v21951_v39  ;;  %v5190_v39 = vld [vmem:[#allocation2 + $0xc0] sm:$0xf8]  ;;  %v5285_v31 = vrot.slane %v5206_v58, 3  ;;  %v5892_v37 = vld [vmem:[#allocation2 + $0x88] sm:$0x1f]  ;;  %v20323_v5 = vld [vmem:[#allocation6 + $0x338] sm:$0xff]  }
 0x3b6   : > { %17860 = vmatprep.subr.bf16.mxu1 %v20309_v54  ;;  %v5261_v20 = vrot.slane %v5190_v39, 3  ;;  %v5893_v38 = vld [vmem:[#allocation2 + $0x90] sm:$0xe0]  ;;  %v5894_v12 = vld [vmem:[#allocation2 + $0x98] sm:$0x1f] }
 0x3b7   : > { %v5895_v56 = vld [vmem:[#allocation2 + $0xa0] sm:$0xe0]  ;;  %v5896_v59 = vld [vmem:[#allocation2 + $0xa8] sm:$0x1f]  ;;  %v5961_v25 = vrot.slane %v5893_v38, 5  ;;  %v5962_v28 = vrot.slane %v5894_v12, 5 }
 0x3b8   : > { %v5263_v51 = vsel %vm5242_vm3, %v5261_v20, %v5262_v55  ;;  %v5958_v20 = vrot.slane %v5891_v50, 5  ;;  %v5959_v55 = vrot.slane %v5892_v37, 5  ;;  %v5964_v0 = vrot.slane %v5895_v56, 5  ;;  %v5897_v61 = vld [vmem:[#allocation2 + $0xb0] sm:$0xe0] }
 0x3b9   : > { %17861 = vmatpush3.bf16.msra.mxu1 %v20309_v54  ;;  %v5283_v54 = vrot.slane %v5205_v47, 3  ;;  %v5965_v63 = vrot.slane %v5896_v59, 5  ;;  %v5898_v3 = vld [vmem:[#allocation2 + $0xb8] sm:$0x1f]  ;;  %v5899_v8 = vld [vmem:[#allocation2 + $0xc0] sm:$0xe0] }
 0x3ba   : > { %17862 = vmatprep.subr.bf16.mxu1 %v20310_v16  ;;  %v5900_v49 = vld [vmem:[#allocation2 + $0xc8] sm:$0x1f]  ;;  %v5967_v40 = vrot.slane %v5897_v61, 5  ;;  %v5968_v45 = vrot.slane %v5898_v3, 5  ;;  %v5970_v35 = vrot.slane %v5899_v8, 5 }
 0x3bb   : > { %v5284_v17 = vsel %vm5242_vm3, %v5282_v27, %v5283_v54  ;;  %v5971_v2 = vrot.slane %v5900_v49, 5  ;;  %v5901_v41 = vld [vmem:[#allocation2 + $0xd0] sm:$0xe0]  ;;  %v5902_v21 = vld [vmem:[#allocation2 + $0xd8] sm:$0x1f] }
 0x3bc   : > { %17831 = vmatmul.mubr.bf16.gmra.mrb[20].mxu1 %v5254_v18  ;;  %v5289_v18 = vrot.slane %v5209_v26, 3  ;;  %v5903_v46 = vld [vmem:[#allocation2 + $0xe0] sm:$0xe0]  ;;  %v5904_v34 = vld [vmem:[#allocation2 + $0xe8] sm:$0x1f]  ;;  %v5973_v6 = vrot.slane %v5901_v41, 5 }
 0x3bd   : > { %17834 = vmatprep.mubr.bf16.mxu1 %v5257_v44  ;;  %17863 = vmatpush3.bf16.msra.mxu1 %v20310_v16  ;;  %v5287_v16 = vsel %vm5242_vm3, %v5285_v31, %v5286_v60  ;;  %v5954_v44 = vsel %vm5951_vm4, %v5952_v32, %v5953_v62  ;;  %v5972_v29 = vsel %vm5951_vm4, %v5970_v35, %v5971_v2  ;;  %v5974_v22 = vrot.slane %v5902_v21, 5  ;;  %v5905_v30 = vld [vmem:[#allocation2 + $0xf0] sm:$0xe0]  ;;  %v5906_v27 = vld [vmem:[#allocation2 + $0xf8] sm:$0x1f]  ;;  %v20324_v60 = vld [vmem:[#allocation6 + $0x340] sm:$0xff]  }
 0x3be   : > { %17864 = vmatprep.subr.bf16.mxu1 %v20311_v33  ;;  %v5907_v54 = vld [vmem:[#allocation2 + $0x100] sm:$0xe0]  ;;  %v5908_v31 = vld [vmem:[#allocation2 + $0x108] sm:$0x1f]  ;;  %v5980_v10 = vrot.slane %v5906_v27, 5 }
 0x3bf   : > { %v5975_v47 = vsel %vm5951_vm4, %v5973_v6, %v5974_v22  ;;  %v5982_v19 = vrot.slane %v5907_v54, 5  ;;  %v5909_v32 = vld [vmem:[#allocation2 + $0x110] sm:$0xe0]  ;;  %v5910_v62 = vld [vmem:[#allocation2 + $0x118] sm:$0x1f] }
 0x3c0   : > { %v5986_v52 = vrot.slane %v5910_v62, 5  ;;  %v5913_v50 = vld [vmem:[#allocation2 + $0x130] sm:$0xe0]  ;;  %v5914_v37 = vld [vmem:[#allocation2 + $0x138] sm:$0x1f] }
 0x3c1   : > { %17865 = vmatpush3.bf16.msra.mxu1 %v20311_v33  ;;  %v5288_v33 = vrot.slane %v5208_v11, 3  ;;  %v5917_v59 = vld [vmem:[#allocation2 + $0x150] sm:$0xe0]  ;;  %v6277_v8 = vld [vmem:[#allocation2 + $0x98] sm:$0x7] }
 0x3c2   : > { %17866 = vmatprep.subr.bf16.mxu1 %v20312_v57  ;;  %v6276_v3 = vld [vmem:[#allocation2 + $0x90] sm:$0xf8]  ;;  %v6278_v49 = vld [vmem:[#allocation2 + $0xa0] sm:$0xf8]  ;;  %v6281_v21 = vld [vmem:[#allocation2 + $0xb8] sm:$0x7] }
 0x3c3   : > { %v5290_v39 = vsel %vm5242_vm3, %v5288_v33, %v5289_v18  ;;  %v5911_v33 = vld [vmem:[#allocation2 + $0x120] sm:$0xe0]  ;;  %v5912_v18 = vld [vmem:[#allocation2 + $0x128] sm:$0x1f]  ;;  %v6344_v35 = vrot.slane %v6278_v49, 3  ;;  %v6348_v22 = vrot.slane %v6281_v21, 3 }
 0x3c4   : > { %17835 = vmatmul.mubr.bf16.gmra.mrb[24].mxu1 %v5260_v42  ;;  %v20317_v42 = vld [vmem:[#allocation6 + $0x308] sm:$0xff]   ;;  %v6280_v41 = vld [vmem:[#allocation2 + $0xb0] sm:$0xf8]  ;;  %v6285_v27 = vld [vmem:[#allocation2 + $0xd8] sm:$0x7] }
 0x3c5   : > { %17838 = vmatprep.mubr.bf16.mxu1 %v5263_v51  ;;  %17867 = vmatpush3.bf16.msra.mxu1 %v20312_v57  ;;  %v5956_v57 = vrot.slane %v5890_v14, 5  ;;  %v5960_v51 = vsel %vm5951_vm4, %v5958_v20, %v5959_v55  ;;  %v5988_v14 = vrot.slane %v5911_v33, 5  ;;  %v5915_v20 = vld [vmem:[#allocation2 + $0x140] sm:$0xe0]  ;;  %v5916_v55 = vld [vmem:[#allocation2 + $0x148] sm:$0x1f] }
 0x3c6   : > { %17868 = vmatprep.subr.bf16.mxu1 %v20313_v1  ;;  %v5995_v38 = vrot.slane %v5916_v55, 5  ;;  %v6347_v6 = vrot.slane %v6280_v41, 3  ;;  %v6286_v54 = vld [vmem:[#allocation2 + $0xe0] sm:$0xf8]  ;;  %v6288_v62 = vld [vmem:[#allocation2 + $0xf0] sm:$0xf8] }
 0x3c7   : > { %v6289_v33 = vld [vmem:[#allocation2 + $0xf8] sm:$0x7]  ;;  %v6292_v55 = vld [vmem:[#allocation2 + $0x110] sm:$0xf8] }
 0x3c9   : > { %17869 = vmatpush3.bf16.msra.mxu1 %v20313_v1  ;;  %v5957_v1 = vsel %vm5951_vm4, %v5955_v53, %v5956_v57 }
 0x3ca   : > { %17870 = vmatprep.subr.bf16.mxu1 %v20314_v13 }
 0x3cc   : > { %17839 = vmatmul.mubr.bf16.gmra.mrb[28].mxu1 %v5266_v24  ;;  %v5963_v24 = vsel %vm5951_vm4, %v5961_v25, %v5962_v28  ;;  %v6274_v25 = vld [vmem:[#allocation2 + $0x80] sm:$0xf8]  ;;  %v6275_v28 = vld [vmem:[#allocation2 + $0x88] sm:$0x7] }
 0x3cd   : > { %17842 = vmatprep.mubr.bf16.mxu1 %v5269_v4  ;;  %17871 = vmatpush3.bf16.msra.mxu1 %v20314_v13  ;;  %v20318_v13 = vld [vmem:[#allocation6 + $0x310] sm:$0xff]   ;;  %v5966_v4 = vsel %vm5951_vm4, %v5964_v0, %v5965_v63  ;;  %v5997_v0 = vrot.slane %v5917_v59, 5 }
 0x3ce   : > { %17872 = vmatprep.subr.bf16.mxu1 %v20315_v15 }
 0x3d1   : > { %17873 = vmatpush3.bf16.msra.mxu1 %v20315_v15  ;;  %v20319_v15 = vld [vmem:[#allocation6 + $0x318] sm:$0xff]  }
 0x3d2   : > { %17906 = vmatprep.subr.bf16.mxu1 %v20316_v43 }
 0x3d4   : > { %17843 = vmatmul.mubr.bf16.gmra.mrb[32].mxu1 %v5272_v48  ;;  %v20321_v48 = vld [vmem:[#allocation6 + $0x328] sm:$0xff]  }
 0x3d5   : > { %17846 = vmatprep.mubr.bf16.mxu1 %v5275_v23  ;;  %v5969_v23 = vsel %vm5951_vm4, %v5967_v40, %v5968_v45  ;;  %v6341_v40 = vrot.slane %v6276_v3, 3  ;;  %v6342_v45 = vrot.slane %v6277_v8, 3 }
 0x3dc   : > { %17847 = vmatmul.mubr.bf16.gmra.mrb[36].mxu1 %v5278_v7  ;;  %v5976_v7 = vrot.slane %v5903_v46, 5  ;;  %v6282_v46 = vld [vmem:[#allocation2 + $0xc0] sm:$0xf8] }
 0x3dd   : > { %17850 = vmatprep.mubr.bf16.mxu1 %v5281_v36  ;;  %v5977_v36 = vrot.slane %v5904_v34, 5  ;;  %v6283_v34 = vld [vmem:[#allocation2 + $0xc8] sm:$0x7] }
 0x3df   : > { %v5978_v58 = vsel %vm5951_vm4, %v5976_v7, %v5977_v36  ;;  %v6350_v7 = vrot.slane %v6282_v46, 3  ;;  %v6351_v36 = vrot.slane %v6283_v34, 3  ;;  %v6304_v34 = vld [vmem:[#allocation2 + $0x170] sm:$0xf8] }
 0x3e4   : > { %17851 = vmatmul.mubr.bf16.gmra.mrb[40].mxu1 %v5284_v17  ;;  %v5979_v17 = vrot.slane %v5905_v30, 5  ;;  %v6284_v30 = vld [vmem:[#allocation2 + $0xd0] sm:$0xf8] }
 0x3e5   : > { %17854 = vmatprep.mubr.bf16.mxu1 %v5287_v16  ;;  %v5983_v16 = vrot.slane %v5908_v31, 5  ;;  %v6287_v31 = vld [vmem:[#allocation2 + $0xe8] sm:$0x7] }
 0x3e6   : > { %v5981_v11 = vsel %vm5951_vm4, %v5979_v17, %v5980_v10  ;;  %v6353_v17 = vrot.slane %v6284_v30, 3  ;;  %v6354_v10 = vrot.slane %v6285_v27, 3  ;;  %v6662_v27 = vld [vmem:[#allocation2 + $0x90] sm:$0xf0] }
 0x3e7   : > { %v5984_v26 = vsel %vm5951_vm4, %v5982_v19, %v5983_v16  ;;  %v6356_v19 = vrot.slane %v6286_v54, 3  ;;  %v6357_v16 = vrot.slane %v6287_v31, 3  ;;  %v6663_v54 = vld [vmem:[#allocation2 + $0x98] sm:$0xf]  ;;  %v6664_v31 = vld [vmem:[#allocation2 + $0xa0] sm:$0xf0] }
 0x3ec   : > { %17855 = vmatmul.mubr.bf16.gmra.mrb[44].mxu1 %v5290_v39  ;;  %v5989_v39 = vrot.slane %v5912_v18, 5  ;;  %v6290_v18 = vld [vmem:[#allocation2 + $0x100] sm:$0xf8] }
 0x3ed   : > { %17874 = vmatprep.mubr.bf16.mxu1 %v5954_v44  ;;  %v5985_v44 = vrot.slane %v5909_v32, 5  ;;  %v6358_v32 = vsel %vm5242_vm3, %v6356_v19, %v6357_v16  ;;  %v6730_v19 = vrot.slane %v6664_v31, 4 }
 0x3ee   : > { %v5990_v57 = vsel %vm5951_vm4, %v5988_v14, %v5989_v39  ;;  %v6359_v14 = vrot.slane %v6288_v62, 3  ;;  %v6360_v39 = vrot.slane %v6289_v33, 3  ;;  %v6666_v62 = vld [vmem:[#allocation2 + $0xb0] sm:$0xf0]  ;;  %v6667_v33 = vld [vmem:[#allocation2 + $0xb8] sm:$0xf] }
 0x3ef   : > { %v5987_v53 = vsel %vm5951_vm4, %v5985_v44, %v5986_v52  ;;  %v6291_v44 = vld [vmem:[#allocation2 + $0x108] sm:$0x7]  ;;  %v20330_v52 = vld [vmem:[#allocation6 + $0x370] sm:$0xff]  }
 0x3f4   : > { %17875 = vmatmul.mubr.bf16.vlgmr.msra.gmra.mrb[16].mxu1 %v5957_v1  ;;  %v5991_v1 = vrot.slane %v5913_v50, 5  ;;  %v20331_v50 = vld [vmem:[#allocation6 + $0x378] sm:$0xff]  }
 0x3f5   : > { %17878 = vmatprep.mubr.bf16.mxu1 %v5960_v51  ;;  %17907 = vmatpush3.bf16.msra.mxu1 %v20316_v43  ;;  %v20320_v43 = vld [vmem:[#allocation6 + $0x320] sm:$0xff]   ;;  %v5994_v51 = vrot.slane %v5915_v20, 5 }
 0x3f6   : > { %17908 = vmatprep.subr.bf16.mxu1 %v20317_v42 }
 0x3f7   : > { %v5996_v56 = vsel %vm5951_vm4, %v5994_v51, %v5995_v38  ;;  %v6295_v51 = vld [vmem:[#allocation2 + $0x128] sm:$0x7]  ;;  %v20332_v38 = vld [vmem:[#allocation6 + $0x380] sm:$0xff]  }
 0x3f9   : > { %17909 = vmatpush3.bf16.msra.mxu1 %v20317_v42  ;;  %v5992_v42 = vrot.slane %v5914_v37, 5  ;;  %v6361_v37 = vsel %vm5242_vm3, %v6359_v14, %v6360_v39  ;;  %v6733_v14 = vrot.slane %v6666_v62, 4  ;;  %v6734_v39 = vrot.slane %v6667_v33, 4 }
 0x3fa   : > { %17910 = vmatprep.subr.bf16.mxu1 %v20318_v13 }
 0x3fb   : > { %v5993_v12 = vsel %vm5951_vm4, %v5991_v1, %v5992_v42  ;;  %v6293_v1 = vld [vmem:[#allocation2 + $0x118] sm:$0x7]  ;;  %v6294_v42 = vld [vmem:[#allocation2 + $0x120] sm:$0xf8] }
 0x3fc   : > { %17879 = vmatmul.mubr.bf16.gmra.mrb[20].mxu1 %v5963_v24  ;;  %v6339_v24 = vrot.slane %v6275_v28, 3  ;;  %v6368_v59 = vrot.slane %v6294_v42, 3  ;;  %v6672_v42 = vld [vmem:[#allocation2 + $0xe0] sm:$0xf0] }
 0x3fd   : > { %17882 = vmatprep.mubr.bf16.mxu1 %v5966_v4  ;;  %17911 = vmatpush3.bf16.msra.mxu1 %v20318_v13  ;;  %v5918_v13 = vld [vmem:[#allocation2 + $0x158] sm:$0x1f] }
 0x3fe   : > { %17912 = vmatprep.subr.bf16.mxu1 %v20319_v15  ;;  %v5998_v63 = vrot.slane %v5918_v13, 5  ;;  %v6369_v13 = vrot.slane %v6295_v51, 3  ;;  %v6673_v51 = vld [vmem:[#allocation2 + $0xe8] sm:$0xf] }
 0x400   : > { %v5999_v4 = vsel %vm5951_vm4, %v5997_v0, %v5998_v63  ;;  %v6370_v28 = vsel %vm5242_vm3, %v6368_v59, %v6369_v13  ;;  %v6296_v0 = vld [vmem:[#allocation2 + $0x130] sm:$0xf8]  ;;  %v6297_v63 = vld [vmem:[#allocation2 + $0x138] sm:$0x7]  ;;  %v6742_v59 = vrot.slane %v6672_v42, 4  ;;  %v6743_v13 = vrot.slane %v6673_v51, 4 }
 0x401   : > { %17913 = vmatpush3.bf16.msra.mxu1 %v20319_v15  ;;  %v6338_v15 = vrot.slane %v6274_v25, 3  ;;  %v7049_v42 = vld [vmem:[#allocation2 + $0x98] sm:$0x1f]  ;;  %v7050_v51 = vld [vmem:[#allocation2 + $0xa0] sm:$0xe0] }
 0x402   : > { %17914 = vmatprep.subr.bf16.mxu1 %v20320_v43 }
 0x403   : > { %v6340_v61 = vsel %vm5242_vm3, %v6338_v15, %v6339_v24  ;;  %v6298_v15 = vld [vmem:[#allocation2 + $0x140] sm:$0xf8]  ;;  %v6299_v24 = vld [vmem:[#allocation2 + $0x148] sm:$0x7] }
 0x404   : > { %17883 = vmatmul.mubr.bf16.gmra.mrb[24].mxu1 %v5969_v23  ;;  %v6343_v23 = vsel %vm5242_vm3, %v6341_v40, %v6342_v45  ;;  %v6374_v3 = vrot.slane %v6298_v15, 3  ;;  %v6375_v8 = vrot.slane %v6299_v24, 3  ;;  %v6300_v40 = vld [vmem:[#allocation2 + $0x150] sm:$0xf8]  ;;  %v6301_v45 = vld [vmem:[#allocation2 + $0x158] sm:$0x7] }
 0x405   : > { %17886 = vmatprep.mubr.bf16.mxu1 %v5972_v29  ;;  %17915 = vmatpush3.bf16.msra.mxu1 %v20320_v43  ;;  %v6279_v43 = vld [vmem:[#allocation2 + $0xa8] sm:$0x7]  ;;  %v6675_v15 = vld [vmem:[#allocation2 + $0xf8] sm:$0xf]  ;;  %v6676_v24 = vld [vmem:[#allocation2 + $0x100] sm:$0xf0] }
 0x406   : > { %17916 = vmatprep.subr.bf16.mxu1 %v20321_v48  ;;  %v6345_v2 = vrot.slane %v6279_v43, 3  ;;  %v6376_v43 = vsel %vm5242_vm3, %v6374_v3, %v6375_v8  ;;  %v6746_v8 = vrot.slane %v6675_v15, 4  ;;  %v7053_v15 = vld [vmem:[#allocation2 + $0xb8] sm:$0x1f] }
 0x408   : > { %v6346_v29 = vsel %vm5242_vm3, %v6344_v35, %v6345_v2  ;;  %v6302_v35 = vld [vmem:[#allocation2 + $0x160] sm:$0xf8]  ;;  %v6303_v2 = vld [vmem:[#allocation2 + $0x168] sm:$0x7] }
 0x409   : > { %17917 = vmatpush3.bf16.msra.mxu1 %v20321_v48  ;;  %v20325_v48 = vld [vmem:[#allocation6 + $0x348] sm:$0xff]   ;;  %v6381_v41 = vrot.slane %v6303_v2, 3  ;;  %v6678_v2 = vld [vmem:[#allocation2 + $0x110] sm:$0xf0] }
 0x40a   : > { %17918 = vmatprep.subr.bf16.mxu1 %v20322_v9 }
 0x40c   : > { %17887 = vmatmul.mubr.bf16.gmra.mrb[28].mxu1 %v5975_v47  ;;  %v6349_v47 = vsel %vm5242_vm3, %v6347_v6, %v6348_v22  ;;  %v6660_v6 = vld [vmem:[#allocation2 + $0x80] sm:$0xf0]  ;;  %v6661_v22 = vld [vmem:[#allocation2 + $0x88] sm:$0xf] }
 0x40d   : > { %17890 = vmatprep.mubr.bf16.mxu1 %v5978_v58  ;;  %17919 = vmatpush3.bf16.msra.mxu1 %v20322_v9  ;;  %v20326_v9 = vld [vmem:[#allocation6 + $0x350] sm:$0xff]   ;;  %v6352_v58 = vsel %vm5242_vm3, %v6350_v7, %v6351_v36  ;;  %v6383_v7 = vrot.slane %v6304_v34, 3 }
 0x40e   : > { %17920 = vmatprep.subr.bf16.mxu1 %v20323_v5 }
 0x411   : > { %17921 = vmatpush3.bf16.msra.mxu1 %v20323_v5  ;;  %v20327_v5 = vld [vmem:[#allocation6 + $0x358] sm:$0xff]  }
 0x412   : > { %17954 = vmatprep.subr.bf16.mxu1 %v20324_v60 }
 0x414   : > { %17891 = vmatmul.mubr.bf16.gmra.mrb[32].mxu1 %v5981_v11  ;;  %v20329_v11 = vld [vmem:[#allocation6 + $0x368] sm:$0xff]  }
 0x415   : > { %17894 = vmatprep.mubr.bf16.mxu1 %v5984_v26  ;;  %v6355_v26 = vsel %vm5242_vm3, %v6353_v17, %v6354_v10  ;;  %v6727_v17 = vrot.slane %v6662_v27, 4  ;;  %v6728_v10 = vrot.slane %v6663_v54, 4 }
 0x41c   : > { %17895 = vmatmul.mubr.bf16.gmra.mrb[36].mxu1 %v5987_v53  ;;  %v6362_v53 = vrot.slane %v6290_v18, 3  ;;  %v6668_v18 = vld [vmem:[#allocation2 + $0xc0] sm:$0xf0] }
 0x41d   : > { %17898 = vmatprep.mubr.bf16.mxu1 %v5990_v57  ;;  %v6363_v57 = vrot.slane %v6291_v44, 3  ;;  %v6669_v44 = vld [vmem:[#allocation2 + $0xc8] sm:$0xf] }
 0x41f   : > { %v6364_v20 = vsel %vm5242_vm3, %v6362_v53, %v6363_v57  ;;  %v6736_v53 = vrot.slane %v6668_v18, 4  ;;  %v6737_v57 = vrot.slane %v6669_v44, 4  ;;  %v6690_v44 = vld [vmem:[#allocation2 + $0x170] sm:$0xf0] }
 0x424   : > { %17899 = vmatmul.mubr.bf16.gmra.mrb[40].mxu1 %v5993_v12  ;;  %v6365_v12 = vrot.slane %v6292_v55, 3  ;;  %v6670_v55 = vld [vmem:[#allocation2 + $0xd0] sm:$0xf0] }
 0x425   : > { %17902 = vmatprep.mubr.bf16.mxu1 %v5996_v56  ;;  %v6366_v56 = vrot.slane %v6293_v1, 3  ;;  %v6671_v1 = vld [vmem:[#allocation2 + $0xd8] sm:$0xf] }
 0x427   : > { %v6367_v25 = vsel %vm5242_vm3, %v6365_v12, %v6366_v56  ;;  %v6739_v12 = vrot.slane %v6670_v55, 4  ;;  %v6740_v56 = vrot.slane %v6671_v1, 4  ;;  %v7048_v1 = vld [vmem:[#allocation2 + $0x90] sm:$0xe0] }
 0x42c   : > { %17903 = vmatmul.mubr.bf16.gmra.mrb[44].mxu1 %v5999_v4  ;;  %v6371_v4 = vrot.slane %v6296_v0, 3  ;;  %v6744_v0 = vsel %vm832_vm0, %v6742_v59, %v6743_v13  ;;  %v7116_v59 = vrot.slane %v7050_v51, 5 }
 0x42d   : > { %17922 = vmatprep.mubr.bf16.mxu1 %v6340_v61  ;;  %v6372_v61 = vrot.slane %v6297_v63, 3  ;;  %v6674_v63 = vld [vmem:[#allocation2 + $0xf0] sm:$0xf0] }
 0x42e   : > { %v6745_v3 = vrot.slane %v6674_v63, 4  ;;  %v7052_v63 = vld [vmem:[#allocation2 + $0xb0] sm:$0xe0] }
 0x42f   : > { %v6373_v49 = vsel %vm5242_vm3, %v6371_v4, %v6372_v61  ;;  %v6677_v4 = vld [vmem:[#allocation2 + $0x108] sm:$0xf]  ;;  %v20338_v61 = vld [vmem:[#allocation6 + $0x3b0] sm:$0xff]  }
 0x434   : > { %17923 = vmatmul.mubr.bf16.vlgmr.msra.gmra.mrb[16].mxu1 %v6343_v23  ;;  %v6378_v23 = vrot.slane %v6301_v45, 3  ;;  %v6747_v45 = vsel %vm832_vm0, %v6745_v3, %v6746_v8  ;;  %v7119_v3 = vrot.slane %v7052_v63, 5  ;;  %v7120_v8 = vrot.slane %v7053_v15, 5 }
 0x435   : > { %17926 = vmatprep.mubr.bf16.mxu1 %v6346_v29  ;;  %17955 = vmatpush3.bf16.msra.mxu1 %v20324_v60  ;;  %v20328_v60 = vld [vmem:[#allocation6 + $0x360] sm:$0xff]   ;;  %v6380_v29 = vrot.slane %v6302_v35, 3 }
 0x436   : > { %17956 = vmatprep.subr.bf16.mxu1 %v20325_v48 }
 0x437   : > { %v6382_v46 = vsel %vm5242_vm3, %v6380_v29, %v6381_v41  ;;  %v6681_v29 = vld [vmem:[#allocation2 + $0x128] sm:$0xf]  ;;  %v20340_v41 = vld [vmem:[#allocation6 + $0x3c0] sm:$0xff]  }
 0x439   : > { %17957 = vmatpush3.bf16.msra.mxu1 %v20325_v48  ;;  %v6377_v48 = vrot.slane %v6300_v40, 3  ;;  %v20339_v40 = vld [vmem:[#allocation6 + $0x3b8] sm:$0xff]  }
 0x43a   : > { %17958 = vmatprep.subr.bf16.mxu1 %v20326_v9 }
 0x43b   : > { %v6379_v21 = vsel %vm5242_vm3, %v6377_v48, %v6378_v23  ;;  %v6679_v48 = vld [vmem:[#allocation2 + $0x118] sm:$0xf]  ;;  %v6680_v23 = vld [vmem:[#allocation2 + $0x120] sm:$0xf0] }
 0x43c   : > { %17927 = vmatmul.mubr.bf16.gmra.mrb[20].mxu1 %v6349_v47  ;;  %v6725_v47 = vrot.slane %v6661_v22, 4  ;;  %v6754_v34 = vrot.slane %v6680_v23, 4  ;;  %v7058_v23 = vld [vmem:[#allocation2 + $0xe0] sm:$0xe0] }
 0x43d   : > { %17930 = vmatprep.mubr.bf16.mxu1 %v6352_v58  ;;  %17959 = vmatpush3.bf16.msra.mxu1 %v20326_v9  ;;  %v6305_v9 = vld [vmem:[#allocation2 + $0x178] sm:$0x7] }
 0x43e   : > { %17960 = vmatprep.subr.bf16.mxu1 %v20327_v5  ;;  %v6384_v36 = vrot.slane %v6305_v9, 3  ;;  %v6755_v9 = vrot.slane %v6681_v29, 4  ;;  %v7059_v29 = vld [vmem:[#allocation2 + $0xe8] sm:$0x1f] }
 0x440   : > { %v6385_v58 = vsel %vm5242_vm3, %v6383_v7, %v6384_v36  ;;  %v6756_v22 = vsel %vm832_vm0, %v6754_v34, %v6755_v9  ;;  %v6682_v7 = vld [vmem:[#allocation2 + $0x130] sm:$0xf0]  ;;  %v6683_v36 = vld [vmem:[#allocation2 + $0x138] sm:$0xf]  ;;  %v7128_v34 = vrot.slane %v7058_v23, 5  ;;  %v7129_v9 = vrot.slane %v7059_v29, 5 }
 0x441   : > { %17961 = vmatpush3.bf16.msra.mxu1 %v20327_v5  ;;  %v6724_v5 = vrot.slane %v6660_v6, 4  ;;  %v7436_v23 = vld [vmem:[#allocation2 + $0xb8] sm:$0x7]  ;;  %v7437_v29 = vld [vmem:[#allocation2 + $0xc0] sm:$0xf8] }
 0x442   : > { %17962 = vmatprep.subr.bf16.mxu1 %v20328_v60 }
 0x443   : > { %v6726_v30 = vsel %vm832_vm0, %v6724_v5, %v6725_v47  ;;  %v6684_v5 = vld [vmem:[#allocation2 + $0x140] sm:$0xf0]  ;;  %v6685_v47 = vld [vmem:[#allocation2 + $0x148] sm:$0xf] }
 0x444   : > { %17931 = vmatmul.mubr.bf16.gmra.mrb[24].mxu1 %v6355_v26  ;;  %v6729_v26 = vsel %vm832_vm0, %v6727_v17, %v6728_v10  ;;  %v6760_v27 = vrot.slane %v6684_v5, 4  ;;  %v6761_v54 = vrot.slane %v6685_v47, 4  ;;  %v6686_v17 = vld [vmem:[#allocation2 + $0x150] sm:$0xf0]  ;;  %v6687_v10 = vld [vmem:[#allocation2 + $0x158] sm:$0xf] }
 0x445   : > { %17934 = vmatprep.mubr.bf16.mxu1 %v6358_v32  ;;  %17963 = vmatpush3.bf16.msra.mxu1 %v20328_v60  ;;  %v6665_v60 = vld [vmem:[#allocation2 + $0xa8] sm:$0xf]  ;;  %v7061_v5 = vld [vmem:[#allocation2 + $0xf8] sm:$0x1f]  ;;  %v7062_v47 = vld [vmem:[#allocation2 + $0x100] sm:$0xe0] }
 0x446   : > { %17964 = vmatprep.subr.bf16.mxu1 %v20329_v11  ;;  %v6731_v16 = vrot.slane %v6665_v60, 4  ;;  %v6762_v60 = vsel %vm832_vm0, %v6760_v27, %v6761_v54  ;;  %v7132_v54 = vrot.slane %v7061_v5, 5  ;;  %v7440_v5 = vld [vmem:[#allocation2 + $0xd8] sm:$0x7] }
 0x448   : > { %v6732_v32 = vsel %vm832_vm0, %v6730_v19, %v6731_v16  ;;  %v6688_v19 = vld [vmem:[#allocation2 + $0x160] sm:$0xf0]  ;;  %v6689_v16 = vld [vmem:[#allocation2 + $0x168] sm:$0xf] }
 0x449   : > { %17965 = vmatpush3.bf16.msra.mxu1 %v20329_v11  ;;  %v20333_v11 = vld [vmem:[#allocation6 + $0x388] sm:$0xff]   ;;  %v6767_v62 = vrot.slane %v6689_v16, 4  ;;  %v7064_v16 = vld [vmem:[#allocation2 + $0x110] sm:$0xe0] }
 0x44a   : > { %17966 = vmatprep.subr.bf16.mxu1 %v20330_v52 }
 0x44c   : > { %17935 = vmatmul.mubr.bf16.gmra.mrb[28].mxu1 %v6361_v37  ;;  %v6735_v37 = vsel %vm832_vm0, %v6733_v14, %v6734_v39  ;;  %v7046_v14 = vld [vmem:[#allocation2 + $0x80] sm:$0xe0]  ;;  %v7047_v39 = vld [vmem:[#allocation2 + $0x88] sm:$0x1f] }
 0x44d   : > { %17938 = vmatprep.mubr.bf16.mxu1 %v6364_v20  ;;  %17967 = vmatpush3.bf16.msra.mxu1 %v20330_v52  ;;  %v20334_v52 = vld [vmem:[#allocation6 + $0x390] sm:$0xff]   ;;  %v6738_v20 = vsel %vm832_vm0, %v6736_v53, %v6737_v57  ;;  %v6769_v53 = vrot.slane %v6690_v44, 4 }
 0x44e   : > { %17968 = vmatprep.subr.bf16.mxu1 %v20331_v50 }
 0x451   : > { %17969 = vmatpush3.bf16.msra.mxu1 %v20331_v50  ;;  %v20335_v50 = vld [vmem:[#allocation6 + $0x398] sm:$0xff]  }
 0x452   : > { %18002 = vmatprep.subr.bf16.mxu1 %v20332_v38 }
 0x454   : > { %17939 = vmatmul.mubr.bf16.gmra.mrb[32].mxu1 %v6367_v25  ;;  %v20337_v25 = vld [vmem:[#allocation6 + $0x3a8] sm:$0xff]  }
 0x455   : > { %17942 = vmatprep.mubr.bf16.mxu1 %v6370_v28  ;;  %v6741_v28 = vsel %vm832_vm0, %v6739_v12, %v6740_v56  ;;  %v7113_v12 = vrot.slane %v7048_v1, 5  ;;  %v7114_v56 = vrot.slane %v7049_v42, 5 }
 0x45c   : > { %17943 = vmatmul.mubr.bf16.gmra.mrb[36].mxu1 %v6373_v49  ;;  %v6748_v49 = vrot.slane %v6676_v24, 4  ;;  %v7054_v24 = vld [vmem:[#allocation2 + $0xc0] sm:$0xe0] }
 0x45d   : > { %17946 = vmatprep.mubr.bf16.mxu1 %v6376_v43  ;;  %v6749_v43 = vrot.slane %v6677_v4, 4  ;;  %v7055_v4 = vld [vmem:[#allocation2 + $0xc8] sm:$0x1f] }
 0x45f   : > { %v6750_v35 = vsel %vm832_vm0, %v6748_v49, %v6749_v43  ;;  %v7122_v49 = vrot.slane %v7054_v24, 5  ;;  %v7123_v43 = vrot.slane %v7055_v4, 5  ;;  %v7076_v4 = vld [vmem:[#allocation2 + $0x170] sm:$0xe0] }
 0x464   : > { %17947 = vmatmul.mubr.bf16.gmra.mrb[40].mxu1 %v6379_v21  ;;  %v6751_v21 = vrot.slane %v6678_v2, 4  ;;  %v7056_v2 = vld [vmem:[#allocation2 + $0xd0] sm:$0xe0] }
 0x465   : > { %17950 = vmatprep.mubr.bf16.mxu1 %v6382_v46  ;;  %v6752_v46 = vrot.slane %v6679_v48, 4  ;;  %v7057_v48 = vld [vmem:[#allocation2 + $0xd8] sm:$0x1f] }
 0x467   : > { %v6753_v6 = vsel %vm832_vm0, %v6751_v21, %v6752_v46  ;;  %v7125_v21 = vrot.slane %v7056_v2, 5  ;;  %v7126_v46 = vrot.slane %v7057_v48, 5  ;;  %v7435_v48 = vld [vmem:[#allocation2 + $0xb0] sm:$0xf8] }
 0x46c   : > { %17951 = vmatmul.mubr.bf16.gmra.mrb[44].mxu1 %v6385_v58  ;;  %v6757_v58 = vrot.slane %v6682_v7, 4  ;;  %v7130_v7 = vsel %vm5951_vm4, %v7128_v34, %v7129_v9  ;;  %v7503_v34 = vrot.slane %v7437_v29, 3 }
 0x46d   : > { %17970 = vmatprep.mubr.bf16.mxu1 %v6726_v30  ;;  %v6758_v30 = vrot.slane %v6683_v36, 4  ;;  %v7060_v36 = vld [vmem:[#allocation2 + $0xf0] sm:$0xe0] }
 0x46e   : > { %v7131_v27 = vrot.slane %v7060_v36, 5  ;;  %v7439_v36 = vld [vmem:[#allocation2 + $0xd0] sm:$0xf8] }
 0x46f   : > { %v6759_v31 = vsel %vm832_vm0, %v6757_v58, %v6758_v30  ;;  %v7063_v58 = vld [vmem:[#allocation2 + $0x108] sm:$0x1f]  ;;  %v20346_v30 = vld [vmem:[#allocation6 + $0x3f0] sm:$0xff]  }
 0x474   : > { %17971 = vmatmul.mubr.bf16.vlgmr.msra.gmra.mrb[16].mxu1 %v6729_v26  ;;  %v6764_v26 = vrot.slane %v6687_v10, 4  ;;  %v7133_v10 = vsel %vm5951_vm4, %v7131_v27, %v7132_v54  ;;  %v7506_v27 = vrot.slane %v7439_v36, 3  ;;  %v7507_v54 = vrot.slane %v7440_v5, 3 }
 0x475   : > { %17974 = vmatprep.mubr.bf16.mxu1 %v6732_v32  ;;  %18003 = vmatpush3.bf16.msra.mxu1 %v20332_v38  ;;  %v20336_v38 = vld [vmem:[#allocation6 + $0x3a0] sm:$0xff]   ;;  %v6766_v32 = vrot.slane %v6688_v19, 4 }
 0x476   : > { %18004 = vmatprep.subr.bf16.mxu1 %v20333_v11 }
 0x477   : > { %v6768_v18 = vsel %vm832_vm0, %v6766_v32, %v6767_v62  ;;  %v7067_v32 = vld [vmem:[#allocation2 + $0x128] sm:$0x1f]  ;;  %v20348_v62 = vld [vmem:[#allocation6 + $0x400] sm:$0xff]  }
 0x479   : > { %18005 = vmatpush3.bf16.msra.mxu1 %v20333_v11  ;;  %v6763_v11 = vrot.slane %v6686_v17, 4  ;;  %v20347_v17 = vld [vmem:[#allocation6 + $0x3f8] sm:$0xff]  }
 0x47a   : > { %18006 = vmatprep.subr.bf16.mxu1 %v20334_v52 }
 0x47b   : > { %v6765_v33 = vsel %vm832_vm0, %v6763_v11, %v6764_v26  ;;  %v7065_v11 = vld [vmem:[#allocation2 + $0x118] sm:$0x1f]  ;;  %v7066_v26 = vld [vmem:[#allocation2 + $0x120] sm:$0xe0] }
 0x47c   : > { %17975 = vmatmul.mubr.bf16.gmra.mrb[20].mxu1 %v6735_v37  ;;  %v7111_v37 = vrot.slane %v7047_v39, 5  ;;  %v7140_v44 = vrot.slane %v7066_v26, 5  ;;  %v7445_v26 = vld [vmem:[#allocation2 + $0x100] sm:$0xf8] }
 0x47d   : > { %17978 = vmatprep.mubr.bf16.mxu1 %v6738_v20  ;;  %18007 = vmatpush3.bf16.msra.mxu1 %v20334_v52  ;;  %v6691_v52 = vld [vmem:[#allocation2 + $0x178] sm:$0xf] }
 0x47e   : > { %18008 = vmatprep.subr.bf16.mxu1 %v20335_v50  ;;  %v6770_v57 = vrot.slane %v6691_v52, 4  ;;  %v7141_v52 = vrot.slane %v7067_v32, 5  ;;  %v7446_v32 = vld [vmem:[#allocation2 + $0x108] sm:$0x7] }
 0x480   : > { %v6771_v20 = vsel %vm832_vm0, %v6769_v53, %v6770_v57  ;;  %v7142_v39 = vsel %vm5951_vm4, %v7140_v44, %v7141_v52  ;;  %v7068_v53 = vld [vmem:[#allocation2 + $0x130] sm:$0xe0]  ;;  %v7069_v57 = vld [vmem:[#allocation2 + $0x138] sm:$0x1f]  ;;  %v7515_v44 = vrot.slane %v7445_v26, 3  ;;  %v7516_v52 = vrot.slane %v7446_v32, 3 }
 0x481   : > { %18009 = vmatpush3.bf16.msra.mxu1 %v20335_v50  ;;  %v7110_v50 = vrot.slane %v7046_v14, 5  ;;  %v7822_v26 = vld [vmem:[#allocation2 + $0xb8] sm:$0xf]  ;;  %v20364_v32 = vld [vmem:[#allocation6 + $0x4c0] sm:$0xff]  }
 0x482   : > { %18010 = vmatprep.subr.bf16.mxu1 %v20336_v38  ;;  %18194 = vmatprep.subr.bf16.mxu0 %v20364_v32 }
 0x483   : > { %v7112_v55 = vsel %vm5951_vm4, %v7110_v50, %v7111_v37  ;;  %v7070_v50 = vld [vmem:[#allocation2 + $0x140] sm:$0xe0]  ;;  %v7071_v37 = vld [vmem:[#allocation2 + $0x148] sm:$0x1f]  ;;  %18195 = vmatpush3.bf16.msra.mxu0 %v20364_v32 }
 0x484   : > { %17979 = vmatmul.mubr.bf16.gmra.mrb[24].mxu1 %v6741_v28  ;;  %v7115_v28 = vsel %vm5951_vm4, %v7113_v12, %v7114_v56  ;;  %v7146_v1 = vrot.slane %v7070_v50, 5  ;;  %v7147_v42 = vrot.slane %v7071_v37, 5  ;;  %v7072_v12 = vld [vmem:[#allocation2 + $0x150] sm:$0xe0]  ;;  %v7073_v56 = vld [vmem:[#allocation2 + $0x158] sm:$0x1f] }
 0x485   : > { %17982 = vmatprep.mubr.bf16.mxu1 %v6744_v0  ;;  %18011 = vmatpush3.bf16.msra.mxu1 %v20336_v38  ;;  %v7051_v38 = vld [vmem:[#allocation2 + $0xa8] sm:$0x1f]  ;;  %v7448_v50 = vld [vmem:[#allocation2 + $0x118] sm:$0x7]  ;;  %v7449_v37 = vld [vmem:[#allocation2 + $0x120] sm:$0xf8] }
 0x486   : > { %18012 = vmatprep.subr.bf16.mxu1 %v20337_v25  ;;  %v7117_v13 = vrot.slane %v7051_v38, 5  ;;  %v7148_v38 = vsel %vm5951_vm4, %v7146_v1, %v7147_v42  ;;  %v7519_v42 = vrot.slane %v7448_v50, 3  ;;  %v7843_v32 = vld [vmem:[#allocation2 + $0x160] sm:$0xf0] }
 0x488   : > { %v7118_v0 = vsel %vm5951_vm4, %v7116_v59, %v7117_v13  ;;  %v7074_v59 = vld [vmem:[#allocation2 + $0x160] sm:$0xe0]  ;;  %v7075_v13 = vld [vmem:[#allocation2 + $0x168] sm:$0x1f] }
 0x489   : > { %18013 = vmatpush3.bf16.msra.mxu1 %v20337_v25  ;;  %v20341_v25 = vld [vmem:[#allocation6 + $0x3c8] sm:$0xff]   ;;  %v7153_v63 = vrot.slane %v7075_v13, 5  ;;  %v7451_v13 = vld [vmem:[#allocation2 + $0x130] sm:$0xf8] }
 0x48a   : > { %18014 = vmatprep.subr.bf16.mxu1 %v20338_v61 }
 0x48c   : > { %17983 = vmatmul.mubr.bf16.gmra.mrb[28].mxu1 %v6747_v45  ;;  %v7121_v45 = vsel %vm5951_vm4, %v7119_v3, %v7120_v8  ;;  %v7433_v3 = vld [vmem:[#allocation2 + $0xa0] sm:$0xf8]  ;;  %v7434_v8 = vld [vmem:[#allocation2 + $0xa8] sm:$0x7] }
 0x48d   : > { %17986 = vmatprep.mubr.bf16.mxu1 %v6750_v35  ;;  %18015 = vmatpush3.bf16.msra.mxu1 %v20338_v61  ;;  %v20342_v61 = vld [vmem:[#allocation6 + $0x3d0] sm:$0xff]   ;;  %v7124_v35 = vsel %vm5951_vm4, %v7122_v49, %v7123_v43  ;;  %v7155_v49 = vrot.slane %v7076_v4, 5 }
 0x48e   : > { %18016 = vmatprep.subr.bf16.mxu1 %v20339_v40 }
 0x491   : > { %18017 = vmatpush3.bf16.msra.mxu1 %v20339_v40  ;;  %v20343_v40 = vld [vmem:[#allocation6 + $0x3d8] sm:$0xff]  }
 0x492   : > { %18050 = vmatprep.subr.bf16.mxu1 %v20340_v41 }
 0x494   : > { %17987 = vmatmul.mubr.bf16.gmra.mrb[32].mxu1 %v6753_v6  ;;  %v20345_v6 = vld [vmem:[#allocation6 + $0x3e8] sm:$0xff]  }
 0x495   : > { %17990 = vmatprep.mubr.bf16.mxu1 %v6756_v22  ;;  %v7127_v22 = vsel %vm5951_vm4, %v7125_v21, %v7126_v46  ;;  %v7500_v21 = vrot.slane %v7435_v48, 3  ;;  %v7501_v46 = vrot.slane %v7436_v23, 3 }
 0x49c   : > { %17991 = vmatmul.mubr.bf16.gmra.mrb[36].mxu1 %v6759_v31  ;;  %v7134_v31 = vrot.slane %v7062_v47, 5  ;;  %v7441_v47 = vld [vmem:[#allocation2 + $0xe0] sm:$0xf8] }
 0x49d   : > { %17994 = vmatprep.mubr.bf16.mxu1 %v6762_v60  ;;  %v7135_v60 = vrot.slane %v7063_v58, 5  ;;  %v7442_v58 = vld [vmem:[#allocation2 + $0xe8] sm:$0x7] }
 0x49f   : > { %v7136_v19 = vsel %vm5951_vm4, %v7134_v31, %v7135_v60  ;;  %v7509_v31 = vrot.slane %v7441_v47, 3  ;;  %v7510_v60 = vrot.slane %v7442_v58, 3  ;;  %v7463_v47 = vld [vmem:[#allocation2 + $0x190] sm:$0xf8]  ;;  %v7464_v58 = vld [vmem:[#allocation2 + $0x198] sm:$0x7] }
 0x4a4   : > { %17995 = vmatmul.mubr.bf16.gmra.mrb[40].mxu1 %v6765_v33  ;;  %v7137_v33 = vrot.slane %v7064_v16, 5  ;;  %v7443_v16 = vld [vmem:[#allocation2 + $0xf0] sm:$0xf8] }
 0x4a5   : > { %17998 = vmatprep.mubr.bf16.mxu1 %v6768_v18  ;;  %v7138_v18 = vrot.slane %v7065_v11, 5  ;;  %v7444_v11 = vld [vmem:[#allocation2 + $0xf8] sm:$0x7] }
 0x4a7   : > { %v7139_v14 = vsel %vm5951_vm4, %v7137_v33, %v7138_v18  ;;  %v7512_v33 = vrot.slane %v7443_v16, 3  ;;  %v7513_v18 = vrot.slane %v7444_v11, 3  ;;  %v7821_v16 = vld [vmem:[#allocation2 + $0xb0] sm:$0xf0] }
 0x4ac   : > { %17999 = vmatmul.mubr.bf16.gmra.mrb[44].mxu1 %v6771_v20  ;;  %v7143_v20 = vrot.slane %v7068_v53, 5  ;;  %v7517_v53 = vsel %vm5242_vm3, %v7515_v44, %v7516_v52  ;;  %v7886_v44 = vrot.slane %v7821_v16, 4  ;;  %v7887_v52 = vrot.slane %v7822_v26, 4  ;;  %v7842_v26 = vld [vmem:[#allocation2 + $0x158] sm:$0xf] }
 0x4ad   : > { %18018 = vmatprep.mubr.bf16.mxu1 %v7112_v55  ;;  %v7144_v55 = vrot.slane %v7069_v57, 5  ;;  %v7447_v57 = vld [vmem:[#allocation2 + $0x110] sm:$0xf8] }
 0x4ae   : > { %v7518_v1 = vrot.slane %v7447_v57, 3  ;;  %v20357_v57 = vld [vmem:[#allocation6 + $0x448] sm:$0xff]   ;;  %v7888_v50 = vsel %vm832_vm0, %v7886_v44, %v7887_v52  ;;  %v7919_v44 = vrot.slane %v7843_v32, 4 }
 0x4af   : > { %v7145_v51 = vsel %vm5951_vm4, %v7143_v20, %v7144_v55  ;;  %v7450_v20 = vld [vmem:[#allocation2 + $0x128] sm:$0x7]  ;;  %v20354_v55 = vld [vmem:[#allocation6 + $0x430] sm:$0xff]  }
 0x4b4   : > { %18019 = vmatmul.mubr.bf16.vlgmr.msra.gmra.mrb[16].mxu1 %v7115_v28  ;;  %v7150_v28 = vrot.slane %v7073_v56, 5  ;;  %v7520_v56 = vsel %vm5242_vm3, %v7518_v1, %v7519_v42  ;;  %v20367_v1 = vld [vmem:[#allocation6 + $0x4d8] sm:$0xff]   ;;  %v7827_v42 = vld [vmem:[#allocation2 + $0xe0] sm:$0xf0] }
 0x4b5   : > { %18022 = vmatprep.mubr.bf16.mxu1 %v7118_v0  ;;  %18051 = vmatpush3.bf16.msra.mxu1 %v20340_v41  ;;  %v20344_v41 = vld [vmem:[#allocation6 + $0x3e0] sm:$0xff]   ;;  %v7152_v0 = vrot.slane %v7074_v59, 5 }
 0x4b6   : > { %18052 = vmatprep.subr.bf16.mxu1 %v20341_v25 }
 0x4b7   : > { %v7154_v24 = vsel %vm5951_vm4, %v7152_v0, %v7153_v63  ;;  %v7454_v0 = vld [vmem:[#allocation2 + $0x148] sm:$0x7]  ;;  %v22172_v63 = vld [vmem:[#allocation6 + $0x440] sm:$0xff]  }
 0x4b9   : > { %18053 = vmatpush3.bf16.msra.mxu1 %v20341_v25  ;;  %v7149_v25 = vrot.slane %v7072_v12, 5  ;;  %v20355_v12 = vld [vmem:[#allocation6 + $0x438] sm:$0xff]  }
 0x4ba   : > { %18054 = vmatprep.subr.bf16.mxu1 %v20342_v61 }
 0x4bb   : > { %v7151_v15 = vsel %vm5951_vm4, %v7149_v25, %v7150_v28  ;;  %v7452_v25 = vld [vmem:[#allocation2 + $0x138] sm:$0x7]  ;;  %v7453_v28 = vld [vmem:[#allocation2 + $0x140] sm:$0xf8] }
 0x4bc   : > { %18023 = vmatmul.mubr.bf16.gmra.mrb[20].mxu1 %v7121_v45  ;;  %v7498_v45 = vrot.slane %v7434_v8, 3  ;;  %v7527_v4 = vrot.slane %v7453_v28, 3  ;;  %v20359_v28 = vld [vmem:[#allocation6 + $0x458] sm:$0xff]  }
 0x4bd   : > { %18026 = vmatprep.mubr.bf16.mxu1 %v7124_v35  ;;  %18055 = vmatpush3.bf16.msra.mxu1 %v20342_v61  ;;  %v7077_v61 = vld [vmem:[#allocation2 + $0x178] sm:$0x1f] }
 0x4be   : > { %18056 = vmatprep.subr.bf16.mxu1 %v20343_v40  ;;  %v7156_v43 = vrot.slane %v7077_v61, 5  ;;  %v7528_v61 = vrot.slane %v7454_v0, 3 }
 0x4c0   : > { %v7157_v35 = vsel %vm5951_vm4, %v7155_v49, %v7156_v43  ;;  %v7529_v8 = vsel %vm5242_vm3, %v7527_v4, %v7528_v61  ;;  %v7455_v49 = vld [vmem:[#allocation2 + $0x150] sm:$0xf8]  ;;  %v7456_v43 = vld [vmem:[#allocation2 + $0x158] sm:$0x7]  ;;  %v20369_v4 = vld [vmem:[#allocation6 + $0x4e8] sm:$0xff]  }
 0x4c1   : > { %18057 = vmatpush3.bf16.msra.mxu1 %v20343_v40  ;;  %v7497_v40 = vrot.slane %v7433_v3, 3  ;;  %v7831_v61 = vld [vmem:[#allocation2 + $0x100] sm:$0xf0] }
 0x4c2   : > { %18058 = vmatprep.subr.bf16.mxu1 %v20344_v41 }
 0x4c3   : > { %v7499_v2 = vsel %vm5242_vm3, %v7497_v40, %v7498_v45  ;;  %v7457_v40 = vld [vmem:[#allocation2 + $0x160] sm:$0xf8]  ;;  %v7458_v45 = vld [vmem:[#allocation2 + $0x168] sm:$0x7] }
 0x4c4   : > { %18027 = vmatmul.mubr.bf16.gmra.mrb[24].mxu1 %v7127_v22  ;;  %v7502_v22 = vsel %vm5242_vm3, %v7500_v21, %v7501_v46  ;;  %v7533_v48 = vrot.slane %v7457_v40, 3  ;;  %v7534_v23 = vrot.slane %v7458_v45, 3  ;;  %v7462_v21 = vld [vmem:[#allocation2 + $0x188] sm:$0x7]  ;;  %v7901_v40 = vrot.slane %v7831_v61, 4 }
 0x4c5   : > { %18030 = vmatprep.mubr.bf16.mxu1 %v7130_v7  ;;  %18059 = vmatpush3.bf16.msra.mxu1 %v20344_v41  ;;  %v7438_v41 = vld [vmem:[#allocation2 + $0xc8] sm:$0x7]  ;;  %v8208_v61 = vld [vmem:[#allocation2 + $0xb8] sm:$0x1f] }
 0x4c6   : > { %18060 = vmatprep.subr.bf16.mxu1 %v20345_v6  ;;  %v7504_v9 = vrot.slane %v7438_v41, 3  ;;  %v7461_v41 = vld [vmem:[#allocation2 + $0x180] sm:$0xf8]  ;;  %v7535_v46 = vsel %vm5242_vm3, %v7533_v48, %v7534_v23 }
 0x4c8   : > { %v7505_v7 = vsel %vm5242_vm3, %v7503_v34, %v7504_v9  ;;  %v7459_v34 = vld [vmem:[#allocation2 + $0x170] sm:$0xf8]  ;;  %v7460_v9 = vld [vmem:[#allocation2 + $0x178] sm:$0x7] }
 0x4c9   : > { %18061 = vmatpush3.bf16.msra.mxu1 %v20345_v6  ;;  %v20349_v6 = vld [vmem:[#allocation6 + $0x408] sm:$0xff]   ;;  %v7537_v36 = vrot.slane %v7460_v9, 3 }
 0x4ca   : > { %18062 = vmatprep.subr.bf16.mxu1 %v20346_v30 }
 0x4cc   : > { %18031 = vmatmul.mubr.bf16.gmra.mrb[28].mxu1 %v7133_v10  ;;  %v7508_v10 = vsel %vm5242_vm3, %v7506_v27, %v7507_v54  ;;  %v7542_v27 = vrot.slane %v7463_v47, 3  ;;  %v7543_v54 = vrot.slane %v7464_v58, 3  ;;  %v7837_v58 = vld [vmem:[#allocation2 + $0x130] sm:$0xf0] }
 0x4cd   : > { %18034 = vmatprep.mubr.bf16.mxu1 %v7136_v19  ;;  %18063 = vmatpush3.bf16.msra.mxu1 %v20346_v30  ;;  %v20350_v30 = vld [vmem:[#allocation6 + $0x410] sm:$0xff]   ;;  %v7511_v19 = vsel %vm5242_vm3, %v7509_v31, %v7510_v60  ;;  %v7819_v31 = vld [vmem:[#allocation2 + $0xa0] sm:$0xf0]  ;;  %v7820_v60 = vld [vmem:[#allocation2 + $0xa8] sm:$0xf] }
 0x4ce   : > { %18064 = vmatprep.subr.bf16.mxu1 %v20347_v17 }
 0x4d1   : > { %18065 = vmatpush3.bf16.msra.mxu1 %v20347_v17  ;;  %v20351_v17 = vld [vmem:[#allocation6 + $0x418] sm:$0xff]  }
 0x4d2   : > { %18098 = vmatprep.subr.bf16.mxu1 %v20348_v62 }
 0x4d4   : > { %18035 = vmatmul.mubr.bf16.gmra.mrb[32].mxu1 %v7139_v14  ;;  %v20353_v14 = vld [vmem:[#allocation6 + $0x428] sm:$0xff]  }
 0x4d5   : > { %18038 = vmatprep.mubr.bf16.mxu1 %v7142_v39  ;;  %v7514_v39 = vsel %vm5242_vm3, %v7512_v33, %v7513_v18  ;;  %v7823_v33 = vld [vmem:[#allocation2 + $0xc0] sm:$0xf0]  ;;  %v7824_v18 = vld [vmem:[#allocation2 + $0xc8] sm:$0xf] }
 0x4dc   : > { %18039 = vmatmul.mubr.bf16.gmra.mrb[36].mxu1 %v7145_v51  ;;  %v7521_v51 = vrot.slane %v7449_v37, 3 }
 0x4dd   : > { %18042 = vmatprep.mubr.bf16.mxu1 %v7148_v38  ;;  %v7522_v38 = vrot.slane %v7450_v20, 3  ;;  %v7825_v20 = vld [vmem:[#allocation2 + $0xd0] sm:$0xf0] }
 0x4df   : > { %v7523_v59 = vsel %vm5242_vm3, %v7521_v51, %v7522_v38  ;;  %v7828_v51 = vld [vmem:[#allocation2 + $0xe8] sm:$0xf]  ;;  %v20358_v38 = vld [vmem:[#allocation6 + $0x450] sm:$0xff]  }
 0x4e4   : > { %18043 = vmatmul.mubr.bf16.gmra.mrb[40].mxu1 %v7151_v15  ;;  %v7524_v15 = vrot.slane %v7451_v13, 3  ;;  %v7896_v13 = vrot.slane %v7828_v51, 4 }
 0x4e5   : > { %18046 = vmatprep.mubr.bf16.mxu1 %v7154_v24  ;;  %v7525_v24 = vrot.slane %v7452_v25, 3  ;;  %v20368_v25 = vld [vmem:[#allocation6 + $0x4e0] sm:$0xff]  }
 0x4e7   : > { %v7526_v3 = vsel %vm5242_vm3, %v7524_v15, %v7525_v24  ;;  %v7829_v15 = vld [vmem:[#allocation2 + $0xf0] sm:$0xf0]  ;;  %v7830_v24 = vld [vmem:[#allocation2 + $0xf8] sm:$0xf] }
 0x4ec   : > { %18047 = vmatmul.mubr.bf16.gmra.mrb[44].mxu1 %v7157_v35  ;;  %v7530_v35 = vrot.slane %v7455_v49, 3  ;;  %v7898_v49 = vrot.slane %v7829_v15, 4 }
 0x4ed   : > { %18066 = vmatprep.mubr.bf16.mxu1 %v7499_v2  ;;  %v7531_v2 = vrot.slane %v7456_v43, 3  ;;  %v7899_v43 = vrot.slane %v7830_v24, 4 }
 0x4ef   : > { %v7532_v29 = vsel %vm5242_vm3, %v7530_v35, %v7531_v2  ;;  %v20370_v35 = vld [vmem:[#allocation6 + $0x4f0] sm:$0xff]   ;;  %v20361_v2 = vld [vmem:[#allocation6 + $0x468] sm:$0xff]   ;;  %v7900_v48 = vsel %vm832_vm0, %v7898_v49, %v7899_v43  ;;  %v8273_v43 = vrot.slane %v8208_v61, 5 }
 0x4f4   : > { %18067 = vmatmul.mubr.bf16.vlgmr.msra.gmra.mrb[16].mxu1 %v7502_v22  ;;  %v7540_v22 = vrot.slane %v7462_v21, 3  ;;  %v7835_v21 = vld [vmem:[#allocation2 + $0x120] sm:$0xf0] }
 0x4f5   : > { %18070 = vmatprep.mubr.bf16.mxu1 %v7505_v7  ;;  %18099 = vmatpush3.bf16.msra.mxu1 %v20348_v62  ;;  %v20352_v62 = vld [vmem:[#allocation6 + $0x420] sm:$0xff]   ;;  %v7536_v7 = vrot.slane %v7459_v34, 3  ;;  %v20362_v34 = vld [vmem:[#allocation6 + $0x470] sm:$0xff]  }
 0x4f6   : > { %18100 = vmatprep.subr.bf16.mxu1 %v20349_v6 }
 0x4f9   : > { %18101 = vmatpush3.bf16.msra.mxu1 %v20349_v6  ;;  %v7539_v6 = vrot.slane %v7461_v41, 3  ;;  %v7834_v41 = vld [vmem:[#allocation2 + $0x118] sm:$0xf] }
 0x4fa   : > { %18102 = vmatprep.subr.bf16.mxu1 %v20350_v30 }
 0x4fb   : > { %v7541_v5 = vsel %vm5242_vm3, %v7539_v6, %v7540_v22  ;;  %v7905_v6 = vrot.slane %v7834_v41, 4  ;;  %v7907_v22 = vrot.slane %v7835_v21, 4  ;;  %v8214_v41 = vld [vmem:[#allocation2 + $0xe8] sm:$0x1f] }
 0x4fc   : > { %18071 = vmatmul.mubr.bf16.gmra.mrb[20].mxu1 %v7508_v10  ;;  %v7884_v10 = vrot.slane %v7820_v60, 4 }
 0x4fd   : > { %18074 = vmatprep.mubr.bf16.mxu1 %v7511_v19  ;;  %18103 = vmatpush3.bf16.msra.mxu1 %v20350_v30  ;;  %v7538_v30 = vsel %vm5242_vm3, %v7536_v7, %v7537_v36  ;;  %v7544_v19 = vsel %vm5242_vm3, %v7542_v27, %v7543_v54  ;;  %v20363_v36 = vld [vmem:[#allocation6 + $0x478] sm:$0xff]   ;;  %v7839_v27 = vld [vmem:[#allocation2 + $0x140] sm:$0xf0]  ;;  %v7840_v54 = vld [vmem:[#allocation2 + $0x148] sm:$0xf] }
 0x4fe   : > { %18104 = vmatprep.subr.bf16.mxu1 %v20351_v17 }
 0x501   : > { %18105 = vmatpush3.bf16.msra.mxu1 %v20351_v17  ;;  %v7883_v17 = vrot.slane %v7819_v31, 4  ;;  %v7910_v31 = vrot.slane %v7837_v58, 4 }
 0x502   : > { %18106 = vmatprep.subr.bf16.mxu1 %v20352_v62 }
 0x503   : > { %v7885_v11 = vsel %vm832_vm0, %v7883_v17, %v7884_v10  ;;  %v7913_v17 = vrot.slane %v7839_v27, 4  ;;  %v7914_v10 = vrot.slane %v7840_v54, 4 }
 0x504   : > { %18075 = vmatmul.mubr.bf16.gmra.mrb[24].mxu1 %v7514_v39  ;;  %v7890_v39 = vrot.slane %v7824_v18, 4  ;;  %v7917_v18 = vrot.slane %v7842_v26, 4 }
 0x505   : > { %18078 = vmatprep.mubr.bf16.mxu1 %v7517_v53  ;;  %18107 = vmatpush3.bf16.msra.mxu1 %v20352_v62  ;;  %v20365_v62 = vld [vmem:[#allocation6 + $0x4c8] sm:$0xff]   ;;  %v20366_v53 = vld [vmem:[#allocation6 + $0x4d0] sm:$0xff]   ;;  %v7915_v16 = vsel %vm832_vm0, %v7913_v17, %v7914_v10  ;;  %v8220_v10 = vld [vmem:[#allocation2 + $0x118] sm:$0x1f] }
 0x506   : > { %18108 = vmatprep.subr.bf16.mxu1 %v20353_v14  ;;  %18196 = vmatprep.subr.bf16.mxu0 %v20365_v62  ;;  %v8219_v17 = vld [vmem:[#allocation2 + $0x110] sm:$0xe0]  ;;  %v8291_v26 = vrot.slane %v8220_v10, 5 }
 0x507   : > { %18197 = vmatpush3.bf16.msra.mxu0 %v20365_v62  ;;  %v7844_v62 = vld [vmem:[#allocation2 + $0x168] sm:$0xf] }
 0x508   : > { %18198 = vmatprep.subr.bf16.mxu0 %v20366_v53  ;;  %v7920_v52 = vrot.slane %v7844_v62, 4 }
 0x509   : > { %18109 = vmatpush3.bf16.msra.mxu1 %v20353_v14  ;;  %v7889_v14 = vrot.slane %v7823_v33, 4 }
 0x50a   : > { %18110 = vmatprep.subr.bf16.mxu1 %v20354_v55 }
 0x50b   : > { %v7891_v37 = vsel %vm832_vm0, %v7889_v14, %v7890_v39  ;;  %18199 = vmatpush3.bf16.msra.mxu0 %v20366_v53  ;;  %v7847_v39 = vld [vmem:[#allocation2 + $0x180] sm:$0xf0]  ;;  %v7848_v53 = vld [vmem:[#allocation2 + $0x188] sm:$0xf] }
 0x50c   : > { %18079 = vmatmul.mubr.bf16.gmra.mrb[28].mxu1 %v7520_v56  ;;  %18200 = vmatprep.subr.bf16.mxu0 %v20367_v1 }
 0x50d   : > { %18082 = vmatprep.mubr.bf16.mxu1 %v7523_v59  ;;  %18111 = vmatpush3.bf16.msra.mxu1 %v20354_v55  ;;  %v7826_v55 = vld [vmem:[#allocation2 + $0xd8] sm:$0xf]  ;;  %v7895_v59 = vrot.slane %v7827_v42, 4 }
 0x50e   : > { %18112 = vmatprep.subr.bf16.mxu1 %v20355_v12  ;;  %v7893_v56 = vrot.slane %v7826_v55, 4  ;;  %v7926_v55 = vrot.slane %v7848_v53, 4 }
 0x50f   : > { %18201 = vmatpush3.bf16.msra.mxu0 %v20367_v1 }
 0x510   : > { %18202 = vmatprep.subr.bf16.mxu0 %v20368_v25 }
 0x511   : > { %18113 = vmatpush3.bf16.msra.mxu1 %v20355_v12  ;;  %v7892_v12 = vrot.slane %v7825_v20, 4  ;;  %v7925_v20 = vrot.slane %v7847_v39, 4  ;;  %v8226_v39 = vld [vmem:[#allocation2 + $0x148] sm:$0x1f] }
 0x512   : > { %18146 = vmatprep.subr.bf16.mxu1 %v22172_v63 }
 0x513   : > { %v7894_v0 = vsel %vm832_vm0, %v7892_v12, %v7893_v56  ;;  %18203 = vmatpush3.bf16.msra.mxu0 %v20368_v25  ;;  %v7927_v51 = vsel %vm832_vm0, %v7925_v20, %v7926_v55  ;;  %v7850_v12 = vld [vmem:[#allocation2 + $0x198] sm:$0xf]  ;;  %v8205_v25 = vld [vmem:[#allocation2 + $0xa0] sm:$0xe0] }
 0x514   : > { %18083 = vmatmul.mubr.bf16.gmra.mrb[32].mxu1 %v7526_v3  ;;  %v7832_v3 = vld [vmem:[#allocation2 + $0x108] sm:$0xf]  ;;  %18204 = vmatprep.subr.bf16.mxu0 %v20369_v4 }
 0x515   : > { %18086 = vmatprep.mubr.bf16.mxu1 %v7529_v8  ;;  %v20360_v8 = vld [vmem:[#allocation6 + $0x460] sm:$0xff]   ;;  %v7902_v45 = vrot.slane %v7832_v3, 4 }
 0x516   : > { %v8209_v3 = vld [vmem:[#allocation2 + $0xc0] sm:$0xe0] }
 0x517   : > { %18205 = vmatpush3.bf16.msra.mxu0 %v20369_v4  ;;  %v7903_v23 = vsel %vm832_vm0, %v7901_v40, %v7902_v45  ;;  %v8207_v4 = vld [vmem:[#allocation2 + $0xb0] sm:$0xe0]  ;;  %v8275_v40 = vrot.slane %v8209_v3, 5 }
 0x518   : > { %18206 = vmatprep.subr.bf16.mxu0 %v20370_v35  ;;  %v8272_v49 = vrot.slane %v8207_v4, 5 }
 0x51b   : > { %18207 = vmatpush3.bf16.msra.mxu0 %v20370_v35  ;;  %v8274_v35 = vsel %vm5951_vm4, %v8272_v49, %v8273_v43  ;;  %v8235_v43 = vld [vmem:[#allocation2 + $0x190] sm:$0xe0] }
 0x51c   : > { %18087 = vmatmul.mubr.bf16.gmra.mrb[36].mxu1 %v7532_v29  ;;  %v7833_v29 = vld [vmem:[#allocation2 + $0x110] sm:$0xf0] }
 0x51d   : > { %18090 = vmatprep.mubr.bf16.mxu1 %v7535_v46  ;;  %v7836_v46 = vld [vmem:[#allocation2 + $0x128] sm:$0xf]  ;;  %v7904_v9 = vrot.slane %v7833_v29, 4  ;;  %v8213_v29 = vld [vmem:[#allocation2 + $0xe0] sm:$0xe0] }
 0x51e   : > { %v7908_v7 = vrot.slane %v7836_v46, 4 }
 0x520   : > { %v7909_v47 = vsel %vm832_vm0, %v7907_v22, %v7908_v7  ;;  %v8215_v7 = vld [vmem:[#allocation2 + $0xf0] sm:$0xe0] }
 0x521   : > { %v8284_v58 = vrot.slane %v8215_v7, 5 }
 0x524   : > { %18091 = vmatmul.mubr.bf16.gmra.mrb[40].mxu1 %v7538_v30  ;;  %v7838_v30 = vld [vmem:[#allocation2 + $0x138] sm:$0xf] }
 0x525   : > { %18094 = vmatprep.mubr.bf16.mxu1 %v7541_v5  ;;  %v7906_v5 = vsel %vm832_vm0, %v7904_v9, %v7905_v6  ;;  %v7911_v60 = vrot.slane %v7838_v30, 4  ;;  %v8282_v9 = vrot.slane %v8214_v41, 5  ;;  %v9000_v41 = vld [vmem:[#allocation2 + $0x48] sm:$0xf] }
 0x52c   : > { %18095 = vmatmul.mubr.bf16.gmra.mrb[44].mxu1 %v7544_v19  ;;  %v7912_v19 = vsel %vm832_vm0, %v7910_v31, %v7911_v60 }
 0x52d   : > { %18114 = vmatprep.mubr.bf16.mxu1 %v7885_v11  ;;  %v7841_v11 = vld [vmem:[#allocation2 + $0x150] sm:$0xf0] }
 0x52e   : > { %v7916_v33 = vrot.slane %v7841_v11, 4  ;;  %v8290_v11 = vrot.slane %v8219_v17, 5  ;;  %v20373_v17 = vld [vmem:[#allocation6 + $0x488] sm:$0xff]  }
 0x530   : > { %v7918_v14 = vsel %vm832_vm0, %v7916_v33, %v7917_v18  ;;  %v8292_v33 = vsel %vm5951_vm4, %v8290_v11, %v8291_v26  ;;  %v20374_v11 = vld [vmem:[#allocation6 + $0x490] sm:$0xff]   ;;  %v20375_v26 = vld [vmem:[#allocation6 + $0x498] sm:$0xff]  }
 0x534   : > { %18115 = vmatmul.mubr.bf16.vlgmr.msra.gmra.mrb[16].mxu1 %v7888_v50  ;;  %v7845_v50 = vld [vmem:[#allocation2 + $0x170] sm:$0xf0] }
 0x535   : > { %18118 = vmatprep.mubr.bf16.mxu1 %v7891_v37  ;;  %18147 = vmatpush3.bf16.msra.mxu1 %v22172_v63  ;;  %v7897_v63 = vsel %vm832_vm0, %v7895_v59, %v7896_v13  ;;  %v7846_v37 = vld [vmem:[#allocation2 + $0x178] sm:$0xf]  ;;  %v7922_v1 = vrot.slane %v7845_v50, 4  ;;  %v7929_v13 = vrot.slane %v7850_v12, 4 }
 0x536   : > { %18148 = vmatprep.subr.bf16.mxu1 %v20357_v57  ;;  %v7923_v42 = vrot.slane %v7846_v37, 4  ;;  %v8300_v37 = vrot.slane %v8226_v39, 5 }
 0x538   : > { %v7924_v56 = vsel %vm832_vm0, %v7922_v1, %v7923_v42  ;;  %v8227_v1 = vld [vmem:[#allocation2 + $0x150] sm:$0xe0]  ;;  %v8228_v42 = vld [vmem:[#allocation2 + $0x158] sm:$0x1f] }
 0x539   : > { %18149 = vmatpush3.bf16.msra.mxu1 %v20357_v57  ;;  %v7921_v57 = vsel %vm832_vm0, %v7919_v44, %v7920_v52  ;;  %v8223_v44 = vld [vmem:[#allocation2 + $0x130] sm:$0xe0]  ;;  %v8224_v52 = vld [vmem:[#allocation2 + $0x138] sm:$0x1f]  ;;  %v8302_v12 = vrot.slane %v8227_v1, 5 }
 0x53a   : > { %18150 = vmatprep.subr.bf16.mxu1 %v20358_v38  ;;  %v8296_v53 = vrot.slane %v8223_v44, 5  ;;  %v22219_v44 = vld [vmem:[#allocation6 + $0x500] sm:$0xff]   ;;  %v8662_v1 = vld [vmem:[%s20908_s20 + $0x10] sm:$0xff] }
 0x53c   : > { %18119 = vmatmul.mubr.bf16.gmra.mrb[20].mxu1 %v7894_v0  ;;  %v8269_v0 = vrot.slane %v8205_v25, 5 }
 0x53d   : > { %18122 = vmatprep.mubr.bf16.mxu1 %v7897_v63  ;;  %18151 = vmatpush3.bf16.msra.mxu1 %v20358_v38  ;;  %v7849_v38 = vld [vmem:[#allocation2 + $0x190] sm:$0xf0] }
 0x53e   : > { %18152 = vmatprep.subr.bf16.mxu1 %v20359_v28  ;;  %v7928_v59 = vrot.slane %v7849_v38, 4  ;;  %v8230_v38 = vld [vmem:[#allocation2 + $0x168] sm:$0x1f] }
 0x540   : > { %v7930_v15 = vsel %vm832_vm0, %v7928_v59, %v7929_v13  ;;  %v8306_v13 = vrot.slane %v8230_v38, 5 }
 0x541   : > { %18153 = vmatpush3.bf16.msra.mxu1 %v20359_v28  ;;  %v8206_v28 = vld [vmem:[#allocation2 + $0xa8] sm:$0x1f] }
 0x542   : > { %18154 = vmatprep.subr.bf16.mxu1 %v20360_v8  ;;  %v8270_v63 = vrot.slane %v8206_v28, 5  ;;  %v8233_v28 = vld [vmem:[#allocation2 + $0x180] sm:$0xe0] }
 0x543   : > { %v8311_v4 = vrot.slane %v8233_v28, 5 }
 0x544   : > { %18123 = vmatmul.mubr.bf16.gmra.mrb[24].mxu1 %v7900_v48  ;;  %v8271_v24 = vsel %vm5951_vm4, %v8269_v0, %v8270_v63  ;;  %v8211_v48 = vld [vmem:[#allocation2 + $0xd0] sm:$0xe0]  ;;  %v8234_v0 = vld [vmem:[#allocation2 + $0x188] sm:$0x1f] }
 0x545   : > { %18126 = vmatprep.mubr.bf16.mxu1 %v7903_v23  ;;  %18155 = vmatpush3.bf16.msra.mxu1 %v20360_v8  ;;  %v8210_v8 = vld [vmem:[#allocation2 + $0xc8] sm:$0x1f]  ;;  %v8212_v23 = vld [vmem:[#allocation2 + $0xd8] sm:$0x1f]  ;;  %v8278_v21 = vrot.slane %v8211_v48, 5  ;;  %v8312_v61 = vrot.slane %v8234_v0, 5 }
 0x546   : > { %18156 = vmatprep.subr.bf16.mxu1 %v20361_v2  ;;  %v8276_v45 = vrot.slane %v8210_v8, 5  ;;  %v8279_v46 = vrot.slane %v8212_v23, 5  ;;  %v20371_v23 = vld [vmem:[#allocation6 + $0x4f8] sm:$0xff]  }
 0x547   : > { %v8313_v49 = vsel %vm5951_vm4, %v8311_v4, %v8312_v61  ;;  %18208 = vmatprep.subr.bf16.mxu0 %v20371_v23 }
 0x548   : > { %v8280_v6 = vsel %vm5951_vm4, %v8278_v21, %v8279_v46  ;;  %18209 = vmatpush3.bf16.msra.mxu0 %v20371_v23  ;;  %v9064_v46 = vrot.slane %v9000_v41, 4 }
 0x549   : > { %18157 = vmatpush3.bf16.msra.mxu1 %v20361_v2  ;;  %v8277_v2 = vsel %vm5951_vm4, %v8275_v40, %v8276_v45  ;;  %v8236_v40 = vld [vmem:[#allocation2 + $0x198] sm:$0x1f] }
 0x54a   : > { %18158 = vmatprep.subr.bf16.mxu1 %v20362_v34 }
 0x54c   : > { %18127 = vmatmul.mubr.bf16.gmra.mrb[28].mxu1 %v7906_v5  ;;  %v8217_v5 = vld [vmem:[#allocation2 + $0x100] sm:$0xe0] }
 0x54d   : > { %18130 = vmatprep.mubr.bf16.mxu1 %v7909_v47  ;;  %18159 = vmatpush3.bf16.msra.mxu1 %v20362_v34  ;;  %v8281_v34 = vrot.slane %v8213_v29, 5  ;;  %v8218_v47 = vld [vmem:[#allocation2 + $0x108] sm:$0x1f]  ;;  %v8287_v27 = vrot.slane %v8217_v5, 5  ;;  %v8999_v29 = vld [vmem:[#allocation2 + $0x40] sm:$0xf0] }
 0x54e   : > { %18160 = vmatprep.subr.bf16.mxu1 %v20363_v36  ;;  %v8288_v54 = vrot.slane %v8218_v47, 5  ;;  %v9063_v21 = vrot.slane %v8999_v29, 4  ;;  %v9003_v47 = vld [vmem:[#allocation2 + $0x60] sm:$0xf0] }
 0x54f   : > { %v8283_v22 = vsel %vm5951_vm4, %v8281_v34, %v8282_v9  ;;  %v9001_v9 = vld [vmem:[#allocation2 + $0x50] sm:$0xf0] }
 0x550   : > { %v8289_v60 = vsel %vm5951_vm4, %v8287_v27, %v8288_v54  ;;  %v9065_v34 = vsel %vm832_vm0, %v9063_v21, %v9064_v46  ;;  %v9066_v7 = vrot.slane %v9001_v9, 4  ;;  %v8664_v21 = vld [vmem:[%s20908_s20 + $0x20] sm:$0xff]  ;;  %v8667_v9 = vld [vmem:[%s20908_s20 + $0x38] sm:$0xff] }
 0x551   : > { %18161 = vmatpush3.bf16.msra.mxu1 %v20363_v36  ;;  %v8216_v36 = vld [vmem:[#allocation2 + $0xf8] sm:$0x1f]  ;;  %18210 = vmatprep.mubr.bf16.mxu0 %v9065_v34 }
 0x552   : > { %v8285_v30 = vrot.slane %v8216_v36, 5 }
 0x554   : > { %18131 = vmatmul.mubr.bf16.gmra.mrb[32].mxu1 %v7912_v19  ;;  %v8286_v31 = vsel %vm5951_vm4, %v8284_v58, %v8285_v30  ;;  %v8221_v19 = vld [vmem:[#allocation2 + $0x120] sm:$0xe0]  ;;  %v9004_v58 = vld [vmem:[#allocation2 + $0x68] sm:$0xf]  ;;  %v9069_v30 = vrot.slane %v9003_v47, 4 }
 0x555   : > { %18134 = vmatprep.mubr.bf16.mxu1 %v7915_v16  ;;  %v8222_v16 = vld [vmem:[#allocation2 + $0x128] sm:$0x1f]  ;;  %v8293_v32 = vrot.slane %v8221_v19, 5  ;;  %v9070_v27 = vrot.slane %v9004_v58, 4 }
 0x556   : > { %v8294_v62 = vrot.slane %v8222_v16, 5 }
 0x557   : > { %v9071_v54 = vsel %vm832_vm0, %v9069_v30, %v9070_v27 }
 0x558   : > { %v8295_v18 = vsel %vm5951_vm4, %v8293_v32, %v8294_v62  ;;  %v20376_v32 = vld [vmem:[#allocation6 + $0x4a0] sm:$0xff]   ;;  %v20377_v62 = vld [vmem:[#allocation6 + $0x4a8] sm:$0xff]  }
 0x55c   : > { %18135 = vmatmul.mubr.bf16.gmra.mrb[36].mxu1 %v7918_v14  ;;  %v8225_v14 = vld [vmem:[#allocation2 + $0x140] sm:$0xe0] }
 0x55d   : > { %18138 = vmatprep.mubr.bf16.mxu1 %v7921_v57  ;;  %v8297_v57 = vrot.slane %v8224_v52, 5  ;;  %v8299_v50 = vrot.slane %v8225_v14, 5  ;;  %v22222_v52 = vld [vmem:[#allocation8 + $0x1] ss:$0 sm:$0xff] }
 0x55f   : > { %v8298_v20 = vsel %vm5951_vm4, %v8296_v53, %v8297_v57  ;;  %v8301_v55 = vsel %vm5951_vm4, %v8299_v50, %v8300_v37 }
 0x564   : > { %18139 = vmatmul.mubr.bf16.gmra.mrb[40].mxu1 %v7924_v56  ;;  %v8303_v56 = vrot.slane %v8228_v42, 5 }
 0x565   : > { %18142 = vmatprep.mubr.bf16.mxu1 %v7927_v51  ;;  %v8229_v51 = vld [vmem:[#allocation2 + $0x160] sm:$0xe0] }
 0x566   : > { %v8305_v59 = vrot.slane %v8229_v51, 5  ;;  %v8304_v25 = vsel %vm5951_vm4, %v8302_v12, %v8303_v56  ;;  %v8660_v12 = vld [vmem:[%s20908_s20] sm:$0xff] }
 0x568   : > { %v8307_v63 = vsel %vm5951_vm4, %v8305_v59, %v8306_v13  ;;  %v8663_v13 = vld [vmem:[%s20908_s20 + $0x18] sm:$0xff] }
 0x56c   : > { %18143 = vmatmul.mubr.bf16.gmra.mrb[44].mxu1 %v7930_v15  ;;  %v8231_v15 = vld [vmem:[#allocation2 + $0x170] sm:$0xe0] }
 0x56d   : > { %18162 = vmatprep.mubr.bf16.mxu1 %v8271_v24  ;;  %v8232_v24 = vld [vmem:[#allocation2 + $0x178] sm:$0x1f]  ;;  %v8308_v3 = vrot.slane %v8231_v15, 5 }
 0x56e   : > { %v8309_v8 = vrot.slane %v8232_v24, 5 }
 0x570   : > { %v8310_v45 = vsel %vm5951_vm4, %v8308_v3, %v8309_v8 }
 0x574   : > { %18163 = vmatmul.mubr.bf16.vlgmr.msra.gmra.mrb[16].mxu1 %v8274_v35  ;;  %v8314_v35 = vrot.slane %v8235_v43, 5 }
 0x575   : > { %18166 = vmatprep.mubr.bf16.mxu1 %v8277_v2  ;;  %v8315_v2 = vrot.slane %v8236_v40, 5 }
 0x577   : > { %v8316_v48 = vsel %vm5951_vm4, %v8314_v35, %v8315_v2 }
 0x57c   : > { %18167 = vmatmul.mubr.bf16.gmra.mrb[20].mxu1 %v8280_v6  ;;  %v9002_v6 = vld [vmem:[#allocation2 + $0x58] sm:$0xf] }
 0x57d   : > { %18170 = vmatprep.mubr.bf16.mxu1 %v8283_v22  ;;  %v20372_v22 = vld [vmem:[#allocation6 + $0x480] sm:$0xff]   ;;  %v9067_v36 = vrot.slane %v9002_v6, 4 }
 0x57e   : > { %18242 = vmatprep.subr.bf16.mxu0 %v20372_v22 }
 0x57f   : > { %v9068_v5 = vsel %vm832_vm0, %v9066_v7, %v9067_v36  ;;  %v8665_v36 = vld [vmem:[%s20908_s20 + $0x28] sm:$0xff] }
 0x580   : > { %18211 = vmatmul.mubr.bf16.vlgmr.msra.gmra.mrb[32].mxu0 %v9068_v5 }
 0x581   : > { %18243 = vmatpush3.bf16.msra.mxu0 %v20372_v22  ;;  %18214 = vmatprep.mubr.bf16.mxu0 %v9071_v54 }
 0x582   : > { %18244 = vmatprep.subr.bf16.mxu0 %v20373_v17 }
 0x584   : > { %18171 = vmatmul.mubr.bf16.gmra.mrb[24].mxu1 %v8286_v31  ;;  %v9005_v31 = vld [vmem:[#allocation2 + $0x70] sm:$0xf0] }
 0x585   : > { %18174 = vmatprep.mubr.bf16.mxu1 %v8289_v60  ;;  %v9006_v60 = vld [vmem:[#allocation2 + $0x78] sm:$0xf]  ;;  %v9072_v10 = vrot.slane %v9005_v31, 4  ;;  %18245 = vmatpush3.bf16.msra.mxu0 %v20373_v17 }
 0x586   : > { %v9073_v19 = vrot.slane %v9006_v60, 4  ;;  %18246 = vmatprep.subr.bf16.mxu0 %v20374_v11 }
 0x588   : > { %v9074_v16 = vsel %vm832_vm0, %v9072_v10, %v9073_v19 }
 0x589   : > { %18215 = vmatmul.mubr.bf16.gmra.mrb[36].mxu0 %v9074_v16 }
 0x58a   : > { %18247 = vmatpush3.bf16.msra.mxu0 %v20374_v11 }
 0x58b   : > { %18248 = vmatprep.subr.bf16.mxu0 %v20375_v26 }
 0x58c   : > { %18175 = vmatmul.mubr.bf16.gmra.mrb[28].mxu1 %v8292_v33  ;;  %v20378_v33 = vld [vmem:[#allocation6 + $0x4b0] sm:$0xff]  }
 0x58d   : > { %18178 = vmatprep.mubr.bf16.mxu1 %v8295_v18  ;;  %v20379_v18 = vld [vmem:[#allocation6 + $0x4b8] sm:$0xff]  }
 0x58e   : > { %18249 = vmatpush3.bf16.msra.mxu0 %v20375_v26 }
 0x58f   : > { %18250 = vmatprep.subr.bf16.mxu0 %v20376_v32 }
 0x592   : > { %18251 = vmatpush3.bf16.msra.mxu0 %v20376_v32 }
 0x593   : > { %18252 = vmatprep.subr.bf16.mxu0 %v20377_v62 }
 0x594   : > { %18179 = vmatmul.mubr.bf16.gmra.mrb[32].mxu1 %v8298_v20 }
 0x595   : > { %18182 = vmatprep.mubr.bf16.mxu1 %v8301_v55 }
 0x596   : > { %18253 = vmatpush3.bf16.msra.mxu0 %v20377_v62 }
 0x597   : > { %18254 = vmatprep.subr.bf16.mxu0 %v20378_v33 }
 0x59a   : > { %18255 = vmatpush3.bf16.msra.mxu0 %v20378_v33  ;;  %v8670_v33 = vld [vmem:[%s20908_s20 + $0x50] sm:$0xff] }
 0x59b   : > { %18256 = vmatprep.subr.bf16.mxu0 %v20379_v18 }
 0x59c   : > { %18183 = vmatmul.mubr.bf16.gmra.mrb[36].mxu1 %v8304_v25 }
 0x59d   : > { %18186 = vmatprep.mubr.bf16.mxu1 %v8307_v63  ;;  %v8661_v63 = vld [vmem:[%s20908_s20 + $0x8] sm:$0xff] }
 0x59e   : > { %18257 = vmatpush3.bf16.msra.mxu0 %v20379_v18 }
 0x59f   : > { %18290 = vmatprep.subr.bf16.mxu0 %v22219_v44 }
 0x5a4   : > { %18187 = vmatmul.mubr.bf16.gmra.mrb[40].mxu1 %v8310_v45 }
 0x5a5   : > { %18190 = vmatprep.mubr.bf16.mxu1 %v8313_v49 }
 0x5ac   : > { %18191 = vmatmul.mubr.bf16.gmra.mrb[44].mxu1 %v8316_v48  ;;  %v8666_v48 = vld [vmem:[%s20908_s20 + $0x30] sm:$0xff] }
 0x647   : > { %v18164_v14 = vpop.f32.mrb[16].mxu1 }
 0x648   : > { %v8598_v39 = vadd.f32 %v18164_v14, %v22222_v52  ;;  %v8432_v53 = vpop.f32.mrb[17].mxu1 }
 0x649   : > { %v8596_v57 = vadd.f32 %v22222_v52, %v8432_v53  ;;  %v18165_v50 = vpop.f32.mrb[18].mxu1 }
 0x64a   : > { %v8630_v37 = vmax.f32 %v8598_v39, 0.0  ;;  %v8599_v20 = vadd.f32 %v18165_v50, %v22222_v52  ;;  %v8435_v55 = vpop.f32.mrb[19].mxu1  ;;  %v8668_v50 = vld [vmem:[%s20908_s20 + $0x40] sm:$0xff] }
 0x64b   : > { %v8628_v42 = vmax.f32 %v8596_v57, 0.0  ;;  %v8597_v51 = vadd.f32 %v22222_v52, %v8435_v55 }
 0x64c   : > { %v8694_v38 = vadd.f32 %v8662_v1, %v8630_v37  ;;  %v8631_v56 = vmax.f32 %v8599_v20, 0.0 }
 0x64d   : > { %v8692_v59 = vadd.f32 %v8660_v12, %v8628_v42  ;;  %v8629_v25 = vmax.f32 %v8597_v51, 0.0 }
 0x64e   : > { %8726 = vst [vmem:[%s20908_s20 + $0x10] sm:$0xff] %v8694_v38  ;;  %v8695_v28 = vadd.f32 %v8663_v13, %v8631_v56  ;;  %v8757_v0 = vpack.c.bf16 %v8631_v56, %v8630_v37 }
 0x64f   : > { %8724 = vst [vmem:[%s20908_s20] sm:$0xff] %v8692_v59  ;;  %v8693_v15 = vadd.f32 %v8661_v63, %v8629_v25  ;;  %v8756_v24 = vpack.c.bf16 %v8629_v25, %v8628_v42  ;;  %v18168_v4 = vpop.f32.mrb[20].mxu1  ;;  %v8671_v42 = vld [vmem:[%s20908_s20 + $0x58] sm:$0xff]  ;;  %v8669_v59 = vld [vmem:[%s20908_s20 + $0x48] sm:$0xff] }
 0x650   : > { %8727 = vst [vmem:[%s20908_s20 + $0x18] sm:$0xff] %v8695_v28  ;;  %v8789_v61 = vrot.slane %v8757_v0, 4  ;;  %v8602_v3 = vadd.f32 %v18168_v4, %v22222_v52  ;;  %v8448_v8 = vpop.f32.mrb[21].mxu1 }
 0x651   : > { %8725 = vst [vmem:[%s20908_s20 + $0x8] sm:$0xff] %v8693_v15  ;;  %v8788_v49 = vrot.slane %v8756_v24, 4  ;;  %v8600_v43 = vadd.f32 %v22222_v52, %v8448_v8  ;;  %v18169_v40 = vpop.f32.mrb[22].mxu1 }
 0x652   : > { %8822 = vst [vmem:[#allocation2 + $0x98] ss:$-4 sps:$4 sm:$0xff] %v8789_v61   ;;  %v8634_v45 = vmax.f32 %v8602_v3, 0.0  ;;  %v8603_v35 = vadd.f32 %v18169_v40, %v22222_v52  ;;  %v8451_v2 = vpop.f32.mrb[23].mxu1 }
 0x653   : > { %8820 = vst [vmem:[#allocation2 + $0x88] ss:$-4 sps:$4 sm:$0xff] %v8788_v49   ;;  %v8632_v23 = vmax.f32 %v8600_v43, 0.0  ;;  %v8601_v29 = vadd.f32 %v22222_v52, %v8451_v2 }
 0x654   : > { %v8698_v41 = vadd.f32 %v8666_v48, %v8634_v45  ;;  %v8635_v46 = vmax.f32 %v8603_v35, 0.0  ;;  %v8674_v48 = vld [vmem:[%s20908_s20 + $0x70] sm:$0xff] }
 0x655   : > { %v8696_v34 = vadd.f32 %v8664_v21, %v8632_v23  ;;  %v8633_v6 = vmax.f32 %v8601_v29, 0.0 }
 0x656   : > { %8730 = vst [vmem:[%s20908_s20 + $0x30] sm:$0xff] %v8698_v41  ;;  %v8699_v22 = vadd.f32 %v8667_v9, %v8635_v46  ;;  %v8759_v7 = vpack.c.bf16 %v8635_v46, %v8634_v45 }
 0x657   : > { %8728 = vst [vmem:[%s20908_s20 + $0x20] sm:$0xff] %v8696_v34  ;;  %v8697_v5 = vadd.f32 %v8665_v36, %v8633_v6  ;;  %v8758_v47 = vpack.c.bf16 %v8633_v6, %v8632_v23  ;;  %v18172_v58 = vpop.f32.mrb[24].mxu1  ;;  %v8672_v34 = vld [vmem:[%s20908_s20 + $0x60] sm:$0xff]  ;;  %v8675_v36 = vld [vmem:[%s20908_s20 + $0x78] sm:$0xff] }
 0x658   : > { %8731 = vst [vmem:[%s20908_s20 + $0x38] sm:$0xff] %v8699_v22  ;;  %v8791_v30 = vrot.slane %v8759_v7, 4  ;;  %v8606_v27 = vadd.f32 %v18172_v58, %v22222_v52  ;;  %v8464_v54 = vpop.f32.mrb[25].mxu1 }
 0x659   : > { %8729 = vst [vmem:[%s20908_s20 + $0x28] sm:$0xff] %v8697_v5  ;;  %v8790_v31 = vrot.slane %v8758_v47, 4  ;;  %v8604_v60 = vadd.f32 %v22222_v52, %v8464_v54  ;;  %v18173_v17 = vpop.f32.mrb[26].mxu1  ;;  %v9009_v10 = vld [vmem:[#allocation2 + $0x90] sm:$0xf0] }
 0x65a   : > { %v9010_v19 = vld [vmem:[#allocation2 + $0x98] sm:$0xf]  ;;  %8826 = vst [vmem:[#allocation2 + $0xb8] ss:$-4 sps:$4 sm:$0xff] %v8791_v30   ;;  %v8638_v16 = vmax.f32 %v8606_v27, 0.0  ;;  %v8607_v11 = vadd.f32 %v18173_v17, %v22222_v52  ;;  %v8467_v26 = vpop.f32.mrb[27].mxu1 }
 0x65b   : > { %v9007_v32 = vld [vmem:[#allocation2 + $0x80] sm:$0xf0]  ;;  %v9008_v62 = vld [vmem:[#allocation2 + $0x88] sm:$0xf]  ;;  %8824 = vst [vmem:[#allocation2 + $0xa8] ss:$-4 sps:$4 sm:$0xff] %v8790_v31   ;;  %v8605_v14 = vadd.f32 %v22222_v52, %v8467_v26 }
 0x65c   : > { %v8636_v18 = vmax.f32 %v8604_v60, 0.0  ;;  %v9075_v39 = vrot.slane %v9007_v32, 4  ;;  %v9076_v53 = vrot.slane %v9008_v62, 4  ;;  %v8702_v57 = vadd.f32 %v8670_v33, %v8638_v16  ;;  %v8673_v27 = vld [vmem:[%s20908_s20 + $0x68] sm:$0xff] }
 0x65d   : > { %v8639_v37 = vmax.f32 %v8607_v11, 0.0  ;;  %v9078_v20 = vrot.slane %v9009_v10, 4  ;;  %v9079_v55 = vrot.slane %v9010_v19, 4  ;;  %v8637_v51 = vmax.f32 %v8605_v14, 0.0 }
 0x65e   : > { %v8700_v1 = vadd.f32 %v8668_v50, %v8636_v18  ;;  %v9077_v38 = vsel %vm832_vm0, %v9075_v39, %v9076_v53  ;;  %8734 = vst [vmem:[%s20908_s20 + $0x50] sm:$0xff] %v8702_v57  ;;  %v8678_v50 = vld [vmem:[%s20908_s20 + $0x90] sm:$0xff] }
 0x65f   : > { %v8703_v12 = vadd.f32 %v8671_v42, %v8639_v37  ;;  %v8761_v56 = vpack.c.bf16 %v8639_v37, %v8638_v16  ;;  %18218 = vmatprep.mubr.bf16.mxu0 %v9077_v38  ;;  %v9080_v13 = vsel %vm832_vm0, %v9078_v20, %v9079_v55  ;;  %v8701_v25 = vadd.f32 %v8669_v59, %v8637_v51  ;;  %v18176_v0 = vpop.f32.mrb[28].mxu1 }
 0x660   : > { %8732 = vst [vmem:[%s20908_s20 + $0x40] sm:$0xff] %v8700_v1  ;;  %v8760_v28 = vpack.c.bf16 %v8637_v51, %v8636_v18  ;;  %18219 = vmatmul.mubr.bf16.gmra.mrb[40].mxu0 %v9080_v13  ;;  %v8610_v15 = vadd.f32 %v18176_v0, %v22222_v52  ;;  %v8480_v24 = vpop.f32.mrb[29].mxu1  ;;  %v8676_v51 = vld [vmem:[%s20908_s20 + $0x80] sm:$0xff]  ;;  %v8679_v13 = vld [vmem:[%s20908_s20 + $0x98] sm:$0xff] }
 0x661   : > { %8735 = vst [vmem:[%s20908_s20 + $0x58] sm:$0xff] %v8703_v12  ;;  %v8793_v63 = vrot.slane %v8761_v56, 4  ;;  %8733 = vst [vmem:[%s20908_s20 + $0x48] sm:$0xff] %v8701_v25  ;;  %v8608_v61 = vadd.f32 %v22222_v52, %v8480_v24  ;;  %v18177_v3 = vpop.f32.mrb[30].mxu1  ;;  %v9013_v8 = vld [vmem:[#allocation2 + $0xb0] sm:$0xf0] }
 0x662   : > { %v8792_v4 = vrot.slane %v8760_v28, 4  ;;  %v9014_v49 = vld [vmem:[#allocation2 + $0xb8] sm:$0xf]  ;;  %v8642_v43 = vmax.f32 %v8610_v15, 0.0  ;;  %v8611_v40 = vadd.f32 %v18177_v3, %v22222_v52  ;;  %v8483_v45 = vpop.f32.mrb[31].mxu1  ;;  %v9084_v6 = vrot.slane %v9013_v8, 4 }
 0x663   : > { %8830 = vst [vmem:[#allocation2 + $0xd8] ss:$-4 sps:$4 sm:$0xff] %v8793_v63   ;;  %v9011_v35 = vld [vmem:[#allocation2 + $0xa0] sm:$0xf0]  ;;  %v9012_v2 = vld [vmem:[#allocation2 + $0xa8] sm:$0xf]  ;;  %v8609_v29 = vadd.f32 %v22222_v52, %v8483_v45 }
 0x664   : > { %8828 = vst [vmem:[#allocation2 + $0xc8] ss:$-4 sps:$4 sm:$0xff] %v8792_v4   ;;  %v8640_v23 = vmax.f32 %v8608_v61, 0.0  ;;  %v9081_v41 = vrot.slane %v9011_v35, 4  ;;  %v9082_v21 = vrot.slane %v9012_v2, 4  ;;  %v8706_v46 = vadd.f32 %v8674_v48, %v8642_v43  ;;  %v8677_v15 = vld [vmem:[%s20908_s20 + $0x88] sm:$0xff] }
 0x665   : > { %v8643_v9 = vmax.f32 %v8611_v40, 0.0  ;;  %v9085_v22 = vrot.slane %v9014_v49, 4  ;;  %v8641_v5 = vmax.f32 %v8609_v29, 0.0 }
 0x666   : > { %v8704_v7 = vadd.f32 %v8672_v34, %v8640_v23  ;;  %v9083_v47 = vsel %vm832_vm0, %v9081_v41, %v9082_v21  ;;  %8738 = vst [vmem:[%s20908_s20 + $0x70] sm:$0xff] %v8706_v46  ;;  %v8682_v34 = vld [vmem:[%s20908_s20 + $0xb0] sm:$0xff] }
 0x667   : > { %v8707_v58 = vadd.f32 %v8675_v36, %v8643_v9  ;;  %v8763_v30 = vpack.c.bf16 %v8643_v9, %v8642_v43  ;;  %18222 = vmatprep.mubr.bf16.mxu0 %v9083_v47  ;;  %v9086_v54 = vsel %vm832_vm0, %v9084_v6, %v9085_v22  ;;  %v8705_v31 = vadd.f32 %v8673_v27, %v8641_v5  ;;  %v18180_v17 = vpop.f32.mrb[32].mxu1 }
 0x668   : > { %8736 = vst [vmem:[%s20908_s20 + $0x60] sm:$0xff] %v8704_v7  ;;  %v8762_v60 = vpack.c.bf16 %v8641_v5, %v8640_v23  ;;  %18223 = vmatmul.mubr.bf16.gmra.mrb[44].mxu0 %v9086_v54  ;;  %v8614_v19 = vadd.f32 %v18180_v17, %v22222_v52  ;;  %v8496_v16 = vpop.f32.mrb[33].mxu1  ;;  %v8680_v5 = vld [vmem:[%s20908_s20 + $0xa0] sm:$0xff]  ;;  %v8683_v54 = vld [vmem:[%s20908_s20 + $0xb8] sm:$0xff] }
 0x669   : > { %8739 = vst [vmem:[%s20908_s20 + $0x78] sm:$0xff] %v8707_v58  ;;  %v8795_v10 = vrot.slane %v8763_v30, 4  ;;  %8737 = vst [vmem:[%s20908_s20 + $0x68] sm:$0xff] %v8705_v31  ;;  %v8612_v26 = vadd.f32 %v22222_v52, %v8496_v16  ;;  %v18181_v32 = vpop.f32.mrb[34].mxu1 }
 0x66a   : > { %v8794_v11 = vrot.slane %v8762_v60, 4  ;;  %v9017_v62 = vld [vmem:[#allocation2 + $0xd0] sm:$0xf0]  ;;  %v9018_v33 = vld [vmem:[#allocation2 + $0xd8] sm:$0xf]  ;;  %v8646_v18 = vmax.f32 %v8614_v19, 0.0  ;;  %v8615_v14 = vadd.f32 %v18181_v32, %v22222_v52 }
 0x66b   : > { %8834 = vst [vmem:[#allocation2 + $0xf8] ss:$-4 sps:$4 sm:$0xff] %v8795_v10   ;;  %v8499_v39 = vpop.f32.mrb[35].mxu1  ;;  %v9015_v53 = vld [vmem:[#allocation2 + $0xc0] sm:$0xf0]  ;;  %v8644_v37 = vmax.f32 %v8612_v26, 0.0 }
 0x66c   : > { %v9016_v57 = vld [vmem:[#allocation2 + $0xc8] sm:$0xf]  ;;  %8832 = vst [vmem:[#allocation2 + $0xe8] ss:$-4 sps:$4 sm:$0xff] %v8794_v11   ;;  %v8613_v20 = vadd.f32 %v22222_v52, %v8499_v39  ;;  %v9087_v55 = vrot.slane %v9015_v53, 4  ;;  %v8710_v42 = vadd.f32 %v8678_v50, %v8646_v18  ;;  %v8647_v38 = vmax.f32 %v8615_v14, 0.0 }
 0x66d   : > { %v9088_v1 = vrot.slane %v9016_v57, 4  ;;  %v9090_v12 = vrot.slane %v9017_v62, 4  ;;  %v9091_v56 = vrot.slane %v9018_v33, 4  ;;  %v8708_v59 = vadd.f32 %v8676_v51, %v8644_v37  ;;  %v8681_v19 = vld [vmem:[%s20908_s20 + $0xa8] sm:$0xff]  ;;  %v8686_v51 = vld [vmem:[%s20908_s20 + $0xd0] sm:$0xff] }
 0x66e   : > { %v8645_v25 = vmax.f32 %v8613_v20, 0.0  ;;  %8742 = vst [vmem:[%s20908_s20 + $0x90] sm:$0xff] %v8710_v42  ;;  %v8711_v0 = vadd.f32 %v8679_v13, %v8647_v38  ;;  %v8765_v63 = vpack.c.bf16 %v8647_v38, %v8646_v18 }
 0x66f   : > { %v9089_v28 = vsel %vm832_vm0, %v9087_v55, %v9088_v1  ;;  %v9092_v24 = vsel %vm832_vm0, %v9090_v12, %v9091_v56  ;;  %8740 = vst [vmem:[%s20908_s20 + $0x80] sm:$0xff] %v8708_v59  ;;  %v18184_v3 = vpop.f32.mrb[36].mxu1 }
 0x670   : > { %18226 = vmatprep.mubr.bf16.mxu0 %v9089_v28  ;;  %v8709_v4 = vadd.f32 %v8677_v15, %v8645_v25  ;;  %v8764_v61 = vpack.c.bf16 %v8645_v25, %v8644_v37  ;;  %8743 = vst [vmem:[%s20908_s20 + $0x98] sm:$0xff] %v8711_v0  ;;  %v8797_v8 = vrot.slane %v8765_v63, 4  ;;  %v8618_v49 = vadd.f32 %v18184_v3, %v22222_v52  ;;  %v8512_v43 = vpop.f32.mrb[37].mxu1  ;;  %v8684_v25 = vld [vmem:[%s20908_s20 + $0xc0] sm:$0xff]  ;;  %v8853_v3 = vld [vmem:[#allocation2 + $0x40] sm:$0xfc] }
 0x671   : > { %18227 = vmatmul.mubr.bf16.gmra.mrb[48].mxu0 %v9092_v24  ;;  %v8616_v45 = vadd.f32 %v22222_v52, %v8512_v43  ;;  %v18185_v35 = vpop.f32.mrb[38].mxu1  ;;  %v8687_v24 = vld [vmem:[%s20908_s20 + $0xd8] sm:$0xff] }
 0x672   : > { %8741 = vst [vmem:[%s20908_s20 + $0x88] sm:$0xff] %v8709_v4  ;;  %v8796_v40 = vrot.slane %v8764_v61, 4  ;;  %v9021_v2 = vld [vmem:[#allocation2 + $0xf0] sm:$0xf0]  ;;  %v9022_v48 = vld [vmem:[#allocation2 + $0xf8] sm:$0xf]  ;;  %v8619_v29 = vadd.f32 %v18185_v35, %v22222_v52 }
 0x673   : > { %8838 = vst [vmem:[#allocation2 + $0x118] ss:$-4 sps:$4 sm:$0xff] %v8797_v8   ;;  %v8650_v23 = vmax.f32 %v8618_v49, 0.0  ;;  %v8515_v41 = vpop.f32.mrb[39].mxu1  ;;  %v9019_v21 = vld [vmem:[#allocation2 + $0xe0] sm:$0xf0] }
 0x674   : > { %v9020_v46 = vld [vmem:[#allocation2 + $0xe8] sm:$0xf]  ;;  %8836 = vst [vmem:[#allocation2 + $0x108] ss:$-4 sps:$4 sm:$0xff] %v8796_v40   ;;  %v8648_v9 = vmax.f32 %v8616_v45, 0.0  ;;  %v8617_v6 = vadd.f32 %v22222_v52, %v8515_v41  ;;  %v9093_v22 = vrot.slane %v9019_v21, 4 }
 0x675   : > { %v9094_v7 = vrot.slane %v9020_v46, 4  ;;  %v8714_v36 = vadd.f32 %v8682_v34, %v8650_v23  ;;  %v8651_v47 = vmax.f32 %v8619_v29, 0.0  ;;  %v9096_v58 = vrot.slane %v9021_v2, 4  ;;  %v8854_v8 = vld [vmem:[#allocation2 + $0x48] sm:$0x3]  ;;  %v8685_v40 = vld [vmem:[%s20908_s20 + $0xc8] sm:$0xff] }
 0x676   : > { %v9097_v30 = vrot.slane %v9022_v48, 4  ;;  %v8712_v27 = vadd.f32 %v8680_v5, %v8648_v9  ;;  %v8649_v31 = vmax.f32 %v8617_v6, 0.0  ;;  %v8918_v21 = vrot.slane %v8853_v3, 2  ;;  %v8862_v3 = vld [vmem:[#allocation2 + $0x88] sm:$0x3] }
 0x677   : > { %v9095_v60 = vsel %vm832_vm0, %v9093_v22, %v9094_v7  ;;  %8746 = vst [vmem:[%s20908_s20 + $0xb0] sm:$0xff] %v8714_v36  ;;  %v8715_v17 = vadd.f32 %v8683_v54, %v8651_v47  ;;  %v8767_v10 = vpack.c.bf16 %v8651_v47, %v8650_v23  ;;  %v18188_v32 = vpop.f32.mrb[40].mxu1  ;;  %v8919_v46 = vrot.slane %v8854_v8, 2  ;;  %v20382_v8 = vld [vmem:[#allocation6 + $0x510] sm:$0xff]  }
 0x678   : > { %18230 = vmatprep.mubr.bf16.mxu0 %v9095_v60  ;;  %v9098_v16 = vsel %vm832_vm0, %v9096_v58, %v9097_v30  ;;  %8744 = vst [vmem:[%s20908_s20 + $0xa0] sm:$0xff] %v8712_v27  ;;  %v8713_v11 = vadd.f32 %v8681_v19, %v8649_v31  ;;  %v8766_v26 = vpack.c.bf16 %v8649_v31, %v8648_v9  ;;  %v8528_v18 = vpop.f32.mrb[41].mxu1  ;;  %v8690_v27 = vld [vmem:[%s20908_s20 + $0xf0] sm:$0xff]  ;;  %v8688_v19 = vld [vmem:[%s20908_s20 + $0xe0] sm:$0xff] }
 0x679   : > { %18231 = vmatmul.mubr.bf16.gmra.mrb[52].mxu0 %v9098_v16  ;;  %8747 = vst [vmem:[%s20908_s20 + $0xb8] sm:$0xff] %v8715_v17  ;;  %v8799_v62 = vrot.slane %v8767_v10, 4  ;;  %v8622_v33 = vadd.f32 %v18188_v32, %v22222_v52  ;;  %v8620_v39 = vadd.f32 %v22222_v52, %v8528_v18  ;;  %v18189_v53 = vpop.f32.mrb[42].mxu1 }
 0x67a   : > { %8745 = vst [vmem:[%s20908_s20 + $0xa8] sm:$0xff] %v8713_v11  ;;  %v8798_v14 = vrot.slane %v8766_v26, 4  ;;  %v9025_v57 = vld [vmem:[#allocation2 + $0x110] sm:$0xf0]  ;;  %v9026_v50 = vld [vmem:[#allocation2 + $0x118] sm:$0xf]  ;;  %v8623_v20 = vadd.f32 %v18189_v53, %v22222_v52 }
 0x67b   : > { %8842 = vst [vmem:[#allocation2 + $0x138] ss:$-4 sps:$4 sm:$0xff] %v8799_v62   ;;  %v8654_v37 = vmax.f32 %v8622_v33, 0.0  ;;  %v8531_v55 = vpop.f32.mrb[43].mxu1  ;;  %v9023_v1 = vld [vmem:[#allocation2 + $0x100] sm:$0xf0] }
 0x67c   : > { %v9024_v42 = vld [vmem:[#allocation2 + $0x108] sm:$0xf]  ;;  %8840 = vst [vmem:[#allocation2 + $0x128] ss:$-4 sps:$4 sm:$0xff] %v8798_v14   ;;  %v8652_v38 = vmax.f32 %v8620_v39, 0.0  ;;  %v8621_v12 = vadd.f32 %v22222_v52, %v8531_v55  ;;  %v9099_v56 = vrot.slane %v9023_v1, 4  ;;  %v8920_v14 = vsel %vm8917_vm5, %v8918_v21, %v8919_v46 }
 0x67d   : > { %v9100_v59 = vrot.slane %v9024_v42, 4  ;;  %v8718_v13 = vadd.f32 %v8686_v51, %v8654_v37  ;;  %v8655_v28 = vmax.f32 %v8623_v20, 0.0  ;;  %v9102_v0 = vrot.slane %v9025_v57, 4  ;;  %v8691_v62 = vld [vmem:[%s20908_s20 + $0xf8] sm:$0xff]  ;;  %v8855_v39 = vld [vmem:[#allocation2 + $0x50] sm:$0xfc] }
 0x67e   : > { %v9103_v63 = vrot.slane %v9026_v50, 4  ;;  %v8716_v15 = vadd.f32 %v8684_v25, %v8652_v38  ;;  %v8653_v4 = vmax.f32 %v8621_v12, 0.0  ;;  %v8856_v53 = vld [vmem:[#allocation2 + $0x58] sm:$0x3]  ;;  %v8689_v50 = vld [vmem:[%s20908_s20 + $0xe8] sm:$0xff] }
 0x67f   : > { %v9101_v61 = vsel %vm832_vm0, %v9099_v56, %v9100_v59  ;;  %8750 = vst [vmem:[%s20908_s20 + $0xd0] sm:$0xff] %v8718_v13  ;;  %v8719_v49 = vadd.f32 %v8687_v24, %v8655_v28  ;;  %v8769_v43 = vpack.c.bf16 %v8655_v28, %v8654_v37  ;;  %v18192_v48 = vpop.f32.mrb[44].mxu1  ;;  %v8857_v20 = vld [vmem:[#allocation2 + $0x60] sm:$0xfc]  ;;  %v8858_v55 = vld [vmem:[#allocation2 + $0x68] sm:$0x3] }
 0x680   : > { %18234 = vmatprep.mubr.bf16.mxu0 %v9101_v61  ;;  %v9104_v45 = vsel %vm832_vm0, %v9102_v0, %v9103_v63  ;;  %8748 = vst [vmem:[%s20908_s20 + $0xc0] sm:$0xff] %v8716_v15  ;;  %v8717_v35 = vadd.f32 %v8685_v40, %v8653_v4  ;;  %v8768_v2 = vpack.c.bf16 %v8653_v4, %v8652_v38  ;;  %v8544_v41 = vpop.f32.mrb[45].mxu1  ;;  %v8921_v38 = vrot.slane %v8855_v39, 2  ;;  %v8859_v0 = vld [vmem:[#allocation2 + $0x70] sm:$0xfc]  ;;  %v20381_v15 = vld [vmem:[#allocation6 + $0x508] sm:$0xff]  }
 0x681   : > { %18235 = vmatmul.mubr.bf16.gmra.mrb[56].mxu0 %v9104_v45  ;;  %8751 = vst [vmem:[%s20908_s20 + $0xd8] sm:$0xff] %v8719_v49  ;;  %v8801_v23 = vrot.slane %v8769_v43, 4  ;;  %v8626_v29 = vadd.f32 %v18192_v48, %v22222_v52  ;;  %v8624_v9 = vadd.f32 %v22222_v52, %v8544_v41  ;;  %v18193_v6 = vpop.f32.mrb[46].mxu1  ;;  %v8922_v12 = vrot.slane %v8856_v53, 2  ;;  %v8860_v63 = vld [vmem:[#allocation2 + $0x78] sm:$0x3] }
 0x682   : > { %8749 = vst [vmem:[%s20908_s20 + $0xc8] sm:$0xff] %v8717_v35  ;;  %v8800_v34 = vrot.slane %v8768_v2, 4  ;;  %v9029_v22 = vld [vmem:[#allocation2 + $0x130] sm:$0xf0]  ;;  %v9030_v7 = vld [vmem:[#allocation2 + $0x138] sm:$0xf]  ;;  %v8627_v5 = vadd.f32 %v18193_v6, %v22222_v52 }
 0x683   : > { %8846 = vst [vmem:[#allocation2 + $0x158] ss:$-4 sps:$4 sm:$0xff] %v8801_v23   ;;  %v8658_v36 = vmax.f32 %v8626_v29, 0.0  ;;  %v8547_v47 = vpop.f32.mrb[47].mxu1  ;;  %v9027_v58 = vld [vmem:[#allocation2 + $0x120] sm:$0xf0]  ;;  %v8923_v25 = vsel %vm8917_vm5, %v8921_v38, %v8922_v12 }
 0x684   : > { %v9028_v30 = vld [vmem:[#allocation2 + $0x128] sm:$0xf]  ;;  %8844 = vst [vmem:[#allocation2 + $0x148] ss:$-4 sps:$4 sm:$0xff] %v8800_v34   ;;  %v8656_v54 = vmax.f32 %v8624_v9, 0.0  ;;  %v8625_v31 = vadd.f32 %v22222_v52, %v8547_v47  ;;  %v9105_v60 = vrot.slane %v9027_v58, 4 }
 0x685   : > { %v9106_v17 = vrot.slane %v9028_v30, 4  ;;  %v8722_v10 = vadd.f32 %v8690_v27, %v8658_v36  ;;  %v8659_v16 = vmax.f32 %v8627_v5, 0.0  ;;  %v9108_v11 = vrot.slane %v9029_v22, 4  ;;  %v8861_v61 = vld [vmem:[#allocation2 + $0x80] sm:$0xfc]  ;;  %v20383_v45 = vld [vmem:[#allocation6 + $0x518] sm:$0xff]  }
 0x686   : > { %v9109_v26 = vrot.slane %v9030_v7, 4  ;;  %v8720_v32 = vadd.f32 %v8688_v19, %v8656_v54  ;;  %v8657_v33 = vmax.f32 %v8625_v31, 0.0  ;;  %v8924_v59 = vrot.slane %v8857_v20, 2  ;;  %v8863_v2 = vld [vmem:[#allocation2 + $0x90] sm:$0xfc]  ;;  %v20384_v29 = vld [vmem:[#allocation6 + $0x520] sm:$0xff]  }
 0x687   : > { %v9107_v18 = vsel %vm832_vm0, %v9105_v60, %v9106_v17  ;;  %8754 = vst [vmem:[%s20908_s20 + $0xf0] sm:$0xff] %v8722_v10  ;;  %v8723_v52 = vadd.f32 %v8691_v62, %v8659_v16  ;;  %v8771_v57 = vpack.c.bf16 %v8659_v16, %v8658_v36  ;;  %v8925_v13 = vrot.slane %v8858_v55, 2  ;;  %v8864_v48 = vld [vmem:[#allocation2 + $0x98] sm:$0x3]  ;;  %v8866_v23 = vld [vmem:[#allocation2 + $0xa8] sm:$0x3] }
 0x688   : > { %18238 = vmatprep.mubr.bf16.mxu0 %v9107_v18  ;;  %v9110_v37 = vsel %vm832_vm0, %v9108_v11, %v9109_v26  ;;  %8752 = vst [vmem:[%s20908_s20 + $0xe0] sm:$0xff] %v8720_v32  ;;  %v8721_v1 = vadd.f32 %v8689_v50, %v8657_v33  ;;  %v8770_v42 = vpack.c.bf16 %v8657_v33, %v8656_v54  ;;  %v8927_v24 = vrot.slane %v8859_v0, 2  ;;  %v20385_v9 = vld [vmem:[#allocation6 + $0x528] sm:$0xff]   ;;  %v8867_v7 = vld [vmem:[#allocation2 + $0xb0] sm:$0xfc]  ;;  %v20387_v60 = vld [vmem:[#allocation6 + $0x538] sm:$0xff]  }
 0x689   : > { %18239 = vmatmul.mubr.bf16.gmra.mrb[60].mxu0 %v9110_v37  ;;  %8755 = vst [vmem:[%s20908_s20 + $0xf8] sm:$0xff] %v8723_v52  ;;  %v8803_v51 = vrot.slane %v8771_v57, 4  ;;  %v8926_v28 = vsel %vm8917_vm5, %v8924_v59, %v8925_v13  ;;  %v8928_v4 = vrot.slane %v8860_v63, 2  ;;  %v8930_v49 = vrot.slane %v8861_v61, 2  ;;  %v8868_v36 = vld [vmem:[#allocation2 + $0xb8] sm:$0x3] }
 0x68a   : > { %18258 = vmatprep.mubr.bf16.mxu0 %v8920_v14  ;;  %8753 = vst [vmem:[%s20908_s20 + $0xe8] sm:$0xff] %v8721_v1  ;;  %v8802_v56 = vrot.slane %v8770_v42, 4  ;;  %v8931_v43 = vrot.slane %v8862_v3, 2  ;;  %v8933_v41 = vrot.slane %v8863_v2, 2  ;;  %v8934_v21 = vrot.slane %v8864_v48, 2  ;;  %v20386_v58 = vld [vmem:[#allocation6 + $0x530] sm:$0xff]  }
 0x68b   : > { %8850 = vst [vmem:[#allocation2 + $0x178] ss:$-4 sps:$4 sm:$0xff] %v8803_v51   ;;  %v8929_v40 = vsel %vm8917_vm5, %v8927_v24, %v8928_v4  ;;  %v8937_v34 = vrot.slane %v8866_v23, 2  ;;  %v8869_v5 = vld [vmem:[#allocation2 + $0xc0] sm:$0xfc]  ;;  %v8939_v30 = vrot.slane %v8867_v7, 2 }
 0x68c   : > { %8848 = vst [vmem:[#allocation2 + $0x168] ss:$-4 sps:$4 sm:$0xff] %v8802_v56   ;;  %v8932_v35 = vsel %vm8917_vm5, %v8930_v49, %v8931_v43  ;;  %v8935_v6 = vsel %vm8917_vm5, %v8933_v41, %v8934_v21  ;;  %v8870_v47 = vld [vmem:[#allocation2 + $0xc8] sm:$0x3]  ;;  %v8940_v27 = vrot.slane %v8868_v36, 2  ;;  %v8942_v54 = vrot.slane %v8869_v5, 2 }
 0x68d   : > { %v8943_v31 = vrot.slane %v8870_v47, 2  ;;  %v8871_v19 = vld [vmem:[#allocation2 + $0xd0] sm:$0xfc]  ;;  %v8872_v16 = vld [vmem:[#allocation2 + $0xd8] sm:$0x3]  ;;  %v20388_v32 = vld [vmem:[#allocation6 + $0x540] sm:$0xff]  }
 0x68e   : > { %v8941_v17 = vsel %vm8917_vm5, %v8939_v30, %v8940_v27  ;;  %v8873_v11 = vld [vmem:[#allocation2 + $0xe0] sm:$0xfc]  ;;  %v8874_v26 = vld [vmem:[#allocation2 + $0xe8] sm:$0x3]  ;;  %v8945_v62 = vrot.slane %v8871_v19, 2  ;;  %v8946_v33 = vrot.slane %v8872_v16, 2 }
 0x68f   : > { %v8944_v10 = vsel %vm8917_vm5, %v8942_v54, %v8943_v31  ;;  %v8948_v18 = vrot.slane %v8873_v11, 2  ;;  %v8949_v14 = vrot.slane %v8874_v26, 2  ;;  %v8875_v52 = vld [vmem:[#allocation2 + $0xf0] sm:$0xfc]  ;;  %v8876_v57 = vld [vmem:[#allocation2 + $0xf8] sm:$0x3] }
 0x690   : > { %v8947_v39 = vsel %vm8917_vm5, %v8945_v62, %v8946_v33  ;;  %v8877_v50 = vld [vmem:[#allocation2 + $0x100] sm:$0xfc]  ;;  %v8878_v37 = vld [vmem:[#allocation2 + $0x108] sm:$0x3]  ;;  %v8951_v20 = vrot.slane %v8875_v52, 2  ;;  %v8952_v55 = vrot.slane %v8876_v57, 2 }
 0x691   : > { %18259 = vmatmul.mubr.bf16.vlgmr.msra.gmra.mrb[32].mxu0 %v8923_v25  ;;  %v8950_v53 = vsel %vm8917_vm5, %v8948_v18, %v8949_v14  ;;  %v8954_v1 = vrot.slane %v8877_v50, 2  ;;  %v8955_v42 = vrot.slane %v8878_v37, 2  ;;  %v8879_v12 = vld [vmem:[#allocation2 + $0x110] sm:$0xfc]  ;;  %v8880_v56 = vld [vmem:[#allocation2 + $0x118] sm:$0x3] }
 0x692   : > { %18291 = vmatpush3.bf16.msra.mxu0 %v22219_v44  ;;  %18262 = vmatprep.mubr.bf16.mxu0 %v8926_v28  ;;  %v8865_v44 = vld [vmem:[#allocation2 + $0xa0] sm:$0xfc]  ;;  %v8953_v51 = vsel %vm8917_vm5, %v8951_v20, %v8952_v55  ;;  %v8882_v13 = vld [vmem:[#allocation2 + $0x128] sm:$0x3]  ;;  %v8957_v25 = vrot.slane %v8879_v12, 2  ;;  %v8958_v28 = vrot.slane %v8880_v56, 2 }
 0x693   : > { %18292 = vmatprep.subr.bf16.mxu0 %v20381_v15  ;;  %v8936_v46 = vrot.slane %v8865_v44, 2  ;;  %v8956_v38 = vsel %vm8917_vm5, %v8954_v1, %v8955_v42  ;;  %v8881_v59 = vld [vmem:[#allocation2 + $0x120] sm:$0xfc]  ;;  %v8961_v63 = vrot.slane %v8882_v13, 2  ;;  %v9563_v4 = vld [vmem:[#allocation2 + $0x48] sm:$0x3f] }
 0x694   : > { %v8960_v0 = vrot.slane %v8881_v59, 2  ;;  %v9562_v24 = vld [vmem:[#allocation2 + $0x40] sm:$0xc0]  ;;  %v8883_v3 = vld [vmem:[#allocation2 + $0x130] sm:$0xfc]  ;;  %v9628_v43 = vrot.slane %v9563_v4, 6 }
 0x695   : > { %v8938_v22 = vsel %vm8917_vm5, %v8936_v46, %v8937_v34  ;;  %v9627_v49 = vrot.slane %v9562_v24, 6  ;;  %v9564_v2 = vld [vmem:[#allocation2 + $0x50] sm:$0xc0]  ;;  %v9565_v48 = vld [vmem:[#allocation2 + $0x58] sm:$0x3f]  ;;  %v20389_v36 = vld [vmem:[#allocation6 + $0x548] sm:$0xff]  }
 0x696   : > { %18293 = vmatpush3.bf16.msra.mxu0 %v20381_v15  ;;  %v8959_v15 = vsel %vm8917_vm5, %v8957_v25, %v8958_v28  ;;  %v8962_v61 = vsel %vm8917_vm5, %v8960_v0, %v8961_v63  ;;  %v9566_v23 = vld [vmem:[#allocation2 + $0x60] sm:$0xc0]  ;;  %v9630_v41 = vrot.slane %v9564_v2, 6  ;;  %v9631_v21 = vrot.slane %v9565_v48, 6  ;;  %v9569_v7 = vld [vmem:[#allocation2 + $0x78] sm:$0x3f] }
 0x697   : > { %18294 = vmatprep.subr.bf16.mxu0 %v20382_v8  ;;  %v9633_v46 = vrot.slane %v9566_v23, 6  ;;  %v9637_v47 = vrot.slane %v9569_v7, 6  ;;  %v9571_v30 = vld [vmem:[#allocation2 + $0x88] sm:$0x3f]  ;;  %v20390_v27 = vld [vmem:[#allocation6 + $0x550] sm:$0xff]   ;;  %v20395_v12 = vld [vmem:[#allocation6 + $0x578] sm:$0xff]  }
 0x698   : > { %v9640_v31 = vrot.slane %v9571_v30, 6  ;;  %v9572_v19 = vld [vmem:[#allocation2 + $0x90] sm:$0xc0]  ;;  %v9573_v16 = vld [vmem:[#allocation2 + $0x98] sm:$0x3f]  ;;  %v20396_v63 = vld [vmem:[#allocation6 + $0x580] sm:$0xff]  }
 0x699   : > { %18263 = vmatmul.mubr.bf16.gmra.mrb[36].mxu0 %v8929_v40  ;;  %v8963_v40 = vrot.slane %v8883_v3, 2  ;;  %v9574_v11 = vld [vmem:[#allocation2 + $0xa0] sm:$0xc0]  ;;  %v9575_v26 = vld [vmem:[#allocation2 + $0xa8] sm:$0x3f]  ;;  %v9642_v62 = vrot.slane %v9572_v19, 6 }
 0x69a   : > { %18266 = vmatprep.mubr.bf16.mxu0 %v8932_v35  ;;  %18295 = vmatpush3.bf16.msra.mxu0 %v20382_v8  ;;  %v8884_v8 = vld [vmem:[#allocation2 + $0x138] sm:$0x3]  ;;  %v9629_v35 = vsel %vm9626_vm6, %v9627_v49, %v9628_v43  ;;  %v9643_v33 = vrot.slane %v9573_v16, 6  ;;  %v9645_v18 = vrot.slane %v9574_v11, 6  ;;  %v9646_v14 = vrot.slane %v9575_v26, 6  ;;  %v20394_v55 = vld [vmem:[#allocation6 + $0x570] sm:$0xff]  }
 0x69b   : > { %18296 = vmatprep.subr.bf16.mxu0 %v20383_v45  ;;  %v9576_v57 = vld [vmem:[#allocation2 + $0xb0] sm:$0xc0]  ;;  %v9577_v50 = vld [vmem:[#allocation2 + $0xb8] sm:$0x3f]  ;;  %v9578_v37 = vld [vmem:[#allocation2 + $0xc0] sm:$0xc0] }
 0x69c   : > { %v9647_v52 = vsel %vm9626_vm6, %v9645_v18, %v9646_v14  ;;  %v9579_v20 = vld [vmem:[#allocation2 + $0xc8] sm:$0x3f]  ;;  %v9648_v1 = vrot.slane %v9576_v57, 6  ;;  %v9649_v42 = vrot.slane %v9577_v50, 6  ;;  %v9580_v13 = vld [vmem:[#allocation2 + $0xd0] sm:$0xc0] }
 0x69d   : > { %v9581_v25 = vld [vmem:[#allocation2 + $0xd8] sm:$0x3f]  ;;  %v9582_v28 = vld [vmem:[#allocation2 + $0xe0] sm:$0xc0]  ;;  %v9583_v0 = vld [vmem:[#allocation2 + $0xe8] sm:$0x3f] }
 0x69e   : > { %18297 = vmatpush3.bf16.msra.mxu0 %v20383_v45  ;;  %v8964_v45 = vrot.slane %v8884_v8, 2  ;;  %v9650_v56 = vsel %vm9626_vm6, %v9648_v1, %v9649_v42  ;;  %v9655_v24 = vrot.slane %v9581_v25, 6  ;;  %v9657_v4 = vrot.slane %v9582_v28, 6  ;;  %v9584_v49 = vld [vmem:[#allocation2 + $0xf0] sm:$0xc0] }
 0x69f   : > { %18298 = vmatprep.subr.bf16.mxu0 %v20384_v29  ;;  %v9585_v43 = vld [vmem:[#allocation2 + $0xf8] sm:$0x3f]  ;;  %v9949_v30 = vld [vmem:[#allocation2 + $0x80] sm:$0xfc]  ;;  %v9951_v16 = vld [vmem:[#allocation2 + $0x90] sm:$0xfc] }
 0x6a0   : > { %v8965_v44 = vsel %vm8917_vm5, %v8963_v40, %v8964_v45  ;;  %v9586_v40 = vld [vmem:[#allocation2 + $0x100] sm:$0xc0]  ;;  %v9587_v45 = vld [vmem:[#allocation2 + $0x108] sm:$0x3f]  ;;  %v9661_v2 = vrot.slane %v9585_v43, 6 }
 0x6a1   : > { %18267 = vmatmul.mubr.bf16.gmra.mrb[40].mxu0 %v8935_v6  ;;  %v9663_v48 = vrot.slane %v9586_v40, 6  ;;  %v9952_v11 = vld [vmem:[#allocation2 + $0x98] sm:$0x3]  ;;  %v9953_v26 = vld [vmem:[#allocation2 + $0xa0] sm:$0xfc] }
 0x6a2   : > { %18270 = vmatprep.mubr.bf16.mxu0 %v8938_v22  ;;  %18299 = vmatpush3.bf16.msra.mxu0 %v20384_v29  ;;  %v9567_v29 = vld [vmem:[#allocation2 + $0x68] sm:$0x3f]  ;;  %v9568_v22 = vld [vmem:[#allocation2 + $0x70] sm:$0xc0]  ;;  %v10019_v18 = vrot.slane %v9953_v26, 2 }
 0x6a3   : > { %18300 = vmatprep.subr.bf16.mxu0 %v20385_v9  ;;  %v9634_v34 = vrot.slane %v9567_v29, 6  ;;  %v9636_v5 = vrot.slane %v9568_v22, 6  ;;  %v9955_v57 = vld [vmem:[#allocation2 + $0xb0] sm:$0xfc]  ;;  %v9956_v50 = vld [vmem:[#allocation2 + $0xb8] sm:$0x3] }
 0x6a4   : > { %v10022_v1 = vrot.slane %v9955_v57, 2  ;;  %v10023_v42 = vrot.slane %v9956_v50, 2  ;;  %v9960_v25 = vld [vmem:[#allocation2 + $0xd8] sm:$0x3]  ;;  %v9961_v28 = vld [vmem:[#allocation2 + $0xe0] sm:$0xfc] }
 0x6a5   : > { %v9635_v6 = vsel %vm9626_vm6, %v9633_v46, %v9634_v34  ;;  %v9590_v46 = vld [vmem:[#allocation2 + $0x120] sm:$0xc0]  ;;  %v9591_v34 = vld [vmem:[#allocation2 + $0x128] sm:$0x3f]  ;;  %v9963_v43 = vld [vmem:[#allocation2 + $0xf0] sm:$0xfc] }
 0x6a6   : > { %18301 = vmatpush3.bf16.msra.mxu0 %v20385_v9  ;;  %v9632_v9 = vsel %vm9626_vm6, %v9630_v41, %v9631_v21  ;;  %v9588_v41 = vld [vmem:[#allocation2 + $0x110] sm:$0xc0]  ;;  %v9589_v21 = vld [vmem:[#allocation2 + $0x118] sm:$0x3f]  ;;  %v9669_v22 = vrot.slane %v9590_v46, 6  ;;  %v9670_v7 = vrot.slane %v9591_v34, 6 }
 0x6a7   : > { %18302 = vmatprep.subr.bf16.mxu0 %v20386_v58  ;;  %v9964_v40 = vld [vmem:[#allocation2 + $0xf8] sm:$0x3]  ;;  %v9967_v34 = vld [vmem:[#allocation2 + $0x110] sm:$0xfc] }
 0x6a9   : > { %18271 = vmatmul.mubr.bf16.gmra.mrb[44].mxu0 %v8941_v17  ;;  %v20391_v17 = vld [vmem:[#allocation6 + $0x558] sm:$0xff]  }
 0x6aa   : > { %18274 = vmatprep.mubr.bf16.mxu0 %v8944_v10  ;;  %18303 = vmatpush3.bf16.msra.mxu0 %v20386_v58  ;;  %v9570_v58 = vld [vmem:[#allocation2 + $0x80] sm:$0xc0] }
 0x6ab   : > { %18304 = vmatprep.subr.bf16.mxu0 %v20387_v60  ;;  %v9639_v54 = vrot.slane %v9570_v58, 6  ;;  %v9593_v58 = vld [vmem:[#allocation2 + $0x138] sm:$0x3f] }
 0x6ad   : > { %v9641_v10 = vsel %vm9626_vm6, %v9639_v54, %v9640_v31  ;;  %v9673_v31 = vrot.slane %v9593_v58, 6 }
 0x6ae   : > { %18305 = vmatpush3.bf16.msra.mxu0 %v20387_v60  ;;  %v9638_v60 = vsel %vm9626_vm6, %v9636_v5, %v9637_v47  ;;  %v9671_v5 = vsel %vm9626_vm6, %v9669_v22, %v9670_v7  ;;  %v9592_v47 = vld [vmem:[#allocation2 + $0x130] sm:$0xc0]  ;;  %v9970_v22 = vld [vmem:[#allocation2 + $0x128] sm:$0x3]  ;;  %v20404_v7 = vld [vmem:[#allocation6 + $0x5c0] sm:$0xff]  }
 0x6af   : > { %18338 = vmatprep.subr.bf16.mxu0 %v20388_v32  ;;  %v9672_v54 = vrot.slane %v9592_v47, 6  ;;  %v10044_v58 = vrot.slane %v9970_v22, 2  ;;  %v10348_v22 = vld [vmem:[#allocation2 + $0xe8] sm:$0xf] }
 0x6b1   : > { %18275 = vmatmul.mubr.bf16.gmra.mrb[48].mxu0 %v8947_v39  ;;  %v20393_v39 = vld [vmem:[#allocation6 + $0x568] sm:$0xff]  }
 0x6b2   : > { %18278 = vmatprep.mubr.bf16.mxu0 %v8950_v53  ;;  %v9644_v53 = vsel %vm9626_vm6, %v9642_v62, %v9643_v33  ;;  %v10016_v62 = vrot.slane %v9951_v16, 2  ;;  %v10017_v33 = vrot.slane %v9952_v11, 2 }
 0x6b9   : > { %18279 = vmatmul.mubr.bf16.gmra.mrb[52].mxu0 %v8953_v51  ;;  %v9651_v51 = vrot.slane %v9578_v37, 6  ;;  %v9957_v37 = vld [vmem:[#allocation2 + $0xc0] sm:$0xfc] }
 0x6ba   : > { %18282 = vmatprep.mubr.bf16.mxu0 %v8956_v38  ;;  %v9652_v38 = vrot.slane %v9579_v20, 6  ;;  %v9958_v20 = vld [vmem:[#allocation2 + $0xc8] sm:$0x3] }
 0x6bc   : > { %v9653_v59 = vsel %vm9626_vm6, %v9651_v51, %v9652_v38  ;;  %v10025_v51 = vrot.slane %v9957_v37, 2  ;;  %v10026_v38 = vrot.slane %v9958_v20, 2  ;;  %v9979_v20 = vld [vmem:[#allocation2 + $0x170] sm:$0xfc] }
 0x6c1   : > { %18283 = vmatmul.mubr.bf16.gmra.mrb[56].mxu0 %v8959_v15  ;;  %v9654_v15 = vrot.slane %v9580_v13, 6  ;;  %v9959_v13 = vld [vmem:[#allocation2 + $0xd0] sm:$0xfc] }
 0x6c2   : > { %18286 = vmatprep.mubr.bf16.mxu0 %v8962_v61  ;;  %v9658_v61 = vrot.slane %v9583_v0, 6  ;;  %v9962_v0 = vld [vmem:[#allocation2 + $0xe8] sm:$0x3] }
 0x6c3   : > { %v9656_v3 = vsel %vm9626_vm6, %v9654_v15, %v9655_v24  ;;  %v10028_v15 = vrot.slane %v9959_v13, 2  ;;  %v10029_v24 = vrot.slane %v9960_v25, 2  ;;  %v10337_v25 = vld [vmem:[#allocation2 + $0x90] sm:$0xf0] }
 0x6c4   : > { %v9659_v8 = vsel %vm9626_vm6, %v9657_v4, %v9658_v61  ;;  %v10031_v4 = vrot.slane %v9961_v28, 2  ;;  %v10032_v61 = vrot.slane %v9962_v0, 2  ;;  %v10338_v28 = vld [vmem:[#allocation2 + $0x98] sm:$0xf]  ;;  %v10339_v0 = vld [vmem:[#allocation2 + $0xa0] sm:$0xf0] }
 0x6c9   : > { %18287 = vmatmul.mubr.bf16.gmra.mrb[60].mxu0 %v8965_v44  ;;  %v9664_v44 = vrot.slane %v9587_v45, 6  ;;  %v9965_v45 = vld [vmem:[#allocation2 + $0x100] sm:$0xfc] }
 0x6ca   : > { %18306 = vmatprep.mubr.bf16.mxu0 %v9629_v35  ;;  %v9660_v35 = vrot.slane %v9584_v49, 6  ;;  %v10033_v49 = vsel %vm8917_vm5, %v10031_v4, %v10032_v61  ;;  %v10405_v4 = vrot.slane %v10339_v0, 4 }
 0x6cb   : > { %v9665_v29 = vsel %vm9626_vm6, %v9663_v48, %v9664_v44  ;;  %v10034_v48 = vrot.slane %v9963_v43, 2  ;;  %v10035_v44 = vrot.slane %v9964_v40, 2  ;;  %v10341_v43 = vld [vmem:[#allocation2 + $0xb0] sm:$0xf0]  ;;  %v10342_v40 = vld [vmem:[#allocation2 + $0xb8] sm:$0xf] }
 0x6cc   : > { %v9662_v23 = vsel %vm9626_vm6, %v9660_v35, %v9661_v2  ;;  %v9966_v35 = vld [vmem:[#allocation2 + $0x108] sm:$0x3]  ;;  %v20402_v2 = vld [vmem:[#allocation6 + $0x5b0] sm:$0xff]  }
 0x6d1   : > { %18307 = vmatmul.mubr.bf16.vlgmr.msra.gmra.mrb[32].mxu0 %v9632_v9  ;;  %v9666_v9 = vrot.slane %v9588_v41, 6  ;;  %v20403_v41 = vld [vmem:[#allocation6 + $0x5b8] sm:$0xff]  }
 0x6d2   : > { %18339 = vmatpush3.bf16.msra.mxu0 %v20388_v32  ;;  %18310 = vmatprep.mubr.bf16.mxu0 %v9635_v6  ;;  %v20392_v32 = vld [vmem:[#allocation6 + $0x560] sm:$0xff]   ;;  %v9667_v6 = vrot.slane %v9589_v21, 6  ;;  %v10036_v21 = vsel %vm8917_vm5, %v10034_v48, %v10035_v44  ;;  %v10408_v48 = vrot.slane %v10341_v43, 4  ;;  %v10409_v44 = vrot.slane %v10342_v40, 4 }
 0x6d3   : > { %18340 = vmatprep.subr.bf16.mxu0 %v20389_v36 }
 0x6d6   : > { %18341 = vmatpush3.bf16.msra.mxu0 %v20389_v36  ;;  %v9668_v36 = vsel %vm9626_vm6, %v9666_v9, %v9667_v6  ;;  %v9968_v9 = vld [vmem:[#allocation2 + $0x118] sm:$0x3]  ;;  %v9969_v6 = vld [vmem:[#allocation2 + $0x120] sm:$0xfc] }
 0x6d7   : > { %18342 = vmatprep.subr.bf16.mxu0 %v20390_v27  ;;  %v10043_v47 = vrot.slane %v9969_v6, 2  ;;  %v10347_v6 = vld [vmem:[#allocation2 + $0xe0] sm:$0xf0] }
 0x6d9   : > { %18311 = vmatmul.mubr.bf16.gmra.mrb[36].mxu0 %v9638_v60  ;;  %v10013_v60 = vrot.slane %v9949_v30, 2 }
 0x6da   : > { %18314 = vmatprep.mubr.bf16.mxu0 %v9641_v10  ;;  %18343 = vmatpush3.bf16.msra.mxu0 %v20390_v27  ;;  %v9950_v27 = vld [vmem:[#allocation2 + $0x88] sm:$0x3]  ;;  %v9674_v10 = vsel %vm9626_vm6, %v9672_v54, %v9673_v31  ;;  %v9971_v54 = vld [vmem:[#allocation2 + $0x130] sm:$0xfc]  ;;  %v9972_v31 = vld [vmem:[#allocation2 + $0x138] sm:$0x3] }
 0x6db   : > { %18344 = vmatprep.subr.bf16.mxu0 %v20391_v17 }
 0x6de   : > { %18345 = vmatpush3.bf16.msra.mxu0 %v20391_v17  ;;  %v10014_v17 = vrot.slane %v9950_v27, 2  ;;  %v10045_v27 = vsel %vm8917_vm5, %v10043_v47, %v10044_v58  ;;  %v10417_v47 = vrot.slane %v10347_v6, 4  ;;  %v10418_v58 = vrot.slane %v10348_v22, 4  ;;  %v10724_v6 = vld [vmem:[#allocation2 + $0x98] sm:$0x3f] }
 0x6df   : > { %18346 = vmatprep.subr.bf16.mxu0 %v20392_v32  ;;  %v10725_v22 = vld [vmem:[#allocation2 + $0xa0] sm:$0xc0] }
 0x6e0   : > { %v10015_v19 = vsel %vm8917_vm5, %v10013_v60, %v10014_v17  ;;  %v9973_v60 = vld [vmem:[#allocation2 + $0x140] sm:$0xfc]  ;;  %v9974_v17 = vld [vmem:[#allocation2 + $0x148] sm:$0x3] }
 0x6e1   : > { %18315 = vmatmul.mubr.bf16.gmra.mrb[40].mxu0 %v9644_v53  ;;  %v10018_v53 = vsel %vm8917_vm5, %v10016_v62, %v10017_v33  ;;  %v10049_v16 = vrot.slane %v9973_v60, 2  ;;  %v10050_v11 = vrot.slane %v9974_v17, 2  ;;  %v9975_v62 = vld [vmem:[#allocation2 + $0x150] sm:$0xfc]  ;;  %v9976_v33 = vld [vmem:[#allocation2 + $0x158] sm:$0x3] }
 0x6e2   : > { %18318 = vmatprep.mubr.bf16.mxu0 %v9647_v52  ;;  %18347 = vmatpush3.bf16.msra.mxu0 %v20392_v32  ;;  %v9954_v32 = vld [vmem:[#allocation2 + $0xa8] sm:$0x3]  ;;  %v10350_v60 = vld [vmem:[#allocation2 + $0xf8] sm:$0xf]  ;;  %v10351_v17 = vld [vmem:[#allocation2 + $0x100] sm:$0xf0] }
 0x6e3   : > { %18348 = vmatprep.subr.bf16.mxu0 %v20393_v39  ;;  %v10020_v14 = vrot.slane %v9954_v32, 2  ;;  %v10051_v32 = vsel %vm8917_vm5, %v10049_v16, %v10050_v11  ;;  %v10421_v11 = vrot.slane %v10350_v60, 4  ;;  %v10728_v60 = vld [vmem:[#allocation2 + $0xb8] sm:$0x3f] }
 0x6e5   : > { %v10021_v52 = vsel %vm8917_vm5, %v10019_v18, %v10020_v14  ;;  %v9977_v18 = vld [vmem:[#allocation2 + $0x160] sm:$0xfc]  ;;  %v9978_v14 = vld [vmem:[#allocation2 + $0x168] sm:$0x3] }
 0x6e6   : > { %18349 = vmatpush3.bf16.msra.mxu0 %v20393_v39  ;;  %v20397_v39 = vld [vmem:[#allocation6 + $0x588] sm:$0xff]   ;;  %v10056_v57 = vrot.slane %v9978_v14, 2  ;;  %v10353_v14 = vld [vmem:[#allocation2 + $0x110] sm:$0xf0] }
 0x6e7   : > { %18350 = vmatprep.subr.bf16.mxu0 %v20394_v55 }
 0x6e9   : > { %18319 = vmatmul.mubr.bf16.gmra.mrb[44].mxu0 %v9650_v56  ;;  %v10024_v56 = vsel %vm8917_vm5, %v10022_v1, %v10023_v42  ;;  %v10335_v1 = vld [vmem:[#allocation2 + $0x80] sm:$0xf0]  ;;  %v10336_v42 = vld [vmem:[#allocation2 + $0x88] sm:$0xf] }
 0x6ea   : > { %18322 = vmatprep.mubr.bf16.mxu0 %v9653_v59  ;;  %18351 = vmatpush3.bf16.msra.mxu0 %v20394_v55  ;;  %v20398_v55 = vld [vmem:[#allocation6 + $0x590] sm:$0xff]   ;;  %v10027_v59 = vsel %vm8917_vm5, %v10025_v51, %v10026_v38  ;;  %v10058_v51 = vrot.slane %v9979_v20, 2 }
 0x6eb   : > { %18352 = vmatprep.subr.bf16.mxu0 %v20395_v12 }
 0x6ee   : > { %18353 = vmatpush3.bf16.msra.mxu0 %v20395_v12  ;;  %v20399_v12 = vld [vmem:[#allocation6 + $0x598] sm:$0xff]  }
 0x6ef   : > { %18386 = vmatprep.subr.bf16.mxu0 %v20396_v63 }
 0x6f1   : > { %18323 = vmatmul.mubr.bf16.gmra.mrb[48].mxu0 %v9656_v3  ;;  %v20401_v3 = vld [vmem:[#allocation6 + $0x5a8] sm:$0xff]  }
 0x6f2   : > { %18326 = vmatprep.mubr.bf16.mxu0 %v9659_v8  ;;  %v10030_v8 = vsel %vm8917_vm5, %v10028_v15, %v10029_v24  ;;  %v10402_v15 = vrot.slane %v10337_v25, 4  ;;  %v10403_v24 = vrot.slane %v10338_v28, 4 }
 0x6f9   : > { %18327 = vmatmul.mubr.bf16.gmra.mrb[52].mxu0 %v9662_v23  ;;  %v10037_v23 = vrot.slane %v9965_v45, 2  ;;  %v10343_v45 = vld [vmem:[#allocation2 + $0xc0] sm:$0xf0] }
 0x6fa   : > { %18330 = vmatprep.mubr.bf16.mxu0 %v9665_v29  ;;  %v10038_v29 = vrot.slane %v9966_v35, 2  ;;  %v10344_v35 = vld [vmem:[#allocation2 + $0xc8] sm:$0xf] }
 0x6fc   : > { %v10039_v46 = vsel %vm8917_vm5, %v10037_v23, %v10038_v29  ;;  %v10411_v23 = vrot.slane %v10343_v45, 4  ;;  %v10412_v29 = vrot.slane %v10344_v35, 4  ;;  %v10365_v35 = vld [vmem:[#allocation2 + $0x170] sm:$0xf0] }
 0x701   : > { %18331 = vmatmul.mubr.bf16.gmra.mrb[56].mxu0 %v9668_v36  ;;  %v10040_v36 = vrot.slane %v9967_v34, 2  ;;  %v10345_v34 = vld [vmem:[#allocation2 + $0xd0] sm:$0xf0] }
 0x702   : > { %18334 = vmatprep.mubr.bf16.mxu0 %v9671_v5  ;;  %v10041_v5 = vrot.slane %v9968_v9, 2  ;;  %v10346_v9 = vld [vmem:[#allocation2 + $0xd8] sm:$0xf] }
 0x704   : > { %v10042_v30 = vsel %vm8917_vm5, %v10040_v36, %v10041_v5  ;;  %v10414_v36 = vrot.slane %v10345_v34, 4  ;;  %v10415_v5 = vrot.slane %v10346_v9, 4  ;;  %v10723_v9 = vld [vmem:[#allocation2 + $0x90] sm:$0xc0] }
 0x709   : > { %18335 = vmatmul.mubr.bf16.gmra.mrb[60].mxu0 %v9674_v10  ;;  %v10046_v10 = vrot.slane %v9971_v54, 2  ;;  %v10419_v54 = vsel %vm832_vm0, %v10417_v47, %v10418_v58  ;;  %v10791_v47 = vrot.slane %v10725_v22, 6 }
 0x70a   : > { %18354 = vmatprep.mubr.bf16.mxu0 %v10015_v19  ;;  %v10047_v19 = vrot.slane %v9972_v31, 2  ;;  %v10349_v31 = vld [vmem:[#allocation2 + $0xf0] sm:$0xf0] }
 0x70b   : > { %v10420_v16 = vrot.slane %v10349_v31, 4  ;;  %v10727_v31 = vld [vmem:[#allocation2 + $0xb0] sm:$0xc0] }
 0x70c   : > { %v10048_v26 = vsel %vm8917_vm5, %v10046_v10, %v10047_v19  ;;  %v10352_v10 = vld [vmem:[#allocation2 + $0x108] sm:$0xf]  ;;  %v20410_v19 = vld [vmem:[#allocation6 + $0x5f0] sm:$0xff]  }
 0x711   : > { %18355 = vmatmul.mubr.bf16.vlgmr.msra.gmra.mrb[32].mxu0 %v10018_v53  ;;  %v10053_v53 = vrot.slane %v9976_v33, 2  ;;  %v10422_v33 = vsel %vm832_vm0, %v10420_v16, %v10421_v11  ;;  %v10794_v16 = vrot.slane %v10727_v31, 6  ;;  %v10795_v11 = vrot.slane %v10728_v60, 6 }
 0x712   : > { %18358 = vmatprep.mubr.bf16.mxu0 %v10021_v52  ;;  %18387 = vmatpush3.bf16.msra.mxu0 %v20396_v63  ;;  %v20400_v63 = vld [vmem:[#allocation6 + $0x5a0] sm:$0xff]   ;;  %v10055_v52 = vrot.slane %v9977_v18, 2 }
 0x713   : > { %18388 = vmatprep.subr.bf16.mxu0 %v20397_v39 }
 0x714   : > { %v10057_v37 = vsel %vm8917_vm5, %v10055_v52, %v10056_v57  ;;  %v10356_v52 = vld [vmem:[#allocation2 + $0x128] sm:$0xf]  ;;  %v20412_v57 = vld [vmem:[#allocation6 + $0x600] sm:$0xff]  }
 0x716   : > { %18389 = vmatpush3.bf16.msra.mxu0 %v20397_v39  ;;  %v10052_v39 = vrot.slane %v9975_v62, 2  ;;  %v20411_v62 = vld [vmem:[#allocation6 + $0x5f8] sm:$0xff]  }
 0x717   : > { %18390 = vmatprep.subr.bf16.mxu0 %v20398_v55 }
 0x718   : > { %v10054_v50 = vsel %vm8917_vm5, %v10052_v39, %v10053_v53  ;;  %v10354_v39 = vld [vmem:[#allocation2 + $0x118] sm:$0xf]  ;;  %v10355_v53 = vld [vmem:[#allocation2 + $0x120] sm:$0xf0] }
 0x719   : > { %18359 = vmatmul.mubr.bf16.gmra.mrb[36].mxu0 %v10024_v56  ;;  %v10400_v56 = vrot.slane %v10336_v42, 4  ;;  %v10429_v20 = vrot.slane %v10355_v53, 4  ;;  %v10733_v53 = vld [vmem:[#allocation2 + $0xe0] sm:$0xc0] }
 0x71a   : > { %18362 = vmatprep.mubr.bf16.mxu0 %v10027_v59  ;;  %18391 = vmatpush3.bf16.msra.mxu0 %v20398_v55  ;;  %v9980_v55 = vld [vmem:[#allocation2 + $0x178] sm:$0x3] }
 0x71b   : > { %18392 = vmatprep.subr.bf16.mxu0 %v20399_v12  ;;  %v10059_v38 = vrot.slane %v9980_v55, 2  ;;  %v10430_v55 = vrot.slane %v10356_v52, 4  ;;  %v10734_v52 = vld [vmem:[#allocation2 + $0xe8] sm:$0x3f] }
 0x71d   : > { %v10060_v59 = vsel %vm8917_vm5, %v10058_v51, %v10059_v38  ;;  %v10431_v42 = vsel %vm832_vm0, %v10429_v20, %v10430_v55  ;;  %v10357_v51 = vld [vmem:[#allocation2 + $0x130] sm:$0xf0]  ;;  %v10358_v38 = vld [vmem:[#allocation2 + $0x138] sm:$0xf]  ;;  %v10803_v20 = vrot.slane %v10733_v53, 6  ;;  %v10804_v55 = vrot.slane %v10734_v52, 6 }
 0x71e   : > { %18393 = vmatpush3.bf16.msra.mxu0 %v20399_v12  ;;  %v10399_v12 = vrot.slane %v10335_v1, 4  ;;  %v11111_v53 = vld [vmem:[#allocation2 + $0xd8] sm:$0x3]  ;;  %v11112_v52 = vld [vmem:[#allocation2 + $0xe0] sm:$0xfc] }
 0x71f   : > { %18394 = vmatprep.subr.bf16.mxu0 %v20400_v63 }
 0x720   : > { %v10401_v13 = vsel %vm832_vm0, %v10399_v12, %v10400_v56  ;;  %v10359_v12 = vld [vmem:[#allocation2 + $0x140] sm:$0xf0]  ;;  %v10360_v56 = vld [vmem:[#allocation2 + $0x148] sm:$0xf] }
 0x721   : > { %18363 = vmatmul.mubr.bf16.gmra.mrb[40].mxu0 %v10030_v8  ;;  %v10404_v8 = vsel %vm832_vm0, %v10402_v15, %v10403_v24  ;;  %v10435_v25 = vrot.slane %v10359_v12, 4  ;;  %v10436_v28 = vrot.slane %v10360_v56, 4  ;;  %v10361_v15 = vld [vmem:[#allocation2 + $0x150] sm:$0xf0]  ;;  %v10362_v24 = vld [vmem:[#allocation2 + $0x158] sm:$0xf] }
 0x722   : > { %18366 = vmatprep.mubr.bf16.mxu0 %v10033_v49  ;;  %18395 = vmatpush3.bf16.msra.mxu0 %v20400_v63  ;;  %v10340_v63 = vld [vmem:[#allocation2 + $0xa8] sm:$0xf]  ;;  %v10736_v12 = vld [vmem:[#allocation2 + $0xf8] sm:$0x3f]  ;;  %v10737_v56 = vld [vmem:[#allocation2 + $0x100] sm:$0xc0] }
 0x723   : > { %18396 = vmatprep.subr.bf16.mxu0 %v20401_v3  ;;  %v10406_v61 = vrot.slane %v10340_v63, 4  ;;  %v10437_v63 = vsel %vm832_vm0, %v10435_v25, %v10436_v28  ;;  %v10807_v28 = vrot.slane %v10736_v12, 6  ;;  %v11115_v12 = vld [vmem:[#allocation2 + $0xf8] sm:$0x3] }
 0x725   : > { %v10407_v49 = vsel %vm832_vm0, %v10405_v4, %v10406_v61  ;;  %v10363_v4 = vld [vmem:[#allocation2 + $0x160] sm:$0xf0]  ;;  %v10364_v61 = vld [vmem:[#allocation2 + $0x168] sm:$0xf] }
 0x726   : > { %18397 = vmatpush3.bf16.msra.mxu0 %v20401_v3  ;;  %v20405_v3 = vld [vmem:[#allocation6 + $0x5c8] sm:$0xff]   ;;  %v10442_v43 = vrot.slane %v10364_v61, 4  ;;  %v10739_v61 = vld [vmem:[#allocation2 + $0x110] sm:$0xc0] }
 0x727   : > { %18398 = vmatprep.subr.bf16.mxu0 %v20402_v2 }
 0x729   : > { %18367 = vmatmul.mubr.bf16.gmra.mrb[44].mxu0 %v10036_v21  ;;  %v10410_v21 = vsel %vm832_vm0, %v10408_v48, %v10409_v44  ;;  %v10721_v48 = vld [vmem:[#allocation2 + $0x80] sm:$0xc0]  ;;  %v10722_v44 = vld [vmem:[#allocation2 + $0x88] sm:$0x3f] }
 0x72a   : > { %18370 = vmatprep.mubr.bf16.mxu0 %v10039_v46  ;;  %18399 = vmatpush3.bf16.msra.mxu0 %v20402_v2  ;;  %v20406_v2 = vld [vmem:[#allocation6 + $0x5d0] sm:$0xff]   ;;  %v10413_v46 = vsel %vm832_vm0, %v10411_v23, %v10412_v29  ;;  %v10444_v23 = vrot.slane %v10365_v35, 4 }
 0x72b   : > { %18400 = vmatprep.subr.bf16.mxu0 %v20403_v41 }
 0x72e   : > { %18401 = vmatpush3.bf16.msra.mxu0 %v20403_v41  ;;  %v20407_v41 = vld [vmem:[#allocation6 + $0x5d8] sm:$0xff]  }
 0x72f   : > { %18434 = vmatprep.subr.bf16.mxu0 %v20404_v7 }
 0x731   : > { %18371 = vmatmul.mubr.bf16.gmra.mrb[48].mxu0 %v10042_v30  ;;  %v20409_v30 = vld [vmem:[#allocation6 + $0x5e8] sm:$0xff]  }
 0x732   : > { %18374 = vmatprep.mubr.bf16.mxu0 %v10045_v27  ;;  %v10416_v27 = vsel %vm832_vm0, %v10414_v36, %v10415_v5  ;;  %v10788_v36 = vrot.slane %v10723_v9, 6  ;;  %v10789_v5 = vrot.slane %v10724_v6, 6 }
 0x739   : > { %18375 = vmatmul.mubr.bf16.gmra.mrb[52].mxu0 %v10048_v26  ;;  %v10423_v26 = vrot.slane %v10351_v17, 4  ;;  %v10729_v17 = vld [vmem:[#allocation2 + $0xc0] sm:$0xc0] }
 0x73a   : > { %18378 = vmatprep.mubr.bf16.mxu0 %v10051_v32  ;;  %v10424_v32 = vrot.slane %v10352_v10, 4  ;;  %v10730_v10 = vld [vmem:[#allocation2 + $0xc8] sm:$0x3f] }
 0x73c   : > { %v10425_v18 = vsel %vm832_vm0, %v10423_v26, %v10424_v32  ;;  %v10797_v26 = vrot.slane %v10729_v17, 6  ;;  %v10798_v32 = vrot.slane %v10730_v10, 6  ;;  %v10751_v10 = vld [vmem:[#allocation2 + $0x170] sm:$0xc0] }
 0x741   : > { %18379 = vmatmul.mubr.bf16.gmra.mrb[56].mxu0 %v10054_v50  ;;  %v10426_v50 = vrot.slane %v10353_v14, 4  ;;  %v10731_v14 = vld [vmem:[#allocation2 + $0xd0] sm:$0xc0] }
 0x742   : > { %18382 = vmatprep.mubr.bf16.mxu0 %v10057_v37  ;;  %v10427_v37 = vrot.slane %v10354_v39, 4  ;;  %v10732_v39 = vld [vmem:[#allocation2 + $0xd8] sm:$0x3f] }
 0x744   : > { %v10428_v1 = vsel %vm832_vm0, %v10426_v50, %v10427_v37  ;;  %v10800_v50 = vrot.slane %v10731_v14, 6  ;;  %v10801_v37 = vrot.slane %v10732_v39, 6  ;;  %v11110_v39 = vld [vmem:[#allocation2 + $0xd0] sm:$0xfc] }
 0x749   : > { %18383 = vmatmul.mubr.bf16.gmra.mrb[60].mxu0 %v10060_v59  ;;  %v10432_v59 = vrot.slane %v10357_v51, 4  ;;  %v10805_v51 = vsel %vm9626_vm6, %v10803_v20, %v10804_v55  ;;  %v11178_v20 = vrot.slane %v11112_v52, 2 }
 0x74a   : > { %18402 = vmatprep.mubr.bf16.mxu0 %v10401_v13  ;;  %v10433_v13 = vrot.slane %v10358_v38, 4  ;;  %v10735_v38 = vld [vmem:[#allocation2 + $0xf0] sm:$0xc0] }
 0x74b   : > { %v10806_v25 = vrot.slane %v10735_v38, 6  ;;  %v11114_v38 = vld [vmem:[#allocation2 + $0xf0] sm:$0xfc] }
 0x74c   : > { %v10434_v0 = vsel %vm832_vm0, %v10432_v59, %v10433_v13  ;;  %v10738_v59 = vld [vmem:[#allocation2 + $0x108] sm:$0x3f]  ;;  %v20418_v13 = vld [vmem:[#allocation6 + $0x630] sm:$0xff]  }
 0x751   : > { %18403 = vmatmul.mubr.bf16.vlgmr.msra.gmra.mrb[32].mxu0 %v10404_v8  ;;  %v10439_v8 = vrot.slane %v10362_v24, 4  ;;  %v10808_v24 = vsel %vm9626_vm6, %v10806_v25, %v10807_v28  ;;  %v11181_v25 = vrot.slane %v11114_v38, 2  ;;  %v11182_v28 = vrot.slane %v11115_v12, 2 }
 0x752   : > { %18406 = vmatprep.mubr.bf16.mxu0 %v10407_v49  ;;  %18435 = vmatpush3.bf16.msra.mxu0 %v20404_v7  ;;  %v20408_v7 = vld [vmem:[#allocation6 + $0x5e0] sm:$0xff]   ;;  %v10441_v49 = vrot.slane %v10363_v4, 4 }
 0x753   : > { %18436 = vmatprep.subr.bf16.mxu0 %v20405_v3 }
 0x754   : > { %v10443_v45 = vsel %vm832_vm0, %v10441_v49, %v10442_v43  ;;  %v10742_v49 = vld [vmem:[#allocation2 + $0x128] sm:$0x3f]  ;;  %v20420_v43 = vld [vmem:[#allocation6 + $0x640] sm:$0xff]  }
 0x756   : > { %18437 = vmatpush3.bf16.msra.mxu0 %v20405_v3  ;;  %v10438_v3 = vrot.slane %v10361_v15, 4  ;;  %v20419_v15 = vld [vmem:[#allocation6 + $0x638] sm:$0xff]  }
 0x757   : > { %18438 = vmatprep.subr.bf16.mxu0 %v20406_v2 }
 0x758   : > { %v10440_v40 = vsel %vm832_vm0, %v10438_v3, %v10439_v8  ;;  %v10740_v3 = vld [vmem:[#allocation2 + $0x118] sm:$0x3f]  ;;  %v10741_v8 = vld [vmem:[#allocation2 + $0x120] sm:$0xc0] }
 0x759   : > { %18407 = vmatmul.mubr.bf16.gmra.mrb[36].mxu0 %v10410_v21  ;;  %v10786_v21 = vrot.slane %v10722_v44, 6  ;;  %v10815_v35 = vrot.slane %v10741_v8, 6  ;;  %v11120_v8 = vld [vmem:[#allocation2 + $0x120] sm:$0xfc] }
 0x75a   : > { %18410 = vmatprep.mubr.bf16.mxu0 %v10413_v46  ;;  %18439 = vmatpush3.bf16.msra.mxu0 %v20406_v2  ;;  %v10366_v2 = vld [vmem:[#allocation2 + $0x178] sm:$0xf] }
 0x75b   : > { %18440 = vmatprep.subr.bf16.mxu0 %v20407_v41  ;;  %v10445_v29 = vrot.slane %v10366_v2, 4  ;;  %v10816_v2 = vrot.slane %v10742_v49, 6  ;;  %v11121_v49 = vld [vmem:[#allocation2 + $0x128] sm:$0x3] }
 0x75d   : > { %v10446_v46 = vsel %vm832_vm0, %v10444_v23, %v10445_v29  ;;  %v10817_v44 = vsel %vm9626_vm6, %v10815_v35, %v10816_v2  ;;  %v10743_v23 = vld [vmem:[#allocation2 + $0x130] sm:$0xc0]  ;;  %v10744_v29 = vld [vmem:[#allocation2 + $0x138] sm:$0x3f]  ;;  %v11190_v35 = vrot.slane %v11120_v8, 2  ;;  %v11191_v2 = vrot.slane %v11121_v49, 2 }
 0x75e   : > { %18441 = vmatpush3.bf16.msra.mxu0 %v20407_v41  ;;  %v10785_v41 = vrot.slane %v10721_v48, 6  ;;  %v11497_v8 = vld [vmem:[#allocation2 + $0xd8] sm:$0xf]  ;;  %v20436_v49 = vld [vmem:[#allocation6 + $0x700] sm:$0xff]  }
 0x75f   : > { %18442 = vmatprep.subr.bf16.mxu0 %v20408_v7  ;;  %18626 = vmatprep.subr.bf16.mxu1 %v20436_v49 }
 0x760   : > { %v10787_v34 = vsel %vm9626_vm6, %v10785_v41, %v10786_v21  ;;  %v10745_v41 = vld [vmem:[#allocation2 + $0x140] sm:$0xc0]  ;;  %v10746_v21 = vld [vmem:[#allocation2 + $0x148] sm:$0x3f]  ;;  %18627 = vmatpush3.bf16.msra.mxu1 %v20436_v49  ;;  %v20435_v49 = vld [vmem:[#allocation6 + $0x6b8] sm:$0xff]  }
 0x761   : > { %18411 = vmatmul.mubr.bf16.gmra.mrb[40].mxu0 %v10416_v27  ;;  %v10790_v27 = vsel %vm9626_vm6, %v10788_v36, %v10789_v5  ;;  %v10821_v9 = vrot.slane %v10745_v41, 6  ;;  %v10822_v6 = vrot.slane %v10746_v21, 6  ;;  %v10747_v36 = vld [vmem:[#allocation2 + $0x150] sm:$0xc0]  ;;  %v10748_v5 = vld [vmem:[#allocation2 + $0x158] sm:$0x3f] }
 0x762   : > { %18414 = vmatprep.mubr.bf16.mxu0 %v10419_v54  ;;  %18443 = vmatpush3.bf16.msra.mxu0 %v20408_v7  ;;  %v10726_v7 = vld [vmem:[#allocation2 + $0xa8] sm:$0x3f]  ;;  %v11123_v41 = vld [vmem:[#allocation2 + $0x138] sm:$0x3]  ;;  %v11124_v21 = vld [vmem:[#allocation2 + $0x140] sm:$0xfc] }
 0x763   : > { %18444 = vmatprep.subr.bf16.mxu0 %v20409_v30  ;;  %v10792_v58 = vrot.slane %v10726_v7, 6  ;;  %v10823_v7 = vsel %vm9626_vm6, %v10821_v9, %v10822_v6  ;;  %v11194_v6 = vrot.slane %v11123_v41, 2 }
 0x765   : > { %v10793_v54 = vsel %vm9626_vm6, %v10791_v47, %v10792_v58  ;;  %v10749_v47 = vld [vmem:[#allocation2 + $0x160] sm:$0xc0]  ;;  %v10750_v58 = vld [vmem:[#allocation2 + $0x168] sm:$0x3f] }
 0x766   : > { %18445 = vmatpush3.bf16.msra.mxu0 %v20409_v30  ;;  %v20413_v30 = vld [vmem:[#allocation6 + $0x608] sm:$0xff]   ;;  %v10828_v31 = vrot.slane %v10750_v58, 6  ;;  %v11126_v58 = vld [vmem:[#allocation2 + $0x150] sm:$0xfc] }
 0x767   : > { %18446 = vmatprep.subr.bf16.mxu0 %v20410_v19 }
 0x769   : > { %18415 = vmatmul.mubr.bf16.gmra.mrb[44].mxu0 %v10422_v33  ;;  %v10796_v33 = vsel %vm9626_vm6, %v10794_v16, %v10795_v11  ;;  %v11108_v16 = vld [vmem:[#allocation2 + $0xc0] sm:$0xfc]  ;;  %v11109_v11 = vld [vmem:[#allocation2 + $0xc8] sm:$0x3] }
 0x76a   : > { %18418 = vmatprep.mubr.bf16.mxu0 %v10425_v18  ;;  %18447 = vmatpush3.bf16.msra.mxu0 %v20410_v19  ;;  %v20414_v19 = vld [vmem:[#allocation6 + $0x610] sm:$0xff]   ;;  %v10799_v18 = vsel %vm9626_vm6, %v10797_v26, %v10798_v32  ;;  %v10830_v26 = vrot.slane %v10751_v10, 6 }
 0x76b   : > { %18448 = vmatprep.subr.bf16.mxu0 %v20411_v62 }
 0x76e   : > { %18449 = vmatpush3.bf16.msra.mxu0 %v20411_v62  ;;  %v20415_v62 = vld [vmem:[#allocation6 + $0x618] sm:$0xff]  }
 0x76f   : > { %18482 = vmatprep.subr.bf16.mxu0 %v20412_v57 }
 0x771   : > { %18419 = vmatmul.mubr.bf16.gmra.mrb[48].mxu0 %v10428_v1  ;;  %v20417_v1 = vld [vmem:[#allocation6 + $0x628] sm:$0xff]  }
 0x772   : > { %18422 = vmatprep.mubr.bf16.mxu0 %v10431_v42  ;;  %v10802_v42 = vsel %vm9626_vm6, %v10800_v50, %v10801_v37  ;;  %v11175_v50 = vrot.slane %v11110_v39, 2  ;;  %v11176_v37 = vrot.slane %v11111_v53, 2 }
 0x779   : > { %18423 = vmatmul.mubr.bf16.gmra.mrb[52].mxu0 %v10434_v0  ;;  %v10809_v0 = vrot.slane %v10737_v56, 6  ;;  %v11116_v56 = vld [vmem:[#allocation2 + $0x100] sm:$0xfc] }
 0x77a   : > { %18426 = vmatprep.mubr.bf16.mxu0 %v10437_v63  ;;  %v10810_v63 = vrot.slane %v10738_v59, 6  ;;  %v11117_v59 = vld [vmem:[#allocation2 + $0x108] sm:$0x3] }
 0x77c   : > { %v10811_v4 = vsel %vm9626_vm6, %v10809_v0, %v10810_v63  ;;  %v11184_v0 = vrot.slane %v11116_v56, 2  ;;  %v11185_v63 = vrot.slane %v11117_v59, 2  ;;  %v11138_v59 = vld [vmem:[#allocation2 + $0x1b0] sm:$0xfc] }
 0x781   : > { %18427 = vmatmul.mubr.bf16.gmra.mrb[56].mxu0 %v10440_v40  ;;  %v10812_v40 = vrot.slane %v10739_v61, 6  ;;  %v11118_v61 = vld [vmem:[#allocation2 + $0x110] sm:$0xfc] }
 0x782   : > { %18430 = vmatprep.mubr.bf16.mxu0 %v10443_v45  ;;  %v10813_v45 = vrot.slane %v10740_v3, 6  ;;  %v11119_v3 = vld [vmem:[#allocation2 + $0x118] sm:$0x3] }
 0x784   : > { %v10814_v48 = vsel %vm9626_vm6, %v10812_v40, %v10813_v45  ;;  %v11187_v40 = vrot.slane %v11118_v61, 2  ;;  %v11188_v45 = vrot.slane %v11119_v3, 2  ;;  %v11496_v61 = vld [vmem:[#allocation2 + $0xd0] sm:$0xf0] }
 0x789   : > { %18431 = vmatmul.mubr.bf16.gmra.mrb[60].mxu0 %v10446_v46  ;;  %v10818_v46 = vrot.slane %v10743_v23, 6  ;;  %v11192_v23 = vsel %vm8917_vm5, %v11190_v35, %v11191_v2  ;;  %v12560_v35 = vld [vmem:[#allocation2] sm:$0xf0]  ;;  %v11561_v2 = vrot.slane %v11496_v61, 4 }
 0x78a   : > { %18450 = vmatprep.mubr.bf16.mxu0 %v10787_v34  ;;  %v10819_v34 = vrot.slane %v10744_v29, 6  ;;  %v11122_v29 = vld [vmem:[#allocation2 + $0x130] sm:$0xfc]  ;;  %v20444_v61 = vld [vmem:[#allocation6 + $0x6c0] sm:$0xff]  }
 0x78b   : > { %v11193_v9 = vrot.slane %v11122_v29, 2 }
 0x78c   : > { %v10820_v22 = vsel %vm9626_vm6, %v10818_v46, %v10819_v34  ;;  %v11125_v46 = vld [vmem:[#allocation2 + $0x148] sm:$0x3]  ;;  %v20426_v34 = vld [vmem:[#allocation6 + $0x670] sm:$0xff]  }
 0x791   : > { %18451 = vmatmul.mubr.bf16.vlgmr.msra.gmra.mrb[32].mxu0 %v10790_v27  ;;  %v10825_v27 = vrot.slane %v10748_v5, 6  ;;  %v11195_v5 = vsel %vm8917_vm5, %v11193_v9, %v11194_v6 }
 0x792   : > { %18454 = vmatprep.mubr.bf16.mxu0 %v10793_v54  ;;  %18483 = vmatpush3.bf16.msra.mxu0 %v20412_v57  ;;  %v20416_v57 = vld [vmem:[#allocation6 + $0x620] sm:$0xff]   ;;  %v10827_v54 = vrot.slane %v10749_v47, 6 }
 0x793   : > { %18484 = vmatprep.subr.bf16.mxu0 %v20413_v30 }
 0x794   : > { %v10829_v17 = vsel %vm9626_vm6, %v10827_v54, %v10828_v31  ;;  %v11129_v54 = vld [vmem:[#allocation2 + $0x168] sm:$0x3]  ;;  %v22422_v31 = vld [vmem:[#allocation6 + $0x680] sm:$0xff]  }
 0x796   : > { %18485 = vmatpush3.bf16.msra.mxu0 %v20413_v30  ;;  %v10824_v30 = vrot.slane %v10747_v36, 6  ;;  %v20427_v36 = vld [vmem:[#allocation6 + $0x678] sm:$0xff]  }
 0x797   : > { %18486 = vmatprep.subr.bf16.mxu0 %v20414_v19 }
 0x798   : > { %v10826_v60 = vsel %vm9626_vm6, %v10824_v30, %v10825_v27  ;;  %v11127_v30 = vld [vmem:[#allocation2 + $0x158] sm:$0x3]  ;;  %v11128_v27 = vld [vmem:[#allocation2 + $0x160] sm:$0xfc] }
 0x799   : > { %18455 = vmatmul.mubr.bf16.gmra.mrb[36].mxu0 %v10796_v33  ;;  %v11173_v33 = vrot.slane %v11109_v11, 2  ;;  %v11202_v10 = vrot.slane %v11128_v27, 2  ;;  %v11132_v11 = vld [vmem:[#allocation2 + $0x180] sm:$0xfc] }
 0x79a   : > { %18458 = vmatprep.mubr.bf16.mxu0 %v10799_v18  ;;  %18487 = vmatpush3.bf16.msra.mxu0 %v20414_v19  ;;  %v10752_v19 = vld [vmem:[#allocation2 + $0x178] sm:$0x3f] }
 0x79b   : > { %18488 = vmatprep.subr.bf16.mxu0 %v20415_v62  ;;  %v10831_v32 = vrot.slane %v10752_v19, 6  ;;  %v11203_v19 = vrot.slane %v11129_v54, 2 }
 0x79d   : > { %v10832_v18 = vsel %vm9626_vm6, %v10830_v26, %v10831_v32  ;;  %v11133_v26 = vld [vmem:[#allocation2 + $0x188] sm:$0x3]  ;;  %v11204_v32 = vsel %vm8917_vm5, %v11202_v10, %v11203_v19  ;;  %v20440_v10 = vld [vmem:[#allocation6 + $0x720] sm:$0xff]   ;;  %v20431_v19 = vld [vmem:[#allocation6 + $0x698] sm:$0xff]  }
 0x79e   : > { %18489 = vmatpush3.bf16.msra.mxu0 %v20415_v62  ;;  %v11172_v62 = vrot.slane %v11108_v16, 2 }
 0x79f   : > { %18490 = vmatprep.subr.bf16.mxu0 %v20416_v57 }
 0x7a0   : > { %v11174_v14 = vsel %vm8917_vm5, %v11172_v62, %v11173_v33  ;;  %v11130_v62 = vld [vmem:[#allocation2 + $0x170] sm:$0xfc]  ;;  %v11131_v33 = vld [vmem:[#allocation2 + $0x178] sm:$0x3] }
 0x7a1   : > { %18459 = vmatmul.mubr.bf16.gmra.mrb[40].mxu0 %v10802_v42  ;;  %v11177_v42 = vsel %vm8917_vm5, %v11175_v50, %v11176_v37  ;;  %v11205_v39 = vrot.slane %v11130_v62, 2  ;;  %v11206_v53 = vrot.slane %v11131_v33, 2  ;;  %v11135_v50 = vld [vmem:[#allocation2 + $0x198] sm:$0x3]  ;;  %v11506_v62 = vld [vmem:[#allocation2 + $0x120] sm:$0xf0] }
 0x7a2   : > { %18462 = vmatprep.mubr.bf16.mxu0 %v10805_v51  ;;  %18491 = vmatpush3.bf16.msra.mxu0 %v20416_v57  ;;  %v11113_v57 = vld [vmem:[#allocation2 + $0xe8] sm:$0x3] }
 0x7a3   : > { %18492 = vmatprep.subr.bf16.mxu0 %v20417_v1  ;;  %v11179_v55 = vrot.slane %v11113_v57, 2  ;;  %v11134_v57 = vld [vmem:[#allocation2 + $0x190] sm:$0xfc]  ;;  %v11207_v37 = vsel %vm8917_vm5, %v11205_v39, %v11206_v53  ;;  %v11507_v33 = vld [vmem:[#allocation2 + $0x128] sm:$0xf]  ;;  %v11576_v53 = vrot.slane %v11506_v62, 4 }
 0x7a5   : > { %v11180_v51 = vsel %vm8917_vm5, %v11178_v20, %v11179_v55  ;;  %v11136_v20 = vld [vmem:[#allocation2 + $0x1a0] sm:$0xfc]  ;;  %v11137_v55 = vld [vmem:[#allocation2 + $0x1a8] sm:$0x3] }
 0x7a6   : > { %18493 = vmatpush3.bf16.msra.mxu0 %v20417_v1  ;;  %v20421_v1 = vld [vmem:[#allocation6 + $0x648] sm:$0xff]   ;;  %v11215_v38 = vrot.slane %v11137_v55, 2  ;;  %v11509_v55 = vld [vmem:[#allocation2 + $0x138] sm:$0xf] }
 0x7a7   : > { %18494 = vmatprep.subr.bf16.mxu0 %v20418_v13 }
 0x7a9   : > { %18463 = vmatmul.mubr.bf16.gmra.mrb[44].mxu0 %v10808_v24  ;;  %v11183_v24 = vsel %vm8917_vm5, %v11181_v25, %v11182_v28  ;;  %v11217_v25 = vrot.slane %v11138_v59, 2  ;;  %v12564_v59 = vld [vmem:[#allocation2 + $0x20] sm:$0xf0] }
 0x7aa   : > { %18466 = vmatprep.mubr.bf16.mxu0 %v10811_v4  ;;  %18495 = vmatpush3.bf16.msra.mxu0 %v20418_v13  ;;  %v20422_v13 = vld [vmem:[#allocation6 + $0x650] sm:$0xff]   ;;  %v11186_v4 = vsel %vm8917_vm5, %v11184_v0, %v11185_v63  ;;  %v11494_v0 = vld [vmem:[#allocation2 + $0xc0] sm:$0xf0]  ;;  %v11495_v63 = vld [vmem:[#allocation2 + $0xc8] sm:$0xf] }
 0x7ab   : > { %18496 = vmatprep.subr.bf16.mxu0 %v20419_v15 }
 0x7ae   : > { %18497 = vmatpush3.bf16.msra.mxu0 %v20419_v15  ;;  %v20423_v15 = vld [vmem:[#allocation6 + $0x658] sm:$0xff]  }
 0x7af   : > { %18530 = vmatprep.subr.bf16.mxu0 %v20420_v43 }
 0x7b1   : > { %18467 = vmatmul.mubr.bf16.gmra.mrb[48].mxu0 %v10814_v48  ;;  %v20425_v48 = vld [vmem:[#allocation6 + $0x668] sm:$0xff]  }
 0x7b2   : > { %18470 = vmatprep.mubr.bf16.mxu0 %v10817_v44  ;;  %v11189_v44 = vsel %vm8917_vm5, %v11187_v40, %v11188_v45  ;;  %v11498_v40 = vld [vmem:[#allocation2 + $0xe0] sm:$0xf0]  ;;  %v11499_v45 = vld [vmem:[#allocation2 + $0xe8] sm:$0xf] }
 0x7b3   : > { %v11564_v29 = vrot.slane %v11498_v40, 4  ;;  %v11565_v41 = vrot.slane %v11499_v45, 4 }
 0x7b9   : > { %18471 = vmatmul.mubr.bf16.gmra.mrb[52].mxu0 %v10820_v22  ;;  %v11196_v22 = vrot.slane %v11124_v21, 2  ;;  %v20438_v21 = vld [vmem:[#allocation6 + $0x710] sm:$0xff]  }
 0x7ba   : > { %18474 = vmatprep.mubr.bf16.mxu0 %v10823_v7  ;;  %v11197_v7 = vrot.slane %v11125_v46, 2 }
 0x7bc   : > { %v11198_v47 = vsel %vm8917_vm5, %v11196_v22, %v11197_v7  ;;  %v11566_v22 = vsel %vm832_vm0, %v11564_v29, %v11565_v41  ;;  %v11500_v7 = vld [vmem:[#allocation2 + $0xf0] sm:$0xf0] }
 0x7bd   : > { %v11567_v27 = vrot.slane %v11500_v7, 4  ;;  %v11516_v7 = vld [vmem:[#allocation2 + $0x170] sm:$0xf0] }
 0x7c1   : > { %18475 = vmatmul.mubr.bf16.gmra.mrb[56].mxu0 %v10826_v60  ;;  %v11199_v60 = vrot.slane %v11126_v58, 2  ;;  %v11503_v58 = vld [vmem:[#allocation2 + $0x108] sm:$0xf] }
 0x7c2   : > { %18478 = vmatprep.mubr.bf16.mxu0 %v10829_v17  ;;  %v11200_v17 = vrot.slane %v11127_v30, 2  ;;  %v20430_v30 = vld [vmem:[#allocation6 + $0x690] sm:$0xff]  }
 0x7c4   : > { %v11201_v16 = vsel %vm8917_vm5, %v11199_v60, %v11200_v17  ;;  %v11571_v17 = vrot.slane %v11503_v58, 4  ;;  %v11591_v58 = vrot.slane %v11516_v7, 4 }
 0x7c9   : > { %18479 = vmatmul.mubr.bf16.gmra.mrb[60].mxu0 %v10832_v18  ;;  %v11208_v18 = vrot.slane %v11132_v11, 2  ;;  %v11504_v11 = vld [vmem:[#allocation2 + $0x110] sm:$0xf0] }
 0x7ca   : > { %18498 = vmatprep.mubr.bf16.mxu0 %v11174_v14  ;;  %v11209_v14 = vrot.slane %v11133_v26, 2  ;;  %v11505_v26 = vld [vmem:[#allocation2 + $0x118] sm:$0xf] }
 0x7cb   : > { %v11574_v39 = vrot.slane %v11505_v26, 4 }
 0x7cc   : > { %v11210_v52 = vsel %vm8917_vm5, %v11208_v18, %v11209_v14  ;;  %v20432_v18 = vld [vmem:[#allocation6 + $0x6a0] sm:$0xff]   ;;  %v11573_v14 = vrot.slane %v11504_v11, 4 }
 0x7d1   : > { %18499 = vmatmul.mubr.bf16.vlgmr.msra.gmra.mrb[32].mxu0 %v11177_v42  ;;  %v11212_v42 = vrot.slane %v11135_v50, 2  ;;  %v20433_v50 = vld [vmem:[#allocation6 + $0x6a8] sm:$0xff]  }
 0x7d2   : > { %18502 = vmatprep.mubr.bf16.mxu0 %v11180_v51  ;;  %18531 = vmatpush3.bf16.msra.mxu0 %v20420_v43  ;;  %v20424_v43 = vld [vmem:[#allocation6 + $0x660] sm:$0xff]   ;;  %v11214_v51 = vrot.slane %v11136_v20, 2  ;;  %v11508_v20 = vld [vmem:[#allocation2 + $0x130] sm:$0xf0] }
 0x7d3   : > { %18532 = vmatprep.subr.bf16.mxu0 %v20421_v1 }
 0x7d4   : > { %v11216_v56 = vsel %vm8917_vm5, %v11214_v51, %v11215_v38  ;;  %v20443_v51 = vld [vmem:[#allocation6 + $0x738] sm:$0xff]   ;;  %v12562_v38 = vld [vmem:[#allocation2 + $0x10] sm:$0xf0] }
 0x7d6   : > { %18533 = vmatpush3.bf16.msra.mxu0 %v20421_v1  ;;  %v11211_v1 = vrot.slane %v11134_v57, 2  ;;  %v20442_v57 = vld [vmem:[#allocation6 + $0x730] sm:$0xff]  }
 0x7d7   : > { %18534 = vmatprep.subr.bf16.mxu0 %v20422_v13 }
 0x7d8   : > { %v11213_v12 = vsel %vm8917_vm5, %v11211_v1, %v11212_v42  ;;  %v11510_v1 = vld [vmem:[#allocation2 + $0x140] sm:$0xf0] }
 0x7d9   : > { %18503 = vmatmul.mubr.bf16.gmra.mrb[36].mxu0 %v11183_v24  ;;  %v11559_v24 = vrot.slane %v11495_v63, 4  ;;  %v12627_v63 = vrot.slane %v12562_v38, 4 }
 0x7da   : > { %18506 = vmatprep.mubr.bf16.mxu0 %v11186_v4  ;;  %18535 = vmatpush3.bf16.msra.mxu0 %v20422_v13  ;;  %v11139_v13 = vld [vmem:[#allocation2 + $0x1b8] sm:$0x3] }
 0x7db   : > { %18536 = vmatprep.subr.bf16.mxu0 %v20423_v15  ;;  %v11218_v28 = vrot.slane %v11139_v13, 2  ;;  %v12565_v13 = vld [vmem:[#allocation2 + $0x28] sm:$0xf] }
 0x7dd   : > { %v11219_v4 = vsel %vm8917_vm5, %v11217_v25, %v11218_v28  ;;  %v20434_v25 = vld [vmem:[#allocation6 + $0x6b0] sm:$0xff]   ;;  %v11579_v28 = vrot.slane %v11508_v20, 4 }
 0x7de   : > { %18537 = vmatpush3.bf16.msra.mxu0 %v20423_v15  ;;  %v11558_v15 = vrot.slane %v11494_v0, 4  ;;  %v11580_v0 = vrot.slane %v11509_v55, 4  ;;  %v11882_v55 = vld [vmem:[#allocation2 + $0xd0] sm:$0xc0] }
 0x7df   : > { %18538 = vmatprep.subr.bf16.mxu0 %v20424_v43  ;;  %v11947_v38 = vrot.slane %v11882_v55, 6 }
 0x7e0   : > { %v11560_v3 = vsel %vm832_vm0, %v11558_v15, %v11559_v24  ;;  %v11582_v24 = vrot.slane %v11510_v1, 4  ;;  %v11883_v1 = vld [vmem:[#allocation2 + $0xd8] sm:$0x3f] }
 0x7e1   : > { %18507 = vmatmul.mubr.bf16.gmra.mrb[40].mxu0 %v11189_v44  ;;  %v12561_v44 = vld [vmem:[#allocation2 + $0x8] sm:$0xf] }
 0x7e2   : > { %18510 = vmatprep.mubr.bf16.mxu0 %v11192_v23  ;;  %18539 = vmatpush3.bf16.msra.mxu0 %v20424_v43  ;;  %v20437_v43 = vld [vmem:[#allocation6 + $0x708] sm:$0xff]   ;;  %v12624_v23 = vrot.slane %v12560_v35, 4  ;;  %v12625_v46 = vrot.slane %v12561_v44, 4  ;;  %v11512_v35 = vld [vmem:[#allocation2 + $0x150] sm:$0xf0] }
 0x7e3   : > { %18540 = vmatprep.subr.bf16.mxu0 %v20425_v48  ;;  %18628 = vmatprep.subr.bf16.mxu1 %v20437_v43  ;;  %v11514_v44 = vld [vmem:[#allocation2 + $0x160] sm:$0xf0]  ;;  %v11585_v29 = vrot.slane %v11512_v35, 4  ;;  %v11893_v35 = vld [vmem:[#allocation2 + $0x128] sm:$0x3f] }
 0x7e4   : > { %v12626_v9 = vsel %vm832_vm0, %v12624_v23, %v12625_v46  ;;  %18629 = vmatpush3.bf16.msra.mxu1 %v20437_v43  ;;  %v11581_v43 = vsel %vm832_vm0, %v11579_v28, %v11580_v0  ;;  %v11515_v23 = vld [vmem:[#allocation2 + $0x168] sm:$0xf]  ;;  %v11886_v28 = vld [vmem:[#allocation2 + $0xf0] sm:$0xc0]  ;;  %v11887_v0 = vld [vmem:[#allocation2 + $0xf8] sm:$0x3f] }
 0x7e5   : > { %18642 = vmatprep.mubr.bf16.mxu1 %v12626_v9  ;;  %18630 = vmatprep.subr.bf16.mxu1 %v20438_v21  ;;  %v11589_v46 = vrot.slane %v11515_v23, 4  ;;  %v11518_v9 = vld [vmem:[#allocation2 + $0x180] sm:$0xf0]  ;;  %v11963_v23 = vrot.slane %v11893_v35, 6  ;;  %v12571_v35 = vld [vmem:[#allocation2 + $0x58] sm:$0xf] }
 0x7e6   : > { %18541 = vmatpush3.bf16.msra.mxu0 %v20425_v48  ;;  %v11562_v48 = vrot.slane %v11497_v8, 4  ;;  %v12631_v8 = vrot.slane %v12565_v13, 4 }
 0x7e7   : > { %18542 = vmatprep.subr.bf16.mxu0 %v20426_v34 }
 0x7e8   : > { %v11563_v6 = vsel %vm832_vm0, %v11561_v2, %v11562_v48  ;;  %18631 = vmatpush3.bf16.msra.mxu1 %v20438_v21  ;;  %v11513_v2 = vld [vmem:[#allocation2 + $0x158] sm:$0xf]  ;;  %v11588_v21 = vrot.slane %v11514_v44, 4 }
 0x7e9   : > { %18511 = vmatmul.mubr.bf16.gmra.mrb[44].mxu0 %v11195_v5  ;;  %v20439_v5 = vld [vmem:[#allocation6 + $0x718] sm:$0xff]   ;;  %v11586_v41 = vrot.slane %v11513_v2, 4 }
 0x7ea   : > { %18514 = vmatprep.mubr.bf16.mxu0 %v11198_v47  ;;  %18543 = vmatpush3.bf16.msra.mxu0 %v20426_v34  ;;  %v20429_v34 = vld [vmem:[#allocation6 + $0x688] sm:$0xff]   ;;  %v11502_v47 = vld [vmem:[#allocation2 + $0x100] sm:$0xf0] }
 0x7eb   : > { %18544 = vmatprep.subr.bf16.mxu0 %v20427_v36  ;;  %v11570_v60 = vrot.slane %v11502_v47, 4  ;;  %18632 = vmatprep.subr.bf16.mxu1 %v20439_v5 }
 0x7ec   : > { %18633 = vmatpush3.bf16.msra.mxu1 %v20439_v5  ;;  %v11594_v5 = vrot.slane %v11518_v9, 4  ;;  %v11897_v9 = vld [vmem:[#allocation2 + $0x148] sm:$0x3f] }
 0x7ed   : > { %18634 = vmatprep.subr.bf16.mxu1 %v20440_v10 }
 0x7ee   : > { %18545 = vmatpush3.bf16.msra.mxu0 %v20427_v36  ;;  %v11501_v36 = vld [vmem:[#allocation2 + $0xf8] sm:$0xf] }
 0x7ef   : > { %18578 = vmatprep.subr.bf16.mxu0 %v22422_v31  ;;  %v11568_v54 = vrot.slane %v11501_v36, 4  ;;  %v11517_v36 = vld [vmem:[#allocation2 + $0x178] sm:$0xf] }
 0x7f0   : > { %18635 = vmatpush3.bf16.msra.mxu1 %v20440_v10  ;;  %v11522_v10 = vld [vmem:[#allocation2 + $0x1a0] sm:$0xf0] }
 0x7f1   : > { %18515 = vmatmul.mubr.bf16.gmra.mrb[48].mxu0 %v11201_v16  ;;  %v11569_v16 = vsel %vm832_vm0, %v11567_v27, %v11568_v54  ;;  %v11520_v54 = vld [vmem:[#allocation2 + $0x190] sm:$0xf0]  ;;  %v11600_v11 = vrot.slane %v11522_v10, 4 }
 0x7f2   : > { %18518 = vmatprep.mubr.bf16.mxu0 %v11204_v32  ;;  %v20441_v32 = vld [vmem:[#allocation6 + $0x728] sm:$0xff]  }
 0x7f3   : > { %18636 = vmatprep.subr.bf16.mxu1 %v20441_v32 }
 0x7f4   : > { %18637 = vmatpush3.bf16.msra.mxu1 %v20441_v32 }
 0x7f5   : > { %18638 = vmatprep.subr.bf16.mxu1 %v20442_v57 }
 0x7f8   : > { %18639 = vmatpush3.bf16.msra.mxu1 %v20442_v57 }
 0x7f9   : > { %18519 = vmatmul.mubr.bf16.gmra.mrb[52].mxu0 %v11207_v37  ;;  %v11575_v37 = vsel %vm832_vm0, %v11573_v14, %v11574_v39  ;;  %18640 = vmatprep.subr.bf16.mxu1 %v20443_v51 }
 0x7fa   : > { %18522 = vmatprep.mubr.bf16.mxu0 %v11210_v52  ;;  %v11577_v52 = vrot.slane %v11507_v33, 4  ;;  %v11524_v33 = vld [vmem:[#allocation2 + $0x1b0] sm:$0xf0] }
 0x7fb   : > { %v11603_v14 = vrot.slane %v11524_v33, 4 }
 0x7fc   : > { %v11578_v42 = vsel %vm832_vm0, %v11576_v53, %v11577_v52  ;;  %18641 = vmatpush3.bf16.msra.mxu1 %v20443_v51  ;;  %v11880_v53 = vld [vmem:[#allocation2 + $0xc0] sm:$0xc0]  ;;  %v11881_v52 = vld [vmem:[#allocation2 + $0xc8] sm:$0x3f] }
 0x7fd   : > { %18674 = vmatprep.subr.bf16.mxu1 %v20444_v61  ;;  %v11944_v57 = vrot.slane %v11880_v53, 6  ;;  %v11885_v51 = vld [vmem:[#allocation2 + $0xe8] sm:$0x3f] }
 0x801   : > { %18523 = vmatmul.mubr.bf16.gmra.mrb[56].mxu0 %v11213_v12  ;;  %v12563_v12 = vld [vmem:[#allocation2 + $0x18] sm:$0xf] }
 0x802   : > { %18526 = vmatprep.mubr.bf16.mxu0 %v11216_v56  ;;  %v11511_v56 = vld [vmem:[#allocation2 + $0x148] sm:$0xf]  ;;  %v12628_v15 = vrot.slane %v12563_v12, 4  ;;  %v11948_v12 = vrot.slane %v11883_v1, 6 }
 0x804   : > { %v12629_v40 = vsel %vm832_vm0, %v12627_v63, %v12628_v15  ;;  %v11949_v13 = vsel %vm9626_vm6, %v11947_v38, %v11948_v12  ;;  %v11888_v63 = vld [vmem:[#allocation2 + $0x100] sm:$0xc0]  ;;  %v11889_v15 = vld [vmem:[#allocation2 + $0x108] sm:$0x3f] }
 0x805   : > { %18643 = vmatmul.mubr.bf16.vlgmr.msra.gmra.mrb[48].mxu1 %v12629_v40  ;;  %v11891_v40 = vld [vmem:[#allocation2 + $0x118] sm:$0x3f] }
 0x806   : > { %18675 = vmatpush3.bf16.msra.mxu1 %v20444_v61  ;;  %v11956_v61 = vrot.slane %v11888_v63, 6  ;;  %v12567_v63 = vld [vmem:[#allocation2 + $0x38] sm:$0xf] }
 0x809   : > { %18527 = vmatmul.mubr.bf16.gmra.mrb[60].mxu0 %v11219_v4  ;;  %v11583_v4 = vrot.slane %v11511_v56, 4 }
 0x80a   : > { %18546 = vmatprep.mubr.bf16.mxu0 %v11560_v3  ;;  %v12630_v3 = vrot.slane %v12564_v59, 4  ;;  %v11951_v59 = vrot.slane %v11885_v51, 6 }
 0x80b   : > { %v11584_v45 = vsel %vm832_vm0, %v11582_v24, %v11583_v4  ;;  %v11953_v24 = vrot.slane %v11886_v28, 6  ;;  %v11954_v4 = vrot.slane %v11887_v0, 6  ;;  %v12566_v0 = vld [vmem:[#allocation2 + $0x30] sm:$0xf0] }
 0x80c   : > { %v12632_v48 = vsel %vm832_vm0, %v12630_v3, %v12631_v8  ;;  %v11957_v3 = vrot.slane %v11889_v15, 6  ;;  %v20445_v15 = vld [vmem:[#allocation6 + $0x6c8] sm:$0xff]  }
 0x80d   : > { %18646 = vmatprep.mubr.bf16.mxu1 %v12632_v48  ;;  %v11955_v8 = vsel %vm9626_vm6, %v11953_v24, %v11954_v4  ;;  %v11960_v48 = vrot.slane %v11891_v40, 6  ;;  %v12633_v24 = vrot.slane %v12566_v0, 4  ;;  %v12634_v4 = vrot.slane %v12567_v63, 4  ;;  %18676 = vmatprep.subr.bf16.mxu1 %v20445_v15 }
 0x80e   : > { %18677 = vmatpush3.bf16.msra.mxu1 %v20445_v15  ;;  %v12341_v15 = vld [vmem:[%s20908_s20 + $0x30] sm:$0xff] }
 0x811   : > { %18547 = vmatmul.mubr.bf16.vlgmr.msra.gmra.mrb[32].mxu0 %v11563_v6  ;;  %v11519_v6 = vld [vmem:[#allocation2 + $0x188] sm:$0xf] }
 0x812   : > { %18550 = vmatprep.mubr.bf16.mxu0 %v11566_v22  ;;  %18579 = vmatpush3.bf16.msra.mxu0 %v22422_v31  ;;  %v11572_v31 = vsel %vm832_vm0, %v11570_v60, %v11571_v17  ;;  %v11590_v22 = vsel %vm832_vm0, %v11588_v21, %v11589_v46  ;;  %v11595_v47 = vrot.slane %v11519_v6, 4  ;;  %v11521_v60 = vld [vmem:[#allocation2 + $0x198] sm:$0xf]  ;;  %v11894_v21 = vld [vmem:[#allocation2 + $0x130] sm:$0xc0] }
 0x813   : > { %18580 = vmatprep.subr.bf16.mxu0 %v20429_v34  ;;  %v11895_v46 = vld [vmem:[#allocation2 + $0x138] sm:$0x3f]  ;;  %v11965_v6 = vrot.slane %v11894_v21, 6 }
 0x814   : > { %v11596_v27 = vsel %vm832_vm0, %v11594_v5, %v11595_v47 }
 0x816   : > { %18581 = vmatpush3.bf16.msra.mxu0 %v20429_v34  ;;  %v11587_v34 = vsel %vm832_vm0, %v11585_v29, %v11586_v41 }
 0x817   : > { %18582 = vmatprep.subr.bf16.mxu0 %v20430_v30 }
 0x819   : > { %18551 = vmatmul.mubr.bf16.gmra.mrb[36].mxu0 %v11569_v16  ;;  %v11597_v16 = vrot.slane %v11520_v54, 4  ;;  %v11901_v54 = vld [vmem:[#allocation2 + $0x168] sm:$0x3f] }
 0x81a   : > { %18554 = vmatprep.mubr.bf16.mxu0 %v11572_v31  ;;  %18583 = vmatpush3.bf16.msra.mxu0 %v20430_v30  ;;  %v11592_v30 = vrot.slane %v11517_v36, 4  ;;  %v11598_v31 = vrot.slane %v11521_v60, 4  ;;  %v11969_v36 = vrot.slane %v11897_v9, 6  ;;  %v12574_v9 = vld [vmem:[#allocation2 + $0x70] sm:$0xf0] }
 0x81b   : > { %18584 = vmatprep.subr.bf16.mxu0 %v20431_v19 }
 0x81c   : > { %v11593_v17 = vsel %vm832_vm0, %v11591_v58, %v11592_v30  ;;  %v11599_v32 = vsel %vm832_vm0, %v11597_v16, %v11598_v31  ;;  %v11898_v58 = vld [vmem:[#allocation2 + $0x150] sm:$0xc0]  ;;  %v11899_v30 = vld [vmem:[#allocation2 + $0x158] sm:$0x3f]  ;;  %v11904_v31 = vld [vmem:[#allocation2 + $0x180] sm:$0xc0] }
 0x81d   : > { %v11971_v60 = vrot.slane %v11898_v58, 6  ;;  %v11980_v33 = vrot.slane %v11904_v31, 6  ;;  %v20449_v58 = vld [vmem:[#allocation6 + $0x6e8] sm:$0xff]  }
 0x81e   : > { %18585 = vmatpush3.bf16.msra.mxu0 %v20431_v19  ;;  %v11523_v19 = vld [vmem:[#allocation2 + $0x1a8] sm:$0xf] }
 0x81f   : > { %18586 = vmatprep.subr.bf16.mxu0 %v20432_v18  ;;  %v11601_v26 = vrot.slane %v11523_v19, 4  ;;  %v11975_v19 = vrot.slane %v11901_v54, 6  ;;  %v22473_v54 = vld [vmem:[#allocation6 + $0x740] sm:$0xff]  }
 0x821   : > { %18555 = vmatmul.mubr.bf16.gmra.mrb[40].mxu0 %v11575_v37  ;;  %v11602_v62 = vsel %vm832_vm0, %v11600_v11, %v11601_v26  ;;  %v11905_v11 = vld [vmem:[#allocation2 + $0x188] sm:$0x3f] }
 0x822   : > { %18558 = vmatprep.mubr.bf16.mxu0 %v11578_v42  ;;  %18587 = vmatpush3.bf16.msra.mxu0 %v20432_v18  ;;  %v11525_v18 = vld [vmem:[#allocation2 + $0x1b8] sm:$0xf]  ;;  %v11884_v42 = vld [vmem:[#allocation2 + $0xe0] sm:$0xc0] }
 0x823   : > { %18588 = vmatprep.subr.bf16.mxu0 %v20433_v50  ;;  %v11604_v39 = vrot.slane %v11525_v18, 4  ;;  %v11950_v56 = vrot.slane %v11884_v42, 6  ;;  %v11981_v18 = vrot.slane %v11905_v11, 6 }
 0x825   : > { %v11605_v37 = vsel %vm832_vm0, %v11603_v14, %v11604_v39  ;;  %v11982_v53 = vsel %vm9626_vm6, %v11980_v33, %v11981_v18 }
 0x826   : > { %18589 = vmatpush3.bf16.msra.mxu0 %v20433_v50  ;;  %v11945_v50 = vrot.slane %v11881_v52, 6  ;;  %v11906_v52 = vld [vmem:[#allocation2 + $0x190] sm:$0xc0] }
 0x827   : > { %18590 = vmatprep.subr.bf16.mxu0 %v20434_v25  ;;  %v11983_v55 = vrot.slane %v11906_v52, 6 }
 0x828   : > { %v11946_v20 = vsel %vm9626_vm6, %v11944_v57, %v11945_v50  ;;  %v11907_v57 = vld [vmem:[#allocation2 + $0x198] sm:$0x3f] }
 0x829   : > { %18559 = vmatmul.mubr.bf16.gmra.mrb[44].mxu0 %v11581_v43  ;;  %v11890_v43 = vld [vmem:[#allocation2 + $0x110] sm:$0xc0]  ;;  %v11984_v1 = vrot.slane %v11907_v57, 6  ;;  %v12338_v57 = vld [vmem:[%s20908_s20 + $0x18] sm:$0xff] }
 0x82a   : > { %18562 = vmatprep.mubr.bf16.mxu0 %v11584_v45  ;;  %18591 = vmatpush3.bf16.msra.mxu0 %v20434_v25  ;;  %v11952_v25 = vsel %vm9626_vm6, %v11950_v56, %v11951_v59  ;;  %v11892_v45 = vld [vmem:[#allocation2 + $0x120] sm:$0xc0]  ;;  %v11959_v2 = vrot.slane %v11890_v43, 6  ;;  %v11910_v56 = vld [vmem:[#allocation2 + $0x1b0] sm:$0xc0] }
 0x82b   : > { %18592 = vmatprep.subr.bf16.mxu0 %v20435_v49  ;;  %v11962_v44 = vrot.slane %v11892_v45, 6  ;;  %v11985_v38 = vsel %vm9626_vm6, %v11983_v55, %v11984_v1  ;;  %v11911_v59 = vld [vmem:[#allocation2 + $0x1b8] sm:$0x3f]  ;;  %v12570_v45 = vld [vmem:[#allocation2 + $0x50] sm:$0xf0] }
 0x82c   : > { %v11961_v29 = vsel %vm9626_vm6, %v11959_v2, %v11960_v48  ;;  %v20446_v2 = vld [vmem:[#allocation6 + $0x6d0] sm:$0xff]   ;;  %v12639_v48 = vrot.slane %v12570_v45, 4 }
 0x82d   : > { %v11964_v41 = vsel %vm9626_vm6, %v11962_v44, %v11963_v23  ;;  %v12640_v44 = vrot.slane %v12571_v35, 4  ;;  %18678 = vmatprep.subr.bf16.mxu1 %v20446_v2  ;;  %v12336_v55 = vld [vmem:[%s20908_s20 + $0x8] sm:$0xff] }
 0x82e   : > { %18593 = vmatpush3.bf16.msra.mxu0 %v20435_v49  ;;  %v11958_v49 = vsel %vm9626_vm6, %v11956_v61, %v11957_v3  ;;  %v12635_v61 = vsel %vm832_vm0, %v12633_v24, %v12634_v4  ;;  %v12568_v3 = vld [vmem:[#allocation2 + $0x40] sm:$0xf0]  ;;  %18679 = vmatpush3.bf16.msra.mxu1 %v20446_v2  ;;  %v12340_v2 = vld [vmem:[%s20908_s20 + $0x28] sm:$0xff] }
 0x82f   : > { %18647 = vmatmul.mubr.bf16.gmra.mrb[52].mxu1 %v12635_v61  ;;  %v12641_v23 = vsel %vm832_vm0, %v12639_v48, %v12640_v44 }
 0x831   : > { %18563 = vmatmul.mubr.bf16.gmra.mrb[48].mxu0 %v11587_v34  ;;  %v11896_v34 = vld [vmem:[#allocation2 + $0x140] sm:$0xc0] }
 0x832   : > { %18566 = vmatprep.mubr.bf16.mxu0 %v11590_v22  ;;  %v11966_v22 = vrot.slane %v11895_v46, 6  ;;  %v11968_v7 = vrot.slane %v11896_v34, 6 }
 0x834   : > { %v11967_v5 = vsel %vm9626_vm6, %v11965_v6, %v11966_v22  ;;  %v11970_v47 = vsel %vm9626_vm6, %v11968_v7, %v11969_v36  ;;  %v12575_v6 = vld [vmem:[#allocation2 + $0x78] sm:$0xf]  ;;  %v12645_v7 = vrot.slane %v12574_v9, 4 }
 0x835   : > { %v20447_v22 = vld [vmem:[#allocation6 + $0x6d8] sm:$0xff]   ;;  %v12646_v36 = vrot.slane %v12575_v6, 4 }
 0x836   : > { %18680 = vmatprep.subr.bf16.mxu1 %v20447_v22 }
 0x837   : > { %18681 = vmatpush3.bf16.msra.mxu1 %v20447_v22 }
 0x839   : > { %18567 = vmatmul.mubr.bf16.gmra.mrb[52].mxu0 %v11593_v17  ;;  %v11972_v17 = vrot.slane %v11899_v30, 6  ;;  %v20450_v30 = vld [vmem:[#allocation6 + $0x6f0] sm:$0xff]  }
 0x83a   : > { %18570 = vmatprep.mubr.bf16.mxu0 %v11596_v27  ;;  %v11900_v27 = vld [vmem:[#allocation2 + $0x160] sm:$0xc0] }
 0x83b   : > { %v11974_v10 = vrot.slane %v11900_v27, 6  ;;  %v11973_v16 = vsel %vm9626_vm6, %v11971_v60, %v11972_v17  ;;  %v20451_v27 = vld [vmem:[#allocation6 + $0x6f8] sm:$0xff]   ;;  %v22476_v60 = vld [vmem:[#allocation8 + $0x2] ss:$0 sm:$0xff] }
 0x83d   : > { %v11976_v26 = vsel %vm9626_vm6, %v11974_v10, %v11975_v19 }
 0x841   : > { %18571 = vmatmul.mubr.bf16.gmra.mrb[56].mxu0 %v11599_v32  ;;  %v11902_v32 = vld [vmem:[#allocation2 + $0x170] sm:$0xc0] }
 0x842   : > { %18574 = vmatprep.mubr.bf16.mxu0 %v11602_v62  ;;  %v11903_v62 = vld [vmem:[#allocation2 + $0x178] sm:$0x3f]  ;;  %v11977_v14 = vrot.slane %v11902_v32, 6 }
 0x843   : > { %v11978_v39 = vrot.slane %v11903_v62, 6  ;;  %v12337_v62 = vld [vmem:[%s20908_s20 + $0x10] sm:$0xff] }
 0x845   : > { %v11979_v50 = vsel %vm9626_vm6, %v11977_v14, %v11978_v39  ;;  %v12335_v39 = vld [vmem:[%s20908_s20] sm:$0xff] }
 0x849   : > { %18575 = vmatmul.mubr.bf16.gmra.mrb[60].mxu0 %v11605_v37  ;;  %v11908_v37 = vld [vmem:[#allocation2 + $0x1a0] sm:$0xc0] }
 0x84a   : > { %18594 = vmatprep.mubr.bf16.mxu0 %v11946_v20  ;;  %v11909_v20 = vld [vmem:[#allocation2 + $0x1a8] sm:$0x3f]  ;;  %v11986_v42 = vrot.slane %v11908_v37, 6 }
 0x84b   : > { %v11987_v51 = vrot.slane %v11909_v20, 6 }
 0x84d   : > { %v11988_v12 = vsel %vm9626_vm6, %v11986_v42, %v11987_v51 }
 0x851   : > { %18595 = vmatmul.mubr.bf16.vlgmr.msra.gmra.mrb[32].mxu0 %v11949_v13  ;;  %v11989_v13 = vrot.slane %v11910_v56, 6 }
 0x852   : > { %18598 = vmatprep.mubr.bf16.mxu0 %v11952_v25  ;;  %v11990_v25 = vrot.slane %v11911_v59, 6 }
 0x854   : > { %v11991_v28 = vsel %vm9626_vm6, %v11989_v13, %v11990_v25 }
 0x859   : > { %18599 = vmatmul.mubr.bf16.gmra.mrb[36].mxu0 %v11955_v8  ;;  %v12569_v8 = vld [vmem:[#allocation2 + $0x48] sm:$0xf] }
 0x85a   : > { %18602 = vmatprep.mubr.bf16.mxu0 %v11958_v49  ;;  %v12636_v49 = vrot.slane %v12568_v3, 4  ;;  %v12637_v43 = vrot.slane %v12569_v8, 4  ;;  %v12339_v3 = vld [vmem:[%s20908_s20 + $0x20] sm:$0xff] }
 0x85c   : > { %v12638_v40 = vsel %vm832_vm0, %v12636_v49, %v12637_v43  ;;  %v12342_v43 = vld [vmem:[%s20908_s20 + $0x38] sm:$0xff] }
 0x85d   : > { %18650 = vmatprep.mubr.bf16.mxu1 %v12638_v40 }
 0x85e   : > { %18651 = vmatmul.mubr.bf16.gmra.mrb[56].mxu1 %v12641_v23 }
 0x861   : > { %18603 = vmatmul.mubr.bf16.gmra.mrb[40].mxu0 %v11961_v29  ;;  %v12572_v29 = vld [vmem:[#allocation2 + $0x60] sm:$0xf0] }
 0x862   : > { %18606 = vmatprep.mubr.bf16.mxu0 %v11964_v41  ;;  %v12573_v41 = vld [vmem:[#allocation2 + $0x68] sm:$0xf]  ;;  %v12642_v21 = vrot.slane %v12572_v29, 4 }
 0x863   : > { %v12643_v46 = vrot.slane %v12573_v41, 4 }
 0x865   : > { %v12644_v34 = vsel %vm832_vm0, %v12642_v21, %v12643_v46 }
 0x866   : > { %18654 = vmatprep.mubr.bf16.mxu1 %v12644_v34 }
 0x869   : > { %18607 = vmatmul.mubr.bf16.gmra.mrb[44].mxu0 %v11967_v5  ;;  %v12647_v5 = vsel %vm832_vm0, %v12645_v7, %v12646_v36 }
 0x86a   : > { %18610 = vmatprep.mubr.bf16.mxu0 %v11970_v47  ;;  %18655 = vmatmul.mubr.bf16.gmra.mrb[60].mxu1 %v12647_v5  ;;  %v20448_v47 = vld [vmem:[#allocation6 + $0x6e0] sm:$0xff]  }
 0x86b   : > { %18682 = vmatprep.subr.bf16.mxu1 %v20448_v47 }
 0x86c   : > { %18683 = vmatpush3.bf16.msra.mxu1 %v20448_v47 }
 0x86d   : > { %18684 = vmatprep.subr.bf16.mxu1 %v20449_v58 }
 0x870   : > { %18685 = vmatpush3.bf16.msra.mxu1 %v20449_v58 }
 0x871   : > { %18611 = vmatmul.mubr.bf16.gmra.mrb[48].mxu0 %v11973_v16  ;;  %18686 = vmatprep.subr.bf16.mxu1 %v20450_v30 }
 0x872   : > { %18614 = vmatprep.mubr.bf16.mxu0 %v11976_v26 }
 0x874   : > { %18687 = vmatpush3.bf16.msra.mxu1 %v20450_v30  ;;  %v12345_v30 = vld [vmem:[%s20908_s20 + $0x50] sm:$0xff] }
 0x875   : > { %18688 = vmatprep.subr.bf16.mxu1 %v20451_v27 }
 0x878   : > { %18689 = vmatpush3.bf16.msra.mxu1 %v20451_v27 }
 0x879   : > { %18615 = vmatmul.mubr.bf16.gmra.mrb[52].mxu0 %v11979_v50  ;;  %18722 = vmatprep.subr.bf16.mxu1 %v22473_v54 }
 0x87a   : > { %18618 = vmatprep.mubr.bf16.mxu0 %v11982_v53 }
 0x881   : > { %18619 = vmatmul.mubr.bf16.gmra.mrb[56].mxu0 %v11985_v38 }
 0x882   : > { %18622 = vmatprep.mubr.bf16.mxu0 %v11988_v12 }
 0x889   : > { %18623 = vmatmul.mubr.bf16.gmra.mrb[60].mxu0 %v11991_v28 }
 0x924   : > { %v18596_v17 = vpop.f32.mrb[32].mxu0 }
 0x925   : > { %v12273_v10 = vadd.f32 %v18596_v17, %v22476_v60  ;;  %v12107_v19 = vpop.f32.mrb[33].mxu0 }
 0x926   : > { %v12271_v16 = vadd.f32 %v22476_v60, %v12107_v19  ;;  %v18597_v31 = vpop.f32.mrb[34].mxu0 }
 0x927   : > { %v12305_v11 = vmax.f32 %v12273_v10, 0.0  ;;  %v12274_v26 = vadd.f32 %v18597_v31, %v22476_v60  ;;  %v12110_v32 = vpop.f32.mrb[35].mxu0  ;;  %v12343_v31 = vld [vmem:[%s20908_s20 + $0x40] sm:$0xff] }
 0x928   : > { %v12303_v33 = vmax.f32 %v12271_v16, 0.0  ;;  %v12272_v18 = vadd.f32 %v22476_v60, %v12110_v32 }
 0x929   : > { %v12369_v14 = vadd.f32 %v12337_v62, %v12305_v11  ;;  %v12306_v53 = vmax.f32 %v12274_v26, 0.0 }
 0x92a   : > { %v12367_v52 = vadd.f32 %v12335_v39, %v12303_v33  ;;  %v12304_v50 = vmax.f32 %v12272_v18, 0.0 }
 0x92b   : > { %12401 = vst [vmem:[%s20908_s20 + $0x10] sm:$0xff] %v12369_v14  ;;  %v12370_v37 = vadd.f32 %v12338_v57, %v12306_v53  ;;  %v12432_v20 = vpack.c.bf16 %v12306_v53, %v12305_v11 }
 0x92c   : > { %12399 = vst [vmem:[%s20908_s20] sm:$0xff] %v12367_v52  ;;  %v12368_v1 = vadd.f32 %v12336_v55, %v12304_v50  ;;  %v12431_v42 = vpack.c.bf16 %v12304_v50, %v12303_v33  ;;  %v18600_v51 = vpop.f32.mrb[36].mxu0  ;;  %v12346_v33 = vld [vmem:[%s20908_s20 + $0x58] sm:$0xff]  ;;  %v12344_v52 = vld [vmem:[%s20908_s20 + $0x48] sm:$0xff] }
 0x92d   : > { %12402 = vst [vmem:[%s20908_s20 + $0x18] sm:$0xff] %v12370_v37  ;;  %v12464_v38 = vrot.slane %v12432_v20, 4  ;;  %v12277_v12 = vadd.f32 %v18600_v51, %v22476_v60  ;;  %v12123_v56 = vpop.f32.mrb[37].mxu0 }
 0x92e   : > { %12400 = vst [vmem:[%s20908_s20 + $0x8] sm:$0xff] %v12368_v1  ;;  %v12463_v59 = vrot.slane %v12431_v42, 4  ;;  %v12275_v13 = vadd.f32 %v22476_v60, %v12123_v56  ;;  %v18601_v25 = vpop.f32.mrb[38].mxu0 }
 0x92f   : > { %12497 = vst [vmem:[#allocation2 + $0x98] ss:$-4 sps:$4 sm:$0xff] %v12464_v38   ;;  %v12309_v28 = vmax.f32 %v12277_v12, 0.0  ;;  %v12278_v0 = vadd.f32 %v18601_v25, %v22476_v60  ;;  %v12126_v63 = vpop.f32.mrb[39].mxu0 }
 0x930   : > { %12495 = vst [vmem:[#allocation2 + $0x88] ss:$-4 sps:$4 sm:$0xff] %v12463_v59   ;;  %v12307_v24 = vmax.f32 %v12275_v13, 0.0  ;;  %v12276_v4 = vadd.f32 %v22476_v60, %v12126_v63 }
 0x931   : > { %v12373_v61 = vadd.f32 %v12341_v15, %v12309_v28  ;;  %v12310_v8 = vmax.f32 %v12278_v0, 0.0  ;;  %v12349_v15 = vld [vmem:[%s20908_s20 + $0x70] sm:$0xff] }
 0x932   : > { %v12371_v49 = vadd.f32 %v12339_v3, %v12307_v24  ;;  %v12308_v40 = vmax.f32 %v12276_v4, 0.0 }
 0x933   : > { %12405 = vst [vmem:[%s20908_s20 + $0x30] sm:$0xff] %v12373_v61  ;;  %v12374_v45 = vadd.f32 %v12342_v43, %v12310_v8  ;;  %v12434_v35 = vpack.c.bf16 %v12310_v8, %v12309_v28 }
 0x934   : > { %12403 = vst [vmem:[%s20908_s20 + $0x20] sm:$0xff] %v12371_v49  ;;  %v12372_v48 = vadd.f32 %v12340_v2, %v12308_v40  ;;  %v12433_v44 = vpack.c.bf16 %v12308_v40, %v12307_v24  ;;  %v18604_v23 = vpop.f32.mrb[40].mxu0  ;;  %v12347_v49 = vld [vmem:[%s20908_s20 + $0x60] sm:$0xff]  ;;  %v12350_v2 = vld [vmem:[%s20908_s20 + $0x78] sm:$0xff] }
 0x935   : > { %12406 = vst [vmem:[%s20908_s20 + $0x38] sm:$0xff] %v12374_v45  ;;  %v12466_v29 = vrot.slane %v12434_v35, 4  ;;  %v12281_v41 = vadd.f32 %v18604_v23, %v22476_v60  ;;  %v12139_v21 = vpop.f32.mrb[41].mxu0 }
 0x936   : > { %12404 = vst [vmem:[%s20908_s20 + $0x28] sm:$0xff] %v12372_v48  ;;  %v12465_v46 = vrot.slane %v12433_v44, 4  ;;  %v12279_v34 = vadd.f32 %v22476_v60, %v12139_v21  ;;  %v18605_v9 = vpop.f32.mrb[42].mxu0  ;;  %v12578_v6 = vld [vmem:[#allocation2 + $0x90] sm:$0xf0] }
 0x937   : > { %v12579_v22 = vld [vmem:[#allocation2 + $0x98] sm:$0xf]  ;;  %12501 = vst [vmem:[#allocation2 + $0xb8] ss:$-4 sps:$4 sm:$0xff] %v12466_v29   ;;  %v12313_v7 = vmax.f32 %v12281_v41, 0.0  ;;  %v12282_v36 = vadd.f32 %v18605_v9, %v22476_v60  ;;  %v12142_v5 = vpop.f32.mrb[43].mxu0 }
 0x938   : > { %v12576_v47 = vld [vmem:[#allocation2 + $0x80] sm:$0xf0]  ;;  %v12577_v58 = vld [vmem:[#allocation2 + $0x88] sm:$0xf]  ;;  %12499 = vst [vmem:[#allocation2 + $0xa8] ss:$-4 sps:$4 sm:$0xff] %v12465_v46   ;;  %v12280_v17 = vadd.f32 %v22476_v60, %v12142_v5 }
 0x939   : > { %v12311_v27 = vmax.f32 %v12279_v34, 0.0  ;;  %v12648_v10 = vrot.slane %v12576_v47, 4  ;;  %v12649_v19 = vrot.slane %v12577_v58, 4  ;;  %v12377_v16 = vadd.f32 %v12345_v30, %v12313_v7  ;;  %v12348_v41 = vld [vmem:[%s20908_s20 + $0x68] sm:$0xff] }
 0x93a   : > { %v12314_v11 = vmax.f32 %v12282_v36, 0.0  ;;  %v12651_v26 = vrot.slane %v12578_v6, 4  ;;  %v12652_v32 = vrot.slane %v12579_v22, 4  ;;  %v12312_v18 = vmax.f32 %v12280_v17, 0.0 }
 0x93b   : > { %v12375_v62 = vadd.f32 %v12343_v31, %v12311_v27  ;;  %v12650_v14 = vsel %vm832_vm0, %v12648_v10, %v12649_v19  ;;  %12409 = vst [vmem:[%s20908_s20 + $0x50] sm:$0xff] %v12377_v16  ;;  %v12353_v31 = vld [vmem:[%s20908_s20 + $0x90] sm:$0xff] }
 0x93c   : > { %v12378_v39 = vadd.f32 %v12346_v33, %v12314_v11  ;;  %v12436_v53 = vpack.c.bf16 %v12314_v11, %v12313_v7  ;;  %18658 = vmatprep.mubr.bf16.mxu1 %v12650_v14  ;;  %v12653_v57 = vsel %vm832_vm0, %v12651_v26, %v12652_v32  ;;  %v12376_v50 = vadd.f32 %v12344_v52, %v12312_v18  ;;  %v18608_v20 = vpop.f32.mrb[44].mxu0 }
 0x93d   : > { %12407 = vst [vmem:[%s20908_s20 + $0x40] sm:$0xff] %v12375_v62  ;;  %v12435_v37 = vpack.c.bf16 %v12312_v18, %v12311_v27  ;;  %18659 = vmatmul.mubr.bf16.gmra.mrb[64].mxu1 %v12653_v57  ;;  %v12285_v1 = vadd.f32 %v18608_v20, %v22476_v60  ;;  %v12155_v42 = vpop.f32.mrb[45].mxu0  ;;  %v12351_v18 = vld [vmem:[%s20908_s20 + $0x80] sm:$0xff]  ;;  %v12354_v57 = vld [vmem:[%s20908_s20 + $0x98] sm:$0xff] }
 0x93e   : > { %12410 = vst [vmem:[%s20908_s20 + $0x58] sm:$0xff] %v12378_v39  ;;  %v12468_v55 = vrot.slane %v12436_v53, 4  ;;  %12408 = vst [vmem:[%s20908_s20 + $0x48] sm:$0xff] %v12376_v50  ;;  %v12283_v38 = vadd.f32 %v22476_v60, %v12155_v42  ;;  %v18609_v12 = vpop.f32.mrb[46].mxu0  ;;  %v12582_v56 = vld [vmem:[#allocation2 + $0xb0] sm:$0xf0] }
 0x93f   : > { %v12467_v51 = vrot.slane %v12435_v37, 4  ;;  %v12583_v59 = vld [vmem:[#allocation2 + $0xb8] sm:$0xf]  ;;  %v12317_v13 = vmax.f32 %v12285_v1, 0.0  ;;  %v12286_v25 = vadd.f32 %v18609_v12, %v22476_v60  ;;  %v12158_v28 = vpop.f32.mrb[47].mxu0  ;;  %v12657_v40 = vrot.slane %v12582_v56, 4 }
 0x940   : > { %12505 = vst [vmem:[#allocation2 + $0xd8] ss:$-4 sps:$4 sm:$0xff] %v12468_v55   ;;  %v12580_v0 = vld [vmem:[#allocation2 + $0xa0] sm:$0xf0]  ;;  %v12581_v63 = vld [vmem:[#allocation2 + $0xa8] sm:$0xf]  ;;  %v12284_v4 = vadd.f32 %v22476_v60, %v12158_v28 }
 0x941   : > { %12503 = vst [vmem:[#allocation2 + $0xc8] ss:$-4 sps:$4 sm:$0xff] %v12467_v51   ;;  %v12315_v24 = vmax.f32 %v12283_v38, 0.0  ;;  %v12654_v61 = vrot.slane %v12580_v0, 4  ;;  %v12655_v3 = vrot.slane %v12581_v63, 4  ;;  %v12381_v8 = vadd.f32 %v12349_v15, %v12317_v13  ;;  %v12352_v1 = vld [vmem:[%s20908_s20 + $0x88] sm:$0xff] }
 0x942   : > { %v12318_v43 = vmax.f32 %v12286_v25, 0.0  ;;  %v12658_v45 = vrot.slane %v12583_v59, 4  ;;  %v12316_v48 = vmax.f32 %v12284_v4, 0.0 }
 0x943   : > { %v12379_v35 = vadd.f32 %v12347_v49, %v12315_v24  ;;  %v12656_v44 = vsel %vm832_vm0, %v12654_v61, %v12655_v3  ;;  %12413 = vst [vmem:[%s20908_s20 + $0x70] sm:$0xff] %v12381_v8  ;;  %v12357_v49 = vld [vmem:[%s20908_s20 + $0xb0] sm:$0xff] }
 0x944   : > { %v12382_v23 = vadd.f32 %v12350_v2, %v12318_v43  ;;  %v12438_v29 = vpack.c.bf16 %v12318_v43, %v12317_v13  ;;  %18662 = vmatprep.mubr.bf16.mxu1 %v12656_v44  ;;  %v12659_v21 = vsel %vm832_vm0, %v12657_v40, %v12658_v45  ;;  %v12380_v46 = vadd.f32 %v12348_v41, %v12316_v48  ;;  %v18612_v9 = vpop.f32.mrb[48].mxu0 }
 0x945   : > { %12411 = vst [vmem:[%s20908_s20 + $0x60] sm:$0xff] %v12379_v35  ;;  %v12437_v34 = vpack.c.bf16 %v12316_v48, %v12315_v24  ;;  %18663 = vmatmul.mubr.bf16.gmra.mrb[68].mxu1 %v12659_v21  ;;  %v12289_v22 = vadd.f32 %v18612_v9, %v22476_v60  ;;  %v12171_v7 = vpop.f32.mrb[49].mxu0  ;;  %v12355_v48 = vld [vmem:[%s20908_s20 + $0xa0] sm:$0xff]  ;;  %v12358_v21 = vld [vmem:[%s20908_s20 + $0xb8] sm:$0xff] }
 0x946   : > { %12414 = vst [vmem:[%s20908_s20 + $0x78] sm:$0xff] %v12382_v23  ;;  %v12470_v6 = vrot.slane %v12438_v29, 4  ;;  %12412 = vst [vmem:[%s20908_s20 + $0x68] sm:$0xff] %v12380_v46  ;;  %v12287_v5 = vadd.f32 %v22476_v60, %v12171_v7  ;;  %v18613_v47 = vpop.f32.mrb[50].mxu0  ;;  %v12527_v9 = vld [vmem:[#allocation2] sm:$0xff]  ;;  %v12356_v7 = vld [vmem:[%s20908_s20 + $0xa8] sm:$0xff] }
 0x947   : > { %v12469_v36 = vrot.slane %v12437_v34, 4  ;;  %v12586_v58 = vld [vmem:[#allocation2 + $0xd0] sm:$0xf0]  ;;  %v12587_v30 = vld [vmem:[#allocation2 + $0xd8] sm:$0xf]  ;;  %v12321_v27 = vmax.f32 %v12289_v22, 0.0  ;;  %v12290_v17 = vadd.f32 %v18613_v47, %v22476_v60 }
 0x948   : > { %12509 = vst [vmem:[#allocation2 + $0xf8] ss:$-4 sps:$4 sm:$0xff] %v12470_v6   ;;  %v12174_v10 = vpop.f32.mrb[51].mxu0  ;;  %v12584_v19 = vld [vmem:[#allocation2 + $0xc0] sm:$0xf0]  ;;  %v12319_v11 = vmax.f32 %v12287_v5, 0.0 }
 0x949   : > { %v12585_v16 = vld [vmem:[#allocation2 + $0xc8] sm:$0xf]  ;;  %12507 = vst [vmem:[#allocation2 + $0xe8] ss:$-4 sps:$4 sm:$0xff] %v12469_v36   ;;  %v12288_v26 = vadd.f32 %v22476_v60, %v12174_v10  ;;  %v12660_v32 = vrot.slane %v12584_v19, 4  ;;  %v12385_v33 = vadd.f32 %v12353_v31, %v12321_v27  ;;  %v12322_v14 = vmax.f32 %v12290_v17, 0.0 }
 0x94a   : > { %v12661_v62 = vrot.slane %v12585_v16, 4  ;;  %v12663_v39 = vrot.slane %v12586_v58, 4  ;;  %v12664_v53 = vrot.slane %v12587_v30, 4  ;;  %v12383_v52 = vadd.f32 %v12351_v18, %v12319_v11 }
 0x94b   : > { %v12320_v50 = vmax.f32 %v12288_v26, 0.0  ;;  %12417 = vst [vmem:[%s20908_s20 + $0x90] sm:$0xff] %v12385_v33  ;;  %v12386_v20 = vadd.f32 %v12354_v57, %v12322_v14  ;;  %v12440_v55 = vpack.c.bf16 %v12322_v14, %v12321_v27  ;;  %v12359_v14 = vld [vmem:[%s20908_s20 + $0xc0] sm:$0xff]  ;;  %v12362_v57 = vld [vmem:[%s20908_s20 + $0xd8] sm:$0xff] }
 0x94c   : > { %v12662_v37 = vsel %vm832_vm0, %v12660_v32, %v12661_v62  ;;  %v12665_v42 = vsel %vm832_vm0, %v12663_v39, %v12664_v53  ;;  %12415 = vst [vmem:[%s20908_s20 + $0x80] sm:$0xff] %v12383_v52  ;;  %v18616_v12 = vpop.f32.mrb[52].mxu0  ;;  %v12361_v32 = vld [vmem:[%s20908_s20 + $0xd0] sm:$0xff]  ;;  %v12528_v53 = vld [vmem:[#allocation2 + $0x10] sm:$0xff] }
 0x94d   : > { %18666 = vmatprep.mubr.bf16.mxu1 %v12662_v37  ;;  %v12384_v51 = vadd.f32 %v12352_v1, %v12320_v50  ;;  %v12439_v38 = vpack.c.bf16 %v12320_v50, %v12319_v11  ;;  %12418 = vst [vmem:[%s20908_s20 + $0x98] sm:$0xff] %v12386_v20  ;;  %v12472_v56 = vrot.slane %v12440_v55, 4  ;;  %v12293_v59 = vadd.f32 %v18616_v12, %v22476_v60  ;;  %v12187_v13 = vpop.f32.mrb[53].mxu0  ;;  %v12529_v37 = vld [vmem:[#allocation2 + $0x20] sm:$0xff]  ;;  %v20453_v20 = vld [vmem:[#allocation6 + $0x748] sm:$0xff]  }
 0x94e   : > { %18667 = vmatmul.mubr.bf16.gmra.mrb[72].mxu1 %v12665_v42  ;;  %v12291_v28 = vadd.f32 %v22476_v60, %v12187_v13  ;;  %v18617_v0 = vpop.f32.mrb[54].mxu0  ;;  %v12360_v42 = vld [vmem:[%s20908_s20 + $0xc8] sm:$0xff] }
 0x94f   : > { %12416 = vst [vmem:[%s20908_s20 + $0x88] sm:$0xff] %v12384_v51  ;;  %v12471_v25 = vrot.slane %v12439_v38, 4  ;;  %v12590_v63 = vld [vmem:[#allocation2 + $0xf0] sm:$0xf0]  ;;  %v12591_v15 = vld [vmem:[#allocation2 + $0xf8] sm:$0xf]  ;;  %v12294_v4 = vadd.f32 %v18617_v0, %v22476_v60 }
 0x950   : > { %12513 = vst [vmem:[#allocation2 + $0x118] ss:$-4 sps:$4 sm:$0xff] %v12472_v56   ;;  %v12325_v24 = vmax.f32 %v12293_v59, 0.0  ;;  %v12190_v61 = vpop.f32.mrb[55].mxu0  ;;  %v12588_v3 = vld [vmem:[#allocation2 + $0xe0] sm:$0xf0] }
 0x951   : > { %v12589_v8 = vld [vmem:[#allocation2 + $0xe8] sm:$0xf]  ;;  %12511 = vst [vmem:[#allocation2 + $0x108] ss:$-4 sps:$4 sm:$0xff] %v12471_v25   ;;  %v12323_v43 = vmax.f32 %v12291_v28, 0.0  ;;  %v12292_v40 = vadd.f32 %v22476_v60, %v12190_v61  ;;  %v12666_v45 = vrot.slane %v12588_v3, 4 }
 0x952   : > { %v12667_v35 = vrot.slane %v12589_v8, 4  ;;  %v12389_v2 = vadd.f32 %v12357_v49, %v12325_v24  ;;  %v12326_v44 = vmax.f32 %v12294_v4, 0.0  ;;  %v12669_v23 = vrot.slane %v12590_v63, 4  ;;  %v20454_v63 = vld [vmem:[#allocation6 + $0x750] sm:$0xff]   ;;  %v12365_v61 = vld [vmem:[%s20908_s20 + $0xf0] sm:$0xff]  ;;  %v12363_v49 = vld [vmem:[%s20908_s20 + $0xe0] sm:$0xff] }
 0x953   : > { %v12670_v29 = vrot.slane %v12591_v15, 4  ;;  %v12387_v41 = vadd.f32 %v12355_v48, %v12323_v43  ;;  %v12324_v46 = vmax.f32 %v12292_v40, 0.0  ;;  %v12530_v40 = vld [vmem:[#allocation2 + $0x30] sm:$0xff]  ;;  %v12531_v48 = vld [vmem:[#allocation2 + $0x40] sm:$0xff] }
 0x954   : > { %v12668_v34 = vsel %vm832_vm0, %v12666_v45, %v12667_v35  ;;  %12421 = vst [vmem:[%s20908_s20 + $0xb0] sm:$0xff] %v12389_v2  ;;  %v12390_v6 = vadd.f32 %v12358_v21, %v12326_v44  ;;  %v12442_v22 = vpack.c.bf16 %v12326_v44, %v12325_v24  ;;  %v18620_v58 = vpop.f32.mrb[56].mxu0  ;;  %v12366_v35 = vld [vmem:[%s20908_s20 + $0xf8] sm:$0xff]  ;;  %v20455_v44 = vld [vmem:[#allocation6 + $0x758] sm:$0xff]  }
 0x955   : > { %18670 = vmatprep.mubr.bf16.mxu1 %v12668_v34  ;;  %v12671_v36 = vsel %vm832_vm0, %v12669_v23, %v12670_v29  ;;  %12419 = vst [vmem:[%s20908_s20 + $0xa0] sm:$0xff] %v12387_v41  ;;  %v12388_v5 = vadd.f32 %v12356_v7, %v12324_v46  ;;  %v12441_v47 = vpack.c.bf16 %v12324_v46, %v12323_v43  ;;  %v12203_v17 = vpop.f32.mrb[57].mxu0  ;;  %v12364_v41 = vld [vmem:[%s20908_s20 + $0xe8] sm:$0xff]  ;;  %v20457_v7 = vld [vmem:[#allocation6 + $0x768] sm:$0xff]  }
 0x956   : > { %18671 = vmatmul.mubr.bf16.gmra.mrb[76].mxu1 %v12671_v36  ;;  %12422 = vst [vmem:[%s20908_s20 + $0xb8] sm:$0xff] %v12390_v6  ;;  %v12474_v30 = vrot.slane %v12442_v22, 4  ;;  %v12297_v27 = vadd.f32 %v18620_v58, %v22476_v60  ;;  %v12295_v19 = vadd.f32 %v22476_v60, %v12203_v17  ;;  %v18621_v16 = vpop.f32.mrb[58].mxu0  ;;  %v12532_v6 = vld [vmem:[#allocation2 + $0x50] sm:$0xff]  ;;  %v12533_v22 = vld [vmem:[#allocation2 + $0x60] sm:$0xff] }
 0x957   : > { %18690 = vmatprep.mubr.bf16.mxu1 %v12527_v9  ;;  %12420 = vst [vmem:[%s20908_s20 + $0xa8] sm:$0xff] %v12388_v5  ;;  %v12473_v10 = vrot.slane %v12441_v47, 4  ;;  %v12298_v11 = vadd.f32 %v18621_v16, %v22476_v60  ;;  %v12206_v26 = vpop.f32.mrb[59].mxu0  ;;  %v20456_v9 = vld [vmem:[#allocation6 + $0x760] sm:$0xff]   ;;  %v20458_v36 = vld [vmem:[#allocation6 + $0x770] sm:$0xff]   ;;  %v20459_v47 = vld [vmem:[#allocation6 + $0x778] sm:$0xff]  }
 0x958   : > { %12517 = vst [vmem:[#allocation2 + $0x138] ss:$-4 sps:$4 sm:$0xff] %v12474_v30   ;;  %v12329_v31 = vmax.f32 %v12297_v27, 0.0  ;;  %v12327_v62 = vmax.f32 %v12295_v19, 0.0  ;;  %v12296_v33 = vadd.f32 %v22476_v60, %v12206_v26  ;;  %v12534_v5 = vld [vmem:[#allocation2 + $0x70] sm:$0xff]  ;;  %v22583_v58 = vld [vmem:[#allocation2 + $0x80] sm:$0xff] }
 0x959   : > { %12515 = vst [vmem:[#allocation2 + $0x128] ss:$-4 sps:$4 sm:$0xff] %v12473_v10   ;;  %v12330_v39 = vmax.f32 %v12298_v11, 0.0  ;;  %v20460_v30 = vld [vmem:[#allocation6 + $0x780] sm:$0xff]   ;;  %v22586_v27 = vld [vmem:[#allocation2 + $0x90] sm:$0xff]  ;;  %v13123_v11 = vld [vmem:[#allocation2 + $0x8] sm:$0xff] }
 0x95a   : > { %v12393_v18 = vadd.f32 %v12361_v32, %v12329_v31  ;;  %v12391_v52 = vadd.f32 %v12359_v14, %v12327_v62  ;;  %v12328_v50 = vmax.f32 %v12296_v33, 0.0  ;;  %v22589_v17 = vld [vmem:[#allocation2 + $0xa0] sm:$0xff]  ;;  %v22592_v10 = vld [vmem:[#allocation2 + $0xb0] sm:$0xff]  ;;  %v13124_v32 = vld [vmem:[#allocation2 + $0x18] sm:$0xff] }
 0x95b   : > { %v12394_v55 = vadd.f32 %v12362_v57, %v12330_v39  ;;  %v12444_v1 = vpack.c.bf16 %v12330_v39, %v12329_v31  ;;  %v22595_v19 = vld [vmem:[#allocation2 + $0xc0] sm:$0xff]  ;;  %v22598_v16 = vld [vmem:[#allocation2 + $0xd0] sm:$0xff]  ;;  %v20461_v33 = vld [vmem:[#allocation6 + $0x788] sm:$0xff]  }
 0x95c   : > { %12425 = vst [vmem:[%s20908_s20 + $0xd0] sm:$0xff] %v12393_v18  ;;  %12423 = vst [vmem:[%s20908_s20 + $0xc0] sm:$0xff] %v12391_v52  ;;  %v12392_v51 = vadd.f32 %v12360_v42, %v12328_v50  ;;  %v12443_v38 = vpack.c.bf16 %v12328_v50, %v12327_v62  ;;  %v18624_v12 = vpop.f32.mrb[60].mxu0  ;;  %v22601_v31 = vld [vmem:[#allocation2 + $0xe0] sm:$0xff]  ;;  %v22604_v26 = vld [vmem:[#allocation2 + $0xf0] sm:$0xff] }
 0x95d   : > { %12426 = vst [vmem:[%s20908_s20 + $0xd8] sm:$0xff] %v12394_v55  ;;  %v12476_v56 = vrot.slane %v12444_v1, 4  ;;  %v12301_v59 = vadd.f32 %v18624_v12, %v22476_v60  ;;  %v12219_v13 = vpop.f32.mrb[61].mxu0  ;;  %v13125_v62 = vld [vmem:[#allocation2 + $0x28] sm:$0xff]  ;;  %v20462_v18 = vld [vmem:[#allocation6 + $0x790] sm:$0xff]   ;;  %v13126_v14 = vld [vmem:[#allocation2 + $0x38] sm:$0xff] }
 0x95e   : > { %18691 = vmatmul.mubr.bf16.vlgmr.msra.gmra.mrb[48].mxu1 %v12528_v53  ;;  %12424 = vst [vmem:[%s20908_s20 + $0xc8] sm:$0xff] %v12392_v51  ;;  %v12475_v25 = vrot.slane %v12443_v38, 4  ;;  %v12299_v28 = vadd.f32 %v22476_v60, %v12219_v13  ;;  %v18625_v0 = vpop.f32.mrb[62].mxu0  ;;  %v13127_v39 = vld [vmem:[#allocation2 + $0x48] sm:$0xff]  ;;  %v20463_v53 = vld [vmem:[#allocation6 + $0x798] sm:$0xff]   ;;  %v20464_v52 = vld [vmem:[#allocation6 + $0x7a0] sm:$0xff]  }
 0x95f   : > { %18723 = vmatpush3.bf16.msra.mxu1 %v22473_v54  ;;  %18694 = vmatprep.mubr.bf16.mxu1 %v12529_v37  ;;  %12521 = vst [vmem:[#allocation2 + $0x158] ss:$-4 sps:$4 sm:$0xff] %v12476_v56   ;;  %v12333_v15 = vmax.f32 %v12301_v59, 0.0  ;;  %v12302_v24 = vadd.f32 %v18625_v0, %v22476_v60  ;;  %v12222_v4 = vpop.f32.mrb[63].mxu0  ;;  %v13128_v57 = vld [vmem:[#allocation2 + $0x58] sm:$0xff]  ;;  %v13129_v50 = vld [vmem:[#allocation2 + $0x68] sm:$0xff] }
 0x960   : > { %18724 = vmatprep.subr.bf16.mxu1 %v20453_v20  ;;  %12519 = vst [vmem:[#allocation2 + $0x148] ss:$-4 sps:$4 sm:$0xff] %v12475_v25   ;;  %v12331_v3 = vmax.f32 %v12299_v28, 0.0  ;;  %v12300_v54 = vadd.f32 %v22476_v60, %v12222_v4  ;;  %v20465_v37 = vld [vmem:[#allocation6 + $0x7a8] sm:$0xff]   ;;  %v13130_v55 = vld [vmem:[#allocation2 + $0x78] sm:$0xff]  ;;  %v20468_v51 = vld [vmem:[#allocation6 + $0x7c0] sm:$0xff]  }
 0x961   : > { %v12397_v8 = vadd.f32 %v12365_v61, %v12333_v15  ;;  %v12334_v43 = vmax.f32 %v12302_v24, 0.0  ;;  %v20467_v1 = vld [vmem:[#allocation6 + $0x7b8] sm:$0xff]   ;;  %v22607_v42 = vld [vmem:[#allocation2 + $0x88] sm:$0xff]  ;;  %v20472_v24 = vld [vmem:[#allocation6 + $0x7e0] sm:$0xff]  }
 0x962   : > { %v12395_v45 = vadd.f32 %v12363_v49, %v12331_v3  ;;  %v12332_v2 = vmax.f32 %v12300_v54, 0.0  ;;  %v22610_v38 = vld [vmem:[#allocation2 + $0x98] sm:$0xff]  ;;  %v22613_v12 = vld [vmem:[#allocation2 + $0xa8] sm:$0xff]  ;;  %v20474_v61 = vld [vmem:[#allocation6 + $0x7f0] sm:$0xff]  }
 0x963   : > { %18725 = vmatpush3.bf16.msra.mxu1 %v20453_v20  ;;  %12429 = vst [vmem:[%s20908_s20 + $0xf0] sm:$0xff] %v12397_v8  ;;  %v12398_v23 = vadd.f32 %v12366_v35, %v12334_v43  ;;  %v12446_v29 = vpack.c.bf16 %v12334_v43, %v12333_v15  ;;  %v20466_v20 = vld [vmem:[#allocation6 + $0x7b0] sm:$0xff]   ;;  %v22616_v56 = vld [vmem:[#allocation2 + $0xb8] sm:$0xff]  ;;  %v22619_v59 = vld [vmem:[#allocation2 + $0xc8] sm:$0xff] }
 0x964   : > { %18726 = vmatprep.subr.bf16.mxu1 %v20454_v63  ;;  %12427 = vst [vmem:[%s20908_s20 + $0xe0] sm:$0xff] %v12395_v45  ;;  %v12396_v60 = vadd.f32 %v12364_v41, %v12332_v2  ;;  %v12445_v21 = vpack.c.bf16 %v12332_v2, %v12331_v3  ;;  %v22622_v13 = vld [vmem:[#allocation2 + $0xd8] sm:$0xff]  ;;  %v22625_v25 = vld [vmem:[#allocation2 + $0xe8] sm:$0xff]  ;;  %v22639_v54 = vld [vmem:[#allocation2 + $0x100] sm:$0xff] }
 0x965   : > { %12430 = vst [vmem:[%s20908_s20 + $0xf8] sm:$0xff] %v12398_v23  ;;  %v12478_v46 = vrot.slane %v12446_v29, 4  ;;  %v22628_v28 = vld [vmem:[#allocation2 + $0xf8] sm:$0xff]  ;;  %v20469_v0 = vld [vmem:[#allocation6 + $0x7c8] sm:$0xff]   ;;  %v20476_v8 = vld [vmem:[#allocation6 + $0x800] sm:$0xff]  }
 0x966   : > { %18695 = vmatmul.mubr.bf16.gmra.mrb[52].mxu1 %v12530_v40  ;;  %12428 = vst [vmem:[%s20908_s20 + $0xe8] sm:$0xff] %v12396_v60  ;;  %v12477_v34 = vrot.slane %v12445_v21, 4  ;;  %v20471_v15 = vld [vmem:[#allocation6 + $0x7d8] sm:$0xff]   ;;  %v20473_v4 = vld [vmem:[#allocation6 + $0x7e8] sm:$0xff]   ;;  %v22642_v49 = vld [vmem:[#allocation2 + $0x110] sm:$0xff] }
 0x967   : > { %18698 = vmatprep.mubr.bf16.mxu1 %v12531_v48  ;;  %18727 = vmatpush3.bf16.msra.mxu1 %v20454_v63  ;;  %12525 = vst [vmem:[#allocation2 + $0x178] ss:$-4 sps:$4 sm:$0xff] %v12478_v46   ;;  %v20470_v63 = vld [vmem:[#allocation6 + $0x7d0] sm:$0xff]   ;;  %v20475_v3 = vld [vmem:[#allocation6 + $0x7f8] sm:$0xff]   ;;  %v22645_v43 = vld [vmem:[#allocation2 + $0x120] sm:$0xff] }
 0x968   : > { %18728 = vmatprep.subr.bf16.mxu1 %v20455_v44  ;;  %12523 = vst [vmem:[#allocation2 + $0x168] ss:$-4 sps:$4 sm:$0xff] %v12477_v34   ;;  %v22648_v40 = vld [vmem:[#allocation2 + $0x130] sm:$0xff]  ;;  %v22651_v45 = vld [vmem:[#allocation2 + $0x140] sm:$0xff]  ;;  %v13674_v46 = vld [vmem:[#allocation2 + $0x98] sm:$0xf] }
 0x969   : > { %v22654_v35 = vld [vmem:[#allocation2 + $0x150] sm:$0xff]  ;;  %v13671_v48 = vld [vmem:[#allocation2 + $0x80] sm:$0xf0] }
 0x96a   : > { %v13735_v23 = vrot.slane %v13671_v48, 4  ;;  %v13673_v21 = vld [vmem:[#allocation2 + $0x90] sm:$0xf0]  ;;  %v13675_v34 = vld [vmem:[#allocation2 + $0xa0] sm:$0xf0] }
 0x96b   : > { %18729 = vmatpush3.bf16.msra.mxu1 %v20455_v44  ;;  %v13672_v44 = vld [vmem:[#allocation2 + $0x88] sm:$0xf] }
 0x96c   : > { %18730 = vmatprep.subr.bf16.mxu1 %v20456_v9  ;;  %v13736_v29 = vrot.slane %v13672_v44, 4  ;;  %v20483_v44 = vld [vmem:[#allocation6 + $0x838] sm:$0xff]  }
 0x96e   : > { %18699 = vmatmul.mubr.bf16.gmra.mrb[56].mxu1 %v12532_v6  ;;  %v22660_v41 = vld [vmem:[#allocation2 + $0x170] sm:$0xff]  ;;  %v13737_v60 = vsel %vm832_vm0, %v13735_v23, %v13736_v29  ;;  %v13738_v6 = vrot.slane %v13673_v21, 4  ;;  %v13690_v21 = vld [vmem:[#allocation2 + $0x118] sm:$0xf] }
 0x96f   : > { %18702 = vmatprep.mubr.bf16.mxu1 %v12533_v22  ;;  %18731 = vmatpush3.bf16.msra.mxu1 %v20456_v9  ;;  %v22657_v2 = vld [vmem:[#allocation2 + $0x160] sm:$0xff]  ;;  %v13676_v9 = vld [vmem:[#allocation2 + $0xa8] sm:$0xf]  ;;  %v13739_v22 = vrot.slane %v13674_v46, 4 }
 0x970   : > { %18732 = vmatprep.subr.bf16.mxu1 %v20457_v7  ;;  %v13691_v46 = vld [vmem:[#allocation2 + $0x120] sm:$0xf0] }
 0x973   : > { %18733 = vmatpush3.bf16.msra.mxu1 %v20457_v7  ;;  %v13741_v7 = vrot.slane %v13675_v34, 4  ;;  %v13692_v34 = vld [vmem:[#allocation2 + $0x128] sm:$0xf] }
 0x974   : > { %18734 = vmatprep.subr.bf16.mxu1 %v20458_v36 }
 0x976   : > { %18703 = vmatmul.mubr.bf16.gmra.mrb[60].mxu1 %v12534_v5  ;;  %v20477_v5 = vld [vmem:[#allocation6 + $0x808] sm:$0xff]  }
 0x977   : > { %18706 = vmatprep.mubr.bf16.mxu1 %v22583_v58  ;;  %18735 = vmatpush3.bf16.msra.mxu1 %v20458_v36  ;;  %v13742_v36 = vrot.slane %v13676_v9, 4  ;;  %v20484_v9 = vld [vmem:[#allocation6 + $0x840] sm:$0xff]  }
 0x978   : > { %18736 = vmatprep.subr.bf16.mxu1 %v20459_v47 }
 0x97b   : > { %18737 = vmatpush3.bf16.msra.mxu1 %v20459_v47  ;;  %v13740_v47 = vsel %vm832_vm0, %v13738_v6, %v13739_v22  ;;  %v13763_v22 = vrot.slane %v13690_v21, 4  ;;  %v14342_v21 = vld [vmem:[#allocation2 + $0x1a0] sm:$0xff] }
 0x97c   : > { %18770 = vmatprep.subr.bf16.mxu1 %v20460_v30 }
 0x97e   : > { %18707 = vmatmul.mubr.bf16.gmra.mrb[64].mxu1 %v22586_v27 }
 0x97f   : > { %18710 = vmatprep.mubr.bf16.mxu1 %v22589_v17 }
 0x986   : > { %18711 = vmatmul.mubr.bf16.gmra.mrb[68].mxu1 %v22592_v10 }
 0x987   : > { %18714 = vmatprep.mubr.bf16.mxu1 %v22595_v19 }
 0x98e   : > { %18715 = vmatmul.mubr.bf16.gmra.mrb[72].mxu1 %v22598_v16 }
 0x98f   : > { %18718 = vmatprep.mubr.bf16.mxu1 %v22601_v31 }
 0x996   : > { %18719 = vmatmul.mubr.bf16.gmra.mrb[76].mxu1 %v22604_v26 }
 0x997   : > { %18738 = vmatprep.mubr.bf16.mxu1 %v13123_v11 }
 0x99e   : > { %18739 = vmatmul.mubr.bf16.vlgmr.msra.gmra.mrb[48].mxu1 %v13124_v32  ;;  %v20479_v32 = vld [vmem:[#allocation6 + $0x818] sm:$0xff]  }
 0x99f   : > { %18771 = vmatpush3.bf16.msra.mxu1 %v20460_v30  ;;  %18742 = vmatprep.mubr.bf16.mxu1 %v13125_v62  ;;  %v13677_v30 = vld [vmem:[#allocation2 + $0xb0] sm:$0xf0] }
 0x9a0   : > { %18772 = vmatprep.subr.bf16.mxu1 %v20461_v33 }
 0x9a3   : > { %18773 = vmatpush3.bf16.msra.mxu1 %v20461_v33 }
 0x9a4   : > { %18774 = vmatprep.subr.bf16.mxu1 %v20462_v18 }
 0x9a6   : > { %18743 = vmatmul.mubr.bf16.gmra.mrb[52].mxu1 %v13126_v14  ;;  %v13682_v14 = vld [vmem:[#allocation2 + $0xd8] sm:$0xf] }
 0x9a7   : > { %18746 = vmatprep.mubr.bf16.mxu1 %v13127_v39  ;;  %18775 = vmatpush3.bf16.msra.mxu1 %v20462_v18  ;;  %v13681_v18 = vld [vmem:[#allocation2 + $0xd0] sm:$0xf0]  ;;  %v13683_v39 = vld [vmem:[#allocation2 + $0xe0] sm:$0xf0] }
 0x9a8   : > { %18776 = vmatprep.subr.bf16.mxu1 %v20463_v53 }
 0x9ab   : > { %18777 = vmatpush3.bf16.msra.mxu1 %v20463_v53  ;;  %v13684_v53 = vld [vmem:[#allocation2 + $0xe8] sm:$0xf] }
 0x9ac   : > { %18778 = vmatprep.subr.bf16.mxu1 %v20464_v52 }
 0x9ae   : > { %18747 = vmatmul.mubr.bf16.gmra.mrb[56].mxu1 %v13128_v57  ;;  %v13750_v57 = vrot.slane %v13681_v18, 4  ;;  %v13700_v18 = vld [vmem:[#allocation2 + $0x168] sm:$0xf] }
 0x9af   : > { %18750 = vmatprep.mubr.bf16.mxu1 %v13129_v50  ;;  %18779 = vmatpush3.bf16.msra.mxu1 %v20464_v52  ;;  %v20480_v52 = vld [vmem:[#allocation6 + $0x820] sm:$0xff]   ;;  %v13751_v50 = vrot.slane %v13682_v14, 4 }
 0x9b0   : > { %18780 = vmatprep.subr.bf16.mxu1 %v20465_v37 }
 0x9b3   : > { %18781 = vmatpush3.bf16.msra.mxu1 %v20465_v37  ;;  %v13753_v37 = vrot.slane %v13683_v39, 4 }
 0x9b4   : > { %18782 = vmatprep.subr.bf16.mxu1 %v20466_v20 }
 0x9b6   : > { %18751 = vmatmul.mubr.bf16.gmra.mrb[60].mxu1 %v13130_v55  ;;  %v20481_v55 = vld [vmem:[#allocation6 + $0x828] sm:$0xff]  }
 0x9b7   : > { %18754 = vmatprep.mubr.bf16.mxu1 %v22607_v42  ;;  %18783 = vmatpush3.bf16.msra.mxu1 %v20466_v20  ;;  %v13754_v20 = vrot.slane %v13684_v53, 4 }
 0x9b8   : > { %18784 = vmatprep.subr.bf16.mxu1 %v20467_v1 }
 0x9bb   : > { %18785 = vmatpush3.bf16.msra.mxu1 %v20467_v1  ;;  %v13752_v1 = vsel %vm832_vm0, %v13750_v57, %v13751_v50 }
 0x9bc   : > { %18818 = vmatprep.subr.bf16.mxu1 %v20468_v51 }
 0x9be   : > { %18755 = vmatmul.mubr.bf16.gmra.mrb[64].mxu1 %v22610_v38 }
 0x9bf   : > { %18758 = vmatprep.mubr.bf16.mxu1 %v22613_v12 }
 0x9c6   : > { %18759 = vmatmul.mubr.bf16.gmra.mrb[68].mxu1 %v22616_v56 }
 0x9c7   : > { %18762 = vmatprep.mubr.bf16.mxu1 %v22619_v59 }
 0x9ce   : > { %18763 = vmatmul.mubr.bf16.gmra.mrb[72].mxu1 %v22622_v13 }
 0x9cf   : > { %18766 = vmatprep.mubr.bf16.mxu1 %v22625_v25 }
 0x9d6   : > { %18767 = vmatmul.mubr.bf16.gmra.mrb[76].mxu1 %v22628_v28 }
 0x9d7   : > { %18786 = vmatprep.mubr.bf16.mxu1 %v22583_v58  ;;  %v13743_v58 = vsel %vm832_vm0, %v13741_v7, %v13742_v36  ;;  %v13765_v7 = vrot.slane %v13691_v46, 4  ;;  %v13766_v36 = vrot.slane %v13692_v34, 4  ;;  %v14345_v46 = vld [vmem:[#allocation2 + $0x1d0] sm:$0xff]  ;;  %v14346_v34 = vld [vmem:[#allocation2 + $0x1e0] sm:$0xff] }
 0x9de   : > { %18787 = vmatmul.mubr.bf16.vlgmr.msra.gmra.mrb[48].mxu1 %v22586_v27  ;;  %v13678_v27 = vld [vmem:[#allocation2 + $0xb8] sm:$0xf] }
 0x9df   : > { %18790 = vmatprep.mubr.bf16.mxu1 %v22589_v17  ;;  %18819 = vmatpush3.bf16.msra.mxu1 %v20468_v51  ;;  %v13679_v17 = vld [vmem:[#allocation2 + $0xc0] sm:$0xf0]  ;;  %v13755_v51 = vsel %vm832_vm0, %v13753_v37, %v13754_v20  ;;  %v13701_v37 = vld [vmem:[#allocation2 + $0x170] sm:$0xf0]  ;;  %v13702_v20 = vld [vmem:[#allocation2 + $0x178] sm:$0xf] }
 0x9e0   : > { %18820 = vmatprep.subr.bf16.mxu1 %v20469_v0  ;;  %v13747_v11 = vrot.slane %v13679_v17, 4  ;;  %v13696_v17 = vld [vmem:[#allocation2 + $0x148] sm:$0xf] }
 0x9e3   : > { %18821 = vmatpush3.bf16.msra.mxu1 %v20469_v0  ;;  %v13685_v0 = vld [vmem:[#allocation2 + $0xf0] sm:$0xf0] }
 0x9e4   : > { %18822 = vmatprep.subr.bf16.mxu1 %v20470_v63 }
 0x9e6   : > { %18791 = vmatmul.mubr.bf16.gmra.mrb[52].mxu1 %v22592_v10  ;;  %v13680_v10 = vld [vmem:[#allocation2 + $0xc8] sm:$0xf] }
 0x9e7   : > { %18794 = vmatprep.mubr.bf16.mxu1 %v22595_v19  ;;  %18823 = vmatpush3.bf16.msra.mxu1 %v20470_v63  ;;  %v20478_v19 = vld [vmem:[#allocation6 + $0x810] sm:$0xff]   ;;  %v13686_v63 = vld [vmem:[#allocation2 + $0xf8] sm:$0xf] }
 0x9e8   : > { %18824 = vmatprep.subr.bf16.mxu1 %v20471_v15 }
 0x9eb   : > { %18825 = vmatpush3.bf16.msra.mxu1 %v20471_v15  ;;  %v13687_v15 = vld [vmem:[#allocation2 + $0x100] sm:$0xf0] }
 0x9ec   : > { %18826 = vmatprep.subr.bf16.mxu1 %v20472_v24 }
 0x9ee   : > { %18795 = vmatmul.mubr.bf16.gmra.mrb[56].mxu1 %v22598_v16  ;;  %v13744_v16 = vrot.slane %v13677_v30, 4  ;;  %v13694_v30 = vld [vmem:[#allocation2 + $0x138] sm:$0xf] }
 0x9ef   : > { %18798 = vmatprep.mubr.bf16.mxu1 %v22601_v31  ;;  %18827 = vmatpush3.bf16.msra.mxu1 %v20472_v24  ;;  %v13745_v31 = vrot.slane %v13678_v27, 4  ;;  %v13688_v24 = vld [vmem:[#allocation2 + $0x108] sm:$0xf]  ;;  %v13695_v27 = vld [vmem:[#allocation2 + $0x140] sm:$0xf0] }
 0x9f0   : > { %18828 = vmatprep.subr.bf16.mxu1 %v20473_v4  ;;  %v13760_v48 = vrot.slane %v13688_v24, 4  ;;  %v20488_v24 = vld [vmem:[#allocation6 + $0x860] sm:$0xff]  }
 0x9f1   : > { %v13746_v62 = vsel %vm832_vm0, %v13744_v16, %v13745_v31  ;;  %v13771_v16 = vrot.slane %v13695_v27, 4  ;;  %v13772_v31 = vrot.slane %v13696_v17, 4  ;;  %v14610_v27 = vld [vmem:[#allocation2 + $0x120] sm:$0xf0]  ;;  %v14611_v17 = vld [vmem:[#allocation2 + $0x128] sm:$0xf] }
 0x9f3   : > { %18829 = vmatpush3.bf16.msra.mxu1 %v20473_v4  ;;  %v20482_v4 = vld [vmem:[#allocation6 + $0x830] sm:$0xff]  }
 0x9f4   : > { %18830 = vmatprep.subr.bf16.mxu1 %v20474_v61 }
 0x9f6   : > { %18799 = vmatmul.mubr.bf16.gmra.mrb[60].mxu1 %v22604_v26  ;;  %v13748_v26 = vrot.slane %v13680_v10, 4 }
 0x9f7   : > { %18802 = vmatprep.mubr.bf16.mxu1 %v22639_v54  ;;  %18831 = vmatpush3.bf16.msra.mxu1 %v20474_v61  ;;  %v13756_v61 = vrot.slane %v13685_v0, 4  ;;  %v20485_v0 = vld [vmem:[#allocation6 + $0x848] sm:$0xff]  }
 0x9f8   : > { %18832 = vmatprep.subr.bf16.mxu1 %v20475_v3  ;;  %v13749_v33 = vsel %vm832_vm0, %v13747_v11, %v13748_v26  ;;  %v13773_v26 = vsel %vm832_vm0, %v13771_v16, %v13772_v31  ;;  %v14676_v16 = vrot.slane %v14610_v27, 4  ;;  %v14677_v31 = vrot.slane %v14611_v17, 4 }
 0x9fb   : > { %18833 = vmatpush3.bf16.msra.mxu1 %v20475_v3  ;;  %v13757_v3 = vrot.slane %v13686_v63, 4  ;;  %v20486_v63 = vld [vmem:[#allocation6 + $0x850] sm:$0xff]  }
 0x9fc   : > { %18866 = vmatprep.subr.bf16.mxu1 %v20476_v8 }
 0x9fd   : > { %v13758_v23 = vsel %vm832_vm0, %v13756_v61, %v13757_v3  ;;  %v22702_v61 = vld [vmem:[#allocation2 + $0x158] sm:$0xff]  ;;  %v22705_v3 = vld [vmem:[#allocation2 + $0x168] sm:$0xff] }
 0x9fe   : > { %18803 = vmatmul.mubr.bf16.gmra.mrb[64].mxu1 %v22642_v49 }
 0x9ff   : > { %18806 = vmatprep.mubr.bf16.mxu1 %v22645_v43 }
 0xa06   : > { %18807 = vmatmul.mubr.bf16.gmra.mrb[68].mxu1 %v22648_v40 }
 0xa07   : > { %18810 = vmatprep.mubr.bf16.mxu1 %v22651_v45 }
 0xa0e   : > { %18811 = vmatmul.mubr.bf16.gmra.mrb[72].mxu1 %v22654_v35 }
 0xa0f   : > { %18814 = vmatprep.mubr.bf16.mxu1 %v22657_v2 }
 0xa16   : > { %18815 = vmatmul.mubr.bf16.gmra.mrb[76].mxu1 %v22660_v41 }
 0xa17   : > { %18834 = vmatprep.mubr.bf16.mxu1 %v13737_v60  ;;  %v13689_v60 = vld [vmem:[#allocation2 + $0x110] sm:$0xf0] }
 0xa18   : > { %v13762_v6 = vrot.slane %v13689_v60, 4  ;;  %v20499_v60 = vld [vmem:[#allocation6 + $0x8b8] sm:$0xff]  }
 0xa1e   : > { %18835 = vmatmul.mubr.bf16.vlgmr.msra.gmra.mrb[48].mxu1 %v13740_v47  ;;  %v13767_v47 = vsel %vm832_vm0, %v13765_v7, %v13766_v36  ;;  %v14347_v7 = vld [vmem:[#allocation2 + $0x1f0] sm:$0xff] }
 0xa1f   : > { %18838 = vmatprep.mubr.bf16.mxu1 %v13743_v58  ;;  %18867 = vmatpush3.bf16.msra.mxu1 %v20476_v8  ;;  %v13759_v8 = vrot.slane %v13687_v15, 4  ;;  %v13693_v58 = vld [vmem:[#allocation2 + $0x130] sm:$0xf0]  ;;  %v20487_v15 = vld [vmem:[#allocation6 + $0x858] sm:$0xff]  }
 0xa20   : > { %18868 = vmatprep.subr.bf16.mxu1 %v20477_v5  ;;  %v13768_v10 = vrot.slane %v13693_v58, 4  ;;  %v14608_v36 = vld [vmem:[#allocation2 + $0x110] sm:$0xf0]  ;;  %v20508_v58 = vld [vmem:[#allocation6 + $0xa00] sm:$0xff]  }
 0xa21   : > { %v13761_v29 = vsel %vm832_vm0, %v13759_v8, %v13760_v48  ;;  %v22708_v8 = vld [vmem:[#allocation2 + $0x178] sm:$0xff]  ;;  %v20493_v48 = vld [vmem:[#allocation6 + $0x888] sm:$0xff]   ;;  %19058 = vmatprep.subr.bf16.mxu0 %v20508_v58 }
 0xa22   : > { %19059 = vmatpush3.bf16.msra.mxu0 %v20508_v58 }
 0xa23   : > { %18869 = vmatpush3.bf16.msra.mxu1 %v20477_v5  ;;  %v13764_v5 = vsel %vm832_vm0, %v13762_v6, %v13763_v22 }
 0xa24   : > { %18870 = vmatprep.subr.bf16.mxu1 %v20478_v19 }
 0xa26   : > { %18839 = vmatmul.mubr.bf16.gmra.mrb[52].mxu1 %v13746_v62  ;;  %v13698_v62 = vld [vmem:[#allocation2 + $0x158] sm:$0xf] }
 0xa27   : > { %18842 = vmatprep.mubr.bf16.mxu1 %v13749_v33  ;;  %18871 = vmatpush3.bf16.msra.mxu1 %v20478_v19  ;;  %v13769_v19 = vrot.slane %v13694_v30, 4  ;;  %v13699_v33 = vld [vmem:[#allocation2 + $0x160] sm:$0xf0]  ;;  %v13775_v39 = vrot.slane %v13698_v62, 4  ;;  %v20509_v30 = vld [vmem:[#allocation6 + $0xa08] sm:$0xff]   ;;  %v14678_v62 = vsel %vm832_vm0, %v14676_v16, %v14677_v31 }
 0xa28   : > { %18872 = vmatprep.subr.bf16.mxu1 %v20479_v32  ;;  %v13777_v53 = vrot.slane %v13699_v33, 4  ;;  %19060 = vmatprep.subr.bf16.mxu0 %v20509_v30  ;;  %v14612_v33 = vld [vmem:[#allocation2 + $0x130] sm:$0xf0]  ;;  %v14630_v16 = vld [vmem:[#allocation2 + $0x1c0] sm:$0xf0] }
 0xa29   : > { %v13770_v11 = vsel %vm832_vm0, %v13768_v10, %v13769_v19  ;;  %v14673_v10 = vrot.slane %v14608_v36, 4  ;;  %19061 = vmatpush3.bf16.msra.mxu0 %v20509_v30  ;;  %v14627_v36 = vld [vmem:[#allocation2 + $0x1a8] sm:$0xf] }
 0xa2a   : > { %v14701_v30 = vrot.slane %v14627_v36, 4  ;;  %v14631_v31 = vld [vmem:[#allocation2 + $0x1c8] sm:$0xf] }
 0xa2b   : > { %18873 = vmatpush3.bf16.msra.mxu1 %v20479_v32  ;;  %v13697_v32 = vld [vmem:[#allocation2 + $0x150] sm:$0xf0] }
 0xa2c   : > { %18874 = vmatprep.subr.bf16.mxu1 %v20480_v52  ;;  %v13774_v14 = vrot.slane %v13697_v32, 4 }
 0xa2e   : > { %18843 = vmatmul.mubr.bf16.gmra.mrb[56].mxu1 %v13752_v1  ;;  %v13776_v57 = vsel %vm832_vm0, %v13774_v14, %v13775_v39  ;;  %v13781_v1 = vrot.slane %v13702_v20, 4  ;;  %v20511_v14 = vld [vmem:[#allocation6 + $0xa18] sm:$0xff]   ;;  %v14614_v39 = vld [vmem:[#allocation2 + $0x140] sm:$0xf0] }
 0xa2f   : > { %18846 = vmatprep.mubr.bf16.mxu1 %v13755_v51  ;;  %18875 = vmatpush3.bf16.msra.mxu1 %v20480_v52  ;;  %v13778_v52 = vrot.slane %v13700_v18, 4  ;;  %v14613_v18 = vld [vmem:[#allocation2 + $0x138] sm:$0xf] }
 0xa30   : > { %18876 = vmatprep.subr.bf16.mxu1 %v20481_v55 }
 0xa31   : > { %v13779_v50 = vsel %vm832_vm0, %v13777_v53, %v13778_v52  ;;  %v14615_v53 = vld [vmem:[#allocation2 + $0x148] sm:$0xf]  ;;  %v20502_v52 = vld [vmem:[#allocation6 + $0x8d0] sm:$0xff]  }
 0xa32   : > { %v14683_v20 = vrot.slane %v14615_v53, 4  ;;  %v14634_v53 = vld [vmem:[#allocation2 + $0x1e0] sm:$0xf0] }
 0xa33   : > { %18877 = vmatpush3.bf16.msra.mxu1 %v20481_v55  ;;  %v13780_v55 = vrot.slane %v13701_v37, 4  ;;  %v14682_v37 = vrot.slane %v14614_v39, 4  ;;  %v14633_v39 = vld [vmem:[#allocation2 + $0x1d8] sm:$0xf] }
 0xa34   : > { %18878 = vmatprep.subr.bf16.mxu1 %v20482_v4 }
 0xa35   : > { %v13782_v51 = vsel %vm832_vm0, %v13780_v55, %v13781_v1  ;;  %v20512_v55 = vld [vmem:[#allocation6 + $0xa20] sm:$0xff]   ;;  %v20503_v1 = vld [vmem:[#allocation6 + $0x8d8] sm:$0xff]  }
 0xa36   : > { %18847 = vmatmul.mubr.bf16.gmra.mrb[60].mxu1 %v13758_v23  ;;  %v20495_v23 = vld [vmem:[#allocation6 + $0x898] sm:$0xff]  }
 0xa37   : > { %18850 = vmatprep.mubr.bf16.mxu1 %v13761_v29  ;;  %18879 = vmatpush3.bf16.msra.mxu1 %v20482_v4  ;;  %v22696_v4 = vld [vmem:[#allocation2 + $0x138] sm:$0xff]  ;;  %v20496_v29 = vld [vmem:[#allocation6 + $0x8a0] sm:$0xff]  }
 0xa38   : > { %18880 = vmatprep.subr.bf16.mxu1 %v20483_v44 }
 0xa3b   : > { %18881 = vmatpush3.bf16.msra.mxu1 %v20483_v44  ;;  %v20494_v44 = vld [vmem:[#allocation6 + $0x890] sm:$0xff]  }
 0xa3c   : > { %18914 = vmatprep.subr.bf16.mxu1 %v20484_v9 }
 0xa3e   : > { %18851 = vmatmul.mubr.bf16.gmra.mrb[64].mxu1 %v13764_v5 }
 0xa3f   : > { %18854 = vmatprep.mubr.bf16.mxu1 %v13767_v47  ;;  %v14609_v47 = vld [vmem:[#allocation2 + $0x118] sm:$0xf] }
 0xa40   : > { %v14674_v19 = vrot.slane %v14609_v47, 4 }
 0xa42   : > { %v14675_v32 = vsel %vm832_vm0, %v14673_v10, %v14674_v19  ;;  %v14628_v10 = vld [vmem:[#allocation2 + $0x1b0] sm:$0xf0]  ;;  %v14629_v19 = vld [vmem:[#allocation2 + $0x1b8] sm:$0xf] }
 0xa46   : > { %18855 = vmatmul.mubr.bf16.gmra.mrb[68].mxu1 %v13770_v11  ;;  %v20510_v11 = vld [vmem:[#allocation6 + $0xa10] sm:$0xff]  }
 0xa47   : > { %18858 = vmatprep.mubr.bf16.mxu1 %v13773_v26  ;;  %v20501_v26 = vld [vmem:[#allocation6 + $0x8c8] sm:$0xff]   ;;  %19062 = vmatprep.subr.bf16.mxu0 %v20510_v11 }
 0xa48   : > { %19063 = vmatpush3.bf16.msra.mxu0 %v20510_v11  ;;  %v14703_v11 = vrot.slane %v14628_v10, 4 }
 0xa49   : > { %19064 = vmatprep.subr.bf16.mxu0 %v20511_v14 }
 0xa4c   : > { %19065 = vmatpush3.bf16.msra.mxu0 %v20511_v14  ;;  %v14632_v14 = vld [vmem:[#allocation2 + $0x1d0] sm:$0xf0] }
 0xa4d   : > { %19066 = vmatprep.subr.bf16.mxu0 %v20512_v55 }
 0xa4e   : > { %18859 = vmatmul.mubr.bf16.gmra.mrb[72].mxu1 %v13776_v57  ;;  %v14679_v57 = vrot.slane %v14612_v33, 4 }
 0xa4f   : > { %18862 = vmatprep.mubr.bf16.mxu1 %v13779_v50  ;;  %v14680_v50 = vrot.slane %v14613_v18, 4 }
 0xa50   : > { %19067 = vmatpush3.bf16.msra.mxu0 %v20512_v55 }
 0xa56   : > { %18863 = vmatmul.mubr.bf16.gmra.mrb[76].mxu1 %v13782_v51  ;;  %v14681_v51 = vsel %vm832_vm0, %v14679_v57, %v14680_v50  ;;  %v14709_v57 = vrot.slane %v14632_v14, 4  ;;  %v14710_v50 = vrot.slane %v14633_v39, 4 }
 0xa57   : > { %18882 = vmatprep.mubr.bf16.mxu1 %v22607_v42  ;;  %v20489_v42 = vld [vmem:[#allocation6 + $0x868] sm:$0xff]  }
 0xa58   : > { %v14711_v55 = vsel %vm832_vm0, %v14709_v57, %v14710_v50 }
 0xa5e   : > { %18883 = vmatmul.mubr.bf16.vlgmr.msra.gmra.mrb[48].mxu1 %v22610_v38  ;;  %v20490_v38 = vld [vmem:[#allocation6 + $0x870] sm:$0xff]  }
 0xa5f   : > { %18886 = vmatprep.mubr.bf16.mxu1 %v22613_v12  ;;  %18915 = vmatpush3.bf16.msra.mxu1 %v20484_v9  ;;  %v20491_v12 = vld [vmem:[#allocation6 + $0x878] sm:$0xff]   ;;  %v14606_v9 = vld [vmem:[#allocation2 + $0x100] sm:$0xf0] }
 0xa60   : > { %18916 = vmatprep.subr.bf16.mxu1 %v20485_v0  ;;  %v14670_v6 = vrot.slane %v14606_v9, 4  ;;  %v14624_v9 = vld [vmem:[#allocation2 + $0x190] sm:$0xf0] }
 0xa63   : > { %18917 = vmatpush3.bf16.msra.mxu1 %v20485_v0  ;;  %v14684_v0 = vsel %vm832_vm0, %v14682_v37, %v14683_v20  ;;  %v14712_v37 = vrot.slane %v14634_v53, 4 }
 0xa64   : > { %18918 = vmatprep.subr.bf16.mxu1 %v20486_v63 }
 0xa66   : > { %18887 = vmatmul.mubr.bf16.gmra.mrb[52].mxu1 %v22616_v56  ;;  %v22687_v56 = vld [vmem:[#allocation2 + $0x108] sm:$0xff] }
 0xa67   : > { %18890 = vmatprep.mubr.bf16.mxu1 %v22619_v59  ;;  %18919 = vmatpush3.bf16.msra.mxu1 %v20486_v63  ;;  %v20492_v59 = vld [vmem:[#allocation6 + $0x880] sm:$0xff]   ;;  %v14616_v63 = vld [vmem:[#allocation2 + $0x150] sm:$0xf0] }
 0xa68   : > { %18920 = vmatprep.subr.bf16.mxu1 %v20487_v15 }
 0xa6b   : > { %18921 = vmatpush3.bf16.msra.mxu1 %v20487_v15  ;;  %v14617_v15 = vld [vmem:[#allocation2 + $0x158] sm:$0xf] }
 0xa6c   : > { %18922 = vmatprep.subr.bf16.mxu1 %v20488_v24 }
 0xa6e   : > { %18891 = vmatmul.mubr.bf16.gmra.mrb[56].mxu1 %v22622_v13  ;;  %v22690_v13 = vld [vmem:[#allocation2 + $0x118] sm:$0xff] }
 0xa6f   : > { %18894 = vmatprep.mubr.bf16.mxu1 %v22625_v25  ;;  %18923 = vmatpush3.bf16.msra.mxu1 %v20488_v24  ;;  %v22693_v25 = vld [vmem:[#allocation2 + $0x128] sm:$0xff]  ;;  %v14618_v24 = vld [vmem:[#allocation2 + $0x160] sm:$0xf0] }
 0xa70   : > { %18924 = vmatprep.subr.bf16.mxu1 %v20489_v42 }
 0xa73   : > { %18925 = vmatpush3.bf16.msra.mxu1 %v20489_v42  ;;  %v14619_v42 = vld [vmem:[#allocation2 + $0x168] sm:$0xf] }
 0xa74   : > { %18926 = vmatprep.subr.bf16.mxu1 %v20490_v38 }
 0xa76   : > { %18895 = vmatmul.mubr.bf16.gmra.mrb[60].mxu1 %v22628_v28  ;;  %v22699_v28 = vld [vmem:[#allocation2 + $0x148] sm:$0xff] }
 0xa77   : > { %18898 = vmatprep.mubr.bf16.mxu1 %v22687_v56  ;;  %18927 = vmatpush3.bf16.msra.mxu1 %v20490_v38  ;;  %v20504_v38 = vld [vmem:[#allocation6 + $0x8e0] sm:$0xff]  }
 0xa78   : > { %18928 = vmatprep.subr.bf16.mxu1 %v20491_v12 }
 0xa7b   : > { %18929 = vmatpush3.bf16.msra.mxu1 %v20491_v12  ;;  %v14685_v12 = vrot.slane %v14616_v63, 4 }
 0xa7c   : > { %18962 = vmatprep.subr.bf16.mxu1 %v20492_v59 }
 0xa7e   : > { %18899 = vmatmul.mubr.bf16.gmra.mrb[64].mxu1 %v22690_v13 }
 0xa7f   : > { %18902 = vmatprep.mubr.bf16.mxu1 %v22693_v25 }
 0xa86   : > { %18903 = vmatmul.mubr.bf16.gmra.mrb[68].mxu1 %v22696_v4 }
 0xa87   : > { %18906 = vmatprep.mubr.bf16.mxu1 %v22699_v28 }
 0xa8e   : > { %18907 = vmatmul.mubr.bf16.gmra.mrb[72].mxu1 %v22702_v61 }
 0xa8f   : > { %18910 = vmatprep.mubr.bf16.mxu1 %v22705_v3 }
 0xa96   : > { %18911 = vmatmul.mubr.bf16.gmra.mrb[76].mxu1 %v22708_v8 }
 0xa97   : > { %18930 = vmatprep.mubr.bf16.mxu1 %v22639_v54  ;;  %v20497_v54 = vld [vmem:[#allocation6 + $0x8a8] sm:$0xff]  }
 0xa9e   : > { %18931 = vmatmul.mubr.bf16.vlgmr.msra.gmra.mrb[48].mxu1 %v22642_v49  ;;  %v20498_v49 = vld [vmem:[#allocation6 + $0x8b0] sm:$0xff]  }
 0xa9f   : > { %18934 = vmatprep.mubr.bf16.mxu1 %v22645_v43  ;;  %18963 = vmatpush3.bf16.msra.mxu1 %v20492_v59  ;;  %v14340_v43 = vld [vmem:[#allocation2 + $0x180] sm:$0xff]  ;;  %v14686_v59 = vrot.slane %v14617_v15, 4 }
 0xaa0   : > { %18964 = vmatprep.subr.bf16.mxu1 %v20493_v48 }
 0xaa3   : > { %18965 = vmatpush3.bf16.msra.mxu1 %v20493_v48  ;;  %v14688_v48 = vrot.slane %v14618_v24, 4 }
 0xaa4   : > { %18966 = vmatprep.subr.bf16.mxu1 %v20494_v44 }
 0xaa6   : > { %18935 = vmatmul.mubr.bf16.gmra.mrb[52].mxu1 %v22648_v40  ;;  %v20500_v40 = vld [vmem:[#allocation6 + $0x8c0] sm:$0xff]  }
 0xaa7   : > { %18938 = vmatprep.mubr.bf16.mxu1 %v22651_v45  ;;  %18967 = vmatpush3.bf16.msra.mxu1 %v20494_v44  ;;  %v14341_v45 = vld [vmem:[#allocation2 + $0x190] sm:$0xff]  ;;  %v14689_v44 = vrot.slane %v14619_v42, 4  ;;  %v15000_v42 = vld [vmem:[#allocation2 + $0x188] sm:$0xff] }
 0xaa8   : > { %18968 = vmatprep.subr.bf16.mxu1 %v20495_v23 }
 0xaab   : > { %18969 = vmatpush3.bf16.msra.mxu1 %v20495_v23  ;;  %v20505_v23 = vld [vmem:[#allocation6 + $0x8e8] sm:$0xff]  }
 0xaac   : > { %18970 = vmatprep.subr.bf16.mxu1 %v20496_v29 }
 0xaae   : > { %18939 = vmatmul.mubr.bf16.gmra.mrb[56].mxu1 %v22654_v35  ;;  %v14343_v35 = vld [vmem:[#allocation2 + $0x1b0] sm:$0xff] }
 0xaaf   : > { %18942 = vmatprep.mubr.bf16.mxu1 %v22657_v2  ;;  %18971 = vmatpush3.bf16.msra.mxu1 %v20496_v29  ;;  %v14344_v2 = vld [vmem:[#allocation2 + $0x1c0] sm:$0xff]  ;;  %v14687_v29 = vsel %vm832_vm0, %v14685_v12, %v14686_v59  ;;  %v15002_v12 = vld [vmem:[#allocation2 + $0x1a8] sm:$0xff] }
 0xab0   : > { %18972 = vmatprep.subr.bf16.mxu1 %v20497_v54  ;;  %v22743_v59 = vld [vmem:[#allocation8 + $0x3] ss:$0 sm:$0xff] }
 0xab3   : > { %18973 = vmatpush3.bf16.msra.mxu1 %v20497_v54  ;;  %v14622_v54 = vld [vmem:[#allocation2 + $0x180] sm:$0xf0] }
 0xab4   : > { %18974 = vmatprep.subr.bf16.mxu1 %v20498_v49 }
 0xab6   : > { %18943 = vmatmul.mubr.bf16.gmra.mrb[60].mxu1 %v22660_v41  ;;  %v14607_v41 = vld [vmem:[#allocation2 + $0x108] sm:$0xf] }
 0xab7   : > { %18946 = vmatprep.mubr.bf16.mxu1 %v14340_v43  ;;  %18975 = vmatpush3.bf16.msra.mxu1 %v20498_v49  ;;  %v14671_v22 = vrot.slane %v14607_v41, 4  ;;  %v14623_v49 = vld [vmem:[#allocation2 + $0x188] sm:$0xf]  ;;  %v14690_v43 = vsel %vm832_vm0, %v14688_v48, %v14689_v44  ;;  %v14625_v41 = vld [vmem:[#allocation2 + $0x198] sm:$0xf] }
 0xab8   : > { %18976 = vmatprep.subr.bf16.mxu1 %v20499_v60  ;;  %v14698_v47 = vrot.slane %v14625_v41, 4 }
 0xab9   : > { %v14672_v5 = vsel %vm832_vm0, %v14670_v6, %v14671_v22  ;;  %v20507_v6 = vld [vmem:[#allocation6 + $0x8f8] sm:$0xff]  }
 0xabb   : > { %18977 = vmatpush3.bf16.msra.mxu1 %v20499_v60  ;;  %v14620_v60 = vld [vmem:[#allocation2 + $0x170] sm:$0xf0] }
 0xabc   : > { %19010 = vmatprep.subr.bf16.mxu1 %v20500_v40 }
 0xabe   : > { %18947 = vmatmul.mubr.bf16.gmra.mrb[64].mxu1 %v14341_v45  ;;  %v14694_v45 = vrot.slane %v14622_v54, 4 }
 0xabf   : > { %18950 = vmatprep.mubr.bf16.mxu1 %v14342_v21  ;;  %v14695_v21 = vrot.slane %v14623_v49, 4 }
 0xac6   : > { %18951 = vmatmul.mubr.bf16.gmra.mrb[68].mxu1 %v14343_v35  ;;  %v20506_v35 = vld [vmem:[#allocation6 + $0x8f0] sm:$0xff]  }
 0xac7   : > { %18954 = vmatprep.mubr.bf16.mxu1 %v14344_v2  ;;  %v14691_v2 = vrot.slane %v14620_v60, 4 }
 0xace   : > { %18955 = vmatmul.mubr.bf16.gmra.mrb[72].mxu1 %v14345_v46 }
 0xacf   : > { %18958 = vmatprep.mubr.bf16.mxu1 %v14346_v34  ;;  %v14696_v34 = vsel %vm832_vm0, %v14694_v45, %v14695_v21 }
 0xad6   : > { %18959 = vmatmul.mubr.bf16.gmra.mrb[76].mxu1 %v14347_v7  ;;  %v14626_v7 = vld [vmem:[#allocation2 + $0x1a0] sm:$0xf0] }
 0xad7   : > { %18978 = vmatprep.mubr.bf16.mxu1 %v14672_v5  ;;  %v14697_v5 = vrot.slane %v14624_v9, 4  ;;  %v14700_v58 = vrot.slane %v14626_v7, 4 }
 0xad9   : > { %v14699_v27 = vsel %vm832_vm0, %v14697_v5, %v14698_v47  ;;  %v14702_v17 = vsel %vm832_vm0, %v14700_v58, %v14701_v30 }
 0xade   : > { %18979 = vmatmul.mubr.bf16.vlgmr.msra.gmra.mrb[48].mxu1 %v14675_v32  ;;  %v14706_v32 = vrot.slane %v14630_v16, 4 }
 0xadf   : > { %18982 = vmatprep.mubr.bf16.mxu1 %v14678_v62  ;;  %19011 = vmatpush3.bf16.msra.mxu1 %v20500_v40  ;;  %v14621_v40 = vld [vmem:[#allocation2 + $0x178] sm:$0xf]  ;;  %v14707_v62 = vrot.slane %v14631_v31, 4 }
 0xae0   : > { %19012 = vmatprep.subr.bf16.mxu1 %v20501_v26  ;;  %v14692_v46 = vrot.slane %v14621_v40, 4 }
 0xae1   : > { %v14708_v18 = vsel %vm832_vm0, %v14706_v32, %v14707_v62 }
 0xae2   : > { %v14693_v22 = vsel %vm832_vm0, %v14691_v2, %v14692_v46 }
 0xae3   : > { %19013 = vmatpush3.bf16.msra.mxu1 %v20501_v26  ;;  %v14704_v26 = vrot.slane %v14629_v19, 4 }
 0xae4   : > { %19014 = vmatprep.subr.bf16.mxu1 %v20502_v52 }
 0xae5   : > { %v14705_v33 = vsel %vm832_vm0, %v14703_v11, %v14704_v26 }
 0xae6   : > { %18983 = vmatmul.mubr.bf16.gmra.mrb[52].mxu1 %v14681_v51  ;;  %v14636_v51 = vld [vmem:[#allocation2 + $0x1f0] sm:$0xf0] }
 0xae7   : > { %18986 = vmatprep.mubr.bf16.mxu1 %v14684_v0  ;;  %19015 = vmatpush3.bf16.msra.mxu1 %v20502_v52  ;;  %v14635_v52 = vld [vmem:[#allocation2 + $0x1e8] sm:$0xf]  ;;  %v14637_v0 = vld [vmem:[#allocation2 + $0x1f8] sm:$0xf]  ;;  %v14715_v63 = vrot.slane %v14636_v51, 4 }
 0xae8   : > { %19016 = vmatprep.subr.bf16.mxu1 %v20503_v1  ;;  %v14713_v20 = vrot.slane %v14635_v52, 4  ;;  %v14716_v15 = vrot.slane %v14637_v0, 4 }
 0xaea   : > { %v14717_v24 = vsel %vm832_vm0, %v14715_v63, %v14716_v15 }
 0xaeb   : > { %19017 = vmatpush3.bf16.msra.mxu1 %v20503_v1  ;;  %v14714_v1 = vsel %vm832_vm0, %v14712_v37, %v14713_v20 }
 0xaec   : > { %19018 = vmatprep.subr.bf16.mxu1 %v20504_v38 }
 0xaee   : > { %18987 = vmatmul.mubr.bf16.gmra.mrb[56].mxu1 %v14687_v29 }
 0xaef   : > { %18990 = vmatprep.mubr.bf16.mxu1 %v14690_v43  ;;  %19019 = vmatpush3.bf16.msra.mxu1 %v20504_v38  ;;  %v15001_v38 = vld [vmem:[#allocation2 + $0x198] sm:$0xff] }
 0xaf0   : > { %19020 = vmatprep.subr.bf16.mxu1 %v20505_v23 }
 0xaf3   : > { %19021 = vmatpush3.bf16.msra.mxu1 %v20505_v23 }
 0xaf4   : > { %19022 = vmatprep.subr.bf16.mxu1 %v20506_v35 }
 0xaf6   : > { %18991 = vmatmul.mubr.bf16.gmra.mrb[60].mxu1 %v14693_v22 }
 0xaf7   : > { %18994 = vmatprep.mubr.bf16.mxu1 %v14696_v34  ;;  %19023 = vmatpush3.bf16.msra.mxu1 %v20506_v35 }
 0xaf8   : > { %19024 = vmatprep.subr.bf16.mxu1 %v20507_v6 }
 0xafb   : > { %19025 = vmatpush3.bf16.msra.mxu1 %v20507_v6 }
 0xafe   : > { %18995 = vmatmul.mubr.bf16.gmra.mrb[64].mxu1 %v14699_v27 }
 0xaff   : > { %18998 = vmatprep.mubr.bf16.mxu1 %v14702_v17 }
 0xb06   : > { %18999 = vmatmul.mubr.bf16.gmra.mrb[68].mxu1 %v14705_v33 }
 0xb07   : > { %19002 = vmatprep.mubr.bf16.mxu1 %v14708_v18 }
 0xb0e   : > { %19003 = vmatmul.mubr.bf16.gmra.mrb[72].mxu1 %v14711_v55 }
 0xb0f   : > { %19006 = vmatprep.mubr.bf16.mxu1 %v14714_v1 }
 0xb16   : > { %19007 = vmatmul.mubr.bf16.gmra.mrb[76].mxu1 %v14717_v24 }
 0xb17   : > { %19026 = vmatprep.mubr.bf16.mxu1 %v22687_v56  ;;  %v15003_v56 = vld [vmem:[#allocation2 + $0x1b8] sm:$0xff] }
 0xb1e   : > { %19027 = vmatmul.mubr.bf16.vlgmr.msra.gmra.mrb[48].mxu1 %v22690_v13  ;;  %v15004_v13 = vld [vmem:[#allocation2 + $0x1c8] sm:$0xff] }
 0xb1f   : > { %19030 = vmatprep.mubr.bf16.mxu1 %v22693_v25  ;;  %v15005_v25 = vld [vmem:[#allocation2 + $0x1d8] sm:$0xff] }
 0xb26   : > { %19031 = vmatmul.mubr.bf16.gmra.mrb[52].mxu1 %v22696_v4  ;;  %v15006_v4 = vld [vmem:[#allocation2 + $0x1e8] sm:$0xff] }
 0xb27   : > { %19034 = vmatprep.mubr.bf16.mxu1 %v22699_v28  ;;  %v15007_v28 = vld [vmem:[#allocation2 + $0x1f8] sm:$0xff] }
 0xb2e   : > { %19035 = vmatmul.mubr.bf16.gmra.mrb[56].mxu1 %v22702_v61  ;;  %v20513_v61 = vld [vmem:[#allocation6 + $0xa28] sm:$0xff]  }
 0xb2f   : > { %19038 = vmatprep.mubr.bf16.mxu1 %v22705_v3  ;;  %19068 = vmatprep.subr.bf16.mxu0 %v20513_v61  ;;  %v20514_v3 = vld [vmem:[#allocation6 + $0xa30] sm:$0xff]  }
 0xb30   : > { %19069 = vmatpush3.bf16.msra.mxu0 %v20513_v61 }
 0xb31   : > { %19070 = vmatprep.subr.bf16.mxu0 %v20514_v3 }
 0xb34   : > { %19071 = vmatpush3.bf16.msra.mxu0 %v20514_v3 }
 0xb36   : > { %19039 = vmatmul.mubr.bf16.gmra.mrb[60].mxu1 %v22708_v8  ;;  %v20515_v8 = vld [vmem:[#allocation6 + $0xa38] sm:$0xff]  }
 0xb37   : > { %19042 = vmatprep.mubr.bf16.mxu1 %v15000_v42  ;;  %19072 = vmatprep.subr.bf16.mxu0 %v20515_v8 }
 0xb38   : > { %19073 = vmatpush3.bf16.msra.mxu0 %v20515_v8 }
 0xb3e   : > { %19043 = vmatmul.mubr.bf16.gmra.mrb[64].mxu1 %v15001_v38 }
 0xb3f   : > { %19046 = vmatprep.mubr.bf16.mxu1 %v15002_v12 }
 0xb46   : > { %19047 = vmatmul.mubr.bf16.gmra.mrb[68].mxu1 %v15003_v56 }
 0xb47   : > { %19050 = vmatprep.mubr.bf16.mxu1 %v15004_v13 }
 0xb4e   : > { %19051 = vmatmul.mubr.bf16.gmra.mrb[72].mxu1 %v15005_v25 }
 0xb4f   : > { %19054 = vmatprep.mubr.bf16.mxu1 %v15006_v4 }
 0xb56   : > { %19055 = vmatmul.mubr.bf16.gmra.mrb[76].mxu1 %v15007_v28 }
 0xbf1   : > { %v19028_v48 = vpop.f32.mrb[48].mxu1 }
 0xbf2   : > { %v22746_v44 = vadd.f32 %v19028_v48, %v22743_v59  ;;  %v15107_v23 = vpop.f32.mrb[49].mxu1 }
 0xbf3   : > { %v22749_v29 = vadd.f32 %v22743_v59, %v15107_v23  ;;  %v19029_v54 = vpop.f32.mrb[50].mxu1 }
 0xbf4   : > { %v22752_v49 = vadd.f32 %v19029_v54, %v22743_v59  ;;  %v15110_v43 = vpop.f32.mrb[51].mxu1  ;;  %v15305_v40 = vmax.f32 %v22746_v44, 0.0 }
 0xbf5   : > { %v22755_v60 = vadd.f32 %v22743_v59, %v15110_v43  ;;  %v15303_v21 = vmax.f32 %v22749_v29, 0.0 }
 0xbf6   : > { %v15306_v45 = vmax.f32 %v22752_v49, 0.0 }
 0xbf7   : > { %v15304_v35 = vmax.f32 %v22755_v60, 0.0 }
 0xbf8   : > { %v15432_v2 = vpack.c.bf16 %v15306_v45, %v15305_v40 }
 0xbf9   : > { %v15431_v46 = vpack.c.bf16 %v15304_v35, %v15303_v21  ;;  %v19032_v34 = vpop.f32.mrb[52].mxu1 }
 0xbfa   : > { %v15464_v9 = vrot.slane %v15432_v2, 4  ;;  %v22770_v41 = vadd.f32 %v19032_v34, %v22743_v59  ;;  %v15123_v6 = vpop.f32.mrb[53].mxu1 }
 0xbfb   : > { %v15463_v22 = vrot.slane %v15431_v46, 4  ;;  %v22773_v7 = vadd.f32 %v22743_v59, %v15123_v6  ;;  %v19033_v36 = vpop.f32.mrb[54].mxu1 }
 0xbfc   : > { %15497 = vst [vmem:[#allocation2 + $0x98] ss:$-4 sps:$4 sm:$0xff] %v15464_v9   ;;  %v22776_v5 = vadd.f32 %v19033_v36, %v22743_v59  ;;  %v15126_v47 = vpop.f32.mrb[55].mxu1  ;;  %v15309_v30 = vmax.f32 %v22770_v41, 0.0 }
 0xbfd   : > { %15495 = vst [vmem:[#allocation2 + $0x88] ss:$-4 sps:$4 sm:$0xff] %v15463_v22   ;;  %v22779_v58 = vadd.f32 %v22743_v59, %v15126_v47  ;;  %v15307_v17 = vmax.f32 %v22773_v7, 0.0 }
 0xbfe   : > { %v15310_v27 = vmax.f32 %v22776_v5, 0.0 }
 0xbff   : > { %v15308_v10 = vmax.f32 %v22779_v58, 0.0 }
 0xc00   : > { %v15434_v19 = vpack.c.bf16 %v15310_v27, %v15309_v30 }
 0xc01   : > { %v15433_v16 = vpack.c.bf16 %v15308_v10, %v15307_v17  ;;  %v19036_v31 = vpop.f32.mrb[56].mxu1 }
 0xc02   : > { %v15466_v11 = vrot.slane %v15434_v19, 4  ;;  %v22794_v26 = vadd.f32 %v19036_v31, %v22743_v59  ;;  %v15139_v32 = vpop.f32.mrb[57].mxu1 }
 0xc03   : > { %v15465_v62 = vrot.slane %v15433_v16, 4  ;;  %v22797_v33 = vadd.f32 %v22743_v59, %v15139_v32  ;;  %v19037_v18 = vpop.f32.mrb[58].mxu1  ;;  %v15529_v14 = vld [vmem:[#allocation2 + $0x90] sm:$0xf0]  ;;  %v15530_v39 = vld [vmem:[#allocation2 + $0x98] sm:$0xf] }
 0xc04   : > { %15501 = vst [vmem:[#allocation2 + $0xb8] ss:$-4 sps:$4 sm:$0xff] %v15466_v11   ;;  %v22800_v53 = vadd.f32 %v19037_v18, %v22743_v59  ;;  %v15142_v52 = vpop.f32.mrb[59].mxu1  ;;  %v15527_v57 = vld [vmem:[#allocation2 + $0x80] sm:$0xf0]  ;;  %v15313_v1 = vmax.f32 %v22794_v26, 0.0 }
 0xc05   : > { %v15528_v50 = vld [vmem:[#allocation2 + $0x88] sm:$0xf]  ;;  %15499 = vst [vmem:[#allocation2 + $0xa8] ss:$-4 sps:$4 sm:$0xff] %v15465_v62   ;;  %v22803_v37 = vadd.f32 %v22743_v59, %v15142_v52  ;;  %v15591_v20 = vrot.slane %v15527_v57, 4  ;;  %v15594_v0 = vrot.slane %v15529_v14, 4 }
 0xc06   : > { %v15592_v55 = vrot.slane %v15528_v50, 4  ;;  %v15314_v51 = vmax.f32 %v22800_v53, 0.0  ;;  %v15595_v63 = vrot.slane %v15530_v39, 4  ;;  %v15311_v15 = vmax.f32 %v22797_v33, 0.0 }
 0xc07   : > { %v15312_v24 = vmax.f32 %v22803_v37, 0.0 }
 0xc08   : > { %v15593_v42 = vsel %vm832_vm0, %v15591_v20, %v15592_v55  ;;  %v15436_v38 = vpack.c.bf16 %v15314_v51, %v15313_v1  ;;  %v15596_v12 = vsel %vm832_vm0, %v15594_v0, %v15595_v63 }
 0xc09   : > { %19074 = vmatprep.mubr.bf16.mxu0 %v15593_v42  ;;  %v15435_v56 = vpack.c.bf16 %v15312_v24, %v15311_v15  ;;  %v19040_v13 = vpop.f32.mrb[60].mxu1 }
 0xc0a   : > { %19075 = vmatmul.mubr.bf16.vlgmr.msra.gmra.mrb[64].mxu0 %v15596_v12  ;;  %v15468_v25 = vrot.slane %v15436_v38, 4  ;;  %v22820_v4 = vadd.f32 %v19040_v13, %v22743_v59  ;;  %v15155_v28 = vpop.f32.mrb[61].mxu1 }
 0xc0b   : > { %v15467_v61 = vrot.slane %v15435_v56, 4  ;;  %v22823_v3 = vadd.f32 %v22743_v59, %v15155_v28  ;;  %v19041_v8 = vpop.f32.mrb[62].mxu1  ;;  %v15533_v48 = vld [vmem:[#allocation2 + $0xb0] sm:$0xf0]  ;;  %v15534_v23 = vld [vmem:[#allocation2 + $0xb8] sm:$0xf] }
 0xc0c   : > { %15505 = vst [vmem:[#allocation2 + $0xd8] ss:$-4 sps:$4 sm:$0xff] %v15468_v25   ;;  %v22826_v54 = vadd.f32 %v19041_v8, %v22743_v59  ;;  %v15158_v43 = vpop.f32.mrb[63].mxu1  ;;  %v15531_v2 = vld [vmem:[#allocation2 + $0xa0] sm:$0xf0]  ;;  %v15317_v22 = vmax.f32 %v22820_v4, 0.0 }
 0xc0d   : > { %v15532_v46 = vld [vmem:[#allocation2 + $0xa8] sm:$0xf]  ;;  %15503 = vst [vmem:[#allocation2 + $0xc8] ss:$-4 sps:$4 sm:$0xff] %v15467_v61   ;;  %v22829_v34 = vadd.f32 %v22743_v59, %v15158_v43  ;;  %v15597_v9 = vrot.slane %v15531_v2, 4  ;;  %v15600_v47 = vrot.slane %v15533_v48, 4 }
 0xc0e   : > { %v15598_v6 = vrot.slane %v15532_v46, 4  ;;  %v23186_v36 = vmax.f32 %v22826_v54, 0.0  ;;  %v15601_v19 = vrot.slane %v15534_v23, 4  ;;  %v15315_v16 = vmax.f32 %v22823_v3, 0.0 }
 0xc0f   : > { %v23185_v31 = vmax.f32 %v22829_v34, 0.0 }
 0xc10   : > { %v15599_v11 = vsel %vm832_vm0, %v15597_v9, %v15598_v6  ;;  %v15438_v32 = vpack.c.bf16 %v23186_v36, %v15317_v22  ;;  %v15602_v62 = vsel %vm832_vm0, %v15600_v47, %v15601_v19 }
 0xc11   : > { %19078 = vmatprep.mubr.bf16.mxu0 %v15599_v11  ;;  %v15437_v18 = vpack.c.bf16 %v23185_v31, %v15315_v16  ;;  %v19044_v14 = vpop.f32.mrb[64].mxu1 }
 0xc12   : > { %19079 = vmatmul.mubr.bf16.gmra.mrb[68].mxu0 %v15602_v62  ;;  %v15470_v39 = vrot.slane %v15438_v32, 4  ;;  %v22846_v52 = vadd.f32 %v19044_v14, %v22743_v59  ;;  %v15171_v57 = vpop.f32.mrb[65].mxu1 }
 0xc13   : > { %v15469_v50 = vrot.slane %v15437_v18, 4  ;;  %v22849_v20 = vadd.f32 %v22743_v59, %v15171_v57  ;;  %v19045_v55 = vpop.f32.mrb[66].mxu1  ;;  %v15537_v0 = vld [vmem:[#allocation2 + $0xd0] sm:$0xf0]  ;;  %v15538_v63 = vld [vmem:[#allocation2 + $0xd8] sm:$0xf] }
 0xc14   : > { %15509 = vst [vmem:[#allocation2 + $0xf8] ss:$-4 sps:$4 sm:$0xff] %v15470_v39   ;;  %v22852_v42 = vadd.f32 %v19045_v55, %v22743_v59  ;;  %v15174_v38 = vpop.f32.mrb[67].mxu1  ;;  %v15535_v12 = vld [vmem:[#allocation2 + $0xc0] sm:$0xf0]  ;;  %v23184_v61 = vmax.f32 %v22846_v52, 0.0 }
 0xc15   : > { %v15536_v56 = vld [vmem:[#allocation2 + $0xc8] sm:$0xf]  ;;  %15507 = vst [vmem:[#allocation2 + $0xe8] ss:$-4 sps:$4 sm:$0xff] %v15469_v50   ;;  %v22855_v13 = vadd.f32 %v22743_v59, %v15174_v38  ;;  %v15603_v25 = vrot.slane %v15535_v12, 4  ;;  %v15606_v48 = vrot.slane %v15537_v0, 4 }
 0xc16   : > { %v15604_v28 = vrot.slane %v15536_v56, 4  ;;  %v23182_v8 = vmax.f32 %v22852_v42, 0.0  ;;  %v15607_v23 = vrot.slane %v15538_v63, 4  ;;  %v23183_v43 = vmax.f32 %v22849_v20, 0.0 }
 0xc17   : > { %v23177_v2 = vmax.f32 %v22855_v13, 0.0 }
 0xc18   : > { %v15605_v46 = vsel %vm832_vm0, %v15603_v25, %v15604_v28  ;;  %v15440_v9 = vpack.c.bf16 %v23182_v8, %v23184_v61  ;;  %v15608_v6 = vsel %vm832_vm0, %v15606_v48, %v15607_v23 }
 0xc19   : > { %19082 = vmatprep.mubr.bf16.mxu0 %v15605_v46  ;;  %v15439_v47 = vpack.c.bf16 %v23177_v2, %v23183_v43  ;;  %v19048_v19 = vpop.f32.mrb[68].mxu1 }
 0xc1a   : > { %19083 = vmatmul.mubr.bf16.gmra.mrb[72].mxu0 %v15608_v6  ;;  %v15472_v11 = vrot.slane %v15440_v9, 4  ;;  %v22872_v32 = vadd.f32 %v19048_v19, %v22743_v59  ;;  %v15187_v62 = vpop.f32.mrb[69].mxu1 }
 0xc1b   : > { %v15471_v18 = vrot.slane %v15439_v47, 4  ;;  %v22875_v14 = vadd.f32 %v22743_v59, %v15187_v62  ;;  %v19049_v39 = vpop.f32.mrb[70].mxu1  ;;  %v15541_v57 = vld [vmem:[#allocation2 + $0xf0] sm:$0xf0]  ;;  %v15542_v50 = vld [vmem:[#allocation2 + $0xf8] sm:$0xf] }
 0xc1c   : > { %15513 = vst [vmem:[#allocation2 + $0x118] ss:$-4 sps:$4 sm:$0xff] %v15472_v11   ;;  %v22878_v55 = vadd.f32 %v19049_v39, %v22743_v59  ;;  %v15190_v0 = vpop.f32.mrb[71].mxu1  ;;  %v15539_v63 = vld [vmem:[#allocation2 + $0xe0] sm:$0xf0]  ;;  %v23176_v28 = vmax.f32 %v22872_v32, 0.0 }
 0xc1d   : > { %v15540_v38 = vld [vmem:[#allocation2 + $0xe8] sm:$0xf]  ;;  %15511 = vst [vmem:[#allocation2 + $0x108] ss:$-4 sps:$4 sm:$0xff] %v15471_v18   ;;  %v22881_v12 = vadd.f32 %v22743_v59, %v15190_v0  ;;  %v15609_v56 = vrot.slane %v15539_v63, 4  ;;  %v15612_v23 = vrot.slane %v15541_v57, 4 }
 0xc1e   : > { %v15610_v25 = vrot.slane %v15540_v38, 4  ;;  %v23174_v48 = vmax.f32 %v22878_v55, 0.0  ;;  %v15613_v46 = vrot.slane %v15542_v50, 4  ;;  %v23175_v9 = vmax.f32 %v22875_v14, 0.0 }
 0xc1f   : > { %v23173_v6 = vmax.f32 %v22881_v12, 0.0 }
 0xc20   : > { %v15611_v47 = vsel %vm832_vm0, %v15609_v56, %v15610_v25  ;;  %v15442_v19 = vpack.c.bf16 %v23174_v48, %v23176_v28  ;;  %v15614_v11 = vsel %vm832_vm0, %v15612_v23, %v15613_v46 }
 0xc21   : > { %19086 = vmatprep.mubr.bf16.mxu0 %v15611_v47  ;;  %v15441_v62 = vpack.c.bf16 %v23173_v6, %v23175_v9  ;;  %v19052_v18 = vpop.f32.mrb[72].mxu1 }
 0xc22   : > { %19087 = vmatmul.mubr.bf16.gmra.mrb[76].mxu0 %v15614_v11  ;;  %v15474_v39 = vrot.slane %v15442_v19, 4  ;;  %v22898_v57 = vadd.f32 %v19052_v18, %v22743_v59  ;;  %v15203_v50 = vpop.f32.mrb[73].mxu1 }
 0xc23   : > { %v15473_v0 = vrot.slane %v15441_v62, 4  ;;  %v22901_v63 = vadd.f32 %v22743_v59, %v15203_v50  ;;  %v19053_v38 = vpop.f32.mrb[74].mxu1  ;;  %v15545_v56 = vld [vmem:[#allocation2 + $0x110] sm:$0xf0]  ;;  %v15546_v25 = vld [vmem:[#allocation2 + $0x118] sm:$0xf] }
 0xc24   : > { %15517 = vst [vmem:[#allocation2 + $0x138] ss:$-4 sps:$4 sm:$0xff] %v15474_v39   ;;  %v22904_v23 = vadd.f32 %v19053_v38, %v22743_v59  ;;  %v15206_v46 = vpop.f32.mrb[75].mxu1  ;;  %v15543_v47 = vld [vmem:[#allocation2 + $0x100] sm:$0xf0]  ;;  %v23179_v62 = vmax.f32 %v22898_v57, 0.0 }
 0xc25   : > { %v15544_v6 = vld [vmem:[#allocation2 + $0x108] sm:$0xf]  ;;  %15515 = vst [vmem:[#allocation2 + $0x128] ss:$-4 sps:$4 sm:$0xff] %v15473_v0   ;;  %v22907_v19 = vadd.f32 %v22743_v59, %v15206_v46  ;;  %v15615_v11 = vrot.slane %v15543_v47, 4  ;;  %v15618_v48 = vrot.slane %v15545_v56, 4 }
 0xc26   : > { %v15616_v18 = vrot.slane %v15544_v6, 4  ;;  %v23178_v50 = vmax.f32 %v22904_v23, 0.0  ;;  %v15619_v9 = vrot.slane %v15546_v25, 4  ;;  %v23181_v39 = vmax.f32 %v22901_v63, 0.0 }
 0xc27   : > { %v23180_v38 = vmax.f32 %v22907_v19, 0.0 }
 0xc28   : > { %v15617_v28 = vsel %vm832_vm0, %v15615_v11, %v15616_v18  ;;  %v15444_v0 = vpack.c.bf16 %v23178_v50, %v23179_v62  ;;  %v15620_v6 = vsel %vm832_vm0, %v15618_v48, %v15619_v9 }
 0xc29   : > { %19090 = vmatprep.mubr.bf16.mxu0 %v15617_v28  ;;  %v15443_v56 = vpack.c.bf16 %v23180_v38, %v23181_v39  ;;  %v19056_v25 = vpop.f32.mrb[76].mxu1 }
 0xc2a   : > { %19091 = vmatmul.mubr.bf16.gmra.mrb[80].mxu0 %v15620_v6  ;;  %v15476_v46 = vrot.slane %v15444_v0, 4  ;;  %v22924_v47 = vadd.f32 %v19056_v25, %v22743_v59  ;;  %v15219_v11 = vpop.f32.mrb[77].mxu1 }
 0xc2b   : > { %v15475_v18 = vrot.slane %v15443_v56, 4  ;;  %v22927_v2 = vadd.f32 %v22743_v59, %v15219_v11  ;;  %v19057_v50 = vpop.f32.mrb[78].mxu1  ;;  %v15549_v28 = vld [vmem:[#allocation2 + $0x130] sm:$0xf0]  ;;  %v15550_v62 = vld [vmem:[#allocation2 + $0x138] sm:$0xf] }
 0xc2c   : > { %15521 = vst [vmem:[#allocation2 + $0x158] ss:$-4 sps:$4 sm:$0xff] %v15476_v46   ;;  %v22930_v48 = vadd.f32 %v19057_v50, %v22743_v59  ;;  %v15222_v9 = vpop.f32.mrb[79].mxu1  ;;  %v15547_v38 = vld [vmem:[#allocation2 + $0x120] sm:$0xf0]  ;;  %v23190_v56 = vmax.f32 %v22924_v47, 0.0 }
 0xc2d   : > { %v15548_v39 = vld [vmem:[#allocation2 + $0x128] sm:$0xf]  ;;  %15519 = vst [vmem:[#allocation2 + $0x148] ss:$-4 sps:$4 sm:$0xff] %v15475_v18   ;;  %v22933_v0 = vadd.f32 %v22743_v59, %v15222_v9  ;;  %v15621_v6 = vrot.slane %v15547_v38, 4  ;;  %v15624_v8 = vrot.slane %v15549_v28, 4 }
 0xc2e   : > { %v15622_v25 = vrot.slane %v15548_v39, 4  ;;  %v23187_v11 = vmax.f32 %v22930_v48, 0.0  ;;  %v15625_v43 = vrot.slane %v15550_v62, 4  ;;  %v23189_v46 = vmax.f32 %v22927_v2, 0.0 }
 0xc2f   : > { %v23188_v50 = vmax.f32 %v22933_v0, 0.0 }
 0xc30   : > { %v15623_v61 = vsel %vm832_vm0, %v15621_v6, %v15622_v25  ;;  %v15446_v59 = vpack.c.bf16 %v23187_v11, %v23190_v56  ;;  %v15626_v39 = vsel %vm832_vm0, %v15624_v8, %v15625_v43 }
 0xc31   : > { %19094 = vmatprep.mubr.bf16.mxu0 %v15623_v61  ;;  %v15445_v38 = vpack.c.bf16 %v23188_v50, %v23189_v46 }
 0xc32   : > { %19095 = vmatmul.mubr.bf16.gmra.mrb[84].mxu0 %v15626_v39  ;;  %v15478_v62 = vrot.slane %v15446_v59, 4 }
 0xc33   : > { %v15477_v18 = vrot.slane %v15445_v38, 4  ;;  %v15553_v28 = vld [vmem:[#allocation2 + $0x150] sm:$0xf0]  ;;  %v15554_v9 = vld [vmem:[#allocation2 + $0x158] sm:$0xf] }
 0xc34   : > { %15525 = vst [vmem:[#allocation2 + $0x178] ss:$-4 sps:$4 sm:$0xff] %v15478_v62   ;;  %v15551_v6 = vld [vmem:[#allocation2 + $0x140] sm:$0xf0]  ;;  %v15552_v25 = vld [vmem:[#allocation2 + $0x148] sm:$0xf] }
 0xc35   : > { %v15630_v31 = vrot.slane %v15553_v28, 4  ;;  %v15631_v36 = vrot.slane %v15554_v9, 4  ;;  %15523 = vst [vmem:[#allocation2 + $0x168] ss:$-4 sps:$4 sm:$0xff] %v15477_v18   ;;  %v15627_v11 = vrot.slane %v15551_v6, 4  ;;  %v15628_v61 = vrot.slane %v15552_v25, 4 }
 0xc36   : > { %v22953_v9 = vld [vmem:[#allocation8 + $0x4] ss:$0 sm:$0xff]  ;;  %v15337_v25 = vld [vmem:[%s20908_s20 + $0x10] sm:$0xff] }
 0xc37   : > { %v15629_v8 = vsel %vm832_vm0, %v15627_v11, %v15628_v61  ;;  %v15632_v43 = vsel %vm832_vm0, %v15630_v31, %v15631_v36 }
 0xc38   : > { %19098 = vmatprep.mubr.bf16.mxu0 %v15629_v8  ;;  %v15369_v8 = vadd.f32 %v15337_v25, %v15305_v40  ;;  %v15336_v40 = vld [vmem:[%s20908_s20 + $0x8] sm:$0xff] }
 0xc3a   : > { %19099 = vmatmul.mubr.bf16.gmra.mrb[88].mxu0 %v15632_v43 }
 0xc3b   : > { %v15557_v50 = vld [vmem:[#allocation2 + $0x170] sm:$0xf0]  ;;  %v15558_v59 = vld [vmem:[#allocation2 + $0x178] sm:$0xf] }
 0xc3c   : > { %v15555_v39 = vld [vmem:[#allocation2 + $0x160] sm:$0xf0]  ;;  %v15556_v38 = vld [vmem:[#allocation2 + $0x168] sm:$0xf]  ;;  %v15636_v46 = vrot.slane %v15557_v50, 4  ;;  %v15637_v62 = vrot.slane %v15558_v59, 4 }
 0xc3d   : > { %v15633_v56 = vrot.slane %v15555_v39, 4  ;;  %v15634_v28 = vrot.slane %v15556_v38, 4  ;;  %v15338_v38 = vld [vmem:[%s20908_s20 + $0x18] sm:$0xff] }
 0xc3e   : > { %v15638_v11 = vsel %vm832_vm0, %v15636_v46, %v15637_v62  ;;  %v15370_v44 = vadd.f32 %v15338_v38, %v15306_v45 }
 0xc3f   : > { %v15635_v18 = vsel %vm832_vm0, %v15633_v56, %v15634_v28  ;;  %v15335_v56 = vld [vmem:[%s20908_s20] sm:$0xff] }
 0xc40   : > { %19102 = vmatprep.mubr.bf16.mxu0 %v15635_v18  ;;  %v15367_v39 = vadd.f32 %v15335_v56, %v15303_v21 }
 0xc42   : > { %19103 = vmatmul.mubr.bf16.gmra.mrb[92].mxu0 %v15638_v11 }
 0xcdd   : > { %v19076_v36 = vpop.f32.mrb[64].mxu0 }
 0xcde   : > { %v15768_v31 = vadd.f32 %v19076_v36, %v22953_v9  ;;  %v15759_v6 = vpop.f32.mrb[65].mxu0  ;;  %v15368_v36 = vadd.f32 %v15336_v40, %v15304_v35 }
 0xcdf   : > { %v15760_v50 = vadd.f32 %v22953_v9, %v15759_v6  ;;  %v19077_v61 = vpop.f32.mrb[66].mxu0 }
 0xce0   : > { %v15888_v43 = vmax.f32 %v15768_v31, 0.0  ;;  %v15771_v46 = vadd.f32 %v19077_v61, %v22953_v9  ;;  %v15762_v59 = vpop.f32.mrb[67].mxu0 }
 0xce1   : > { %v15886_v62 = vmax.f32 %v15760_v50, 0.0  ;;  %v15763_v28 = vadd.f32 %v22953_v9, %v15762_v59  ;;  %v15341_v50 = vld [vmem:[%s20908_s20 + $0x30] sm:$0xff] }
 0xce2   : > { %v15952_v18 = vadd.f32 %v15888_v43, %v15369_v8  ;;  %v15889_v11 = vmax.f32 %v15771_v46, 0.0  ;;  %v15373_v35 = vadd.f32 %v15341_v50, %v15309_v30  ;;  %v15339_v8 = vld [vmem:[%s20908_s20 + $0x20] sm:$0xff]  ;;  %v15340_v30 = vld [vmem:[%s20908_s20 + $0x28] sm:$0xff]  ;;  %v15346_v50 = vld [vmem:[%s20908_s20 + $0x58] sm:$0xff] }
 0xce3   : > { %v15950_v31 = vadd.f32 %v15886_v62, %v15367_v39  ;;  %v15887_v29 = vmax.f32 %v15763_v28, 0.0  ;;  %v15371_v59 = vadd.f32 %v15339_v8, %v15307_v17  ;;  %v15342_v39 = vld [vmem:[%s20908_s20 + $0x38] sm:$0xff]  ;;  %v15372_v40 = vadd.f32 %v15340_v30, %v15308_v10 }
 0xce4   : > { %15984 = vst [vmem:[%s20908_s20 + $0x10] sm:$0xff] %v15952_v18  ;;  %v15953_v21 = vadd.f32 %v15889_v11, %v15370_v44  ;;  %v15374_v41 = vadd.f32 %v15342_v39, %v15310_v27  ;;  %v15378_v26 = vadd.f32 %v15346_v50, %v15314_v51  ;;  %v15349_v39 = vld [vmem:[%s20908_s20 + $0x70] sm:$0xff] }
 0xce5   : > { %15982 = vst [vmem:[%s20908_s20] sm:$0xff] %v15950_v31  ;;  %v15951_v6 = vadd.f32 %v15887_v29, %v15368_v36  ;;  %v19080_v25 = vpop.f32.mrb[68].mxu0  ;;  %v15345_v31 = vld [vmem:[%s20908_s20 + $0x50] sm:$0xff] }
 0xce6   : > { %15985 = vst [vmem:[%s20908_s20 + $0x18] sm:$0xff] %v15953_v21  ;;  %v15784_v49 = vadd.f32 %v19080_v25, %v22953_v9  ;;  %v15775_v45 = vpop.f32.mrb[69].mxu0  ;;  %v15377_v10 = vadd.f32 %v15345_v31, %v15313_v1  ;;  %v15343_v21 = vld [vmem:[%s20908_s20 + $0x40] sm:$0xff]  ;;  %v15344_v1 = vld [vmem:[%s20908_s20 + $0x48] sm:$0xff] }
 0xce7   : > { %15983 = vst [vmem:[%s20908_s20 + $0x8] sm:$0xff] %v15951_v6  ;;  %v15776_v61 = vadd.f32 %v22953_v9, %v15775_v45  ;;  %v19081_v60 = vpop.f32.mrb[70].mxu0  ;;  %v15375_v45 = vadd.f32 %v15343_v21, %v15311_v15  ;;  %v15353_v21 = vld [vmem:[%s20908_s20 + $0x90] sm:$0xff] }
 0xce8   : > { %v15892_v56 = vmax.f32 %v15784_v49, 0.0  ;;  %v15787_v43 = vadd.f32 %v19081_v60, %v22953_v9  ;;  %v15778_v46 = vpop.f32.mrb[71].mxu0 }
 0xce9   : > { %v15890_v38 = vmax.f32 %v15776_v61, 0.0  ;;  %v15779_v62 = vadd.f32 %v22953_v9, %v15778_v46 }
 0xcea   : > { %v15956_v28 = vadd.f32 %v15892_v56, %v15373_v35  ;;  %v15893_v44 = vmax.f32 %v15787_v43, 0.0  ;;  %v15376_v56 = vadd.f32 %v15344_v1, %v15312_v24  ;;  %v15381_v24 = vadd.f32 %v15349_v39, %v15317_v22  ;;  %v15348_v22 = vld [vmem:[%s20908_s20 + $0x68] sm:$0xff] }
 0xceb   : > { %v15954_v18 = vadd.f32 %v15890_v38, %v15371_v59  ;;  %v15891_v7 = vmax.f32 %v15779_v62, 0.0  ;;  %v15347_v62 = vld [vmem:[%s20908_s20 + $0x60] sm:$0xff] }
 0xcec   : > { %15988 = vst [vmem:[%s20908_s20 + $0x30] sm:$0xff] %v15956_v28  ;;  %v15957_v17 = vadd.f32 %v15893_v44, %v15374_v41  ;;  %v15379_v44 = vadd.f32 %v15347_v62, %v15315_v16  ;;  %v15357_v62 = vld [vmem:[%s20908_s20 + $0xb0] sm:$0xff] }
 0xced   : > { %15986 = vst [vmem:[%s20908_s20 + $0x20] sm:$0xff] %v15954_v18  ;;  %v15955_v11 = vadd.f32 %v15891_v7, %v15372_v40  ;;  %v19084_v36 = vpop.f32.mrb[72].mxu0  ;;  %v15350_v40 = vld [vmem:[%s20908_s20 + $0x78] sm:$0xff] }
 0xcee   : > { %15989 = vst [vmem:[%s20908_s20 + $0x38] sm:$0xff] %v15957_v17  ;;  %v15800_v5 = vadd.f32 %v19084_v36, %v22953_v9  ;;  %v15791_v27 = vpop.f32.mrb[73].mxu0  ;;  %v23202_v17 = vmax.f32 %v22826_v54, 0.0 }
 0xcef   : > { %15987 = vst [vmem:[%s20908_s20 + $0x28] sm:$0xff] %v15955_v11  ;;  %v15792_v29 = vadd.f32 %v22953_v9, %v15791_v27  ;;  %v19085_v58 = vpop.f32.mrb[74].mxu0 }
 0xcf0   : > { %v15896_v6 = vmax.f32 %v15800_v5, 0.0  ;;  %v15803_v25 = vadd.f32 %v19085_v58, %v22953_v9  ;;  %v15794_v49 = vpop.f32.mrb[75].mxu0  ;;  %v15382_v4 = vadd.f32 %v15350_v40, %v23202_v17  ;;  %v23203_v5 = vmax.f32 %v22829_v34, 0.0 }
 0xcf1   : > { %v15894_v61 = vmax.f32 %v15792_v29, 0.0  ;;  %v15795_v60 = vadd.f32 %v22953_v9, %v15794_v49  ;;  %v23209_v17 = vmax.f32 %v22875_v14, 0.0 }
 0xcf2   : > { %v15960_v35 = vadd.f32 %v15896_v6, %v15377_v10  ;;  %v15897_v8 = vmax.f32 %v15803_v25, 0.0  ;;  %v15380_v27 = vadd.f32 %v15348_v22, %v23203_v5  ;;  %v23204_v25 = vmax.f32 %v22846_v52, 0.0  ;;  %v15358_v22 = vld [vmem:[%s20908_s20 + $0xb8] sm:$0xff] }
 0xcf3   : > { %v15958_v43 = vadd.f32 %v15894_v61, %v15375_v45  ;;  %v15895_v33 = vmax.f32 %v15795_v60, 0.0  ;;  %v15351_v45 = vld [vmem:[%s20908_s20 + $0x80] sm:$0xff]  ;;  %v23210_v5 = vmax.f32 %v22878_v55, 0.0 }
 0xcf4   : > { %15992 = vst [vmem:[%s20908_s20 + $0x50] sm:$0xff] %v15960_v35  ;;  %v15961_v15 = vadd.f32 %v15897_v8, %v15378_v26  ;;  %v15385_v49 = vadd.f32 %v15353_v21, %v23204_v25  ;;  %v23205_v26 = vmax.f32 %v22849_v20, 0.0  ;;  %v15354_v35 = vld [vmem:[%s20908_s20 + $0x98] sm:$0xff] }
 0xcf5   : > { %15990 = vst [vmem:[%s20908_s20 + $0x40] sm:$0xff] %v15958_v43  ;;  %v15959_v46 = vadd.f32 %v15895_v33, %v15376_v56  ;;  %v19088_v59 = vpop.f32.mrb[76].mxu0  ;;  %v23206_v43 = vmax.f32 %v22852_v42, 0.0  ;;  %v15352_v33 = vld [vmem:[%s20908_s20 + $0x88] sm:$0xff] }
 0xcf6   : > { %15993 = vst [vmem:[%s20908_s20 + $0x58] sm:$0xff] %v15961_v15  ;;  %v15816_v53 = vadd.f32 %v19088_v59, %v22953_v9  ;;  %v15807_v51 = vpop.f32.mrb[77].mxu0  ;;  %v15383_v1 = vadd.f32 %v15351_v45, %v23205_v26  ;;  %v23207_v59 = vmax.f32 %v22855_v13, 0.0 }
 0xcf7   : > { %15991 = vst [vmem:[%s20908_s20 + $0x48] sm:$0xff] %v15959_v46  ;;  %v15808_v38 = vadd.f32 %v22953_v9, %v15807_v51  ;;  %v19089_v37 = vpop.f32.mrb[78].mxu0  ;;  %v15386_v52 = vadd.f32 %v15354_v35, %v23206_v43 }
 0xcf8   : > { %v15900_v41 = vmax.f32 %v15816_v53, 0.0  ;;  %v15819_v30 = vadd.f32 %v19089_v37, %v22953_v9  ;;  %v15810_v28 = vpop.f32.mrb[79].mxu0  ;;  %v15384_v53 = vadd.f32 %v15352_v33, %v23207_v59  ;;  %v15360_v33 = vld [vmem:[%s20908_s20 + $0xc8] sm:$0xff]  ;;  %v23215_v59 = vmax.f32 %v22907_v19, 0.0 }
 0xcf9   : > { %v15898_v18 = vmax.f32 %v15808_v38, 0.0  ;;  %v15811_v7 = vadd.f32 %v22953_v9, %v15810_v28 }
 0xcfa   : > { %v15964_v11 = vadd.f32 %v15900_v41, %v15381_v24  ;;  %v15901_v36 = vmax.f32 %v15819_v30, 0.0  ;;  %v23208_v30 = vmax.f32 %v22872_v32, 0.0  ;;  %v15390_v32 = vadd.f32 %v15358_v22, %v23210_v5 }
 0xcfb   : > { %v15962_v31 = vadd.f32 %v15898_v18, %v15379_v44  ;;  %v15899_v3 = vmax.f32 %v15811_v7, 0.0  ;;  %v15355_v44 = vld [vmem:[%s20908_s20 + $0xa0] sm:$0xff] }
 0xcfc   : > { %15996 = vst [vmem:[%s20908_s20 + $0x70] sm:$0xff] %v15964_v11  ;;  %v15965_v16 = vadd.f32 %v15901_v36, %v15382_v4  ;;  %v15389_v28 = vadd.f32 %v15357_v62, %v23208_v30  ;;  %v15387_v4 = vadd.f32 %v15355_v44, %v23209_v17  ;;  %v23216_v62 = vmax.f32 %v22924_v47, 0.0 }
 0xcfd   : > { %15994 = vst [vmem:[%s20908_s20 + $0x60] sm:$0xff] %v15962_v31  ;;  %v15963_v29 = vadd.f32 %v15899_v3, %v15380_v27  ;;  %v19092_v58 = vpop.f32.mrb[80].mxu0  ;;  %v15356_v27 = vld [vmem:[%s20908_s20 + $0xa8] sm:$0xff]  ;;  %v23218_v47 = vmax.f32 %v22930_v48, 0.0 }
 0xcfe   : > { %15997 = vst [vmem:[%s20908_s20 + $0x78] sm:$0xff] %v15965_v16  ;;  %v15832_v54 = vadd.f32 %v19092_v58, %v22953_v9  ;;  %v15823_v10 = vpop.f32.mrb[81].mxu0  ;;  %v23211_v16 = vmax.f32 %v22881_v12, 0.0 }
 0xcff   : > { %15995 = vst [vmem:[%s20908_s20 + $0x68] sm:$0xff] %v15963_v29  ;;  %v15824_v6 = vadd.f32 %v22953_v9, %v15823_v10  ;;  %v19093_v34 = vpop.f32.mrb[82].mxu0 }
 0xd00   : > { %v15904_v50 = vmax.f32 %v15832_v54, 0.0  ;;  %v15835_v61 = vadd.f32 %v19093_v34, %v22953_v9  ;;  %v15826_v60 = vpop.f32.mrb[83].mxu0  ;;  %v15388_v29 = vadd.f32 %v15356_v27, %v23211_v16  ;;  %v15361_v34 = vld [vmem:[%s20908_s20 + $0xd0] sm:$0xff] }
 0xd01   : > { %v15902_v8 = vmax.f32 %v15824_v6, 0.0  ;;  %v15827_v56 = vadd.f32 %v22953_v9, %v15826_v60 }
 0xd02   : > { %v15968_v15 = vadd.f32 %v15904_v50, %v15385_v49  ;;  %v15905_v46 = vmax.f32 %v15835_v61, 0.0  ;;  %v23212_v49 = vmax.f32 %v22898_v57, 0.0  ;;  %v15359_v50 = vld [vmem:[%s20908_s20 + $0xc0] sm:$0xff] }
 0xd03   : > { %v15966_v51 = vadd.f32 %v15902_v8, %v15383_v1  ;;  %v15903_v20 = vmax.f32 %v15827_v56, 0.0  ;;  %v23213_v1 = vmax.f32 %v22901_v63, 0.0  ;;  %v15362_v8 = vld [vmem:[%s20908_s20 + $0xd8] sm:$0xff] }
 0xd04   : > { %16000 = vst [vmem:[%s20908_s20 + $0x90] sm:$0xff] %v15968_v15  ;;  %v15969_v39 = vadd.f32 %v15905_v46, %v15386_v52  ;;  %v15393_v45 = vadd.f32 %v15361_v34, %v23212_v49  ;;  %v23214_v52 = vmax.f32 %v22904_v23, 0.0 }
 0xd05   : > { %15998 = vst [vmem:[%s20908_s20 + $0x80] sm:$0xff] %v15966_v51  ;;  %v15967_v38 = vadd.f32 %v15903_v20, %v15384_v53  ;;  %v19096_v37 = vpop.f32.mrb[84].mxu0  ;;  %v15391_v35 = vadd.f32 %v15359_v50, %v23213_v1  ;;  %v15392_v53 = vadd.f32 %v15360_v33, %v23215_v59 }
 0xd06   : > { %16001 = vst [vmem:[%s20908_s20 + $0x98] sm:$0xff] %v15969_v39  ;;  %v15848_v42 = vadd.f32 %v19096_v37, %v22953_v9  ;;  %v15839_v24 = vpop.f32.mrb[85].mxu0  ;;  %v15394_v57 = vadd.f32 %v15362_v8, %v23214_v52 }
 0xd07   : > { %15999 = vst [vmem:[%s20908_s20 + $0x88] sm:$0xff] %v15967_v38  ;;  %v15840_v41 = vadd.f32 %v22953_v9, %v15839_v24  ;;  %v19097_v13 = vpop.f32.mrb[86].mxu0 }
 0xd08   : > { %v15908_v40 = vmax.f32 %v15848_v42, 0.0  ;;  %v15851_v18 = vadd.f32 %v19097_v13, %v22953_v9  ;;  %v15842_v7 = vpop.f32.mrb[87].mxu0  ;;  %v15365_v42 = vld [vmem:[%s20908_s20 + $0xf0] sm:$0xff]  ;;  %v15363_v13 = vld [vmem:[%s20908_s20 + $0xe0] sm:$0xff] }
 0xd09   : > { %v15906_v11 = vmax.f32 %v15840_v41, 0.0  ;;  %v15843_v36 = vadd.f32 %v22953_v9, %v15842_v7  ;;  %v15397_v41 = vadd.f32 %v15365_v42, %v23216_v62  ;;  %v15366_v7 = vld [vmem:[%s20908_s20 + $0xf8] sm:$0xff] }
 0xd0a   : > { %v15972_v31 = vadd.f32 %v15908_v40, %v15389_v28  ;;  %v15909_v3 = vmax.f32 %v15851_v18, 0.0  ;;  %v23217_v40 = vmax.f32 %v22927_v2, 0.0  ;;  %v15398_v22 = vadd.f32 %v15366_v7, %v23218_v47 }
 0xd0b   : > { %v15970_v58 = vadd.f32 %v15906_v11, %v15387_v4  ;;  %v15907_v14 = vmax.f32 %v15843_v36, 0.0  ;;  %v15364_v11 = vld [vmem:[%s20908_s20 + $0xe8] sm:$0xff]  ;;  %v23219_v2 = vmax.f32 %v22933_v0, 0.0 }
 0xd0c   : > { %16004 = vst [vmem:[%s20908_s20 + $0xb0] sm:$0xff] %v15972_v31  ;;  %v15973_v54 = vadd.f32 %v15909_v3, %v15390_v32  ;;  %v15395_v18 = vadd.f32 %v15363_v13, %v23217_v40 }
 0xd0d   : > { %16002 = vst [vmem:[%s20908_s20 + $0xa0] sm:$0xff] %v15970_v58  ;;  %v15971_v10 = vadd.f32 %v15907_v14, %v15388_v29  ;;  %v19100_v21 = vpop.f32.mrb[88].mxu0  ;;  %v15396_v32 = vadd.f32 %v15364_v11, %v23219_v2 }
 0xd0e   : > { %16005 = vst [vmem:[%s20908_s20 + $0xb8] sm:$0xff] %v15973_v54  ;;  %v15864_v55 = vadd.f32 %v19100_v21, %v22953_v9  ;;  %v15855_v6 = vpop.f32.mrb[89].mxu0 }
 0xd0f   : > { %16003 = vst [vmem:[%s20908_s20 + $0xa8] sm:$0xff] %v15971_v10  ;;  %v15856_v25 = vadd.f32 %v22953_v9, %v15855_v6  ;;  %v19101_v12 = vpop.f32.mrb[90].mxu0 }
 0xd10   : > { %v15912_v61 = vmax.f32 %v15864_v55, 0.0  ;;  %v15867_v60 = vadd.f32 %v19101_v12, %v22953_v9  ;;  %v15858_v26 = vpop.f32.mrb[91].mxu0 }
 0xd11   : > { %v15910_v56 = vmax.f32 %v15856_v25, 0.0  ;;  %v15859_v43 = vadd.f32 %v22953_v9, %v15858_v26 }
 0xd12   : > { %v15976_v15 = vadd.f32 %v15912_v61, %v15393_v45  ;;  %v15913_v46 = vmax.f32 %v15867_v60, 0.0 }
 0xd13   : > { %v15974_v51 = vadd.f32 %v15910_v56, %v15391_v35  ;;  %v15911_v63 = vmax.f32 %v15859_v43, 0.0 }
 0xd14   : > { %16008 = vst [vmem:[%s20908_s20 + $0xd0] sm:$0xff] %v15976_v15  ;;  %v15977_v20 = vadd.f32 %v15913_v46, %v15394_v57 }
 0xd15   : > { %16006 = vst [vmem:[%s20908_s20 + $0xc0] sm:$0xff] %v15974_v51  ;;  %v15975_v39 = vadd.f32 %v15911_v63, %v15392_v53  ;;  %v19104_v38 = vpop.f32.mrb[92].mxu0 }
 0xd16   : > { %16009 = vst [vmem:[%s20908_s20 + $0xd8] sm:$0xff] %v15977_v20  ;;  %v15880_v23 = vadd.f32 %v19104_v38, %v22953_v9  ;;  %v15871_v37 = vpop.f32.mrb[93].mxu0 }
 0xd17   : > { %16007 = vst [vmem:[%s20908_s20 + $0xc8] sm:$0xff] %v15975_v39  ;;  %v15872_v19 = vadd.f32 %v22953_v9, %v15871_v37  ;;  %v19105_v24 = vpop.f32.mrb[94].mxu0 }
 0xd18   : > { %v15916_v30 = vmax.f32 %v15880_v23, 0.0  ;;  %v15883_v28 = vadd.f32 %v19105_v24, %v22953_v9  ;;  %v15874_v44 = vpop.f32.mrb[95].mxu0 }
 0xd19   : > { %v15914_v17 = vmax.f32 %v15872_v19, 0.0  ;;  %v15875_v4 = vadd.f32 %v22953_v9, %v15874_v44 }
 0xd1a   : > { %v15980_v36 = vadd.f32 %v15916_v30, %v15397_v41  ;;  %v15917_v5 = vmax.f32 %v15883_v28, 0.0 }
 0xd1b   : > { %v15978_v27 = vadd.f32 %v15914_v17, %v15395_v18  ;;  %v15915_v31 = vmax.f32 %v15875_v4, 0.0 }
 0xd1c   : > { %16012 = vst [vmem:[%s20908_s20 + $0xf0] sm:$0xff] %v15980_v36  ;;  %v15981_v3 = vadd.f32 %v15917_v5, %v15398_v22 }
 0xd1d   : > { %16010 = vst [vmem:[%s20908_s20 + $0xe0] sm:$0xff] %v15978_v27  ;;  %v15979_v48 = vadd.f32 %v15915_v31, %v15396_v32 }
 0xd1e   : > { %16013 = vst [vmem:[%s20908_s20 + $0xf8] sm:$0xff] %v15981_v3 }
 0xd1f   : > { %16011 = vst [vmem:[%s20908_s20 + $0xe8] sm:$0xff] %v15979_v48 }
 0xd20   : > { %20631 = shalt.err (!%p20628_p0)
}
 0xd21   : > { %s20632_s25 = scalar_lea.hbm %s23117_s16, 4096  ;;  %s20636_s21 = scalar_lea.hbm %s23169_s3, 8192 }
 0xd22   : > { %p20633_p6 = scmp.ne.s32.totalorder %s23117_s16, %s20632_s25  ;;  %p20637_p5 = scmp.lt.u32.totalorder %s23117_s16, %s23169_s3 }
 0xd23   : > { %p20638_p9 = scmp.lt.u32.totalorder %s20636_s21, %s20632_s25  ;;  %p20640_p3 = scmp.lt.u32.totalorder %s20632_s25, %s23117_s16 }
 0xd24   : > { %p20634_p8 = pnand %p20633_p6, %p23220_p1 }
 0xd25   : > { %p20639_p12 = por %p20638_p9, %p20637_p5 }
 0xd26   : > { %p20635_p4 = pneg %p20634_p8 }
 0xd27   : > { %p20641_p11 = por %p20640_p3, %p20639_p12 }
 0xd29   : > { %p20642_p7 = pnand %p20641_p11, %p20635_p4 }
 0xd2b   : > { %20645 = shalt.err (!%p20642_p7)
}
 0xd2c   : > { %s20699_s30 = smov 128   ;;  %s20700_s20 = smov 8  }
 0xd2d   : > { %20156 = dma.vmem_to_hbm [thread:$0]  (%p23220_p1), %s23119_s17, 4096, %s23117_s16, %s16015_s27, %s20699_s30, %s20699_s30, %s20700_s20  }
 0xd2e PF: > { %s16043_s18 = sand.u32 1, %s20676_s12   ;;  %p23221_p10 = scmp.ne.s32.totalorder %s23192_s19, 0 }
 0xd2f   : > { %p23222_p13 = scmp.ge.s32.totalorder %s20688_s15, 2  ;;  %s16044_s24 = scalar_lea.sflag [#allocation5], %s16043_s18 }
 0xd31   : > { %p20170_p2 = pnand %p23222_p13, %p23221_p10 }
 0xd33   : > { %20671 = dma.done.wait (!%p20170_p2), %s16044_s24, 4096  }
 0xd34   : > { %20673 = vsyncadd (!%p20170_p2), %s16044_s24, 4294963200  ;;  %p17_p0 = scmp.ge.s32.totalorder %s20832_s4, 4   ;;  %s23223_s12 = smov %s20680_s13 }
 0xd35   : > { %s23224_s13 = smov %s20684_s14  ;;  %s23225_s14 = smov %s20848_s7 }
 0xd36   : > { %s23226_s15 = smov %s20832_s4  ;;  %19 = sbr.rel (!%p17_p0) target bundleno = 6 (0x6), region = 133 }
 0xd3d   :  { %16049 = vsyncpa [#allocation4], 1 }
 0xd3e   :  { %16051 = vsyncpa [#allocation4 + $0x1], 1 }
 0xd3f   :  { %16052 = vsyncpa [#allocation7], 1 }
 0xd40   :  { %16053 = vsyncpa [#allocation5], 1 }
 0xd41   :  { %16055 = vsyncpa [#allocation5 + $0x1], 1 }

</bundles_post_ra>
